<compile_context>
chip_gen: v6e
topology: v6e:2x2x1
jax: 0.10.0
libtpu: 0.0.40
codegen_flags: <defaults>
</compile_context>

<pallas_src>
import functools

import jax
import jax.numpy as jnp
from jax.experimental import pallas as pl
from jax.experimental.pallas import tpu as pltpu


def _round_up(v, m):
    return (v + m - 1) // m * m


def make_fused_factor(A, B, C, dtype=jnp.bfloat16):
    """kron(A, kron(B, C)); row-major flattening matches x.reshape(n, i*j*k).

    For a fixed parameter set compute this once (parameter-prep time) and pass
    it to mode_product via `fused_factor=` to avoid repeating the kron per call.
    """
    return jnp.kron(A, jnp.kron(B, C)).astype(dtype)


def mode_product_kernel(x_ref, m_ref, bias_ref, o_ref, *, compute_dtype):
    # x_ref:    (TN, IJK)    batch tile (lane-dense)
    # m_ref:    (IJK, TABC)  fused Kronecker factor block (VMEM resident)
    # bias_ref: (1, TABC)    broadcast over the batch tile, kept f32
    # o_ref:    (TN, TABC)
    x = x_ref[...]
    if x.dtype != compute_dtype:
        x = x.astype(compute_dtype)          # in-register cast; MXU runs bf16
    y = jnp.dot(x, m_ref[...], preferred_element_type=jnp.float32)
    y = y + bias_ref[...].astype(jnp.float32)
    o_ref[...] = jax.nn.sigmoid(y).astype(o_ref.dtype)


def _choose_batch_tile(n, block_n, sublane):
    # Prefer >= 2 grid steps (megacore / pipelining) and a nearly-full last tile.
    num_tiles = max(pl.cdiv(n, block_n),      # capacity bound
                    min(8, n // 256),         # more steps while tiles stay >= 256 rows
                    min(2, n // sublane),     # >= 2 steps whenever n allows it
                    1)
    tn = min(_round_up(pl.cdiv(n, num_tiles), sublane), block_n)
    return n if tn >= n else tn               # full-extent block for tiny batches


def _choose_abc_tile(abc, ijk, itemsize, budget_bytes):
    max_cols = max(budget_bytes // max(ijk * itemsize, 1), 1)
    if max_cols >= abc:
        return abc
    return max((max_cols // 128) * 128, 128)


_SINGLE_BUFFER_OK = True  # flipped off if this JAX build rejects pipeline_mode here


def mode_product(x, A, B, C, bias, *, fused_factor=None,
                 compute_dtype=jnp.bfloat16, out_dtype=None,
                 block_n=512, m_block_budget_bytes=8 << 20):
    """sigmoid(x x_i A x_j B x_k C + bias) as a single fused Pallas GEMM."""
    global _SINGLE_BUFFER_OK

    n, i, j, k = x.shape
    a, b, c = A.shape[1], B.shape[1], C.shape[1]
    ijk, abc = i * j * k, a * b * c
    out_dtype = x.dtype if out_dtype is None else out_dtype

    # Fused factor (reused across calls when passed in; in production also jit
    # this wrapper so the reshape / astype fuse into neighbouring ops).
    if fused_factor is None:
        M = make_fused_factor(A, B, C, compute_dtype)
    else:
        M = fused_factor.astype(compute_dtype)
    x2 = x.reshape(n, ijk)                       # no pad / no cast pass over x
    bias2 = bias.reshape(1, abc).astype(jnp.float32)

    sublane = 8 if jnp.dtype(x2.dtype).itemsize >= 4 else 16
    tn = _choose_batch_tile(n, block_n, sublane)
    grid_n = pl.cdiv(n, tn)

    t_abc = _choose_abc_tile(abc, ijk, jnp.dtype(M.dtype).itemsize,
                             m_block_budget_bytes)
    grid_abc = pl.cdiv(abc, t_abc)
    resident = grid_abc == 1                     # M / bias index_map is constant

    # TODO(synk): for very large ijk also tile the contraction (K) axis with an
    # f32 accumulator, or use a kron(B, C)-only fusion (cuts the FLOP blow-up
    # ~7x; relevant for the FLOP-starved v5e path).

    est_vmem = (2 * tn * ijk * jnp.dtype(x2.dtype).itemsize
                + 2 * tn * t_abc * jnp.dtype(out_dtype).itemsize
                + (1 if resident else 2) * ijk * t_abc * jnp.dtype(M.dtype).itemsize
                + 2 * t_abc * 4)
    vmem_limit = int(max(32 << 20, est_vmem + (4 << 20)))

    kernel = functools.partial(mode_product_kernel, compute_dtype=compute_dtype)

    def build(single_buffer_resident):
        res_kw = ({"pipeline_mode": pl.Buffered(1)}
                  if single_buffer_resident else {})
        return pl.pallas_call(
            kernel,
            out_shape=jax.ShapeDtypeStruct((n, abc), out_dtype),
            grid_spec=pltpu.PrefetchScalarGridSpec(
                num_scalar_prefetch=0,
                grid=(grid_n, grid_abc),
                in_specs=[
                    pl.BlockSpec((tn, ijk), lambda nb, ab: (nb, 0)),        # x tile
                    pl.BlockSpec((ijk, t_abc), lambda nb, ab: (0, ab), **res_kw),  # M
                    pl.BlockSpec((1, t_abc), lambda nb, ab: (0, ab), **res_kw),    # bias
                ],
                out_specs=pl.BlockSpec((tn, t_abc), lambda nb, ab: (nb, ab)),
            ),
            compiler_params=pltpu.CompilerParams(
                # Both axes are independent (no reduction axis): shardable
                # across v7x's two TensorCores.
                dimension_semantics=("parallel", "parallel"),
                vmem_limit_bytes=vmem_limit),
        )

    if resident and _SINGLE_BUFFER_OK:
        try:
            out2 = build(True)(x2, M, bias2)
        except Exception:
            # This JAX build does not accept pipeline_mode on a top-level
            # BlockSpec; fall back to default double-buffering.
            _SINGLE_BUFFER_OK = False
            out2 = build(False)(x2, M, bias2)
    else:
        out2 = build(False)(x2, M, bias2)

    return out2.reshape(n, a, b, c)


def mode_product_reference(x, A, B, C, bias):
    hp = jax.lax.Precision.HIGHEST
    e1 = jnp.einsum('nijk,ia->najk', x, A, precision=hp)
    e2 = jnp.einsum('najk,jb->nabk', e1, B, precision=hp)
    e3 = jnp.einsum('nabk,kc->nabc', e2, C, precision=hp)
    return jax.nn.sigmoid(e3 + bias)


if __name__ == "__main__":
    # Small shapes consistent with the module's __init__(i, j, k, a, b, c).
    n, i, j, k = 2, 8, 8, 16
    a, b, c = 8, 8, 16

    key = jax.random.PRNGKey(0)
    kx, kA, kB, kC, kb, kx2 = jax.random.split(key, 6)

    # Parameters ~ torch.rand (uniform [0,1)).  x is scaled down so pre-sigmoid
    # activations do not saturate and the numerical check is meaningful.
    x = jax.random.uniform(kx, (n, i, j, k), dtype=jnp.float32) * 0.02
    A = jax.random.uniform(kA, (i, a), dtype=jnp.float32)
    B = jax.random.uniform(kB, (j, b), dtype=jnp.float32)
    C = jax.random.uniform(kC, (k, c), dtype=jnp.float32)
    bias = jax.random.uniform(kb, (a, b, c), dtype=jnp.float32)

    ref = mode_product_reference(x, A, B, C, bias)

    # 1) f32 operand path: tight check against the f32 reference.
    out_f32 = jax.block_until_ready(
        mode_product(x, A, B, C, bias, compute_dtype=jnp.float32))
    assert out_f32.shape == (n, a, b, c), out_f32.shape
    err_f32 = float(jnp.max(jnp.abs(out_f32 - ref)))
    assert jnp.allclose(out_f32, ref, atol=1e-4, rtol=1e-4), \
        f"f32 path mismatch vs reference, max_err={err_f32}"

    # 2) Default bf16-operand / f32-accumulate path with a precomputed (cached)
    #    fused factor: looser tolerance vs the f32 reference.
    M_bf16 = make_fused_factor(A, B, C, jnp.bfloat16)   # hoisted param-prep step
    out_bf16 = jax.block_until_ready(
        mode_product(x, A, B, C, bias, fused_factor=M_bf16))
    err_bf16 = float(jnp.max(jnp.abs(out_bf16 - ref)))
    assert jnp.allclose(out_bf16, ref, atol=2e-2, rtol=2e-2), \
        f"bf16 path mismatch vs reference, max_err={err_bf16}"

    # 3) Ragged batch (n=20 -> two grid steps, masked last block, no host pad).
    xb = jax.random.uniform(kx2, (20, i, j, k), dtype=jnp.float32) * 0.02
    refb = mode_product_reference(xb, A, B, C, bias)
    outb = jax.block_until_ready(
        mode_product(xb, A, B, C, bias, fused_factor=M_bf16))
    err_b = float(jnp.max(jnp.abs(outb - refb)))
    assert outb.shape == (20, a, b, c), outb.shape
    assert jnp.allclose(outb, refb, atol=2e-2, rtol=2e-2), \
        f"ragged-batch mismatch vs reference, max_err={err_b}"

    print("KERNEL_OK")
</pallas_src>

<mosaic_0001>
module attributes {stable_mosaic.version = 11 : i64} {
  func.func @mode_product_kernel(%arg0: i32, %arg1: i32, %arg2: memref<2x1024xf32, #tpu.memory_space<vmem>>, %arg3: memref<1024x1024xf32, #tpu.memory_space<vmem>>, %arg4: memref<1x1024xf32, #tpu.memory_space<vmem>>, %arg5: memref<2x1024xf32, #tpu.memory_space<vmem>>) attributes {dimension_semantics = [#tpu.dimension_semantics<parallel>, #tpu.dimension_semantics<parallel>], iteration_bounds = array<i64: 1, 1>, scalar_prefetch = 0 : i64, scratch_operands = 0 : i64, tpu.core_type = #tpu.core_type<tc>, window_params = [{transform_indices = @transform_0, window_bounds = array<i64: 2, 1024>}, {pipeline_mode = #tpu.pipeline_mode<synchronous>, transform_indices = @transform_1, window_bounds = array<i64: 1024, 1024>}, {pipeline_mode = #tpu.pipeline_mode<synchronous>, transform_indices = @transform_2, window_bounds = array<i64: 1, 1024>}, {transform_indices = @transform_3, window_bounds = array<i64: 2, 1024>}]} {
    %c0 = arith.constant 0 : index
    %c0_0 = arith.constant 0 : index
    %0 = vector.load %arg2[%c0, %c0_0] : memref<2x1024xf32, #tpu.memory_space<vmem>>, vector<2x1024xf32>
    %c0_1 = arith.constant 0 : index
    %c0_2 = arith.constant 0 : index
    %1 = vector.load %arg3[%c0_1, %c0_2] : memref<1024x1024xf32, #tpu.memory_space<vmem>>, vector<1024x1024xf32>
    %cst = arith.constant dense<0.000000e+00> : vector<2x1024xf32>
    %2 = tpu.matmul %0, %1, %cst {dimension_numbers = #tpu.dot_dimension_numbers<[1], [0], [0], [1], [0, 0, 1, 1], [], []>} : vector<2x1024xf32>, vector<1024x1024xf32>, vector<2x1024xf32> -> vector<2x1024xf32>
    %c0_3 = arith.constant 0 : index
    %c0_4 = arith.constant 0 : index
    %3 = vector.load %arg4[%c0_3, %c0_4] : memref<1x1024xf32, #tpu.memory_space<vmem>>, vector<1x1024xf32>
    %4 = vector.broadcast %3 : vector<1x1024xf32> to vector<2x1024xf32>
    %5 = arith.addf %2, %4 : vector<2x1024xf32>
    %6 = arith.negf %5 : vector<2x1024xf32>
    %7 = math.exp %6 : vector<2x1024xf32>
    %cst_5 = arith.constant 1.000000e+00 : f32
    %8 = vector.broadcast %cst_5 : f32 to vector<2x1024xf32>
    %9 = arith.addf %8, %7 : vector<2x1024xf32>
    %10 = arith.divf %8, %9 : vector<2x1024xf32>
    %c0_6 = arith.constant 0 : index
    %c0_7 = arith.constant 0 : index
    %11 = vector.load %arg5[%c0_6, %c0_7] : memref<2x1024xf32, #tpu.memory_space<vmem>>, vector<2x1024xf32>
    tpu.vector_store %arg5[%c0_6, %c0_7], %10 {strides = array<i32>} : memref<2x1024xf32, #tpu.memory_space<vmem>>, vector<2x1024xf32>,
    return
  }
  func.func @transform_0(%arg0: i32, %arg1: i32) -> (i32, i32) {
    %c0_i32 = arith.constant 0 : i32
    %c0_i32_0 = arith.constant 0 : i32
    return %arg0, %c0_i32 : i32, i32
  }
  func.func @transform_1(%arg0: i32, %arg1: i32) -> (i32, i32) {
    %c0_i32 = arith.constant 0 : i32
    %c0_i32_0 = arith.constant 0 : i32
    return %c0_i32, %arg1 : i32, i32
  }
  func.func @transform_2(%arg0: i32, %arg1: i32) -> (i32, i32) {
    %c0_i32 = arith.constant 0 : i32
    %c0_i32_0 = arith.constant 0 : i32
    return %c0_i32, %arg1 : i32, i32
  }
  func.func @transform_3(%arg0: i32, %arg1: i32) -> (i32, i32) {
    %c0_i32 = arith.constant 0 : i32
    return %arg0, %arg1 : i32, i32
  }
}

module attributes {stable_mosaic.version = 11 : i64} {
  func.func @mode_product_kernel(%arg0: i32, %arg1: i32, %arg2: memref<2x1024xf32, #tpu.memory_space<vmem>>, %arg3: memref<1024x1024xf32, #tpu.memory_space<vmem>>, %arg4: memref<1x1024xf32, #tpu.memory_space<vmem>>, %arg5: memref<2x1024xf32, #tpu.memory_space<vmem>>) attributes {dimension_semantics = [#tpu.dimension_semantics<parallel>, #tpu.dimension_semantics<parallel>], iteration_bounds = array<i64: 1, 1>, scalar_prefetch = 0 : i64, scratch_operands = 0 : i64, tpu.core_type = #tpu.core_type<tc>, window_params = [{transform_indices = @transform_0, window_bounds = array<i64: 2, 1024>}, {transform_indices = @transform_1, window_bounds = array<i64: 1024, 1024>}, {transform_indices = @transform_2, window_bounds = array<i64: 1, 1024>}, {transform_indices = @transform_3, window_bounds = array<i64: 2, 1024>}]} {
    %c0 = arith.constant 0 : index
    %c0_0 = arith.constant 0 : index
    %0 = vector.load %arg2[%c0, %c0_0] : memref<2x1024xf32, #tpu.memory_space<vmem>>, vector<2x1024xf32>
    %c0_1 = arith.constant 0 : index
    %c0_2 = arith.constant 0 : index
    %1 = vector.load %arg3[%c0_1, %c0_2] : memref<1024x1024xf32, #tpu.memory_space<vmem>>, vector<1024x1024xf32>
    %cst = arith.constant dense<0.000000e+00> : vector<2x1024xf32>
    %2 = tpu.matmul %0, %1, %cst {dimension_numbers = #tpu.dot_dimension_numbers<[1], [0], [0], [1], [0, 0, 1, 1], [], []>} : vector<2x1024xf32>, vector<1024x1024xf32>, vector<2x1024xf32> -> vector<2x1024xf32>
    %c0_3 = arith.constant 0 : index
    %c0_4 = arith.constant 0 : index
    %3 = vector.load %arg4[%c0_3, %c0_4] : memref<1x1024xf32, #tpu.memory_space<vmem>>, vector<1x1024xf32>
    %4 = vector.broadcast %3 : vector<1x1024xf32> to vector<2x1024xf32>
    %5 = arith.addf %2, %4 : vector<2x1024xf32>
    %6 = arith.negf %5 : vector<2x1024xf32>
    %7 = math.exp %6 : vector<2x1024xf32>
    %cst_5 = arith.constant 1.000000e+00 : f32
    %8 = vector.broadcast %cst_5 : f32 to vector<2x1024xf32>
    %9 = arith.addf %8, %7 : vector<2x1024xf32>
    %10 = arith.divf %8, %9 : vector<2x1024xf32>
    %c0_6 = arith.constant 0 : index
    %c0_7 = arith.constant 0 : index
    %11 = vector.load %arg5[%c0_6, %c0_7] : memref<2x1024xf32, #tpu.memory_space<vmem>>, vector<2x1024xf32>
    tpu.vector_store %arg5[%c0_6, %c0_7], %10 {strides = array<i32>} : memref<2x1024xf32, #tpu.memory_space<vmem>>, vector<2x1024xf32>,
    return
  }
  func.func @transform_0(%arg0: i32, %arg1: i32) -> (i32, i32) {
    %c0_i32 = arith.constant 0 : i32
    %c0_i32_0 = arith.constant 0 : i32
    return %arg0, %c0_i32 : i32, i32
  }
  func.func @transform_1(%arg0: i32, %arg1: i32) -> (i32, i32) {
    %c0_i32 = arith.constant 0 : i32
    %c0_i32_0 = arith.constant 0 : i32
    return %c0_i32, %arg1 : i32, i32
  }
  func.func @transform_2(%arg0: i32, %arg1: i32) -> (i32, i32) {
    %c0_i32 = arith.constant 0 : i32
    %c0_i32_0 = arith.constant 0 : i32
    return %c0_i32, %arg1 : i32, i32
  }
  func.func @transform_3(%arg0: i32, %arg1: i32) -> (i32, i32) {
    %c0_i32 = arith.constant 0 : i32
    return %arg0, %arg1 : i32, i32
  }
}

</mosaic_0001>

<bundles_post_ra>
// kernel: tpu_custom_call.1
= control target key start
LH: loop header
LB: loop body
LE: loop exit
PB: predicated region body
PF: predicated region fallthrough
CT: control target
= control target key end

     0   :  { %8 = vsyncpa [#allocation3], 0  ;;  %s2671_s0 = inlined_call_operand.hbm [shape: f32[2,1024], index: 0, kind: input, shape index: {}]   ;;  %s2672_s1 = inlined_call_operand.hbm [shape: f32[1024,1024], index: 1, kind: input, shape index: {}]   ;;  %s2673_s2 = inlined_call_operand.hbm [shape: f32[1,1024], index: 2, kind: input, shape index: {}]   ;;  %s2674_s3 = inlined_call_operand.hbm [shape: f32[2,1024], index: 3, kind: output, shape index: {}]  }
   0x1   :  { %9 = vsyncpa [#allocation6], 0 }
   0x2   :  { %10 = vsyncpa [#allocation4], 0  ;;  %s2545_s12 = smov [#allocation5]  }
   0x3   :  { %s26_s13 = sshll.u32 %s2545_s12, 4  ;;  %s27_s13 = int_to_ptr.vmem [resolvable:$true] %s26_s13 }
   0x4   :  { %s2467_s14 = scalar_lea.vmem %s27_s13, 131072  ;;  %p2472_p1 = scmp.lt.s32.totalorder %s27_s13, %s27_s13 }
   0x5   :  { %p2468_p0 = scmp.ne.s32.totalorder %s27_s13, %s2467_s14  ;;  %p2473_p2 = scmp.lt.s32.totalorder %s2467_s14, %s2467_s14 }
   0x7   :  { %p2474_p3 = por %p2473_p2, %p2472_p1 }
   0x9   :  { %p2475_p4 = pnand %p2474_p3, %p2468_p0 }
   0xb   :  { %2478 = shalt.err (!%p2475_p4)
}
   0xc   :  { %s2546_s15 = smov 1024   ;;  %s2547_s16 = smov 64  }
   0xd   :  { %32 = dma.hbm_to_vmem [thread:$0]  %s2672_s1, 131072, %s27_s13, [#allocation6], %s2546_s15, %s2546_s15, %s2547_s16  }
   0xe   :  { %s2548_s19 = smov [#allocation2]   ;;  %s2549_s21 = smov [#allocation7]  }
   0xf   :  { %s17_s20 = sshll.u32 %s2548_s19, 4  ;;  %s39_s22 = sshll.u32 %s2549_s21, 4  ;;  %s18_s20 = int_to_ptr.vmem [resolvable:$true] %s17_s20  ;;  %s40_s22 = int_to_ptr.vmem [resolvable:$true] %s39_s22 }
  0x10   :  { %s2487_s23 = scalar_lea.vmem %s18_s20, 256  ;;  %p2492_p6 = scmp.lt.s32.totalorder %s18_s20, %s18_s20 }
  0x11   :  { %p2488_p5 = scmp.ne.s32.totalorder %s18_s20, %s2487_s23  ;;  %p2493_p7 = scmp.lt.s32.totalorder %s2487_s23, %s2487_s23 }
  0x13   :  { %p2494_p8 = por %p2493_p7, %p2492_p6 }
  0x15   :  { %p2495_p9 = pnand %p2494_p8, %p2488_p5 }
  0x17   :  { %2498 = shalt.err (!%p2495_p9)
}
  0x18   :  { %20 = dma.hbm_to_vmem [thread:$0]  %s2671_s0, 256, %s18_s20, [#allocation3]  }
  0x19   :  { %s2507_s26 = scalar_lea.vmem %s40_s22, 128  ;;  %p2512_p11 = scmp.lt.s32.totalorder %s40_s22, %s40_s22 }
  0x1a   :  { %p2508_p10 = scmp.ne.s32.totalorder %s40_s22, %s2507_s26  ;;  %p2513_p12 = scmp.lt.s32.totalorder %s2507_s26, %s2507_s26 }
  0x1c   :  { %p2514_p13 = por %p2513_p12, %p2512_p11 }
  0x1e   :  { %p2515_p0 = pnand %p2514_p13, %p2508_p10 }
  0x20   :  { %2518 = shalt.err (!%p2515_p0)
}
  0x21   :  { %42 = dma.hbm_to_vmem [thread:$0]  %s2673_s2, 128, %s40_s22, [#allocation6]  }
  0x22   :  { %2539 = dma.done.wait [#allocation3], 256  }
  0x23   :  { %2540 = vsyncadd [#allocation3], 4294967040 }
  0x24   :  { %2541 = dma.done.wait [#allocation6], 131200  }
  0x25   :  { %2542 = vsyncadd [#allocation6], 4294836096  ;;  %v175_v0 = vld [vmem:[#allocation5 + $0x3c8] sm:$0xff]  ;;  %v174_v2 = vld [vmem:[#allocation5 + $0x3c0] sm:$0xff]  ;;  %s2551_s0 = smov [#allocation8]  }
  0x26   :  { %v431_v1 = vld [vmem:[#allocation5 + $0xbc8] sm:$0xff]  ;;  %1164 = vmatprep.subr.mxu0 %v175_v0  ;;  %v430_v3 = vld [vmem:[#allocation5 + $0xbc0] sm:$0xff]  ;;  %s2400_s2 = sshll.u32 %s2551_s0, 4  ;;  %s2401_s2 = int_to_ptr.vmem [resolvable:$true] %s2400_s2 }
  0x27   :  { %1235 = vmatprep.subr.mxu1 %v431_v1  ;;  %v167_v4 = vld [vmem:[#allocation5 + $0x388] sm:$0xff]  ;;  %1165 = vmatpush1.msra.mxu0 %v174_v2  ;;  %v166_v6 = vld [vmem:[#allocation5 + $0x380] sm:$0xff]  ;;  %s2519_s28 = scalar_lea.vmem %s2401_s2, 256  ;;  %p2524_p2 = scmp.lt.s32.totalorder %s2401_s2, %s2401_s2 }
  0x28   :  { %v423_v5 = vld [vmem:[#allocation5 + $0xb88] sm:$0xff]  ;;  %1236 = vmatpush1.msra.mxu1 %v430_v3  ;;  %v422_v7 = vld [vmem:[#allocation5 + $0xb80] sm:$0xff]  ;;  %1166 = vmatprep.subr.mxu0 %v167_v4  ;;  %p2520_p1 = scmp.ne.s32.totalorder %s2401_s2, %s2519_s28  ;;  %p2525_p3 = scmp.lt.s32.totalorder %s2519_s28, %s2519_s28 }
  0x29   :  { %v159_v8 = vld [vmem:[#allocation5 + $0x348] sm:$0xff]  ;;  %1237 = vmatprep.subr.mxu1 %v423_v5  ;;  %v158_v10 = vld [vmem:[#allocation5 + $0x340] sm:$0xff]  ;;  %1167 = vmatpush1.msra.mxu0 %v166_v6 }
  0x2a   :  { %v415_v9 = vld [vmem:[#allocation5 + $0xb48] sm:$0xff]  ;;  %v414_v11 = vld [vmem:[#allocation5 + $0xb40] sm:$0xff]  ;;  %1238 = vmatpush1.msra.mxu1 %v422_v7  ;;  %1168 = vmatprep.subr.mxu0 %v159_v8  ;;  %p2526_p4 = por %p2525_p3, %p2524_p2 }
  0x2b   :  { %v151_v12 = vld [vmem:[#allocation5 + $0x308] sm:$0xff]  ;;  %1239 = vmatprep.subr.mxu1 %v415_v9  ;;  %v150_v14 = vld [vmem:[#allocation5 + $0x300] sm:$0xff]  ;;  %1169 = vmatpush1.msra.mxu0 %v158_v10 }
  0x2c   :  { %v407_v13 = vld [vmem:[#allocation5 + $0xb08] sm:$0xff]  ;;  %v406_v15 = vld [vmem:[#allocation5 + $0xb00] sm:$0xff]  ;;  %1240 = vmatpush1.msra.mxu1 %v414_v11  ;;  %1170 = vmatprep.subr.mxu0 %v151_v12  ;;  %p2527_p5 = pnand %p2526_p4, %p2520_p1 }
  0x2d   :  { %v143_v16 = vld [vmem:[#allocation5 + $0x2c8] sm:$0xff]  ;;  %1241 = vmatprep.subr.mxu1 %v407_v13  ;;  %v142_v18 = vld [vmem:[#allocation5 + $0x2c0] sm:$0xff]  ;;  %1171 = vmatpush1.msra.mxu0 %v150_v14 }
  0x2e   :  { %v399_v17 = vld [vmem:[#allocation5 + $0xac8] sm:$0xff]  ;;  %v398_v19 = vld [vmem:[#allocation5 + $0xac0] sm:$0xff]  ;;  %1242 = vmatpush1.msra.mxu1 %v406_v15  ;;  %1172 = vmatprep.subr.mxu0 %v143_v16 }
  0x2f   :  { %v135_v20 = vld [vmem:[#allocation5 + $0x288] sm:$0xff]  ;;  %1243 = vmatprep.subr.mxu1 %v399_v17  ;;  %v134_v22 = vld [vmem:[#allocation5 + $0x280] sm:$0xff]  ;;  %1173 = vmatpush1.msra.mxu0 %v142_v18 }
  0x30   :  { %v391_v21 = vld [vmem:[#allocation5 + $0xa88] sm:$0xff]  ;;  %v390_v23 = vld [vmem:[#allocation5 + $0xa80] sm:$0xff]  ;;  %1244 = vmatpush1.msra.mxu1 %v398_v19  ;;  %1174 = vmatprep.subr.mxu0 %v135_v20 }
  0x31   :  { %v127_v24 = vld [vmem:[#allocation5 + $0x248] sm:$0xff]  ;;  %1245 = vmatprep.subr.mxu1 %v391_v21  ;;  %v126_v26 = vld [vmem:[#allocation5 + $0x240] sm:$0xff]  ;;  %1175 = vmatpush1.msra.mxu0 %v134_v22 }
  0x32   :  { %v383_v25 = vld [vmem:[#allocation5 + $0xa48] sm:$0xff]  ;;  %v382_v27 = vld [vmem:[#allocation5 + $0xa40] sm:$0xff]  ;;  %1246 = vmatpush1.msra.mxu1 %v390_v23  ;;  %1176 = vmatprep.subr.mxu0 %v127_v24 }
  0x33   :  { %v119_v28 = vld [vmem:[#allocation5 + $0x208] sm:$0xff]  ;;  %1247 = vmatprep.subr.mxu1 %v383_v25  ;;  %v118_v30 = vld [vmem:[#allocation5 + $0x200] sm:$0xff]  ;;  %1177 = vmatpush1.msra.mxu0 %v126_v26 }
  0x34   :  { %v375_v29 = vld [vmem:[#allocation5 + $0xa08] sm:$0xff]  ;;  %v374_v31 = vld [vmem:[#allocation5 + $0xa00] sm:$0xff]  ;;  %1248 = vmatpush1.msra.mxu1 %v382_v27  ;;  %1178 = vmatprep.subr.mxu0 %v119_v28 }
  0x35   :  { %v111_v32 = vld [vmem:[#allocation5 + $0x1c8] sm:$0xff]  ;;  %1249 = vmatprep.subr.mxu1 %v375_v29  ;;  %v110_v34 = vld [vmem:[#allocation5 + $0x1c0] sm:$0xff]  ;;  %1179 = vmatpush1.msra.mxu0 %v118_v30  ;;  %v1080_v30 = vlaneseq }
  0x36   :  { %v367_v33 = vld [vmem:[#allocation5 + $0x9c8] sm:$0xff]  ;;  %v366_v35 = vld [vmem:[#allocation5 + $0x9c0] sm:$0xff]  ;;  %1250 = vmatpush1.msra.mxu1 %v374_v31  ;;  %1180 = vmatprep.subr.mxu0 %v111_v32  ;;  %v2550_v31 = vmov 1983009808  }
  0x37   :  { %v103_v36 = vld [vmem:[#allocation5 + $0x188] sm:$0xff]  ;;  %1251 = vmatprep.subr.mxu1 %v367_v33  ;;  %v102_v38 = vld [vmem:[#allocation5 + $0x180] sm:$0xff]  ;;  %1181 = vmatpush1.msra.mxu0 %v110_v34  ;;  %v1124_v32 = vunpack.c.l.s4 %v2550_v31 }
  0x38   :  { %v359_v37 = vld [vmem:[#allocation5 + $0x988] sm:$0xff]  ;;  %v358_v39 = vld [vmem:[#allocation5 + $0x980] sm:$0xff]  ;;  %1252 = vmatpush1.msra.mxu1 %v366_v35  ;;  %1182 = vmatprep.subr.mxu0 %v103_v36 }
  0x39   :  { %v95_v40 = vld [vmem:[#allocation5 + $0x148] sm:$0xff]  ;;  %1253 = vmatprep.subr.mxu1 %v359_v37  ;;  %v94_v42 = vld [vmem:[#allocation5 + $0x140] sm:$0xff]  ;;  %1183 = vmatpush1.msra.mxu0 %v102_v38 }
  0x3a   :  { %v351_v41 = vld [vmem:[#allocation5 + $0x948] sm:$0xff]  ;;  %v350_v43 = vld [vmem:[#allocation5 + $0x940] sm:$0xff]  ;;  %1254 = vmatpush1.msra.mxu1 %v358_v39  ;;  %1184 = vmatprep.subr.mxu0 %v95_v40 }
  0x3b   :  { %v87_v44 = vld [vmem:[#allocation5 + $0x108] sm:$0xff]  ;;  %1255 = vmatprep.subr.mxu1 %v351_v41  ;;  %v86_v46 = vld [vmem:[#allocation5 + $0x100] sm:$0xff]  ;;  %1185 = vmatpush1.msra.mxu0 %v94_v42  ;;  %v2581_v41 = vshrl.u32 %v1080_v30, 7  ;;  %v1125_v42 = vunpack.c.0.s8 %v1124_v32 }
  0x3c   :  { %v343_v45 = vld [vmem:[#allocation5 + $0x908] sm:$0xff]  ;;  %v342_v47 = vld [vmem:[#allocation5 + $0x900] sm:$0xff]  ;;  %1256 = vmatpush1.msra.mxu1 %v350_v43  ;;  %1186 = vmatprep.subr.mxu0 %v87_v44 }
  0x3d   :  { %v79_v48 = vld [vmem:[#allocation5 + $0xc8] sm:$0xff]  ;;  %1257 = vmatprep.subr.mxu1 %v343_v45  ;;  %v78_v50 = vld [vmem:[#allocation5 + $0xc0] sm:$0xff]  ;;  %1187 = vmatpush1.msra.mxu0 %v86_v46 }
  0x3e   :  { %v335_v49 = vld [vmem:[#allocation5 + $0x8c8] sm:$0xff]  ;;  %v334_v51 = vld [vmem:[#allocation5 + $0x8c0] sm:$0xff]  ;;  %1258 = vmatpush1.msra.mxu1 %v342_v47  ;;  %1188 = vmatprep.subr.mxu0 %v79_v48 }
  0x3f   :  { %v71_v52 = vld [vmem:[#allocation5 + $0x88] sm:$0xff]  ;;  %1259 = vmatprep.subr.mxu1 %v335_v49  ;;  %v70_v54 = vld [vmem:[#allocation5 + $0x80] sm:$0xff]  ;;  %1189 = vmatpush1.msra.mxu0 %v78_v50  ;;  %v52_v49 = vld [vmem:[#allocation2] sm:$0xff] }
  0x40   :  { %v327_v53 = vld [vmem:[#allocation5 + $0x888] sm:$0xff]  ;;  %v326_v55 = vld [vmem:[#allocation5 + $0x880] sm:$0xff]  ;;  %1260 = vmatpush1.msra.mxu1 %v334_v51  ;;  %1190 = vmatprep.subr.mxu0 %v71_v52  ;;  %v2584_v52 = vsub.s32 %v1125_v42, %v2581_v41 }
  0x41   :  { %v63_v56 = vld [vmem:[#allocation5 + $0x48] sm:$0xff]  ;;  %1261 = vmatprep.subr.mxu1 %v327_v53  ;;  %v62_v58 = vld [vmem:[#allocation5 + $0x40] sm:$0xff]  ;;  %1191 = vmatpush1.msra.mxu0 %v70_v54 }
  0x42   :  { %v319_v57 = vld [vmem:[#allocation5 + $0x848] sm:$0xff]  ;;  %v318_v59 = vld [vmem:[#allocation5 + $0x840] sm:$0xff]  ;;  %1262 = vmatpush1.msra.mxu1 %v326_v55  ;;  %1192 = vmatprep.subr.mxu0 %v63_v56 }
  0x43   :  { %v55_v60 = vld [vmem:[#allocation5 + $0x8] sm:$0xff]  ;;  %1263 = vmatprep.subr.mxu1 %v319_v57  ;;  %v54_v62 = vld [vmem:[#allocation5] sm:$0xff]  ;;  %1193 = vmatpush1.msra.mxu0 %v62_v58  ;;  %v1122_v57 = vcombine.high %v52_v49, %v52_v49 }
  0x44   :  { %v311_v61 = vld [vmem:[#allocation5 + $0x808] sm:$0xff]  ;;  %v310_v63 = vld [vmem:[#allocation5 + $0x800] sm:$0xff]  ;;  %1264 = vmatpush1.msra.mxu1 %v318_v59  ;;  %1194 = vmatprep.subr.mxu0 %v55_v60 }
  0x45   :  { %v303_v0 = vld [vmem:[#allocation5 + $0x7c8] sm:$0xff]  ;;  %1265 = vmatprep.subr.mxu1 %v311_v61  ;;  %v302_v2 = vld [vmem:[#allocation5 + $0x7c0] sm:$0xff]  ;;  %1195 = vmatpush1.msra.mxu0 %v54_v62  ;;  %v2587_v62 = vrot.slane %v52_v49, %v2584_v52 }
  0x46   :  { %v559_v1 = vld [vmem:[#allocation5 + $0xfc8] sm:$0xff]  ;;  %v558_v3 = vld [vmem:[#allocation5 + $0xfc0] sm:$0xff]  ;;  %1266 = vmatpush1.msra.mxu1 %v310_v63  ;;  %1196 = vmatprep.subr.mxu0 %v303_v0 }
  0x47   :  { %v295_v4 = vld [vmem:[#allocation5 + $0x788] sm:$0xff]  ;;  %1267 = vmatprep.subr.mxu1 %v559_v1  ;;  %v294_v6 = vld [vmem:[#allocation5 + $0x780] sm:$0xff]  ;;  %1197 = vmatpush2.msra.mxu0 %v302_v2 }
  0x48   :  { %v551_v5 = vld [vmem:[#allocation5 + $0xf88] sm:$0xff]  ;;  %v550_v7 = vld [vmem:[#allocation5 + $0xf80] sm:$0xff]  ;;  %1268 = vmatpush2.msra.mxu1 %v558_v3  ;;  %1198 = vmatprep.subr.mxu0 %v295_v4  ;;  %v2590_v3 = vrot.slane %v1122_v57, %v2584_v52 }
  0x49   :  { %v287_v8 = vld [vmem:[#allocation5 + $0x748] sm:$0xff]  ;;  %1269 = vmatprep.subr.mxu1 %v551_v5  ;;  %v286_v10 = vld [vmem:[#allocation5 + $0x740] sm:$0xff]  ;;  %1199 = vmatpush2.msra.mxu0 %v294_v6 }
  0x4a   :  { %v543_v9 = vld [vmem:[#allocation5 + $0xf48] sm:$0xff]  ;;  %v542_v11 = vld [vmem:[#allocation5 + $0xf40] sm:$0xff]  ;;  %1270 = vmatpush2.msra.mxu1 %v550_v7  ;;  %1200 = vmatprep.subr.mxu0 %v287_v8  ;;  %v2594_v8 = vcombine.high %v2587_v62, %v2587_v62 }
  0x4b   :  { %v279_v12 = vld [vmem:[#allocation5 + $0x708] sm:$0xff]  ;;  %1271 = vmatprep.subr.mxu1 %v543_v9  ;;  %v278_v14 = vld [vmem:[#allocation5 + $0x700] sm:$0xff]  ;;  %1201 = vmatpush2.msra.mxu0 %v286_v10 }
  0x4c   :  { %v535_v13 = vld [vmem:[#allocation5 + $0xf08] sm:$0xff]  ;;  %v534_v15 = vld [vmem:[#allocation5 + $0xf00] sm:$0xff]  ;;  %1272 = vmatpush2.msra.mxu1 %v542_v11  ;;  %1202 = vmatprep.subr.mxu0 %v279_v12  ;;  %v2598_v11 = vcombine.high %v2590_v3, %v2590_v3 }
  0x4d   :  { %v271_v16 = vld [vmem:[#allocation5 + $0x6c8] sm:$0xff]  ;;  %1273 = vmatprep.subr.mxu1 %v535_v13  ;;  %v270_v18 = vld [vmem:[#allocation5 + $0x6c0] sm:$0xff]  ;;  %1203 = vmatpush2.msra.mxu0 %v278_v14 }
  0x4e   :  { %v527_v17 = vld [vmem:[#allocation5 + $0xec8] sm:$0xff]  ;;  %v526_v19 = vld [vmem:[#allocation5 + $0xec0] sm:$0xff]  ;;  %1274 = vmatpush2.msra.mxu1 %v534_v15  ;;  %1204 = vmatprep.subr.mxu0 %v271_v16 }
  0x4f   :  { %v263_v20 = vld [vmem:[#allocation5 + $0x688] sm:$0xff]  ;;  %1275 = vmatprep.subr.mxu1 %v527_v17  ;;  %v262_v22 = vld [vmem:[#allocation5 + $0x680] sm:$0xff]  ;;  %1205 = vmatpush2.msra.mxu0 %v270_v18 }
  0x50   :  { %v519_v21 = vld [vmem:[#allocation5 + $0xe88] sm:$0xff]  ;;  %v518_v23 = vld [vmem:[#allocation5 + $0xe80] sm:$0xff]  ;;  %1276 = vmatpush2.msra.mxu1 %v526_v19  ;;  %1206 = vmatprep.subr.mxu0 %v263_v20 }
  0x51   :  { %v255_v24 = vld [vmem:[#allocation5 + $0x648] sm:$0xff]  ;;  %1277 = vmatprep.subr.mxu1 %v519_v21  ;;  %v254_v26 = vld [vmem:[#allocation5 + $0x640] sm:$0xff]  ;;  %1207 = vmatpush2.msra.mxu0 %v262_v22 }
  0x52   :  { %v511_v25 = vld [vmem:[#allocation5 + $0xe48] sm:$0xff]  ;;  %v510_v27 = vld [vmem:[#allocation5 + $0xe40] sm:$0xff]  ;;  %1278 = vmatpush2.msra.mxu1 %v518_v23  ;;  %1208 = vmatprep.subr.mxu0 %v255_v24 }
  0x53   :  { %v247_v28 = vld [vmem:[#allocation5 + $0x608] sm:$0xff]  ;;  %1279 = vmatprep.subr.mxu1 %v511_v25  ;;  %v246_v33 = vld [vmem:[#allocation5 + $0x600] sm:$0xff]  ;;  %1209 = vmatpush2.msra.mxu0 %v254_v26 }
  0x54   :  { %v503_v29 = vld [vmem:[#allocation5 + $0xe08] sm:$0xff]  ;;  %v502_v34 = vld [vmem:[#allocation5 + $0xe00] sm:$0xff]  ;;  %1280 = vmatpush2.msra.mxu1 %v510_v27  ;;  %1210 = vmatprep.subr.mxu0 %v247_v28 }
  0x55   :  { %v239_v35 = vld [vmem:[#allocation5 + $0x5c8] sm:$0xff]  ;;  %1281 = vmatprep.subr.mxu1 %v503_v29  ;;  %v238_v37 = vld [vmem:[#allocation5 + $0x5c0] sm:$0xff]  ;;  %1211 = vmatpush2.msra.mxu0 %v246_v33 }
  0x56   :  { %v495_v36 = vld [vmem:[#allocation5 + $0xdc8] sm:$0xff]  ;;  %v494_v38 = vld [vmem:[#allocation5 + $0xdc0] sm:$0xff]  ;;  %1282 = vmatpush2.msra.mxu1 %v502_v34  ;;  %1212 = vmatprep.subr.mxu0 %v239_v35 }
  0x57   :  { %v231_v39 = vld [vmem:[#allocation5 + $0x588] sm:$0xff]  ;;  %1283 = vmatprep.subr.mxu1 %v495_v36  ;;  %v230_v43 = vld [vmem:[#allocation5 + $0x580] sm:$0xff]  ;;  %1213 = vmatpush2.msra.mxu0 %v238_v37 }
  0x58   :  { %v487_v40 = vld [vmem:[#allocation5 + $0xd88] sm:$0xff]  ;;  %v486_v44 = vld [vmem:[#allocation5 + $0xd80] sm:$0xff]  ;;  %1284 = vmatpush2.msra.mxu1 %v494_v38  ;;  %1214 = vmatprep.subr.mxu0 %v231_v39 }
  0x59   :  { %v223_v45 = vld [vmem:[#allocation5 + $0x548] sm:$0xff]  ;;  %1285 = vmatprep.subr.mxu1 %v487_v40  ;;  %v222_v47 = vld [vmem:[#allocation5 + $0x540] sm:$0xff]  ;;  %1215 = vmatpush2.msra.mxu0 %v230_v43 }
  0x5a   :  { %v479_v46 = vld [vmem:[#allocation5 + $0xd48] sm:$0xff]  ;;  %v478_v48 = vld [vmem:[#allocation5 + $0xd40] sm:$0xff]  ;;  %1286 = vmatpush2.msra.mxu1 %v486_v44  ;;  %1216 = vmatprep.subr.mxu0 %v223_v45 }
  0x5b   :  { %v215_v50 = vld [vmem:[#allocation5 + $0x508] sm:$0xff]  ;;  %1287 = vmatprep.subr.mxu1 %v479_v46  ;;  %v214_v53 = vld [vmem:[#allocation5 + $0x500] sm:$0xff]  ;;  %1217 = vmatpush2.msra.mxu0 %v222_v47 }
  0x5c   :  { %v471_v51 = vld [vmem:[#allocation5 + $0xd08] sm:$0xff]  ;;  %v470_v54 = vld [vmem:[#allocation5 + $0xd00] sm:$0xff]  ;;  %1288 = vmatpush2.msra.mxu1 %v478_v48  ;;  %1218 = vmatprep.subr.mxu0 %v215_v50 }
  0x5d   :  { %v207_v55 = vld [vmem:[#allocation5 + $0x4c8] sm:$0xff]  ;;  %1289 = vmatprep.subr.mxu1 %v471_v51  ;;  %v206_v58 = vld [vmem:[#allocation5 + $0x4c0] sm:$0xff]  ;;  %1219 = vmatpush2.msra.mxu0 %v214_v53 }
  0x5e   :  { %v463_v56 = vld [vmem:[#allocation5 + $0xcc8] sm:$0xff]  ;;  %v462_v59 = vld [vmem:[#allocation5 + $0xcc0] sm:$0xff]  ;;  %1290 = vmatpush2.msra.mxu1 %v470_v54  ;;  %1220 = vmatprep.subr.mxu0 %v207_v55 }
  0x5f   :  { %v199_v60 = vld [vmem:[#allocation5 + $0x488] sm:$0xff]  ;;  %1291 = vmatprep.subr.mxu1 %v463_v56  ;;  %v198_v63 = vld [vmem:[#allocation5 + $0x480] sm:$0xff]  ;;  %1221 = vmatpush2.msra.mxu0 %v206_v58 }
  0x60   :  { %v455_v61 = vld [vmem:[#allocation5 + $0xc88] sm:$0xff]  ;;  %v454_v0 = vld [vmem:[#allocation5 + $0xc80] sm:$0xff]  ;;  %1292 = vmatpush2.msra.mxu1 %v462_v59  ;;  %1222 = vmatprep.subr.mxu0 %v199_v60 }
  0x61   :  { %v191_v1 = vld [vmem:[#allocation5 + $0x448] sm:$0xff]  ;;  %1293 = vmatprep.subr.mxu1 %v455_v61  ;;  %v190_v4 = vld [vmem:[#allocation5 + $0x440] sm:$0xff]  ;;  %1223 = vmatpush2.msra.mxu0 %v198_v63 }
  0x62   :  { %v447_v2 = vld [vmem:[#allocation5 + $0xc48] sm:$0xff]  ;;  %v446_v5 = vld [vmem:[#allocation5 + $0xc40] sm:$0xff]  ;;  %1294 = vmatpush2.msra.mxu1 %v454_v0  ;;  %1224 = vmatprep.subr.mxu0 %v191_v1 }
  0x63   :  { %v183_v6 = vld [vmem:[#allocation5 + $0x408] sm:$0xff]  ;;  %1295 = vmatprep.subr.mxu1 %v447_v2  ;;  %v182_v9 = vld [vmem:[#allocation5 + $0x400] sm:$0xff]  ;;  %1225 = vmatpush2.msra.mxu0 %v190_v4 }
  0x64   :  { %v439_v7 = vld [vmem:[#allocation5 + $0xc08] sm:$0xff]  ;;  %1296 = vmatpush2.msra.mxu1 %v446_v5  ;;  %v438_v10 = vld [vmem:[#allocation5 + $0xc00] sm:$0xff]  ;;  %1226 = vmatprep.subr.mxu0 %v183_v6 }
  0x65   :  { %1297 = vmatprep.subr.mxu1 %v439_v7  ;;  %v687_v12 = vld [vmem:[#allocation5 + $0x13c8] sm:$0xff]  ;;  %1227 = vmatpush2.msra.mxu0 %v182_v9  ;;  %v686_v14 = vld [vmem:[#allocation5 + $0x13c0] sm:$0xff] }
  0x66   :  { %1228 = vmatprep.mubr.f32.mxu0 %v2594_v8  ;;  %v943_v13 = vld [vmem:[#allocation5 + $0x1bc8] sm:$0xff]  ;;  %1298 = vmatpush2.msra.mxu1 %v438_v10  ;;  %v942_v15 = vld [vmem:[#allocation5 + $0x1bc0] sm:$0xff] }
  0x67   :  { %1229 = vmatmul.mubr.f32.vlgmr.msra.gmra.mxu0 %v2587_v62  ;;  %1299 = vmatprep.mubr.f32.mxu1 %v2598_v11  ;;  %v679_v16 = vld [vmem:[#allocation5 + $0x1388] sm:$0xff]  ;;  %v678_v18 = vld [vmem:[#allocation5 + $0x1380] sm:$0xff] }
  0x68   :  { %1306 = vmatprep.subr.mxu0 %v687_v12  ;;  %v935_v17 = vld [vmem:[#allocation5 + $0x1b88] sm:$0xff]  ;;  %1377 = vmatprep.subr.mxu1 %v943_v13  ;;  %v934_v19 = vld [vmem:[#allocation5 + $0x1b80] sm:$0xff] }
  0x69   :  { %1300 = vmatmul.mubr.f32.vlgmr.msra.gmra.mxu1 %v2590_v3  ;;  %1307 = vmatpush1.msra.mxu0 %v686_v14  ;;  %v671_v20 = vld [vmem:[#allocation5 + $0x1348] sm:$0xff]  ;;  %v670_v22 = vld [vmem:[#allocation5 + $0x1340] sm:$0xff] }
  0x6a   :  { %1378 = vmatpush1.msra.mxu1 %v942_v15  ;;  %v927_v21 = vld [vmem:[#allocation5 + $0x1b48] sm:$0xff]  ;;  %1308 = vmatprep.subr.mxu0 %v679_v16  ;;  %v926_v23 = vld [vmem:[#allocation5 + $0x1b40] sm:$0xff] }
  0x6b   :  { %1379 = vmatprep.subr.mxu1 %v935_v17  ;;  %1309 = vmatpush1.msra.mxu0 %v678_v18  ;;  %v663_v24 = vld [vmem:[#allocation5 + $0x1308] sm:$0xff]  ;;  %v662_v26 = vld [vmem:[#allocation5 + $0x1300] sm:$0xff] }
  0x6c   :  { %1380 = vmatpush1.msra.mxu1 %v934_v19  ;;  %v919_v25 = vld [vmem:[#allocation5 + $0x1b08] sm:$0xff]  ;;  %1310 = vmatprep.subr.mxu0 %v671_v20  ;;  %v918_v27 = vld [vmem:[#allocation5 + $0x1b00] sm:$0xff] }
  0x6d   :  { %1381 = vmatprep.subr.mxu1 %v927_v21  ;;  %1311 = vmatpush1.msra.mxu0 %v670_v22  ;;  %v655_v28 = vld [vmem:[#allocation5 + $0x12c8] sm:$0xff]  ;;  %v654_v30 = vld [vmem:[#allocation5 + $0x12c0] sm:$0xff] }
  0x6e   :  { %1382 = vmatpush1.msra.mxu1 %v926_v23  ;;  %v911_v29 = vld [vmem:[#allocation5 + $0x1ac8] sm:$0xff]  ;;  %1312 = vmatprep.subr.mxu0 %v663_v24  ;;  %v910_v31 = vld [vmem:[#allocation5 + $0x1ac0] sm:$0xff] }
  0x6f   :  { %1383 = vmatprep.subr.mxu1 %v919_v25  ;;  %1313 = vmatpush1.msra.mxu0 %v662_v26  ;;  %v647_v32 = vld [vmem:[#allocation5 + $0x1288] sm:$0xff]  ;;  %v646_v34 = vld [vmem:[#allocation5 + $0x1280] sm:$0xff] }
  0x70   :  { %1384 = vmatpush1.msra.mxu1 %v918_v27  ;;  %v903_v33 = vld [vmem:[#allocation5 + $0x1a88] sm:$0xff]  ;;  %1314 = vmatprep.subr.mxu0 %v655_v28  ;;  %v902_v35 = vld [vmem:[#allocation5 + $0x1a80] sm:$0xff] }
  0x71   :  { %1385 = vmatprep.subr.mxu1 %v911_v29  ;;  %1315 = vmatpush1.msra.mxu0 %v654_v30  ;;  %v639_v36 = vld [vmem:[#allocation5 + $0x1248] sm:$0xff]  ;;  %v638_v38 = vld [vmem:[#allocation5 + $0x1240] sm:$0xff] }
  0x72   :  { %1386 = vmatpush1.msra.mxu1 %v910_v31  ;;  %v895_v37 = vld [vmem:[#allocation5 + $0x1a48] sm:$0xff]  ;;  %1316 = vmatprep.subr.mxu0 %v647_v32  ;;  %v894_v39 = vld [vmem:[#allocation5 + $0x1a40] sm:$0xff] }
  0x73   :  { %1387 = vmatprep.subr.mxu1 %v903_v33  ;;  %1317 = vmatpush1.msra.mxu0 %v646_v34  ;;  %v631_v40 = vld [vmem:[#allocation5 + $0x1208] sm:$0xff]  ;;  %v630_v43 = vld [vmem:[#allocation5 + $0x1200] sm:$0xff] }
  0x74   :  { %1388 = vmatpush1.msra.mxu1 %v902_v35  ;;  %v887_v42 = vld [vmem:[#allocation5 + $0x1a08] sm:$0xff]  ;;  %1318 = vmatprep.subr.mxu0 %v639_v36  ;;  %v886_v44 = vld [vmem:[#allocation5 + $0x1a00] sm:$0xff] }
  0x75   :  { %1389 = vmatprep.subr.mxu1 %v895_v37  ;;  %1319 = vmatpush1.msra.mxu0 %v638_v38  ;;  %v623_v45 = vld [vmem:[#allocation5 + $0x11c8] sm:$0xff]  ;;  %v622_v47 = vld [vmem:[#allocation5 + $0x11c0] sm:$0xff] }
  0x76   :  { %1390 = vmatpush1.msra.mxu1 %v894_v39  ;;  %v879_v46 = vld [vmem:[#allocation5 + $0x19c8] sm:$0xff]  ;;  %1320 = vmatprep.subr.mxu0 %v631_v40  ;;  %v878_v48 = vld [vmem:[#allocation5 + $0x19c0] sm:$0xff] }
  0x77   :  { %1391 = vmatprep.subr.mxu1 %v887_v42  ;;  %1321 = vmatpush1.msra.mxu0 %v630_v43  ;;  %v615_v49 = vld [vmem:[#allocation5 + $0x1188] sm:$0xff]  ;;  %v614_v51 = vld [vmem:[#allocation5 + $0x1180] sm:$0xff] }
  0x78   :  { %1392 = vmatpush1.msra.mxu1 %v886_v44  ;;  %v871_v50 = vld [vmem:[#allocation5 + $0x1988] sm:$0xff]  ;;  %1322 = vmatprep.subr.mxu0 %v623_v45  ;;  %v870_v53 = vld [vmem:[#allocation5 + $0x1980] sm:$0xff] }
  0x79   :  { %1393 = vmatprep.subr.mxu1 %v879_v46  ;;  %1323 = vmatpush1.msra.mxu0 %v622_v47  ;;  %v607_v54 = vld [vmem:[#allocation5 + $0x1148] sm:$0xff]  ;;  %v606_v56 = vld [vmem:[#allocation5 + $0x1140] sm:$0xff] }
  0x7a   :  { %1394 = vmatpush1.msra.mxu1 %v878_v48  ;;  %v863_v55 = vld [vmem:[#allocation5 + $0x1948] sm:$0xff]  ;;  %1324 = vmatprep.subr.mxu0 %v615_v49  ;;  %v862_v57 = vld [vmem:[#allocation5 + $0x1940] sm:$0xff] }
  0x7b   :  { %1395 = vmatprep.subr.mxu1 %v871_v50  ;;  %1325 = vmatpush1.msra.mxu0 %v614_v51  ;;  %v599_v58 = vld [vmem:[#allocation5 + $0x1108] sm:$0xff]  ;;  %v598_v60 = vld [vmem:[#allocation5 + $0x1100] sm:$0xff] }
  0x7c   :  { %1396 = vmatpush1.msra.mxu1 %v870_v53  ;;  %v855_v59 = vld [vmem:[#allocation5 + $0x1908] sm:$0xff]  ;;  %1326 = vmatprep.subr.mxu0 %v607_v54  ;;  %v854_v61 = vld [vmem:[#allocation5 + $0x1900] sm:$0xff] }
  0x7d   :  { %1397 = vmatprep.subr.mxu1 %v863_v55  ;;  %1327 = vmatpush1.msra.mxu0 %v606_v56  ;;  %v591_v63 = vld [vmem:[#allocation5 + $0x10c8] sm:$0xff]  ;;  %v590_v1 = vld [vmem:[#allocation5 + $0x10c0] sm:$0xff] }
  0x7e   :  { %1398 = vmatpush1.msra.mxu1 %v862_v57  ;;  %v847_v0 = vld [vmem:[#allocation5 + $0x18c8] sm:$0xff]  ;;  %1328 = vmatprep.subr.mxu0 %v599_v58  ;;  %v846_v2 = vld [vmem:[#allocation5 + $0x18c0] sm:$0xff] }
  0x7f   :  { %1399 = vmatprep.subr.mxu1 %v855_v59  ;;  %1329 = vmatpush1.msra.mxu0 %v598_v60  ;;  %v583_v4 = vld [vmem:[#allocation5 + $0x1088] sm:$0xff]  ;;  %v582_v6 = vld [vmem:[#allocation5 + $0x1080] sm:$0xff] }
  0x80   :  { %1400 = vmatpush1.msra.mxu1 %v854_v61  ;;  %v839_v5 = vld [vmem:[#allocation5 + $0x1888] sm:$0xff]  ;;  %1330 = vmatprep.subr.mxu0 %v591_v63  ;;  %v838_v7 = vld [vmem:[#allocation5 + $0x1880] sm:$0xff] }
  0x81   :  { %1401 = vmatprep.subr.mxu1 %v847_v0  ;;  %1331 = vmatpush1.msra.mxu0 %v590_v1  ;;  %v575_v9 = vld [vmem:[#allocation5 + $0x1048] sm:$0xff]  ;;  %v574_v12 = vld [vmem:[#allocation5 + $0x1040] sm:$0xff]  ;;  %v53_v1 = vld [vmem:[#allocation2 + $0x8] sm:$0xff] }
  0x82   :  { %1402 = vmatpush1.msra.mxu1 %v846_v2  ;;  %v831_v10 = vld [vmem:[#allocation5 + $0x1848] sm:$0xff]  ;;  %1332 = vmatprep.subr.mxu0 %v583_v4  ;;  %v830_v13 = vld [vmem:[#allocation5 + $0x1840] sm:$0xff] }
  0x83   :  { %1403 = vmatprep.subr.mxu1 %v839_v5  ;;  %1333 = vmatpush1.msra.mxu0 %v582_v6  ;;  %v567_v14 = vld [vmem:[#allocation5 + $0x1008] sm:$0xff]  ;;  %v566_v16 = vld [vmem:[#allocation5 + $0x1000] sm:$0xff] }
  0x84   :  { %1404 = vmatpush1.msra.mxu1 %v838_v7  ;;  %v823_v15 = vld [vmem:[#allocation5 + $0x1808] sm:$0xff]  ;;  %1334 = vmatprep.subr.mxu0 %v575_v9  ;;  %v822_v17 = vld [vmem:[#allocation5 + $0x1800] sm:$0xff] }
  0x85   :  { %1405 = vmatprep.subr.mxu1 %v831_v10  ;;  %1335 = vmatpush1.msra.mxu0 %v574_v12  ;;  %v815_v18 = vld [vmem:[#allocation5 + $0x17c8] sm:$0xff]  ;;  %v814_v20 = vld [vmem:[#allocation5 + $0x17c0] sm:$0xff]  ;;  %v1139_v10 = vcombine.high %v53_v1, %v53_v1 }
  0x86   :  { %1406 = vmatpush1.msra.mxu1 %v830_v13  ;;  %v1071_v19 = vld [vmem:[#allocation5 + $0x1fc8] sm:$0xff]  ;;  %1336 = vmatprep.subr.mxu0 %v567_v14  ;;  %v1070_v21 = vld [vmem:[#allocation5 + $0x1fc0] sm:$0xff] }
  0x87   :  { %1407 = vmatprep.subr.mxu1 %v823_v15  ;;  %1337 = vmatpush1.msra.mxu0 %v566_v16  ;;  %v807_v22 = vld [vmem:[#allocation5 + $0x1788] sm:$0xff]  ;;  %v806_v24 = vld [vmem:[#allocation5 + $0x1780] sm:$0xff]  ;;  %v2605_v16 = vrot.slane %v53_v1, %v2584_v52  ;;  %v113_v1 = vld [vmem:[#allocation5 + $0x1d8] sm:$0xff] }
  0x88   :  { %1408 = vmatpush1.msra.mxu1 %v822_v17  ;;  %v1063_v23 = vld [vmem:[#allocation5 + $0x1f88] sm:$0xff]  ;;  %1338 = vmatprep.subr.mxu0 %v815_v18  ;;  %v1062_v25 = vld [vmem:[#allocation5 + $0x1f80] sm:$0xff] }
  0x89   :  { %1409 = vmatprep.subr.mxu1 %v1071_v19  ;;  %1339 = vmatpush2.msra.mxu0 %v814_v20  ;;  %v799_v26 = vld [vmem:[#allocation5 + $0x1748] sm:$0xff]  ;;  %v798_v28 = vld [vmem:[#allocation5 + $0x1740] sm:$0xff] }
  0x8a   :  { %1410 = vmatpush2.msra.mxu1 %v1070_v21  ;;  %v1055_v27 = vld [vmem:[#allocation5 + $0x1f48] sm:$0xff]  ;;  %1340 = vmatprep.subr.mxu0 %v807_v22  ;;  %v1054_v29 = vld [vmem:[#allocation5 + $0x1f40] sm:$0xff]  ;;  %v2608_v21 = vrot.slane %v1139_v10, %v2584_v52  ;;  %v360_v10 = vld [vmem:[#allocation5 + $0x990] sm:$0xff] }
  0x8b   :  { %1411 = vmatprep.subr.mxu1 %v1063_v23  ;;  %1341 = vmatpush2.msra.mxu0 %v806_v24  ;;  %v791_v30 = vld [vmem:[#allocation5 + $0x1708] sm:$0xff]  ;;  %v790_v32 = vld [vmem:[#allocation5 + $0x1700] sm:$0xff] }
  0x8c   :  { %1412 = vmatpush2.msra.mxu1 %v1062_v25  ;;  %v1047_v31 = vld [vmem:[#allocation5 + $0x1f08] sm:$0xff]  ;;  %1342 = vmatprep.subr.mxu0 %v799_v26  ;;  %v1046_v33 = vld [vmem:[#allocation5 + $0x1f00] sm:$0xff]  ;;  %v2612_v26 = vcombine.high %v2605_v16, %v2605_v16 }
  0x8d   :  { %1413 = vmatprep.subr.mxu1 %v1055_v27  ;;  %1343 = vmatpush2.msra.mxu0 %v798_v28  ;;  %v783_v34 = vld [vmem:[#allocation5 + $0x16c8] sm:$0xff]  ;;  %v782_v36 = vld [vmem:[#allocation5 + $0x16c0] sm:$0xff] }
  0x8e   :  { %1414 = vmatpush2.msra.mxu1 %v1054_v29  ;;  %v1039_v35 = vld [vmem:[#allocation5 + $0x1ec8] sm:$0xff]  ;;  %1344 = vmatprep.subr.mxu0 %v791_v30  ;;  %v1038_v37 = vld [vmem:[#allocation5 + $0x1ec0] sm:$0xff]  ;;  %v2616_v29 = vcombine.high %v2608_v21, %v2608_v21  ;;  %v177_v30 = vld [vmem:[#allocation5 + $0x3d8] sm:$0xff] }
  0x8f   :  { %1415 = vmatprep.subr.mxu1 %v1047_v31  ;;  %1345 = vmatpush2.msra.mxu0 %v790_v32  ;;  %v775_v38 = vld [vmem:[#allocation5 + $0x1688] sm:$0xff]  ;;  %v774_v40 = vld [vmem:[#allocation5 + $0x1680] sm:$0xff]  ;;  %v433_v31 = vld [vmem:[#allocation5 + $0xbd8] sm:$0xff] }
  0x90   :  { %1416 = vmatpush2.msra.mxu1 %v1046_v33  ;;  %v1031_v39 = vld [vmem:[#allocation5 + $0x1e88] sm:$0xff]  ;;  %1346 = vmatprep.subr.mxu0 %v783_v34  ;;  %v1030_v42 = vld [vmem:[#allocation5 + $0x1e80] sm:$0xff]  ;;  %v176_v32 = vld [vmem:[#allocation5 + $0x3d0] sm:$0xff] }
  0x91   :  { %1417 = vmatprep.subr.mxu1 %v1039_v35  ;;  %1347 = vmatpush2.msra.mxu0 %v782_v36  ;;  %v767_v43 = vld [vmem:[#allocation5 + $0x1648] sm:$0xff]  ;;  %v766_v45 = vld [vmem:[#allocation5 + $0x1640] sm:$0xff]  ;;  %v432_v33 = vld [vmem:[#allocation5 + $0xbd0] sm:$0xff] }
  0x92   :  { %1418 = vmatpush2.msra.mxu1 %v1038_v37  ;;  %v1023_v44 = vld [vmem:[#allocation5 + $0x1e48] sm:$0xff]  ;;  %1348 = vmatprep.subr.mxu0 %v775_v38  ;;  %v1022_v46 = vld [vmem:[#allocation5 + $0x1e40] sm:$0xff]  ;;  %v169_v34 = vld [vmem:[#allocation5 + $0x398] sm:$0xff] }
  0x93   :  { %1419 = vmatprep.subr.mxu1 %v1031_v39  ;;  %1349 = vmatpush2.msra.mxu0 %v774_v40  ;;  %v759_v47 = vld [vmem:[#allocation5 + $0x1608] sm:$0xff]  ;;  %v758_v49 = vld [vmem:[#allocation5 + $0x1600] sm:$0xff]  ;;  %v425_v35 = vld [vmem:[#allocation5 + $0xb98] sm:$0xff] }
  0x94   :  { %1420 = vmatpush2.msra.mxu1 %v1030_v42  ;;  %v1015_v48 = vld [vmem:[#allocation5 + $0x1e08] sm:$0xff]  ;;  %1350 = vmatprep.subr.mxu0 %v767_v43  ;;  %v1014_v50 = vld [vmem:[#allocation5 + $0x1e00] sm:$0xff]  ;;  %v168_v36 = vld [vmem:[#allocation5 + $0x390] sm:$0xff] }
  0x95   :  { %1421 = vmatprep.subr.mxu1 %v1023_v44  ;;  %1351 = vmatpush2.msra.mxu0 %v766_v45  ;;  %v751_v51 = vld [vmem:[#allocation5 + $0x15c8] sm:$0xff]  ;;  %v750_v54 = vld [vmem:[#allocation5 + $0x15c0] sm:$0xff]  ;;  %v424_v37 = vld [vmem:[#allocation5 + $0xb90] sm:$0xff] }
  0x96   :  { %1422 = vmatpush2.msra.mxu1 %v1022_v46  ;;  %v1007_v53 = vld [vmem:[#allocation5 + $0x1dc8] sm:$0xff]  ;;  %1352 = vmatprep.subr.mxu0 %v759_v47  ;;  %v1006_v55 = vld [vmem:[#allocation5 + $0x1dc0] sm:$0xff]  ;;  %v161_v38 = vld [vmem:[#allocation5 + $0x358] sm:$0xff] }
  0x97   :  { %1423 = vmatprep.subr.mxu1 %v1015_v48  ;;  %1353 = vmatpush2.msra.mxu0 %v758_v49  ;;  %v743_v56 = vld [vmem:[#allocation5 + $0x1588] sm:$0xff]  ;;  %v742_v58 = vld [vmem:[#allocation5 + $0x1580] sm:$0xff]  ;;  %v417_v39 = vld [vmem:[#allocation5 + $0xb58] sm:$0xff] }
  0x98   :  { %1424 = vmatpush2.msra.mxu1 %v1014_v50  ;;  %v999_v57 = vld [vmem:[#allocation5 + $0x1d88] sm:$0xff]  ;;  %1354 = vmatprep.subr.mxu0 %v751_v51  ;;  %v998_v59 = vld [vmem:[#allocation5 + $0x1d80] sm:$0xff]  ;;  %v160_v40 = vld [vmem:[#allocation5 + $0x350] sm:$0xff] }
  0x99   :  { %1425 = vmatprep.subr.mxu1 %v1007_v53  ;;  %1355 = vmatpush2.msra.mxu0 %v750_v54  ;;  %v735_v60 = vld [vmem:[#allocation5 + $0x1548] sm:$0xff]  ;;  %v734_v63 = vld [vmem:[#allocation5 + $0x1540] sm:$0xff]  ;;  %v416_v42 = vld [vmem:[#allocation5 + $0xb50] sm:$0xff] }
  0x9a   :  { %1426 = vmatpush2.msra.mxu1 %v1006_v55  ;;  %v991_v61 = vld [vmem:[#allocation5 + $0x1d48] sm:$0xff]  ;;  %1356 = vmatprep.subr.mxu0 %v743_v56  ;;  %v990_v0 = vld [vmem:[#allocation5 + $0x1d40] sm:$0xff]  ;;  %v153_v43 = vld [vmem:[#allocation5 + $0x318] sm:$0xff] }
  0x9b   :  { %1427 = vmatprep.subr.mxu1 %v999_v57  ;;  %1357 = vmatpush2.msra.mxu0 %v742_v58  ;;  %v727_v2 = vld [vmem:[#allocation5 + $0x1508] sm:$0xff]  ;;  %v726_v5 = vld [vmem:[#allocation5 + $0x1500] sm:$0xff]  ;;  %v409_v44 = vld [vmem:[#allocation5 + $0xb18] sm:$0xff] }
  0x9c   :  { %1428 = vmatpush2.msra.mxu1 %v998_v59  ;;  %v983_v4 = vld [vmem:[#allocation5 + $0x1d08] sm:$0xff]  ;;  %1358 = vmatprep.subr.mxu0 %v735_v60  ;;  %v982_v6 = vld [vmem:[#allocation5 + $0x1d00] sm:$0xff]  ;;  %v152_v45 = vld [vmem:[#allocation5 + $0x310] sm:$0xff] }
  0x9d   :  { %1429 = vmatprep.subr.mxu1 %v991_v61  ;;  %1359 = vmatpush2.msra.mxu0 %v734_v63  ;;  %v719_v7 = vld [vmem:[#allocation5 + $0x14c8] sm:$0xff]  ;;  %v718_v12 = vld [vmem:[#allocation5 + $0x14c0] sm:$0xff]  ;;  %v408_v46 = vld [vmem:[#allocation5 + $0xb10] sm:$0xff] }
  0x9e   :  { %1430 = vmatpush2.msra.mxu1 %v990_v0  ;;  %v975_v9 = vld [vmem:[#allocation5 + $0x1cc8] sm:$0xff]  ;;  %1360 = vmatprep.subr.mxu0 %v727_v2  ;;  %v974_v13 = vld [vmem:[#allocation5 + $0x1cc0] sm:$0xff]  ;;  %v145_v47 = vld [vmem:[#allocation5 + $0x2d8] sm:$0xff] }
  0x9f   :  { %1431 = vmatprep.subr.mxu1 %v983_v4  ;;  %1361 = vmatpush2.msra.mxu0 %v726_v5  ;;  %v711_v14 = vld [vmem:[#allocation5 + $0x1488] sm:$0xff]  ;;  %v710_v17 = vld [vmem:[#allocation5 + $0x1480] sm:$0xff]  ;;  %v401_v48 = vld [vmem:[#allocation5 + $0xad8] sm:$0xff] }
  0xa0   :  { %1432 = vmatpush2.msra.mxu1 %v982_v6  ;;  %v967_v15 = vld [vmem:[#allocation5 + $0x1c88] sm:$0xff]  ;;  %1362 = vmatprep.subr.mxu0 %v719_v7  ;;  %v966_v18 = vld [vmem:[#allocation5 + $0x1c80] sm:$0xff]  ;;  %v144_v49 = vld [vmem:[#allocation5 + $0x2d0] sm:$0xff] }
  0xa1   :  { %1433 = vmatprep.subr.mxu1 %v975_v9  ;;  %1363 = vmatpush2.msra.mxu0 %v718_v12  ;;  %v703_v19 = vld [vmem:[#allocation5 + $0x1448] sm:$0xff]  ;;  %v702_v22 = vld [vmem:[#allocation5 + $0x1440] sm:$0xff]  ;;  %v400_v50 = vld [vmem:[#allocation5 + $0xad0] sm:$0xff] }
  0xa2   :  { %1434 = vmatpush2.msra.mxu1 %v974_v13  ;;  %v959_v20 = vld [vmem:[#allocation5 + $0x1c48] sm:$0xff]  ;;  %1364 = vmatprep.subr.mxu0 %v711_v14  ;;  %v958_v23 = vld [vmem:[#allocation5 + $0x1c40] sm:$0xff]  ;;  %v137_v51 = vld [vmem:[#allocation5 + $0x298] sm:$0xff] }
  0xa3   :  { %1435 = vmatprep.subr.mxu1 %v967_v15  ;;  %1365 = vmatpush2.msra.mxu0 %v710_v17  ;;  %v695_v24 = vld [vmem:[#allocation5 + $0x1408] sm:$0xff]  ;;  %v694_v27 = vld [vmem:[#allocation5 + $0x1400] sm:$0xff]  ;;  %v393_v53 = vld [vmem:[#allocation5 + $0xa98] sm:$0xff] }
  0xa4   :  { %1436 = vmatpush2.msra.mxu1 %v966_v18  ;;  %v951_v25 = vld [vmem:[#allocation5 + $0x1c08] sm:$0xff]  ;;  %1366 = vmatprep.subr.mxu0 %v703_v19  ;;  %v950_v28 = vld [vmem:[#allocation5 + $0x1c00] sm:$0xff]  ;;  %v136_v54 = vld [vmem:[#allocation5 + $0x290] sm:$0xff] }
  0xa5   :  { %1437 = vmatprep.subr.mxu1 %v959_v20  ;;  %1367 = vmatpush2.msra.mxu0 %v702_v22  ;;  %v392_v55 = vld [vmem:[#allocation5 + $0xa90] sm:$0xff]  ;;  %v129_v56 = vld [vmem:[#allocation5 + $0x258] sm:$0xff] }
  0xa6   :  { %1438 = vmatpush2.msra.mxu1 %v958_v23  ;;  %1368 = vmatprep.subr.mxu0 %v695_v24  ;;  %v385_v57 = vld [vmem:[#allocation5 + $0xa58] sm:$0xff]  ;;  %v128_v58 = vld [vmem:[#allocation5 + $0x250] sm:$0xff] }
  0xa7   :  { %1439 = vmatprep.subr.mxu1 %v951_v25  ;;  %1369 = vmatpush2.msra.mxu0 %v694_v27  ;;  %v384_v59 = vld [vmem:[#allocation5 + $0xa50] sm:$0xff]  ;;  %v121_v60 = vld [vmem:[#allocation5 + $0x218] sm:$0xff] }
  0xa8   :  { %1370 = vmatprep.mubr.f32.mxu0 %v2612_v26  ;;  %1440 = vmatpush2.msra.mxu1 %v950_v28  ;;  %v377_v61 = vld [vmem:[#allocation5 + $0xa18] sm:$0xff]  ;;  %v120_v63 = vld [vmem:[#allocation5 + $0x210] sm:$0xff] }
  0xa9   :  { %1371 = vmatmul.mubr.f32.vlgmr.msra.gmra.mxu0 %v2605_v16  ;;  %1441 = vmatprep.mubr.f32.mxu1 %v2616_v29  ;;  %v376_v0 = vld [vmem:[#allocation5 + $0xa10] sm:$0xff]  ;;  %v369_v2 = vld [vmem:[#allocation5 + $0x9d8] sm:$0xff] }
  0xaa   :  { %1448 = vmatprep.subr.mxu0 %v177_v30  ;;  %1519 = vmatprep.subr.mxu1 %v433_v31  ;;  %v112_v4 = vld [vmem:[#allocation5 + $0x1d0] sm:$0xff]  ;;  %v105_v6 = vld [vmem:[#allocation5 + $0x198] sm:$0xff] }
  0xab   :  { %1442 = vmatmul.mubr.f32.vlgmr.msra.gmra.mxu1 %v2608_v21  ;;  %1449 = vmatpush1.msra.mxu0 %v176_v32  ;;  %v368_v5 = vld [vmem:[#allocation5 + $0x9d0] sm:$0xff]  ;;  %v361_v7 = vld [vmem:[#allocation5 + $0x998] sm:$0xff] }
  0xac   :  { %1520 = vmatpush1.msra.mxu1 %v432_v33  ;;  %1450 = vmatprep.subr.mxu0 %v169_v34  ;;  %v104_v9 = vld [vmem:[#allocation5 + $0x190] sm:$0xff]  ;;  %v97_v12 = vld [vmem:[#allocation5 + $0x158] sm:$0xff] }
  0xad   :  { %1521 = vmatprep.subr.mxu1 %v425_v35  ;;  %1451 = vmatpush1.msra.mxu0 %v168_v36  ;;  %v353_v13 = vld [vmem:[#allocation5 + $0x958] sm:$0xff]  ;;  %v96_v14 = vld [vmem:[#allocation5 + $0x150] sm:$0xff] }
  0xae   :  { %1522 = vmatpush1.msra.mxu1 %v424_v37  ;;  %1452 = vmatprep.subr.mxu0 %v161_v38  ;;  %v352_v15 = vld [vmem:[#allocation5 + $0x950] sm:$0xff]  ;;  %v89_v17 = vld [vmem:[#allocation5 + $0x118] sm:$0xff] }
  0xaf   :  { %1523 = vmatprep.subr.mxu1 %v417_v39  ;;  %1453 = vmatpush1.msra.mxu0 %v160_v40  ;;  %v345_v18 = vld [vmem:[#allocation5 + $0x918] sm:$0xff]  ;;  %v88_v19 = vld [vmem:[#allocation5 + $0x110] sm:$0xff] }
  0xb0   :  { %1524 = vmatpush1.msra.mxu1 %v416_v42  ;;  %1454 = vmatprep.subr.mxu0 %v153_v43  ;;  %v344_v20 = vld [vmem:[#allocation5 + $0x910] sm:$0xff]  ;;  %v81_v22 = vld [vmem:[#allocation5 + $0xd8] sm:$0xff] }
  0xb1   :  { %1525 = vmatprep.subr.mxu1 %v409_v44  ;;  %1455 = vmatpush1.msra.mxu0 %v152_v45  ;;  %v337_v23 = vld [vmem:[#allocation5 + $0x8d8] sm:$0xff]  ;;  %v80_v24 = vld [vmem:[#allocation5 + $0xd0] sm:$0xff] }
  0xb2   :  { %1526 = vmatpush1.msra.mxu1 %v408_v46  ;;  %1456 = vmatprep.subr.mxu0 %v145_v47  ;;  %v336_v25 = vld [vmem:[#allocation5 + $0x8d0] sm:$0xff]  ;;  %v73_v27 = vld [vmem:[#allocation5 + $0x98] sm:$0xff] }
  0xb3   :  { %1527 = vmatprep.subr.mxu1 %v401_v48  ;;  %1457 = vmatpush1.msra.mxu0 %v144_v49  ;;  %v329_v28 = vld [vmem:[#allocation5 + $0x898] sm:$0xff]  ;;  %v72_v30 = vld [vmem:[#allocation5 + $0x90] sm:$0xff] }
  0xb4   :  { %1528 = vmatpush1.msra.mxu1 %v400_v50  ;;  %1458 = vmatprep.subr.mxu0 %v137_v51  ;;  %v328_v31 = vld [vmem:[#allocation5 + $0x890] sm:$0xff]  ;;  %v65_v32 = vld [vmem:[#allocation5 + $0x58] sm:$0xff] }
  0xb5   :  { %1529 = vmatprep.subr.mxu1 %v393_v53  ;;  %1459 = vmatpush1.msra.mxu0 %v136_v54  ;;  %v321_v33 = vld [vmem:[#allocation5 + $0x858] sm:$0xff]  ;;  %v64_v34 = vld [vmem:[#allocation5 + $0x50] sm:$0xff] }
  0xb6   :  { %1530 = vmatpush1.msra.mxu1 %v392_v55  ;;  %1460 = vmatprep.subr.mxu0 %v129_v56  ;;  %v320_v35 = vld [vmem:[#allocation5 + $0x850] sm:$0xff]  ;;  %v57_v36 = vld [vmem:[#allocation5 + $0x18] sm:$0xff] }
  0xb7   :  { %1531 = vmatprep.subr.mxu1 %v385_v57  ;;  %1461 = vmatpush1.msra.mxu0 %v128_v58  ;;  %v313_v37 = vld [vmem:[#allocation5 + $0x818] sm:$0xff]  ;;  %v56_v38 = vld [vmem:[#allocation5 + $0x10] sm:$0xff] }
  0xb8   :  { %1532 = vmatpush1.msra.mxu1 %v384_v59  ;;  %1462 = vmatprep.subr.mxu0 %v121_v60  ;;  %v312_v39 = vld [vmem:[#allocation5 + $0x810] sm:$0xff]  ;;  %v305_v40 = vld [vmem:[#allocation5 + $0x7d8] sm:$0xff] }
  0xb9   :  { %1533 = vmatprep.subr.mxu1 %v377_v61  ;;  %1463 = vmatpush1.msra.mxu0 %v120_v63  ;;  %v561_v42 = vld [vmem:[#allocation5 + $0xfd8] sm:$0xff]  ;;  %v304_v43 = vld [vmem:[#allocation5 + $0x7d0] sm:$0xff] }
  0xba   :  { %1534 = vmatpush1.msra.mxu1 %v376_v0  ;;  %1464 = vmatprep.subr.mxu0 %v113_v1  ;;  %v560_v44 = vld [vmem:[#allocation5 + $0xfd0] sm:$0xff]  ;;  %v297_v45 = vld [vmem:[#allocation5 + $0x798] sm:$0xff] }
  0xbb   :  { %1535 = vmatprep.subr.mxu1 %v369_v2  ;;  %1465 = vmatpush1.msra.mxu0 %v112_v4  ;;  %v553_v46 = vld [vmem:[#allocation5 + $0xf98] sm:$0xff]  ;;  %v296_v47 = vld [vmem:[#allocation5 + $0x790] sm:$0xff] }
  0xbc   :  { %1536 = vmatpush1.msra.mxu1 %v368_v5  ;;  %1466 = vmatprep.subr.mxu0 %v105_v6  ;;  %v552_v48 = vld [vmem:[#allocation5 + $0xf90] sm:$0xff]  ;;  %v289_v49 = vld [vmem:[#allocation5 + $0x758] sm:$0xff] }
  0xbd   :  { %1537 = vmatprep.subr.mxu1 %v361_v7  ;;  %1467 = vmatpush1.msra.mxu0 %v104_v9  ;;  %v545_v50 = vld [vmem:[#allocation5 + $0xf58] sm:$0xff]  ;;  %v288_v51 = vld [vmem:[#allocation5 + $0x750] sm:$0xff] }
  0xbe   :  { %1538 = vmatpush1.msra.mxu1 %v360_v10  ;;  %1468 = vmatprep.subr.mxu0 %v97_v12  ;;  %v544_v53 = vld [vmem:[#allocation5 + $0xf50] sm:$0xff]  ;;  %v281_v54 = vld [vmem:[#allocation5 + $0x718] sm:$0xff] }
  0xbf   :  { %1539 = vmatprep.subr.mxu1 %v353_v13  ;;  %1469 = vmatpush1.msra.mxu0 %v96_v14  ;;  %v537_v55 = vld [vmem:[#allocation5 + $0xf18] sm:$0xff]  ;;  %v280_v56 = vld [vmem:[#allocation5 + $0x710] sm:$0xff] }
  0xc0   :  { %1540 = vmatpush1.msra.mxu1 %v352_v15  ;;  %1470 = vmatprep.subr.mxu0 %v89_v17  ;;  %v536_v57 = vld [vmem:[#allocation5 + $0xf10] sm:$0xff]  ;;  %v273_v58 = vld [vmem:[#allocation5 + $0x6d8] sm:$0xff] }
  0xc1   :  { %1541 = vmatprep.subr.mxu1 %v345_v18  ;;  %1471 = vmatpush1.msra.mxu0 %v88_v19  ;;  %v529_v59 = vld [vmem:[#allocation5 + $0xed8] sm:$0xff]  ;;  %v272_v60 = vld [vmem:[#allocation5 + $0x6d0] sm:$0xff] }
  0xc2   :  { %1542 = vmatpush1.msra.mxu1 %v344_v20  ;;  %1472 = vmatprep.subr.mxu0 %v81_v22  ;;  %v528_v61 = vld [vmem:[#allocation5 + $0xed0] sm:$0xff]  ;;  %v265_v63 = vld [vmem:[#allocation5 + $0x698] sm:$0xff] }
  0xc3   :  { %1543 = vmatprep.subr.mxu1 %v337_v23  ;;  %1473 = vmatpush1.msra.mxu0 %v80_v24  ;;  %v521_v0 = vld [vmem:[#allocation5 + $0xe98] sm:$0xff]  ;;  %v264_v1 = vld [vmem:[#allocation5 + $0x690] sm:$0xff] }
  0xc4   :  { %1544 = vmatpush1.msra.mxu1 %v336_v25  ;;  %1474 = vmatprep.subr.mxu0 %v73_v27  ;;  %v520_v2 = vld [vmem:[#allocation5 + $0xe90] sm:$0xff]  ;;  %v257_v4 = vld [vmem:[#allocation5 + $0x658] sm:$0xff] }
  0xc5   :  { %1545 = vmatprep.subr.mxu1 %v329_v28  ;;  %1475 = vmatpush1.msra.mxu0 %v72_v30  ;;  %v513_v5 = vld [vmem:[#allocation5 + $0xe58] sm:$0xff]  ;;  %v256_v6 = vld [vmem:[#allocation5 + $0x650] sm:$0xff] }
  0xc6   :  { %1546 = vmatpush1.msra.mxu1 %v328_v31  ;;  %1476 = vmatprep.subr.mxu0 %v65_v32  ;;  %v512_v7 = vld [vmem:[#allocation5 + $0xe50] sm:$0xff]  ;;  %v249_v9 = vld [vmem:[#allocation5 + $0x618] sm:$0xff] }
  0xc7   :  { %1547 = vmatprep.subr.mxu1 %v321_v33  ;;  %1477 = vmatpush1.msra.mxu0 %v64_v34  ;;  %v505_v10 = vld [vmem:[#allocation5 + $0xe18] sm:$0xff]  ;;  %v248_v12 = vld [vmem:[#allocation5 + $0x610] sm:$0xff] }
  0xc8   :  { %1548 = vmatpush1.msra.mxu1 %v320_v35  ;;  %1478 = vmatprep.subr.mxu0 %v57_v36  ;;  %v504_v13 = vld [vmem:[#allocation5 + $0xe10] sm:$0xff]  ;;  %v241_v14 = vld [vmem:[#allocation5 + $0x5d8] sm:$0xff] }
  0xc9   :  { %1549 = vmatprep.subr.mxu1 %v313_v37  ;;  %1479 = vmatpush1.msra.mxu0 %v56_v38  ;;  %v497_v15 = vld [vmem:[#allocation5 + $0xdd8] sm:$0xff]  ;;  %v240_v17 = vld [vmem:[#allocation5 + $0x5d0] sm:$0xff] }
  0xca   :  { %1550 = vmatpush1.msra.mxu1 %v312_v39  ;;  %1480 = vmatprep.subr.mxu0 %v305_v40  ;;  %v496_v18 = vld [vmem:[#allocation5 + $0xdd0] sm:$0xff]  ;;  %v233_v19 = vld [vmem:[#allocation5 + $0x598] sm:$0xff] }
  0xcb   :  { %1551 = vmatprep.subr.mxu1 %v561_v42  ;;  %1481 = vmatpush2.msra.mxu0 %v304_v43  ;;  %v489_v20 = vld [vmem:[#allocation5 + $0xd98] sm:$0xff]  ;;  %v232_v22 = vld [vmem:[#allocation5 + $0x590] sm:$0xff] }
  0xcc   :  { %1552 = vmatpush2.msra.mxu1 %v560_v44  ;;  %1482 = vmatprep.subr.mxu0 %v297_v45  ;;  %v488_v23 = vld [vmem:[#allocation5 + $0xd90] sm:$0xff]  ;;  %v225_v24 = vld [vmem:[#allocation5 + $0x558] sm:$0xff] }
  0xcd   :  { %1553 = vmatprep.subr.mxu1 %v553_v46  ;;  %1483 = vmatpush2.msra.mxu0 %v296_v47  ;;  %v481_v25 = vld [vmem:[#allocation5 + $0xd58] sm:$0xff]  ;;  %v224_v27 = vld [vmem:[#allocation5 + $0x550] sm:$0xff] }
  0xce   :  { %1554 = vmatpush2.msra.mxu1 %v552_v48  ;;  %1484 = vmatprep.subr.mxu0 %v289_v49  ;;  %v480_v28 = vld [vmem:[#allocation5 + $0xd50] sm:$0xff]  ;;  %v217_v30 = vld [vmem:[#allocation5 + $0x518] sm:$0xff] }
  0xcf   :  { %1555 = vmatprep.subr.mxu1 %v545_v50  ;;  %1485 = vmatpush2.msra.mxu0 %v288_v51  ;;  %v473_v31 = vld [vmem:[#allocation5 + $0xd18] sm:$0xff]  ;;  %v216_v32 = vld [vmem:[#allocation5 + $0x510] sm:$0xff] }
  0xd0   :  { %1556 = vmatpush2.msra.mxu1 %v544_v53  ;;  %1486 = vmatprep.subr.mxu0 %v281_v54  ;;  %v472_v33 = vld [vmem:[#allocation5 + $0xd10] sm:$0xff]  ;;  %v209_v34 = vld [vmem:[#allocation5 + $0x4d8] sm:$0xff] }
  0xd1   :  { %1557 = vmatprep.subr.mxu1 %v537_v55  ;;  %1487 = vmatpush2.msra.mxu0 %v280_v56  ;;  %v465_v35 = vld [vmem:[#allocation5 + $0xcd8] sm:$0xff]  ;;  %v208_v36 = vld [vmem:[#allocation5 + $0x4d0] sm:$0xff] }
  0xd2   :  { %1558 = vmatpush2.msra.mxu1 %v536_v57  ;;  %1488 = vmatprep.subr.mxu0 %v273_v58  ;;  %v464_v37 = vld [vmem:[#allocation5 + $0xcd0] sm:$0xff]  ;;  %v201_v38 = vld [vmem:[#allocation5 + $0x498] sm:$0xff] }
  0xd3   :  { %1559 = vmatprep.subr.mxu1 %v529_v59  ;;  %1489 = vmatpush2.msra.mxu0 %v272_v60  ;;  %v457_v39 = vld [vmem:[#allocation5 + $0xc98] sm:$0xff]  ;;  %v200_v40 = vld [vmem:[#allocation5 + $0x490] sm:$0xff] }
  0xd4   :  { %1560 = vmatpush2.msra.mxu1 %v528_v61  ;;  %1490 = vmatprep.subr.mxu0 %v265_v63  ;;  %v456_v42 = vld [vmem:[#allocation5 + $0xc90] sm:$0xff]  ;;  %v193_v43 = vld [vmem:[#allocation5 + $0x458] sm:$0xff] }
  0xd5   :  { %1561 = vmatprep.subr.mxu1 %v521_v0  ;;  %1491 = vmatpush2.msra.mxu0 %v264_v1  ;;  %v449_v44 = vld [vmem:[#allocation5 + $0xc58] sm:$0xff]  ;;  %v192_v45 = vld [vmem:[#allocation5 + $0x450] sm:$0xff] }
  0xd6   :  { %1562 = vmatpush2.msra.mxu1 %v520_v2  ;;  %1492 = vmatprep.subr.mxu0 %v257_v4  ;;  %v448_v46 = vld [vmem:[#allocation5 + $0xc50] sm:$0xff]  ;;  %v185_v47 = vld [vmem:[#allocation5 + $0x418] sm:$0xff] }
  0xd7   :  { %1563 = vmatprep.subr.mxu1 %v513_v5  ;;  %1493 = vmatpush2.msra.mxu0 %v256_v6  ;;  %v441_v48 = vld [vmem:[#allocation5 + $0xc18] sm:$0xff]  ;;  %v184_v49 = vld [vmem:[#allocation5 + $0x410] sm:$0xff] }
  0xd8   :  { %1564 = vmatpush2.msra.mxu1 %v512_v7  ;;  %1494 = vmatprep.subr.mxu0 %v249_v9  ;;  %v440_v50 = vld [vmem:[#allocation5 + $0xc10] sm:$0xff]  ;;  %v689_v51 = vld [vmem:[#allocation5 + $0x13d8] sm:$0xff] }
  0xd9   :  { %1565 = vmatprep.subr.mxu1 %v505_v10  ;;  %1495 = vmatpush2.msra.mxu0 %v248_v12  ;;  %v945_v53 = vld [vmem:[#allocation5 + $0x1bd8] sm:$0xff]  ;;  %v688_v54 = vld [vmem:[#allocation5 + $0x13d0] sm:$0xff] }
  0xda   :  { %1566 = vmatpush2.msra.mxu1 %v504_v13  ;;  %1496 = vmatprep.subr.mxu0 %v241_v14  ;;  %v944_v55 = vld [vmem:[#allocation5 + $0x1bd0] sm:$0xff]  ;;  %v681_v56 = vld [vmem:[#allocation5 + $0x1398] sm:$0xff] }
  0xdb   :  { %1567 = vmatprep.subr.mxu1 %v497_v15  ;;  %1497 = vmatpush2.msra.mxu0 %v240_v17  ;;  %v937_v57 = vld [vmem:[#allocation5 + $0x1b98] sm:$0xff]  ;;  %v680_v58 = vld [vmem:[#allocation5 + $0x1390] sm:$0xff] }
  0xdc   :  { %1568 = vmatpush2.msra.mxu1 %v496_v18  ;;  %1498 = vmatprep.subr.mxu0 %v233_v19  ;;  %v936_v59 = vld [vmem:[#allocation5 + $0x1b90] sm:$0xff]  ;;  %v673_v60 = vld [vmem:[#allocation5 + $0x1358] sm:$0xff] }
  0xdd   :  { %1569 = vmatprep.subr.mxu1 %v489_v20  ;;  %1499 = vmatpush2.msra.mxu0 %v232_v22  ;;  %v929_v61 = vld [vmem:[#allocation5 + $0x1b58] sm:$0xff]  ;;  %v672_v63 = vld [vmem:[#allocation5 + $0x1350] sm:$0xff] }
  0xde   :  { %1570 = vmatpush2.msra.mxu1 %v488_v23  ;;  %1500 = vmatprep.subr.mxu0 %v225_v24  ;;  %v928_v0 = vld [vmem:[#allocation5 + $0x1b50] sm:$0xff]  ;;  %v665_v1 = vld [vmem:[#allocation5 + $0x1318] sm:$0xff] }
  0xdf   :  { %1571 = vmatprep.subr.mxu1 %v481_v25  ;;  %1501 = vmatpush2.msra.mxu0 %v224_v27  ;;  %v921_v2 = vld [vmem:[#allocation5 + $0x1b18] sm:$0xff]  ;;  %v664_v4 = vld [vmem:[#allocation5 + $0x1310] sm:$0xff] }
  0xe0   :  { %1572 = vmatpush2.msra.mxu1 %v480_v28  ;;  %1502 = vmatprep.subr.mxu0 %v217_v30  ;;  %v920_v5 = vld [vmem:[#allocation5 + $0x1b10] sm:$0xff]  ;;  %v657_v6 = vld [vmem:[#allocation5 + $0x12d8] sm:$0xff] }
  0xe1   :  { %1573 = vmatprep.subr.mxu1 %v473_v31  ;;  %1503 = vmatpush2.msra.mxu0 %v216_v32  ;;  %v913_v7 = vld [vmem:[#allocation5 + $0x1ad8] sm:$0xff]  ;;  %v656_v9 = vld [vmem:[#allocation5 + $0x12d0] sm:$0xff] }
  0xe2   :  { %1574 = vmatpush2.msra.mxu1 %v472_v33  ;;  %1504 = vmatprep.subr.mxu0 %v209_v34  ;;  %v912_v10 = vld [vmem:[#allocation5 + $0x1ad0] sm:$0xff]  ;;  %v649_v12 = vld [vmem:[#allocation5 + $0x1298] sm:$0xff] }
  0xe3   :  { %1575 = vmatprep.subr.mxu1 %v465_v35  ;;  %1505 = vmatpush2.msra.mxu0 %v208_v36  ;;  %v905_v13 = vld [vmem:[#allocation5 + $0x1a98] sm:$0xff]  ;;  %v648_v14 = vld [vmem:[#allocation5 + $0x1290] sm:$0xff] }
  0xe4   :  { %1576 = vmatpush2.msra.mxu1 %v464_v37  ;;  %1506 = vmatprep.subr.mxu0 %v201_v38  ;;  %v904_v15 = vld [vmem:[#allocation5 + $0x1a90] sm:$0xff]  ;;  %v641_v17 = vld [vmem:[#allocation5 + $0x1258] sm:$0xff] }
  0xe5   :  { %1577 = vmatprep.subr.mxu1 %v457_v39  ;;  %1507 = vmatpush2.msra.mxu0 %v200_v40  ;;  %v897_v18 = vld [vmem:[#allocation5 + $0x1a58] sm:$0xff]  ;;  %v640_v19 = vld [vmem:[#allocation5 + $0x1250] sm:$0xff] }
  0xe6   :  { %1578 = vmatpush2.msra.mxu1 %v456_v42  ;;  %1508 = vmatprep.subr.mxu0 %v193_v43  ;;  %v896_v20 = vld [vmem:[#allocation5 + $0x1a50] sm:$0xff]  ;;  %v633_v22 = vld [vmem:[#allocation5 + $0x1218] sm:$0xff] }
  0xe7   :  { %1579 = vmatprep.subr.mxu1 %v449_v44  ;;  %1509 = vmatpush2.msra.mxu0 %v192_v45  ;;  %v889_v23 = vld [vmem:[#allocation5 + $0x1a18] sm:$0xff]  ;;  %v632_v24 = vld [vmem:[#allocation5 + $0x1210] sm:$0xff] }
  0xe8   :  { %1580 = vmatpush2.msra.mxu1 %v448_v46  ;;  %1510 = vmatprep.subr.mxu0 %v185_v47  ;;  %v888_v25 = vld [vmem:[#allocation5 + $0x1a10] sm:$0xff]  ;;  %v625_v27 = vld [vmem:[#allocation5 + $0x11d8] sm:$0xff] }
  0xe9   :  { %1581 = vmatprep.subr.mxu1 %v441_v48  ;;  %1511 = vmatpush2.msra.mxu0 %v184_v49  ;;  %v881_v28 = vld [vmem:[#allocation5 + $0x19d8] sm:$0xff]  ;;  %v624_v30 = vld [vmem:[#allocation5 + $0x11d0] sm:$0xff] }
  0xea   :  { %1512 = vmatprep.mubr.f32.mxu0 %v2594_v8  ;;  %1582 = vmatpush2.msra.mxu1 %v440_v50  ;;  %v880_v31 = vld [vmem:[#allocation5 + $0x19d0] sm:$0xff]  ;;  %v617_v32 = vld [vmem:[#allocation5 + $0x1198] sm:$0xff] }
  0xeb   :  { %1513 = vmatmul.mubr.f32.vlgmr.msra.gmra.mxu0 %v2587_v62  ;;  %1583 = vmatprep.mubr.f32.mxu1 %v2598_v11  ;;  %v873_v33 = vld [vmem:[#allocation5 + $0x1998] sm:$0xff]  ;;  %v616_v34 = vld [vmem:[#allocation5 + $0x1190] sm:$0xff] }
  0xec   :  { %1590 = vmatprep.subr.mxu0 %v689_v51  ;;  %1661 = vmatprep.subr.mxu1 %v945_v53  ;;  %v872_v35 = vld [vmem:[#allocation5 + $0x1990] sm:$0xff]  ;;  %v609_v36 = vld [vmem:[#allocation5 + $0x1158] sm:$0xff] }
  0xed   :  { %1584 = vmatmul.mubr.f32.vlgmr.msra.gmra.mxu1 %v2590_v3  ;;  %1591 = vmatpush1.msra.mxu0 %v688_v54  ;;  %v865_v37 = vld [vmem:[#allocation5 + $0x1958] sm:$0xff]  ;;  %v608_v38 = vld [vmem:[#allocation5 + $0x1150] sm:$0xff] }
  0xee   :  { %1662 = vmatpush1.msra.mxu1 %v944_v55  ;;  %1592 = vmatprep.subr.mxu0 %v681_v56  ;;  %v864_v39 = vld [vmem:[#allocation5 + $0x1950] sm:$0xff]  ;;  %v601_v40 = vld [vmem:[#allocation5 + $0x1118] sm:$0xff] }
  0xef   :  { %1663 = vmatprep.subr.mxu1 %v937_v57  ;;  %1593 = vmatpush1.msra.mxu0 %v680_v58  ;;  %v857_v42 = vld [vmem:[#allocation5 + $0x1918] sm:$0xff]  ;;  %v600_v43 = vld [vmem:[#allocation5 + $0x1110] sm:$0xff] }
  0xf0   :  { %1664 = vmatpush1.msra.mxu1 %v936_v59  ;;  %1594 = vmatprep.subr.mxu0 %v673_v60  ;;  %v856_v44 = vld [vmem:[#allocation5 + $0x1910] sm:$0xff]  ;;  %v593_v45 = vld [vmem:[#allocation5 + $0x10d8] sm:$0xff] }
  0xf1   :  { %1665 = vmatprep.subr.mxu1 %v929_v61  ;;  %1595 = vmatpush1.msra.mxu0 %v672_v63  ;;  %v849_v46 = vld [vmem:[#allocation5 + $0x18d8] sm:$0xff]  ;;  %v592_v47 = vld [vmem:[#allocation5 + $0x10d0] sm:$0xff] }
  0xf2   :  { %1666 = vmatpush1.msra.mxu1 %v928_v0  ;;  %1596 = vmatprep.subr.mxu0 %v665_v1  ;;  %v848_v48 = vld [vmem:[#allocation5 + $0x18d0] sm:$0xff]  ;;  %v585_v49 = vld [vmem:[#allocation5 + $0x1098] sm:$0xff] }
  0xf3   :  { %1667 = vmatprep.subr.mxu1 %v921_v2  ;;  %1597 = vmatpush1.msra.mxu0 %v664_v4  ;;  %v841_v50 = vld [vmem:[#allocation5 + $0x1898] sm:$0xff]  ;;  %v584_v51 = vld [vmem:[#allocation5 + $0x1090] sm:$0xff] }
  0xf4   :  { %1668 = vmatpush1.msra.mxu1 %v920_v5  ;;  %1598 = vmatprep.subr.mxu0 %v657_v6  ;;  %v840_v53 = vld [vmem:[#allocation5 + $0x1890] sm:$0xff]  ;;  %v577_v54 = vld [vmem:[#allocation5 + $0x1058] sm:$0xff] }
  0xf5   :  { %1669 = vmatprep.subr.mxu1 %v913_v7  ;;  %1599 = vmatpush1.msra.mxu0 %v656_v9  ;;  %v833_v55 = vld [vmem:[#allocation5 + $0x1858] sm:$0xff]  ;;  %v576_v56 = vld [vmem:[#allocation5 + $0x1050] sm:$0xff] }
  0xf6   :  { %1670 = vmatpush1.msra.mxu1 %v912_v10  ;;  %1600 = vmatprep.subr.mxu0 %v649_v12  ;;  %v832_v57 = vld [vmem:[#allocation5 + $0x1850] sm:$0xff]  ;;  %v569_v58 = vld [vmem:[#allocation5 + $0x1018] sm:$0xff] }
  0xf7   :  { %1671 = vmatprep.subr.mxu1 %v905_v13  ;;  %1601 = vmatpush1.msra.mxu0 %v648_v14  ;;  %v825_v59 = vld [vmem:[#allocation5 + $0x1818] sm:$0xff]  ;;  %v568_v60 = vld [vmem:[#allocation5 + $0x1010] sm:$0xff] }
  0xf8   :  { %1672 = vmatpush1.msra.mxu1 %v904_v15  ;;  %1602 = vmatprep.subr.mxu0 %v641_v17  ;;  %v824_v61 = vld [vmem:[#allocation5 + $0x1810] sm:$0xff]  ;;  %v817_v63 = vld [vmem:[#allocation5 + $0x17d8] sm:$0xff] }
  0xf9   :  { %1673 = vmatprep.subr.mxu1 %v897_v18  ;;  %1603 = vmatpush1.msra.mxu0 %v640_v19  ;;  %v1073_v0 = vld [vmem:[#allocation5 + $0x1fd8] sm:$0xff]  ;;  %v816_v1 = vld [vmem:[#allocation5 + $0x17d0] sm:$0xff] }
  0xfa   :  { %1674 = vmatpush1.msra.mxu1 %v896_v20  ;;  %1604 = vmatprep.subr.mxu0 %v633_v22  ;;  %v1072_v2 = vld [vmem:[#allocation5 + $0x1fd0] sm:$0xff]  ;;  %v809_v4 = vld [vmem:[#allocation5 + $0x1798] sm:$0xff] }
  0xfb   :  { %1675 = vmatprep.subr.mxu1 %v889_v23  ;;  %1605 = vmatpush1.msra.mxu0 %v632_v24  ;;  %v1065_v5 = vld [vmem:[#allocation5 + $0x1f98] sm:$0xff]  ;;  %v808_v6 = vld [vmem:[#allocation5 + $0x1790] sm:$0xff] }
  0xfc   :  { %1676 = vmatpush1.msra.mxu1 %v888_v25  ;;  %1606 = vmatprep.subr.mxu0 %v625_v27  ;;  %v1064_v7 = vld [vmem:[#allocation5 + $0x1f90] sm:$0xff]  ;;  %v801_v9 = vld [vmem:[#allocation5 + $0x1758] sm:$0xff] }
  0xfd   :  { %1677 = vmatprep.subr.mxu1 %v881_v28  ;;  %1607 = vmatpush1.msra.mxu0 %v624_v30  ;;  %v1057_v10 = vld [vmem:[#allocation5 + $0x1f58] sm:$0xff]  ;;  %v800_v12 = vld [vmem:[#allocation5 + $0x1750] sm:$0xff] }
  0xfe   :  { %1678 = vmatpush1.msra.mxu1 %v880_v31  ;;  %1608 = vmatprep.subr.mxu0 %v617_v32  ;;  %v1056_v13 = vld [vmem:[#allocation5 + $0x1f50] sm:$0xff]  ;;  %v793_v14 = vld [vmem:[#allocation5 + $0x1718] sm:$0xff] }
  0xff   :  { %1679 = vmatprep.subr.mxu1 %v873_v33  ;;  %1609 = vmatpush1.msra.mxu0 %v616_v34  ;;  %v1049_v15 = vld [vmem:[#allocation5 + $0x1f18] sm:$0xff]  ;;  %v792_v17 = vld [vmem:[#allocation5 + $0x1710] sm:$0xff] }
 0x100   :  { %1680 = vmatpush1.msra.mxu1 %v872_v35  ;;  %1610 = vmatprep.subr.mxu0 %v609_v36  ;;  %v1048_v18 = vld [vmem:[#allocation5 + $0x1f10] sm:$0xff]  ;;  %v785_v19 = vld [vmem:[#allocation5 + $0x16d8] sm:$0xff] }
 0x101   :  { %1681 = vmatprep.subr.mxu1 %v865_v37  ;;  %1611 = vmatpush1.msra.mxu0 %v608_v38  ;;  %v1041_v20 = vld [vmem:[#allocation5 + $0x1ed8] sm:$0xff]  ;;  %v784_v22 = vld [vmem:[#allocation5 + $0x16d0] sm:$0xff] }
 0x102   :  { %1682 = vmatpush1.msra.mxu1 %v864_v39  ;;  %1612 = vmatprep.subr.mxu0 %v601_v40  ;;  %v1040_v23 = vld [vmem:[#allocation5 + $0x1ed0] sm:$0xff]  ;;  %v777_v24 = vld [vmem:[#allocation5 + $0x1698] sm:$0xff] }
 0x103   :  { %1683 = vmatprep.subr.mxu1 %v857_v42  ;;  %1613 = vmatpush1.msra.mxu0 %v600_v43  ;;  %v1033_v25 = vld [vmem:[#allocation5 + $0x1e98] sm:$0xff]  ;;  %v776_v27 = vld [vmem:[#allocation5 + $0x1690] sm:$0xff] }
 0x104   :  { %1684 = vmatpush1.msra.mxu1 %v856_v44  ;;  %1614 = vmatprep.subr.mxu0 %v593_v45  ;;  %v1032_v28 = vld [vmem:[#allocation5 + $0x1e90] sm:$0xff]  ;;  %v769_v30 = vld [vmem:[#allocation5 + $0x1658] sm:$0xff] }
 0x105   :  { %1685 = vmatprep.subr.mxu1 %v849_v46  ;;  %1615 = vmatpush1.msra.mxu0 %v592_v47  ;;  %v1025_v31 = vld [vmem:[#allocation5 + $0x1e58] sm:$0xff]  ;;  %v768_v32 = vld [vmem:[#allocation5 + $0x1650] sm:$0xff] }
 0x106   :  { %1686 = vmatpush1.msra.mxu1 %v848_v48  ;;  %1616 = vmatprep.subr.mxu0 %v585_v49  ;;  %v1024_v33 = vld [vmem:[#allocation5 + $0x1e50] sm:$0xff]  ;;  %v761_v34 = vld [vmem:[#allocation5 + $0x1618] sm:$0xff] }
 0x107   :  { %1687 = vmatprep.subr.mxu1 %v841_v50  ;;  %1617 = vmatpush1.msra.mxu0 %v584_v51  ;;  %v1017_v35 = vld [vmem:[#allocation5 + $0x1e18] sm:$0xff]  ;;  %v760_v36 = vld [vmem:[#allocation5 + $0x1610] sm:$0xff] }
 0x108   :  { %1688 = vmatpush1.msra.mxu1 %v840_v53  ;;  %1618 = vmatprep.subr.mxu0 %v577_v54  ;;  %v1016_v37 = vld [vmem:[#allocation5 + $0x1e10] sm:$0xff]  ;;  %v753_v38 = vld [vmem:[#allocation5 + $0x15d8] sm:$0xff] }
 0x109   :  { %1689 = vmatprep.subr.mxu1 %v833_v55  ;;  %1619 = vmatpush1.msra.mxu0 %v576_v56  ;;  %v1009_v39 = vld [vmem:[#allocation5 + $0x1dd8] sm:$0xff]  ;;  %v752_v40 = vld [vmem:[#allocation5 + $0x15d0] sm:$0xff] }
 0x10a   :  { %1690 = vmatpush1.msra.mxu1 %v832_v57  ;;  %1620 = vmatprep.subr.mxu0 %v569_v58  ;;  %v1008_v42 = vld [vmem:[#allocation5 + $0x1dd0] sm:$0xff]  ;;  %v745_v43 = vld [vmem:[#allocation5 + $0x1598] sm:$0xff] }
 0x10b   :  { %1691 = vmatprep.subr.mxu1 %v825_v59  ;;  %1621 = vmatpush1.msra.mxu0 %v568_v60  ;;  %v1001_v44 = vld [vmem:[#allocation5 + $0x1d98] sm:$0xff]  ;;  %v744_v45 = vld [vmem:[#allocation5 + $0x1590] sm:$0xff] }
 0x10c   :  { %1692 = vmatpush1.msra.mxu1 %v824_v61  ;;  %1622 = vmatprep.subr.mxu0 %v817_v63  ;;  %v1000_v46 = vld [vmem:[#allocation5 + $0x1d90] sm:$0xff]  ;;  %v737_v47 = vld [vmem:[#allocation5 + $0x1558] sm:$0xff] }
 0x10d   :  { %1693 = vmatprep.subr.mxu1 %v1073_v0  ;;  %1623 = vmatpush2.msra.mxu0 %v816_v1  ;;  %v993_v48 = vld [vmem:[#allocation5 + $0x1d58] sm:$0xff]  ;;  %v736_v49 = vld [vmem:[#allocation5 + $0x1550] sm:$0xff] }
 0x10e   :  { %1694 = vmatpush2.msra.mxu1 %v1072_v2  ;;  %1624 = vmatprep.subr.mxu0 %v809_v4  ;;  %v992_v50 = vld [vmem:[#allocation5 + $0x1d50] sm:$0xff]  ;;  %v729_v51 = vld [vmem:[#allocation5 + $0x1518] sm:$0xff] }
 0x10f   :  { %1695 = vmatprep.subr.mxu1 %v1065_v5  ;;  %1625 = vmatpush2.msra.mxu0 %v808_v6  ;;  %v985_v53 = vld [vmem:[#allocation5 + $0x1d18] sm:$0xff]  ;;  %v728_v54 = vld [vmem:[#allocation5 + $0x1510] sm:$0xff] }
 0x110   :  { %1696 = vmatpush2.msra.mxu1 %v1064_v7  ;;  %1626 = vmatprep.subr.mxu0 %v801_v9  ;;  %v984_v55 = vld [vmem:[#allocation5 + $0x1d10] sm:$0xff]  ;;  %v721_v56 = vld [vmem:[#allocation5 + $0x14d8] sm:$0xff] }
 0x111   :  { %1697 = vmatprep.subr.mxu1 %v1057_v10  ;;  %1627 = vmatpush2.msra.mxu0 %v800_v12  ;;  %v977_v57 = vld [vmem:[#allocation5 + $0x1cd8] sm:$0xff]  ;;  %v720_v58 = vld [vmem:[#allocation5 + $0x14d0] sm:$0xff]  ;;  %v179_v12 = vld [vmem:[#allocation5 + $0x3e8] sm:$0xff] }
 0x112   :  { %1698 = vmatpush2.msra.mxu1 %v1056_v13  ;;  %1628 = vmatprep.subr.mxu0 %v793_v14  ;;  %v976_v59 = vld [vmem:[#allocation5 + $0x1cd0] sm:$0xff]  ;;  %v713_v60 = vld [vmem:[#allocation5 + $0x1498] sm:$0xff]  ;;  %v435_v13 = vld [vmem:[#allocation5 + $0xbe8] sm:$0xff] }
 0x113   :  { %1699 = vmatprep.subr.mxu1 %v1049_v15  ;;  %1629 = vmatpush2.msra.mxu0 %v792_v17  ;;  %v969_v61 = vld [vmem:[#allocation5 + $0x1c98] sm:$0xff]  ;;  %v712_v63 = vld [vmem:[#allocation5 + $0x1490] sm:$0xff]  ;;  %v178_v14 = vld [vmem:[#allocation5 + $0x3e0] sm:$0xff] }
 0x114   :  { %1700 = vmatpush2.msra.mxu1 %v1048_v18  ;;  %1630 = vmatprep.subr.mxu0 %v785_v19  ;;  %v968_v0 = vld [vmem:[#allocation5 + $0x1c90] sm:$0xff]  ;;  %v705_v1 = vld [vmem:[#allocation5 + $0x1458] sm:$0xff]  ;;  %v434_v15 = vld [vmem:[#allocation5 + $0xbe0] sm:$0xff] }
 0x115   :  { %1701 = vmatprep.subr.mxu1 %v1041_v20  ;;  %1631 = vmatpush2.msra.mxu0 %v784_v22  ;;  %v961_v2 = vld [vmem:[#allocation5 + $0x1c58] sm:$0xff]  ;;  %v704_v4 = vld [vmem:[#allocation5 + $0x1450] sm:$0xff]  ;;  %v171_v17 = vld [vmem:[#allocation5 + $0x3a8] sm:$0xff] }
 0x116   :  { %1702 = vmatpush2.msra.mxu1 %v1040_v23  ;;  %1632 = vmatprep.subr.mxu0 %v777_v24  ;;  %v960_v5 = vld [vmem:[#allocation5 + $0x1c50] sm:$0xff]  ;;  %v697_v6 = vld [vmem:[#allocation5 + $0x1418] sm:$0xff]  ;;  %v427_v18 = vld [vmem:[#allocation5 + $0xba8] sm:$0xff] }
 0x117   :  { %1703 = vmatprep.subr.mxu1 %v1033_v25  ;;  %1633 = vmatpush2.msra.mxu0 %v776_v27  ;;  %v953_v7 = vld [vmem:[#allocation5 + $0x1c18] sm:$0xff]  ;;  %v696_v9 = vld [vmem:[#allocation5 + $0x1410] sm:$0xff]  ;;  %v170_v19 = vld [vmem:[#allocation5 + $0x3a0] sm:$0xff] }
 0x118   :  { %1704 = vmatpush2.msra.mxu1 %v1032_v28  ;;  %1634 = vmatprep.subr.mxu0 %v769_v30  ;;  %v952_v10 = vld [vmem:[#allocation5 + $0x1c10] sm:$0xff]  ;;  %v426_v20 = vld [vmem:[#allocation5 + $0xba0] sm:$0xff]  ;;  %v163_v22 = vld [vmem:[#allocation5 + $0x368] sm:$0xff] }
 0x119   :  { %1705 = vmatprep.subr.mxu1 %v1025_v31  ;;  %1635 = vmatpush2.msra.mxu0 %v768_v32  ;;  %v419_v23 = vld [vmem:[#allocation5 + $0xb68] sm:$0xff]  ;;  %v162_v24 = vld [vmem:[#allocation5 + $0x360] sm:$0xff] }
 0x11a   :  { %1706 = vmatpush2.msra.mxu1 %v1024_v33  ;;  %1636 = vmatprep.subr.mxu0 %v761_v34  ;;  %v418_v25 = vld [vmem:[#allocation5 + $0xb60] sm:$0xff]  ;;  %v155_v27 = vld [vmem:[#allocation5 + $0x328] sm:$0xff] }
 0x11b   :  { %1707 = vmatprep.subr.mxu1 %v1017_v35  ;;  %1637 = vmatpush2.msra.mxu0 %v760_v36  ;;  %v411_v28 = vld [vmem:[#allocation5 + $0xb28] sm:$0xff]  ;;  %v154_v30 = vld [vmem:[#allocation5 + $0x320] sm:$0xff] }
 0x11c   :  { %1708 = vmatpush2.msra.mxu1 %v1016_v37  ;;  %1638 = vmatprep.subr.mxu0 %v753_v38  ;;  %v410_v31 = vld [vmem:[#allocation5 + $0xb20] sm:$0xff]  ;;  %v147_v32 = vld [vmem:[#allocation5 + $0x2e8] sm:$0xff] }
 0x11d   :  { %1709 = vmatprep.subr.mxu1 %v1009_v39  ;;  %1639 = vmatpush2.msra.mxu0 %v752_v40  ;;  %v403_v33 = vld [vmem:[#allocation5 + $0xae8] sm:$0xff]  ;;  %v146_v34 = vld [vmem:[#allocation5 + $0x2e0] sm:$0xff] }
 0x11e   :  { %1710 = vmatpush2.msra.mxu1 %v1008_v42  ;;  %1640 = vmatprep.subr.mxu0 %v745_v43  ;;  %v402_v35 = vld [vmem:[#allocation5 + $0xae0] sm:$0xff]  ;;  %v139_v36 = vld [vmem:[#allocation5 + $0x2a8] sm:$0xff] }
 0x11f   :  { %1711 = vmatprep.subr.mxu1 %v1001_v44  ;;  %1641 = vmatpush2.msra.mxu0 %v744_v45  ;;  %v395_v37 = vld [vmem:[#allocation5 + $0xaa8] sm:$0xff]  ;;  %v138_v38 = vld [vmem:[#allocation5 + $0x2a0] sm:$0xff] }
 0x120   :  { %1712 = vmatpush2.msra.mxu1 %v1000_v46  ;;  %1642 = vmatprep.subr.mxu0 %v737_v47  ;;  %v394_v39 = vld [vmem:[#allocation5 + $0xaa0] sm:$0xff]  ;;  %v131_v40 = vld [vmem:[#allocation5 + $0x268] sm:$0xff] }
 0x121   :  { %1713 = vmatprep.subr.mxu1 %v993_v48  ;;  %1643 = vmatpush2.msra.mxu0 %v736_v49  ;;  %v387_v42 = vld [vmem:[#allocation5 + $0xa68] sm:$0xff]  ;;  %v130_v43 = vld [vmem:[#allocation5 + $0x260] sm:$0xff] }
 0x122   :  { %1714 = vmatpush2.msra.mxu1 %v992_v50  ;;  %1644 = vmatprep.subr.mxu0 %v729_v51  ;;  %v386_v44 = vld [vmem:[#allocation5 + $0xa60] sm:$0xff]  ;;  %v123_v45 = vld [vmem:[#allocation5 + $0x228] sm:$0xff] }
 0x123   :  { %1715 = vmatprep.subr.mxu1 %v985_v53  ;;  %1645 = vmatpush2.msra.mxu0 %v728_v54  ;;  %v379_v46 = vld [vmem:[#allocation5 + $0xa28] sm:$0xff]  ;;  %v122_v47 = vld [vmem:[#allocation5 + $0x220] sm:$0xff] }
 0x124   :  { %1716 = vmatpush2.msra.mxu1 %v984_v55  ;;  %1646 = vmatprep.subr.mxu0 %v721_v56  ;;  %v378_v48 = vld [vmem:[#allocation5 + $0xa20] sm:$0xff]  ;;  %v115_v49 = vld [vmem:[#allocation5 + $0x1e8] sm:$0xff] }
 0x125   :  { %1717 = vmatprep.subr.mxu1 %v977_v57  ;;  %1647 = vmatpush2.msra.mxu0 %v720_v58  ;;  %v371_v50 = vld [vmem:[#allocation5 + $0x9e8] sm:$0xff]  ;;  %v114_v51 = vld [vmem:[#allocation5 + $0x1e0] sm:$0xff] }
 0x126   :  { %1718 = vmatpush2.msra.mxu1 %v976_v59  ;;  %1648 = vmatprep.subr.mxu0 %v713_v60  ;;  %v370_v53 = vld [vmem:[#allocation5 + $0x9e0] sm:$0xff]  ;;  %v107_v54 = vld [vmem:[#allocation5 + $0x1a8] sm:$0xff] }
 0x127   :  { %1719 = vmatprep.subr.mxu1 %v969_v61  ;;  %1649 = vmatpush2.msra.mxu0 %v712_v63  ;;  %v363_v55 = vld [vmem:[#allocation5 + $0x9a8] sm:$0xff]  ;;  %v106_v56 = vld [vmem:[#allocation5 + $0x1a0] sm:$0xff] }
 0x128   :  { %1720 = vmatpush2.msra.mxu1 %v968_v0  ;;  %1650 = vmatprep.subr.mxu0 %v705_v1  ;;  %v362_v57 = vld [vmem:[#allocation5 + $0x9a0] sm:$0xff]  ;;  %v99_v58 = vld [vmem:[#allocation5 + $0x168] sm:$0xff] }
 0x129   :  { %1721 = vmatprep.subr.mxu1 %v961_v2  ;;  %1651 = vmatpush2.msra.mxu0 %v704_v4  ;;  %v355_v59 = vld [vmem:[#allocation5 + $0x968] sm:$0xff]  ;;  %v98_v60 = vld [vmem:[#allocation5 + $0x160] sm:$0xff] }
 0x12a   :  { %1722 = vmatpush2.msra.mxu1 %v960_v5  ;;  %1652 = vmatprep.subr.mxu0 %v697_v6  ;;  %v354_v61 = vld [vmem:[#allocation5 + $0x960] sm:$0xff]  ;;  %v91_v63 = vld [vmem:[#allocation5 + $0x128] sm:$0xff] }
 0x12b   :  { %1723 = vmatprep.subr.mxu1 %v953_v7  ;;  %1653 = vmatpush2.msra.mxu0 %v696_v9  ;;  %v347_v0 = vld [vmem:[#allocation5 + $0x928] sm:$0xff]  ;;  %v90_v1 = vld [vmem:[#allocation5 + $0x120] sm:$0xff] }
 0x12c   :  { %1654 = vmatprep.mubr.f32.mxu0 %v2612_v26  ;;  %1724 = vmatpush2.msra.mxu1 %v952_v10  ;;  %v346_v2 = vld [vmem:[#allocation5 + $0x920] sm:$0xff]  ;;  %v83_v4 = vld [vmem:[#allocation5 + $0xe8] sm:$0xff] }
 0x12d   :  { %1655 = vmatmul.mubr.f32.vlgmr.msra.gmra.mxu0 %v2605_v16  ;;  %1725 = vmatprep.mubr.f32.mxu1 %v2616_v29  ;;  %v339_v5 = vld [vmem:[#allocation5 + $0x8e8] sm:$0xff]  ;;  %v82_v6 = vld [vmem:[#allocation5 + $0xe0] sm:$0xff] }
 0x12e   :  { %1732 = vmatprep.subr.mxu0 %v179_v12  ;;  %1803 = vmatprep.subr.mxu1 %v435_v13  ;;  %v338_v7 = vld [vmem:[#allocation5 + $0x8e0] sm:$0xff]  ;;  %v75_v9 = vld [vmem:[#allocation5 + $0xa8] sm:$0xff] }
 0x12f   :  { %1726 = vmatmul.mubr.f32.vlgmr.msra.gmra.mxu1 %v2608_v21  ;;  %1733 = vmatpush1.msra.mxu0 %v178_v14  ;;  %v331_v10 = vld [vmem:[#allocation5 + $0x8a8] sm:$0xff]  ;;  %v74_v12 = vld [vmem:[#allocation5 + $0xa0] sm:$0xff] }
 0x130   :  { %1804 = vmatpush1.msra.mxu1 %v434_v15  ;;  %1734 = vmatprep.subr.mxu0 %v171_v17  ;;  %v330_v13 = vld [vmem:[#allocation5 + $0x8a0] sm:$0xff]  ;;  %v67_v14 = vld [vmem:[#allocation5 + $0x68] sm:$0xff] }
 0x131   :  { %1805 = vmatprep.subr.mxu1 %v427_v18  ;;  %1735 = vmatpush1.msra.mxu0 %v170_v19  ;;  %v323_v15 = vld [vmem:[#allocation5 + $0x868] sm:$0xff]  ;;  %v66_v17 = vld [vmem:[#allocation5 + $0x60] sm:$0xff] }
 0x132   :  { %1806 = vmatpush1.msra.mxu1 %v426_v20  ;;  %1736 = vmatprep.subr.mxu0 %v163_v22  ;;  %v322_v18 = vld [vmem:[#allocation5 + $0x860] sm:$0xff]  ;;  %v59_v19 = vld [vmem:[#allocation5 + $0x28] sm:$0xff] }
 0x133   :  { %1807 = vmatprep.subr.mxu1 %v419_v23  ;;  %1737 = vmatpush1.msra.mxu0 %v162_v24  ;;  %v315_v20 = vld [vmem:[#allocation5 + $0x828] sm:$0xff]  ;;  %v58_v22 = vld [vmem:[#allocation5 + $0x20] sm:$0xff] }
 0x134   :  { %1808 = vmatpush1.msra.mxu1 %v418_v25  ;;  %1738 = vmatprep.subr.mxu0 %v155_v27  ;;  %v314_v23 = vld [vmem:[#allocation5 + $0x820] sm:$0xff]  ;;  %v307_v24 = vld [vmem:[#allocation5 + $0x7e8] sm:$0xff] }
 0x135   :  { %1809 = vmatprep.subr.mxu1 %v411_v28  ;;  %1739 = vmatpush1.msra.mxu0 %v154_v30  ;;  %v563_v25 = vld [vmem:[#allocation5 + $0xfe8] sm:$0xff]  ;;  %v306_v27 = vld [vmem:[#allocation5 + $0x7e0] sm:$0xff] }
 0x136   :  { %1810 = vmatpush1.msra.mxu1 %v410_v31  ;;  %1740 = vmatprep.subr.mxu0 %v147_v32  ;;  %v562_v28 = vld [vmem:[#allocation5 + $0xfe0] sm:$0xff]  ;;  %v299_v30 = vld [vmem:[#allocation5 + $0x7a8] sm:$0xff] }
 0x137   :  { %1811 = vmatprep.subr.mxu1 %v403_v33  ;;  %1741 = vmatpush1.msra.mxu0 %v146_v34  ;;  %v555_v31 = vld [vmem:[#allocation5 + $0xfa8] sm:$0xff]  ;;  %v298_v32 = vld [vmem:[#allocation5 + $0x7a0] sm:$0xff] }
 0x138   :  { %1812 = vmatpush1.msra.mxu1 %v402_v35  ;;  %1742 = vmatprep.subr.mxu0 %v139_v36  ;;  %v554_v33 = vld [vmem:[#allocation5 + $0xfa0] sm:$0xff]  ;;  %v291_v34 = vld [vmem:[#allocation5 + $0x768] sm:$0xff] }
 0x139   :  { %1813 = vmatprep.subr.mxu1 %v395_v37  ;;  %1743 = vmatpush1.msra.mxu0 %v138_v38  ;;  %v547_v35 = vld [vmem:[#allocation5 + $0xf68] sm:$0xff]  ;;  %v290_v36 = vld [vmem:[#allocation5 + $0x760] sm:$0xff] }
 0x13a   :  { %1814 = vmatpush1.msra.mxu1 %v394_v39  ;;  %1744 = vmatprep.subr.mxu0 %v131_v40  ;;  %v546_v37 = vld [vmem:[#allocation5 + $0xf60] sm:$0xff]  ;;  %v283_v38 = vld [vmem:[#allocation5 + $0x728] sm:$0xff] }
 0x13b   :  { %1815 = vmatprep.subr.mxu1 %v387_v42  ;;  %1745 = vmatpush1.msra.mxu0 %v130_v43  ;;  %v539_v39 = vld [vmem:[#allocation5 + $0xf28] sm:$0xff]  ;;  %v282_v40 = vld [vmem:[#allocation5 + $0x720] sm:$0xff] }
 0x13c   :  { %1816 = vmatpush1.msra.mxu1 %v386_v44  ;;  %1746 = vmatprep.subr.mxu0 %v123_v45  ;;  %v538_v42 = vld [vmem:[#allocation5 + $0xf20] sm:$0xff]  ;;  %v275_v43 = vld [vmem:[#allocation5 + $0x6e8] sm:$0xff] }
 0x13d   :  { %1817 = vmatprep.subr.mxu1 %v379_v46  ;;  %1747 = vmatpush1.msra.mxu0 %v122_v47  ;;  %v531_v44 = vld [vmem:[#allocation5 + $0xee8] sm:$0xff]  ;;  %v274_v45 = vld [vmem:[#allocation5 + $0x6e0] sm:$0xff] }
 0x13e   :  { %1818 = vmatpush1.msra.mxu1 %v378_v48  ;;  %1748 = vmatprep.subr.mxu0 %v115_v49  ;;  %v530_v46 = vld [vmem:[#allocation5 + $0xee0] sm:$0xff]  ;;  %v267_v47 = vld [vmem:[#allocation5 + $0x6a8] sm:$0xff] }
 0x13f   :  { %1819 = vmatprep.subr.mxu1 %v371_v50  ;;  %1749 = vmatpush1.msra.mxu0 %v114_v51  ;;  %v523_v48 = vld [vmem:[#allocation5 + $0xea8] sm:$0xff]  ;;  %v266_v49 = vld [vmem:[#allocation5 + $0x6a0] sm:$0xff] }
 0x140   :  { %1820 = vmatpush1.msra.mxu1 %v370_v53  ;;  %1750 = vmatprep.subr.mxu0 %v107_v54  ;;  %v522_v50 = vld [vmem:[#allocation5 + $0xea0] sm:$0xff]  ;;  %v259_v51 = vld [vmem:[#allocation5 + $0x668] sm:$0xff] }
 0x141   :  { %1821 = vmatprep.subr.mxu1 %v363_v55  ;;  %1751 = vmatpush1.msra.mxu0 %v106_v56  ;;  %v515_v53 = vld [vmem:[#allocation5 + $0xe68] sm:$0xff]  ;;  %v258_v54 = vld [vmem:[#allocation5 + $0x660] sm:$0xff] }
 0x142   :  { %1822 = vmatpush1.msra.mxu1 %v362_v57  ;;  %1752 = vmatprep.subr.mxu0 %v99_v58  ;;  %v514_v55 = vld [vmem:[#allocation5 + $0xe60] sm:$0xff]  ;;  %v251_v56 = vld [vmem:[#allocation5 + $0x628] sm:$0xff] }
 0x143   :  { %1823 = vmatprep.subr.mxu1 %v355_v59  ;;  %1753 = vmatpush1.msra.mxu0 %v98_v60  ;;  %v507_v57 = vld [vmem:[#allocation5 + $0xe28] sm:$0xff]  ;;  %v250_v58 = vld [vmem:[#allocation5 + $0x620] sm:$0xff] }
 0x144   :  { %1824 = vmatpush1.msra.mxu1 %v354_v61  ;;  %1754 = vmatprep.subr.mxu0 %v91_v63  ;;  %v506_v59 = vld [vmem:[#allocation5 + $0xe20] sm:$0xff]  ;;  %v243_v60 = vld [vmem:[#allocation5 + $0x5e8] sm:$0xff] }
 0x145   :  { %1825 = vmatprep.subr.mxu1 %v347_v0  ;;  %1755 = vmatpush1.msra.mxu0 %v90_v1  ;;  %v499_v61 = vld [vmem:[#allocation5 + $0xde8] sm:$0xff]  ;;  %v242_v63 = vld [vmem:[#allocation5 + $0x5e0] sm:$0xff] }
 0x146   :  { %1826 = vmatpush1.msra.mxu1 %v346_v2  ;;  %1756 = vmatprep.subr.mxu0 %v83_v4  ;;  %v498_v0 = vld [vmem:[#allocation5 + $0xde0] sm:$0xff]  ;;  %v235_v1 = vld [vmem:[#allocation5 + $0x5a8] sm:$0xff] }
 0x147   :  { %1827 = vmatprep.subr.mxu1 %v339_v5  ;;  %1757 = vmatpush1.msra.mxu0 %v82_v6  ;;  %v491_v2 = vld [vmem:[#allocation5 + $0xda8] sm:$0xff]  ;;  %v234_v4 = vld [vmem:[#allocation5 + $0x5a0] sm:$0xff] }
 0x148   :  { %1828 = vmatpush1.msra.mxu1 %v338_v7  ;;  %1758 = vmatprep.subr.mxu0 %v75_v9  ;;  %v490_v5 = vld [vmem:[#allocation5 + $0xda0] sm:$0xff]  ;;  %v227_v6 = vld [vmem:[#allocation5 + $0x568] sm:$0xff] }
 0x149   :  { %1829 = vmatprep.subr.mxu1 %v331_v10  ;;  %1759 = vmatpush1.msra.mxu0 %v74_v12  ;;  %v483_v7 = vld [vmem:[#allocation5 + $0xd68] sm:$0xff]  ;;  %v226_v9 = vld [vmem:[#allocation5 + $0x560] sm:$0xff] }
 0x14a   :  { %1830 = vmatpush1.msra.mxu1 %v330_v13  ;;  %1760 = vmatprep.subr.mxu0 %v67_v14  ;;  %v482_v10 = vld [vmem:[#allocation5 + $0xd60] sm:$0xff]  ;;  %v219_v12 = vld [vmem:[#allocation5 + $0x528] sm:$0xff] }
 0x14b   :  { %1831 = vmatprep.subr.mxu1 %v323_v15  ;;  %1761 = vmatpush1.msra.mxu0 %v66_v17  ;;  %v475_v13 = vld [vmem:[#allocation5 + $0xd28] sm:$0xff]  ;;  %v218_v14 = vld [vmem:[#allocation5 + $0x520] sm:$0xff] }
 0x14c   :  { %1832 = vmatpush1.msra.mxu1 %v322_v18  ;;  %1762 = vmatprep.subr.mxu0 %v59_v19  ;;  %v474_v15 = vld [vmem:[#allocation5 + $0xd20] sm:$0xff]  ;;  %v211_v17 = vld [vmem:[#allocation5 + $0x4e8] sm:$0xff] }
 0x14d   :  { %1833 = vmatprep.subr.mxu1 %v315_v20  ;;  %1763 = vmatpush1.msra.mxu0 %v58_v22  ;;  %v467_v18 = vld [vmem:[#allocation5 + $0xce8] sm:$0xff]  ;;  %v210_v19 = vld [vmem:[#allocation5 + $0x4e0] sm:$0xff] }
 0x14e   :  { %1834 = vmatpush1.msra.mxu1 %v314_v23  ;;  %1764 = vmatprep.subr.mxu0 %v307_v24  ;;  %v466_v20 = vld [vmem:[#allocation5 + $0xce0] sm:$0xff]  ;;  %v203_v22 = vld [vmem:[#allocation5 + $0x4a8] sm:$0xff] }
 0x14f   :  { %1835 = vmatprep.subr.mxu1 %v563_v25  ;;  %1765 = vmatpush2.msra.mxu0 %v306_v27  ;;  %v459_v23 = vld [vmem:[#allocation5 + $0xca8] sm:$0xff]  ;;  %v202_v24 = vld [vmem:[#allocation5 + $0x4a0] sm:$0xff] }
 0x150   :  { %1836 = vmatpush2.msra.mxu1 %v562_v28  ;;  %1766 = vmatprep.subr.mxu0 %v299_v30  ;;  %v458_v25 = vld [vmem:[#allocation5 + $0xca0] sm:$0xff]  ;;  %v195_v27 = vld [vmem:[#allocation5 + $0x468] sm:$0xff] }
 0x151   :  { %1837 = vmatprep.subr.mxu1 %v555_v31  ;;  %1767 = vmatpush2.msra.mxu0 %v298_v32  ;;  %v451_v28 = vld [vmem:[#allocation5 + $0xc68] sm:$0xff]  ;;  %v194_v30 = vld [vmem:[#allocation5 + $0x460] sm:$0xff] }
 0x152   :  { %1838 = vmatpush2.msra.mxu1 %v554_v33  ;;  %1768 = vmatprep.subr.mxu0 %v291_v34  ;;  %v450_v31 = vld [vmem:[#allocation5 + $0xc60] sm:$0xff]  ;;  %v187_v32 = vld [vmem:[#allocation5 + $0x428] sm:$0xff] }
 0x153   :  { %1839 = vmatprep.subr.mxu1 %v547_v35  ;;  %1769 = vmatpush2.msra.mxu0 %v290_v36  ;;  %v443_v33 = vld [vmem:[#allocation5 + $0xc28] sm:$0xff]  ;;  %v186_v34 = vld [vmem:[#allocation5 + $0x420] sm:$0xff] }
 0x154   :  { %1840 = vmatpush2.msra.mxu1 %v546_v37  ;;  %1770 = vmatprep.subr.mxu0 %v283_v38  ;;  %v442_v35 = vld [vmem:[#allocation5 + $0xc20] sm:$0xff]  ;;  %v691_v36 = vld [vmem:[#allocation5 + $0x13e8] sm:$0xff] }
 0x155   :  { %1841 = vmatprep.subr.mxu1 %v539_v39  ;;  %1771 = vmatpush2.msra.mxu0 %v282_v40  ;;  %v947_v37 = vld [vmem:[#allocation5 + $0x1be8] sm:$0xff]  ;;  %v690_v38 = vld [vmem:[#allocation5 + $0x13e0] sm:$0xff] }
 0x156   :  { %1842 = vmatpush2.msra.mxu1 %v538_v42  ;;  %1772 = vmatprep.subr.mxu0 %v275_v43  ;;  %v946_v39 = vld [vmem:[#allocation5 + $0x1be0] sm:$0xff]  ;;  %v683_v40 = vld [vmem:[#allocation5 + $0x13a8] sm:$0xff] }
 0x157   :  { %1843 = vmatprep.subr.mxu1 %v531_v44  ;;  %1773 = vmatpush2.msra.mxu0 %v274_v45  ;;  %v939_v42 = vld [vmem:[#allocation5 + $0x1ba8] sm:$0xff]  ;;  %v682_v43 = vld [vmem:[#allocation5 + $0x13a0] sm:$0xff] }
 0x158   :  { %1844 = vmatpush2.msra.mxu1 %v530_v46  ;;  %1774 = vmatprep.subr.mxu0 %v267_v47  ;;  %v938_v44 = vld [vmem:[#allocation5 + $0x1ba0] sm:$0xff]  ;;  %v675_v45 = vld [vmem:[#allocation5 + $0x1368] sm:$0xff] }
 0x159   :  { %1845 = vmatprep.subr.mxu1 %v523_v48  ;;  %1775 = vmatpush2.msra.mxu0 %v266_v49  ;;  %v931_v46 = vld [vmem:[#allocation5 + $0x1b68] sm:$0xff]  ;;  %v674_v47 = vld [vmem:[#allocation5 + $0x1360] sm:$0xff] }
 0x15a   :  { %1846 = vmatpush2.msra.mxu1 %v522_v50  ;;  %1776 = vmatprep.subr.mxu0 %v259_v51  ;;  %v930_v48 = vld [vmem:[#allocation5 + $0x1b60] sm:$0xff]  ;;  %v667_v49 = vld [vmem:[#allocation5 + $0x1328] sm:$0xff] }
 0x15b   :  { %1847 = vmatprep.subr.mxu1 %v515_v53  ;;  %1777 = vmatpush2.msra.mxu0 %v258_v54  ;;  %v923_v50 = vld [vmem:[#allocation5 + $0x1b28] sm:$0xff]  ;;  %v666_v51 = vld [vmem:[#allocation5 + $0x1320] sm:$0xff] }
 0x15c   :  { %1848 = vmatpush2.msra.mxu1 %v514_v55  ;;  %1778 = vmatprep.subr.mxu0 %v251_v56  ;;  %v922_v53 = vld [vmem:[#allocation5 + $0x1b20] sm:$0xff]  ;;  %v659_v54 = vld [vmem:[#allocation5 + $0x12e8] sm:$0xff] }
 0x15d   :  { %1849 = vmatprep.subr.mxu1 %v507_v57  ;;  %1779 = vmatpush2.msra.mxu0 %v250_v58  ;;  %v915_v55 = vld [vmem:[#allocation5 + $0x1ae8] sm:$0xff]  ;;  %v658_v56 = vld [vmem:[#allocation5 + $0x12e0] sm:$0xff] }
 0x15e   :  { %1850 = vmatpush2.msra.mxu1 %v506_v59  ;;  %1780 = vmatprep.subr.mxu0 %v243_v60  ;;  %v914_v57 = vld [vmem:[#allocation5 + $0x1ae0] sm:$0xff]  ;;  %v651_v58 = vld [vmem:[#allocation5 + $0x12a8] sm:$0xff] }
 0x15f   :  { %1851 = vmatprep.subr.mxu1 %v499_v61  ;;  %1781 = vmatpush2.msra.mxu0 %v242_v63  ;;  %v907_v59 = vld [vmem:[#allocation5 + $0x1aa8] sm:$0xff]  ;;  %v650_v60 = vld [vmem:[#allocation5 + $0x12a0] sm:$0xff] }
 0x160   :  { %1852 = vmatpush2.msra.mxu1 %v498_v0  ;;  %1782 = vmatprep.subr.mxu0 %v235_v1  ;;  %v906_v61 = vld [vmem:[#allocation5 + $0x1aa0] sm:$0xff]  ;;  %v643_v63 = vld [vmem:[#allocation5 + $0x1268] sm:$0xff] }
 0x161   :  { %1853 = vmatprep.subr.mxu1 %v491_v2  ;;  %1783 = vmatpush2.msra.mxu0 %v234_v4  ;;  %v899_v0 = vld [vmem:[#allocation5 + $0x1a68] sm:$0xff]  ;;  %v642_v1 = vld [vmem:[#allocation5 + $0x1260] sm:$0xff] }
 0x162   :  { %1854 = vmatpush2.msra.mxu1 %v490_v5  ;;  %1784 = vmatprep.subr.mxu0 %v227_v6  ;;  %v898_v2 = vld [vmem:[#allocation5 + $0x1a60] sm:$0xff]  ;;  %v635_v4 = vld [vmem:[#allocation5 + $0x1228] sm:$0xff] }
 0x163   :  { %1855 = vmatprep.subr.mxu1 %v483_v7  ;;  %1785 = vmatpush2.msra.mxu0 %v226_v9  ;;  %v891_v5 = vld [vmem:[#allocation5 + $0x1a28] sm:$0xff]  ;;  %v634_v6 = vld [vmem:[#allocation5 + $0x1220] sm:$0xff] }
 0x164   :  { %1856 = vmatpush2.msra.mxu1 %v482_v10  ;;  %1786 = vmatprep.subr.mxu0 %v219_v12  ;;  %v890_v7 = vld [vmem:[#allocation5 + $0x1a20] sm:$0xff]  ;;  %v627_v9 = vld [vmem:[#allocation5 + $0x11e8] sm:$0xff] }
 0x165   :  { %1857 = vmatprep.subr.mxu1 %v475_v13  ;;  %1787 = vmatpush2.msra.mxu0 %v218_v14  ;;  %v883_v10 = vld [vmem:[#allocation5 + $0x19e8] sm:$0xff]  ;;  %v626_v12 = vld [vmem:[#allocation5 + $0x11e0] sm:$0xff] }
 0x166   :  { %1858 = vmatpush2.msra.mxu1 %v474_v15  ;;  %1788 = vmatprep.subr.mxu0 %v211_v17  ;;  %v882_v13 = vld [vmem:[#allocation5 + $0x19e0] sm:$0xff]  ;;  %v619_v14 = vld [vmem:[#allocation5 + $0x11a8] sm:$0xff] }
 0x167   :  { %1859 = vmatprep.subr.mxu1 %v467_v18  ;;  %1789 = vmatpush2.msra.mxu0 %v210_v19  ;;  %v875_v15 = vld [vmem:[#allocation5 + $0x19a8] sm:$0xff]  ;;  %v618_v17 = vld [vmem:[#allocation5 + $0x11a0] sm:$0xff] }
 0x168   :  { %1860 = vmatpush2.msra.mxu1 %v466_v20  ;;  %1790 = vmatprep.subr.mxu0 %v203_v22  ;;  %v874_v18 = vld [vmem:[#allocation5 + $0x19a0] sm:$0xff]  ;;  %v611_v19 = vld [vmem:[#allocation5 + $0x1168] sm:$0xff] }
 0x169   :  { %1861 = vmatprep.subr.mxu1 %v459_v23  ;;  %1791 = vmatpush2.msra.mxu0 %v202_v24  ;;  %v867_v20 = vld [vmem:[#allocation5 + $0x1968] sm:$0xff]  ;;  %v610_v22 = vld [vmem:[#allocation5 + $0x1160] sm:$0xff] }
 0x16a   :  { %1862 = vmatpush2.msra.mxu1 %v458_v25  ;;  %1792 = vmatprep.subr.mxu0 %v195_v27  ;;  %v866_v23 = vld [vmem:[#allocation5 + $0x1960] sm:$0xff]  ;;  %v603_v24 = vld [vmem:[#allocation5 + $0x1128] sm:$0xff] }
 0x16b   :  { %1863 = vmatprep.subr.mxu1 %v451_v28  ;;  %1793 = vmatpush2.msra.mxu0 %v194_v30  ;;  %v859_v25 = vld [vmem:[#allocation5 + $0x1928] sm:$0xff]  ;;  %v602_v27 = vld [vmem:[#allocation5 + $0x1120] sm:$0xff] }
 0x16c   :  { %1864 = vmatpush2.msra.mxu1 %v450_v31  ;;  %1794 = vmatprep.subr.mxu0 %v187_v32  ;;  %v858_v28 = vld [vmem:[#allocation5 + $0x1920] sm:$0xff]  ;;  %v595_v30 = vld [vmem:[#allocation5 + $0x10e8] sm:$0xff] }
 0x16d   :  { %1865 = vmatprep.subr.mxu1 %v443_v33  ;;  %1795 = vmatpush2.msra.mxu0 %v186_v34  ;;  %v851_v31 = vld [vmem:[#allocation5 + $0x18e8] sm:$0xff]  ;;  %v594_v32 = vld [vmem:[#allocation5 + $0x10e0] sm:$0xff] }
 0x16e   :  { %1796 = vmatprep.mubr.f32.mxu0 %v2594_v8  ;;  %1866 = vmatpush2.msra.mxu1 %v442_v35  ;;  %v850_v33 = vld [vmem:[#allocation5 + $0x18e0] sm:$0xff]  ;;  %v587_v34 = vld [vmem:[#allocation5 + $0x10a8] sm:$0xff] }
 0x16f   :  { %1797 = vmatmul.mubr.f32.vlgmr.msra.gmra.mxu0 %v2587_v62  ;;  %1867 = vmatprep.mubr.f32.mxu1 %v2598_v11  ;;  %v843_v35 = vld [vmem:[#allocation5 + $0x18a8] sm:$0xff] }
 0x170   :  { %1874 = vmatprep.subr.mxu0 %v691_v36  ;;  %1945 = vmatprep.subr.mxu1 %v947_v37  ;;  %v586_v36 = vld [vmem:[#allocation5 + $0x10a0] sm:$0xff] }
 0x171   :  { %1868 = vmatmul.mubr.f32.vlgmr.msra.gmra.mxu1 %v2590_v3  ;;  %1875 = vmatpush1.msra.mxu0 %v690_v38  ;;  %v842_v37 = vld [vmem:[#allocation5 + $0x18a0] sm:$0xff]  ;;  %v579_v38 = vld [vmem:[#allocation5 + $0x1068] sm:$0xff] }
 0x172   :  { %1946 = vmatpush1.msra.mxu1 %v946_v39  ;;  %1876 = vmatprep.subr.mxu0 %v683_v40  ;;  %v835_v39 = vld [vmem:[#allocation5 + $0x1868] sm:$0xff]  ;;  %v578_v40 = vld [vmem:[#allocation5 + $0x1060] sm:$0xff] }
 0x173   :  { %1947 = vmatprep.subr.mxu1 %v939_v42  ;;  %1877 = vmatpush1.msra.mxu0 %v682_v43  ;;  %v834_v42 = vld [vmem:[#allocation5 + $0x1860] sm:$0xff]  ;;  %v571_v43 = vld [vmem:[#allocation5 + $0x1028] sm:$0xff] }
 0x174   :  { %1948 = vmatpush1.msra.mxu1 %v938_v44  ;;  %1878 = vmatprep.subr.mxu0 %v675_v45  ;;  %v827_v44 = vld [vmem:[#allocation5 + $0x1828] sm:$0xff]  ;;  %v570_v45 = vld [vmem:[#allocation5 + $0x1020] sm:$0xff] }
 0x175   :  { %1949 = vmatprep.subr.mxu1 %v931_v46  ;;  %1879 = vmatpush1.msra.mxu0 %v674_v47  ;;  %v826_v46 = vld [vmem:[#allocation5 + $0x1820] sm:$0xff]  ;;  %v819_v47 = vld [vmem:[#allocation5 + $0x17e8] sm:$0xff] }
 0x176   :  { %1950 = vmatpush1.msra.mxu1 %v930_v48  ;;  %1880 = vmatprep.subr.mxu0 %v667_v49  ;;  %v1075_v48 = vld [vmem:[#allocation5 + $0x1fe8] sm:$0xff]  ;;  %v818_v49 = vld [vmem:[#allocation5 + $0x17e0] sm:$0xff] }
 0x177   :  { %1951 = vmatprep.subr.mxu1 %v923_v50  ;;  %1881 = vmatpush1.msra.mxu0 %v666_v51  ;;  %v1074_v50 = vld [vmem:[#allocation5 + $0x1fe0] sm:$0xff]  ;;  %v811_v51 = vld [vmem:[#allocation5 + $0x17a8] sm:$0xff] }
 0x178   :  { %1952 = vmatpush1.msra.mxu1 %v922_v53  ;;  %1882 = vmatprep.subr.mxu0 %v659_v54  ;;  %v1067_v53 = vld [vmem:[#allocation5 + $0x1fa8] sm:$0xff]  ;;  %v810_v54 = vld [vmem:[#allocation5 + $0x17a0] sm:$0xff] }
 0x179   :  { %1953 = vmatprep.subr.mxu1 %v915_v55  ;;  %1883 = vmatpush1.msra.mxu0 %v658_v56  ;;  %v1066_v55 = vld [vmem:[#allocation5 + $0x1fa0] sm:$0xff]  ;;  %v803_v56 = vld [vmem:[#allocation5 + $0x1768] sm:$0xff] }
 0x17a   :  { %1954 = vmatpush1.msra.mxu1 %v914_v57  ;;  %1884 = vmatprep.subr.mxu0 %v651_v58  ;;  %v1059_v57 = vld [vmem:[#allocation5 + $0x1f68] sm:$0xff]  ;;  %v802_v58 = vld [vmem:[#allocation5 + $0x1760] sm:$0xff] }
 0x17b   :  { %1955 = vmatprep.subr.mxu1 %v907_v59  ;;  %1885 = vmatpush1.msra.mxu0 %v650_v60  ;;  %v1058_v59 = vld [vmem:[#allocation5 + $0x1f60] sm:$0xff]  ;;  %v795_v60 = vld [vmem:[#allocation5 + $0x1728] sm:$0xff] }
 0x17c   :  { %1956 = vmatpush1.msra.mxu1 %v906_v61  ;;  %1886 = vmatprep.subr.mxu0 %v643_v63  ;;  %v1051_v61 = vld [vmem:[#allocation5 + $0x1f28] sm:$0xff]  ;;  %v794_v63 = vld [vmem:[#allocation5 + $0x1720] sm:$0xff] }
 0x17d   :  { %1957 = vmatprep.subr.mxu1 %v899_v0  ;;  %1887 = vmatpush1.msra.mxu0 %v642_v1  ;;  %v1050_v0 = vld [vmem:[#allocation5 + $0x1f20] sm:$0xff]  ;;  %v787_v1 = vld [vmem:[#allocation5 + $0x16e8] sm:$0xff] }
 0x17e   :  { %1958 = vmatpush1.msra.mxu1 %v898_v2  ;;  %1888 = vmatprep.subr.mxu0 %v635_v4  ;;  %v1043_v2 = vld [vmem:[#allocation5 + $0x1ee8] sm:$0xff]  ;;  %v786_v4 = vld [vmem:[#allocation5 + $0x16e0] sm:$0xff] }
 0x17f   :  { %1959 = vmatprep.subr.mxu1 %v891_v5  ;;  %1889 = vmatpush1.msra.mxu0 %v634_v6  ;;  %v1042_v5 = vld [vmem:[#allocation5 + $0x1ee0] sm:$0xff]  ;;  %v779_v6 = vld [vmem:[#allocation5 + $0x16a8] sm:$0xff] }
 0x180   :  { %1960 = vmatpush1.msra.mxu1 %v890_v7  ;;  %1890 = vmatprep.subr.mxu0 %v627_v9  ;;  %v1035_v7 = vld [vmem:[#allocation5 + $0x1ea8] sm:$0xff]  ;;  %v778_v9 = vld [vmem:[#allocation5 + $0x16a0] sm:$0xff] }
 0x181   :  { %1961 = vmatprep.subr.mxu1 %v883_v10  ;;  %1891 = vmatpush1.msra.mxu0 %v626_v12  ;;  %v1034_v10 = vld [vmem:[#allocation5 + $0x1ea0] sm:$0xff]  ;;  %v771_v12 = vld [vmem:[#allocation5 + $0x1668] sm:$0xff] }
 0x182   :  { %1962 = vmatpush1.msra.mxu1 %v882_v13  ;;  %1892 = vmatprep.subr.mxu0 %v619_v14  ;;  %v1027_v13 = vld [vmem:[#allocation5 + $0x1e68] sm:$0xff]  ;;  %v770_v14 = vld [vmem:[#allocation5 + $0x1660] sm:$0xff] }
 0x183   :  { %1963 = vmatprep.subr.mxu1 %v875_v15  ;;  %1893 = vmatpush1.msra.mxu0 %v618_v17  ;;  %v1026_v15 = vld [vmem:[#allocation5 + $0x1e60] sm:$0xff]  ;;  %v763_v17 = vld [vmem:[#allocation5 + $0x1628] sm:$0xff] }
 0x184   :  { %1964 = vmatpush1.msra.mxu1 %v874_v18  ;;  %1894 = vmatprep.subr.mxu0 %v611_v19  ;;  %v1019_v18 = vld [vmem:[#allocation5 + $0x1e28] sm:$0xff]  ;;  %v762_v19 = vld [vmem:[#allocation5 + $0x1620] sm:$0xff] }
 0x185   :  { %1965 = vmatprep.subr.mxu1 %v867_v20  ;;  %1895 = vmatpush1.msra.mxu0 %v610_v22  ;;  %v1018_v20 = vld [vmem:[#allocation5 + $0x1e20] sm:$0xff]  ;;  %v755_v22 = vld [vmem:[#allocation5 + $0x15e8] sm:$0xff] }
 0x186   :  { %1966 = vmatpush1.msra.mxu1 %v866_v23  ;;  %1896 = vmatprep.subr.mxu0 %v603_v24  ;;  %v1011_v23 = vld [vmem:[#allocation5 + $0x1de8] sm:$0xff]  ;;  %v754_v24 = vld [vmem:[#allocation5 + $0x15e0] sm:$0xff] }
 0x187   :  { %1967 = vmatprep.subr.mxu1 %v859_v25  ;;  %1897 = vmatpush1.msra.mxu0 %v602_v27  ;;  %v1010_v25 = vld [vmem:[#allocation5 + $0x1de0] sm:$0xff]  ;;  %v747_v27 = vld [vmem:[#allocation5 + $0x15a8] sm:$0xff] }
 0x188   :  { %1968 = vmatpush1.msra.mxu1 %v858_v28  ;;  %1898 = vmatprep.subr.mxu0 %v595_v30  ;;  %v1003_v28 = vld [vmem:[#allocation5 + $0x1da8] sm:$0xff]  ;;  %v746_v30 = vld [vmem:[#allocation5 + $0x15a0] sm:$0xff] }
 0x189   :  { %1969 = vmatprep.subr.mxu1 %v851_v31  ;;  %1899 = vmatpush1.msra.mxu0 %v594_v32  ;;  %v1002_v31 = vld [vmem:[#allocation5 + $0x1da0] sm:$0xff]  ;;  %v739_v32 = vld [vmem:[#allocation5 + $0x1568] sm:$0xff] }
 0x18a   :  { %1970 = vmatpush1.msra.mxu1 %v850_v33  ;;  %1900 = vmatprep.subr.mxu0 %v587_v34  ;;  %v995_v33 = vld [vmem:[#allocation5 + $0x1d68] sm:$0xff]  ;;  %v738_v34 = vld [vmem:[#allocation5 + $0x1560] sm:$0xff] }
 0x18b   :  { %1971 = vmatprep.subr.mxu1 %v843_v35  ;;  %1901 = vmatpush1.msra.mxu0 %v586_v36  ;;  %v994_v35 = vld [vmem:[#allocation5 + $0x1d60] sm:$0xff]  ;;  %v731_v36 = vld [vmem:[#allocation5 + $0x1528] sm:$0xff] }
 0x18c   :  { %1972 = vmatpush1.msra.mxu1 %v842_v37  ;;  %1902 = vmatprep.subr.mxu0 %v579_v38  ;;  %v987_v37 = vld [vmem:[#allocation5 + $0x1d28] sm:$0xff]  ;;  %v730_v38 = vld [vmem:[#allocation5 + $0x1520] sm:$0xff] }
 0x18d   :  { %1973 = vmatprep.subr.mxu1 %v835_v39  ;;  %1903 = vmatpush1.msra.mxu0 %v578_v40  ;;  %v986_v39 = vld [vmem:[#allocation5 + $0x1d20] sm:$0xff]  ;;  %v723_v40 = vld [vmem:[#allocation5 + $0x14e8] sm:$0xff] }
 0x18e   :  { %1974 = vmatpush1.msra.mxu1 %v834_v42  ;;  %1904 = vmatprep.subr.mxu0 %v571_v43  ;;  %v979_v42 = vld [vmem:[#allocation5 + $0x1ce8] sm:$0xff]  ;;  %v722_v43 = vld [vmem:[#allocation5 + $0x14e0] sm:$0xff] }
 0x18f   :  { %1975 = vmatprep.subr.mxu1 %v827_v44  ;;  %1905 = vmatpush1.msra.mxu0 %v570_v45  ;;  %v978_v44 = vld [vmem:[#allocation5 + $0x1ce0] sm:$0xff]  ;;  %v715_v45 = vld [vmem:[#allocation5 + $0x14a8] sm:$0xff] }
 0x190   :  { %1976 = vmatpush1.msra.mxu1 %v826_v46  ;;  %1906 = vmatprep.subr.mxu0 %v819_v47  ;;  %v971_v46 = vld [vmem:[#allocation5 + $0x1ca8] sm:$0xff]  ;;  %v714_v47 = vld [vmem:[#allocation5 + $0x14a0] sm:$0xff] }
 0x191   :  { %1977 = vmatprep.subr.mxu1 %v1075_v48  ;;  %1907 = vmatpush2.msra.mxu0 %v818_v49  ;;  %v970_v48 = vld [vmem:[#allocation5 + $0x1ca0] sm:$0xff]  ;;  %v707_v49 = vld [vmem:[#allocation5 + $0x1468] sm:$0xff] }
 0x192   :  { %1978 = vmatpush2.msra.mxu1 %v1074_v50  ;;  %1908 = vmatprep.subr.mxu0 %v811_v51  ;;  %v963_v50 = vld [vmem:[#allocation5 + $0x1c68] sm:$0xff]  ;;  %v706_v51 = vld [vmem:[#allocation5 + $0x1460] sm:$0xff] }
 0x193   :  { %1979 = vmatprep.subr.mxu1 %v1067_v53  ;;  %1909 = vmatpush2.msra.mxu0 %v810_v54  ;;  %v962_v53 = vld [vmem:[#allocation5 + $0x1c60] sm:$0xff]  ;;  %v699_v54 = vld [vmem:[#allocation5 + $0x1428] sm:$0xff] }
 0x194   :  { %1980 = vmatpush2.msra.mxu1 %v1066_v55  ;;  %1910 = vmatprep.subr.mxu0 %v803_v56  ;;  %v955_v55 = vld [vmem:[#allocation5 + $0x1c28] sm:$0xff]  ;;  %v698_v56 = vld [vmem:[#allocation5 + $0x1420] sm:$0xff] }
 0x195   :  { %1981 = vmatprep.subr.mxu1 %v1059_v57  ;;  %1911 = vmatpush2.msra.mxu0 %v802_v58  ;;  %v954_v57 = vld [vmem:[#allocation5 + $0x1c20] sm:$0xff]  ;;  %v181_v58 = vld [vmem:[#allocation5 + $0x3f8] sm:$0xff] }
 0x196   :  { %1982 = vmatpush2.msra.mxu1 %v1058_v59  ;;  %1912 = vmatprep.subr.mxu0 %v795_v60  ;;  %v437_v59 = vld [vmem:[#allocation5 + $0xbf8] sm:$0xff]  ;;  %v180_v60 = vld [vmem:[#allocation5 + $0x3f0] sm:$0xff] }
 0x197   :  { %1983 = vmatprep.subr.mxu1 %v1051_v61  ;;  %1913 = vmatpush2.msra.mxu0 %v794_v63  ;;  %v436_v61 = vld [vmem:[#allocation5 + $0xbf0] sm:$0xff]  ;;  %v173_v63 = vld [vmem:[#allocation5 + $0x3b8] sm:$0xff] }
 0x198   :  { %1984 = vmatpush2.msra.mxu1 %v1050_v0  ;;  %1914 = vmatprep.subr.mxu0 %v787_v1  ;;  %v429_v0 = vld [vmem:[#allocation5 + $0xbb8] sm:$0xff]  ;;  %v172_v1 = vld [vmem:[#allocation5 + $0x3b0] sm:$0xff] }
 0x199   :  { %1985 = vmatprep.subr.mxu1 %v1043_v2  ;;  %1915 = vmatpush2.msra.mxu0 %v786_v4  ;;  %v428_v2 = vld [vmem:[#allocation5 + $0xbb0] sm:$0xff]  ;;  %v165_v4 = vld [vmem:[#allocation5 + $0x378] sm:$0xff] }
 0x19a   :  { %1986 = vmatpush2.msra.mxu1 %v1042_v5  ;;  %1916 = vmatprep.subr.mxu0 %v779_v6  ;;  %v421_v5 = vld [vmem:[#allocation5 + $0xb78] sm:$0xff]  ;;  %v164_v6 = vld [vmem:[#allocation5 + $0x370] sm:$0xff] }
 0x19b   :  { %1987 = vmatprep.subr.mxu1 %v1035_v7  ;;  %1917 = vmatpush2.msra.mxu0 %v778_v9  ;;  %v420_v7 = vld [vmem:[#allocation5 + $0xb70] sm:$0xff]  ;;  %v157_v9 = vld [vmem:[#allocation5 + $0x338] sm:$0xff] }
 0x19c   :  { %1988 = vmatpush2.msra.mxu1 %v1034_v10  ;;  %1918 = vmatprep.subr.mxu0 %v771_v12  ;;  %v413_v10 = vld [vmem:[#allocation5 + $0xb38] sm:$0xff]  ;;  %v156_v12 = vld [vmem:[#allocation5 + $0x330] sm:$0xff] }
 0x19d   :  { %1989 = vmatprep.subr.mxu1 %v1027_v13  ;;  %1919 = vmatpush2.msra.mxu0 %v770_v14  ;;  %v412_v13 = vld [vmem:[#allocation5 + $0xb30] sm:$0xff]  ;;  %v149_v14 = vld [vmem:[#allocation5 + $0x2f8] sm:$0xff] }
 0x19e   :  { %1990 = vmatpush2.msra.mxu1 %v1026_v15  ;;  %1920 = vmatprep.subr.mxu0 %v763_v17  ;;  %v405_v15 = vld [vmem:[#allocation5 + $0xaf8] sm:$0xff]  ;;  %v148_v17 = vld [vmem:[#allocation5 + $0x2f0] sm:$0xff] }
 0x19f   :  { %1991 = vmatprep.subr.mxu1 %v1019_v18  ;;  %1921 = vmatpush2.msra.mxu0 %v762_v19  ;;  %v404_v18 = vld [vmem:[#allocation5 + $0xaf0] sm:$0xff]  ;;  %v141_v19 = vld [vmem:[#allocation5 + $0x2b8] sm:$0xff] }
 0x1a0   :  { %1992 = vmatpush2.msra.mxu1 %v1018_v20  ;;  %1922 = vmatprep.subr.mxu0 %v755_v22  ;;  %v397_v20 = vld [vmem:[#allocation5 + $0xab8] sm:$0xff]  ;;  %v140_v22 = vld [vmem:[#allocation5 + $0x2b0] sm:$0xff] }
 0x1a1   :  { %1993 = vmatprep.subr.mxu1 %v1011_v23  ;;  %1923 = vmatpush2.msra.mxu0 %v754_v24  ;;  %v396_v23 = vld [vmem:[#allocation5 + $0xab0] sm:$0xff]  ;;  %v133_v24 = vld [vmem:[#allocation5 + $0x278] sm:$0xff] }
 0x1a2   :  { %1994 = vmatpush2.msra.mxu1 %v1010_v25  ;;  %1924 = vmatprep.subr.mxu0 %v747_v27  ;;  %v389_v25 = vld [vmem:[#allocation5 + $0xa78] sm:$0xff]  ;;  %v132_v27 = vld [vmem:[#allocation5 + $0x270] sm:$0xff] }
 0x1a3   :  { %1995 = vmatprep.subr.mxu1 %v1003_v28  ;;  %1925 = vmatpush2.msra.mxu0 %v746_v30  ;;  %v388_v28 = vld [vmem:[#allocation5 + $0xa70] sm:$0xff]  ;;  %v125_v30 = vld [vmem:[#allocation5 + $0x238] sm:$0xff] }
 0x1a4   :  { %1996 = vmatpush2.msra.mxu1 %v1002_v31  ;;  %1926 = vmatprep.subr.mxu0 %v739_v32  ;;  %v381_v31 = vld [vmem:[#allocation5 + $0xa38] sm:$0xff]  ;;  %v124_v32 = vld [vmem:[#allocation5 + $0x230] sm:$0xff] }
 0x1a5   :  { %1997 = vmatprep.subr.mxu1 %v995_v33  ;;  %1927 = vmatpush2.msra.mxu0 %v738_v34  ;;  %v380_v33 = vld [vmem:[#allocation5 + $0xa30] sm:$0xff]  ;;  %v117_v34 = vld [vmem:[#allocation5 + $0x1f8] sm:$0xff] }
 0x1a6   :  { %1998 = vmatpush2.msra.mxu1 %v994_v35  ;;  %1928 = vmatprep.subr.mxu0 %v731_v36  ;;  %v373_v35 = vld [vmem:[#allocation5 + $0x9f8] sm:$0xff]  ;;  %v116_v36 = vld [vmem:[#allocation5 + $0x1f0] sm:$0xff] }
 0x1a7   :  { %1999 = vmatprep.subr.mxu1 %v987_v37  ;;  %1929 = vmatpush2.msra.mxu0 %v730_v38  ;;  %v372_v37 = vld [vmem:[#allocation5 + $0x9f0] sm:$0xff]  ;;  %v109_v38 = vld [vmem:[#allocation5 + $0x1b8] sm:$0xff] }
 0x1a8   :  { %2000 = vmatpush2.msra.mxu1 %v986_v39  ;;  %1930 = vmatprep.subr.mxu0 %v723_v40  ;;  %v365_v39 = vld [vmem:[#allocation5 + $0x9b8] sm:$0xff]  ;;  %v108_v40 = vld [vmem:[#allocation5 + $0x1b0] sm:$0xff] }
 0x1a9   :  { %2001 = vmatprep.subr.mxu1 %v979_v42  ;;  %1931 = vmatpush2.msra.mxu0 %v722_v43  ;;  %v364_v42 = vld [vmem:[#allocation5 + $0x9b0] sm:$0xff]  ;;  %v101_v43 = vld [vmem:[#allocation5 + $0x178] sm:$0xff] }
 0x1aa   :  { %2002 = vmatpush2.msra.mxu1 %v978_v44  ;;  %1932 = vmatprep.subr.mxu0 %v715_v45  ;;  %v357_v44 = vld [vmem:[#allocation5 + $0x978] sm:$0xff]  ;;  %v100_v45 = vld [vmem:[#allocation5 + $0x170] sm:$0xff] }
 0x1ab   :  { %2003 = vmatprep.subr.mxu1 %v971_v46  ;;  %1933 = vmatpush2.msra.mxu0 %v714_v47  ;;  %v356_v46 = vld [vmem:[#allocation5 + $0x970] sm:$0xff]  ;;  %v93_v47 = vld [vmem:[#allocation5 + $0x138] sm:$0xff] }
 0x1ac   :  { %2004 = vmatpush2.msra.mxu1 %v970_v48  ;;  %1934 = vmatprep.subr.mxu0 %v707_v49  ;;  %v349_v48 = vld [vmem:[#allocation5 + $0x938] sm:$0xff]  ;;  %v92_v49 = vld [vmem:[#allocation5 + $0x130] sm:$0xff] }
 0x1ad   :  { %2005 = vmatprep.subr.mxu1 %v963_v50  ;;  %1935 = vmatpush2.msra.mxu0 %v706_v51  ;;  %v348_v50 = vld [vmem:[#allocation5 + $0x930] sm:$0xff]  ;;  %v85_v51 = vld [vmem:[#allocation5 + $0xf8] sm:$0xff] }
 0x1ae   :  { %2006 = vmatpush2.msra.mxu1 %v962_v53  ;;  %1936 = vmatprep.subr.mxu0 %v699_v54  ;;  %v341_v53 = vld [vmem:[#allocation5 + $0x8f8] sm:$0xff]  ;;  %v84_v54 = vld [vmem:[#allocation5 + $0xf0] sm:$0xff] }
 0x1af   :  { %2007 = vmatprep.subr.mxu1 %v955_v55  ;;  %1937 = vmatpush2.msra.mxu0 %v698_v56  ;;  %v340_v55 = vld [vmem:[#allocation5 + $0x8f0] sm:$0xff]  ;;  %v77_v56 = vld [vmem:[#allocation5 + $0xb8] sm:$0xff] }
 0x1b0   :  { %1938 = vmatprep.mubr.f32.mxu0 %v2612_v26  ;;  %2008 = vmatpush2.msra.mxu1 %v954_v57  ;;  %v333_v57 = vld [vmem:[#allocation5 + $0x8b8] sm:$0xff] }
 0x1b1   :  { %1939 = vmatmul.mubr.f32.vlgmr.msra.gmra.mxu0 %v2605_v16  ;;  %2009 = vmatprep.mubr.f32.mxu1 %v2616_v29 }
 0x1b2   :  { %2016 = vmatprep.subr.mxu0 %v181_v58  ;;  %2087 = vmatprep.subr.mxu1 %v437_v59  ;;  %v76_v58 = vld [vmem:[#allocation5 + $0xb0] sm:$0xff] }
 0x1b3   :  { %2010 = vmatmul.mubr.f32.vlgmr.msra.gmra.mxu1 %v2608_v21  ;;  %2017 = vmatpush1.msra.mxu0 %v180_v60  ;;  %v332_v59 = vld [vmem:[#allocation5 + $0x8b0] sm:$0xff]  ;;  %v69_v60 = vld [vmem:[#allocation5 + $0x78] sm:$0xff] }
 0x1b4   :  { %2088 = vmatpush1.msra.mxu1 %v436_v61  ;;  %2018 = vmatprep.subr.mxu0 %v173_v63  ;;  %v325_v61 = vld [vmem:[#allocation5 + $0x878] sm:$0xff]  ;;  %v68_v63 = vld [vmem:[#allocation5 + $0x70] sm:$0xff] }
 0x1b5   :  { %2089 = vmatprep.subr.mxu1 %v429_v0  ;;  %2019 = vmatpush1.msra.mxu0 %v172_v1  ;;  %v324_v0 = vld [vmem:[#allocation5 + $0x870] sm:$0xff]  ;;  %v61_v1 = vld [vmem:[#allocation5 + $0x38] sm:$0xff] }
 0x1b6   :  { %2090 = vmatpush1.msra.mxu1 %v428_v2  ;;  %2020 = vmatprep.subr.mxu0 %v165_v4  ;;  %v317_v2 = vld [vmem:[#allocation5 + $0x838] sm:$0xff]  ;;  %v60_v4 = vld [vmem:[#allocation5 + $0x30] sm:$0xff] }
 0x1b7   :  { %2091 = vmatprep.subr.mxu1 %v421_v5  ;;  %2021 = vmatpush1.msra.mxu0 %v164_v6  ;;  %v316_v5 = vld [vmem:[#allocation5 + $0x830] sm:$0xff]  ;;  %v309_v6 = vld [vmem:[#allocation5 + $0x7f8] sm:$0xff] }
 0x1b8   :  { %2092 = vmatpush1.msra.mxu1 %v420_v7  ;;  %2022 = vmatprep.subr.mxu0 %v157_v9  ;;  %v565_v7 = vld [vmem:[#allocation5 + $0xff8] sm:$0xff]  ;;  %v308_v9 = vld [vmem:[#allocation5 + $0x7f0] sm:$0xff] }
 0x1b9   :  { %2093 = vmatprep.subr.mxu1 %v413_v10  ;;  %2023 = vmatpush1.msra.mxu0 %v156_v12  ;;  %v564_v10 = vld [vmem:[#allocation5 + $0xff0] sm:$0xff]  ;;  %v301_v12 = vld [vmem:[#allocation5 + $0x7b8] sm:$0xff] }
 0x1ba   :  { %2094 = vmatpush1.msra.mxu1 %v412_v13  ;;  %2024 = vmatprep.subr.mxu0 %v149_v14  ;;  %v557_v13 = vld [vmem:[#allocation5 + $0xfb8] sm:$0xff]  ;;  %v300_v14 = vld [vmem:[#allocation5 + $0x7b0] sm:$0xff] }
 0x1bb   :  { %2095 = vmatprep.subr.mxu1 %v405_v15  ;;  %2025 = vmatpush1.msra.mxu0 %v148_v17  ;;  %v556_v15 = vld [vmem:[#allocation5 + $0xfb0] sm:$0xff]  ;;  %v1086_v17 = vsub.s32 1, %v2581_v41 }
 0x1bc   :  { %2096 = vmatpush1.msra.mxu1 %v404_v18  ;;  %2026 = vmatprep.subr.mxu0 %v141_v19  ;;  %v293_v18 = vld [vmem:[#allocation5 + $0x778] sm:$0xff] }
 0x1bd   :  { %2097 = vmatprep.subr.mxu1 %v397_v20  ;;  %2027 = vmatpush1.msra.mxu0 %v140_v22  ;;  %v549_v19 = vld [vmem:[#allocation5 + $0xf78] sm:$0xff]  ;;  %v2639_v20 = vld [vmem:[#allocation7] sm:$0xff]  ;;  %v1230_v22 = vpop.f32.mrf.mxu0 }
 0x1be   :  { %2098 = vmatpush1.msra.mxu1 %v396_v23  ;;  %2028 = vmatprep.subr.mxu0 %v133_v24  ;;  %v292_v23 = vld [vmem:[#allocation5 + $0x770] sm:$0xff] }
 0x1bf   :  { %2099 = vmatprep.subr.mxu1 %v389_v25  ;;  %2029 = vmatpush1.msra.mxu0 %v132_v27  ;;  %v548_v24 = vld [vmem:[#allocation5 + $0xf70] sm:$0xff]  ;;  %v1082_v25 = vsub.s32 0, %v2581_v41  ;;  %v285_v27 = vld [vmem:[#allocation5 + $0x738] sm:$0xff] }
 0x1c0   :  { %2100 = vmatpush1.msra.mxu1 %v388_v28  ;;  %2030 = vmatprep.subr.mxu0 %v125_v30  ;;  %v541_v28 = vld [vmem:[#allocation5 + $0xf38] sm:$0xff]  ;;  %v284_v30 = vld [vmem:[#allocation5 + $0x730] sm:$0xff] }
 0x1c1   :  { %2101 = vmatprep.subr.mxu1 %v381_v31  ;;  %2031 = vmatpush1.msra.mxu0 %v124_v32  ;;  %v540_v31 = vld [vmem:[#allocation5 + $0xf30] sm:$0xff]  ;;  %v1087_v32 = vrot.slane %v2639_v20, %v1086_v17 }
 0x1c2   :  { %2102 = vmatpush1.msra.mxu1 %v380_v33  ;;  %2032 = vmatprep.subr.mxu0 %v117_v34  ;;  %v277_v33 = vld [vmem:[#allocation5 + $0x6f8] sm:$0xff] }
 0x1c3   :  { %2103 = vmatprep.subr.mxu1 %v373_v35  ;;  %2033 = vmatpush1.msra.mxu0 %v116_v36  ;;  %v533_v34 = vld [vmem:[#allocation5 + $0xef8] sm:$0xff]  ;;  %v1301_v35 = vpop.f32.mrf.mxu1  ;;  %v1232_v36 = vpop.f32.mrf.mxu0 }
 0x1c4   :  { %2104 = vmatpush1.msra.mxu1 %v372_v37  ;;  %2034 = vmatprep.subr.mxu0 %v109_v38  ;;  %v276_v37 = vld [vmem:[#allocation5 + $0x6f0] sm:$0xff] }
 0x1c5   :  { %2105 = vmatprep.subr.mxu1 %v365_v39  ;;  %2035 = vmatpush1.msra.mxu0 %v108_v40  ;;  %v532_v38 = vld [vmem:[#allocation5 + $0xef0] sm:$0xff]  ;;  %v1083_v39 = vrot.slane %v2639_v20, %v1082_v25  ;;  %v269_v40 = vld [vmem:[#allocation5 + $0x6b8] sm:$0xff] }
 0x1c6   :  { %2106 = vmatpush1.msra.mxu1 %v364_v42  ;;  %2036 = vmatprep.subr.mxu0 %v101_v43  ;;  %v525_v42 = vld [vmem:[#allocation5 + $0xeb8] sm:$0xff]  ;;  %v1372_v43 = vpop.f32.mrf.mxu0 }
 0x1c7   :  { %2107 = vmatprep.subr.mxu1 %v357_v44  ;;  %2037 = vmatpush1.msra.mxu0 %v100_v45  ;;  %v268_v44 = vld [vmem:[#allocation5 + $0x6b0] sm:$0xff] }
 0x1c8   :  { %2108 = vmatpush1.msra.mxu1 %v356_v46  ;;  %2038 = vmatprep.subr.mxu0 %v93_v47  ;;  %v524_v45 = vld [vmem:[#allocation5 + $0xeb0] sm:$0xff]  ;;  %v1233_v46 = vadd.f32 %v1232_v36, %v1087_v32  ;;  %v261_v47 = vld [vmem:[#allocation5 + $0x678] sm:$0xff] }
 0x1c9   :  { %2109 = vmatprep.subr.mxu1 %v349_v48  ;;  %2039 = vmatpush1.msra.mxu0 %v92_v49  ;;  %v517_v48 = vld [vmem:[#allocation5 + $0xe78] sm:$0xff]  ;;  %v1303_v49 = vpop.f32.mrf.mxu1  ;;  %v220_v32 = vld [vmem:[#allocation5 + $0x530] sm:$0xff] }
 0x1ca   :  { %2110 = vmatpush1.msra.mxu1 %v348_v50  ;;  %2040 = vmatprep.subr.mxu0 %v85_v51  ;;  %v260_v50 = vld [vmem:[#allocation5 + $0x670] sm:$0xff]  ;;  %v213_v36 = vld [vmem:[#allocation5 + $0x4f8] sm:$0xff] }
 0x1cb   :  { %2111 = vmatprep.subr.mxu1 %v341_v53  ;;  %2041 = vmatpush1.msra.mxu0 %v84_v54  ;;  %v516_v51 = vld [vmem:[#allocation5 + $0xe70] sm:$0xff]  ;;  %v1231_v53 = vadd.f32 %v1230_v22, %v1083_v39  ;;  %v253_v54 = vld [vmem:[#allocation5 + $0x638] sm:$0xff] }
 0x1cc   :  { %2112 = vmatpush1.msra.mxu1 %v340_v55  ;;  %2042 = vmatprep.subr.mxu0 %v77_v56  ;;  %v509_v55 = vld [vmem:[#allocation5 + $0xe38] sm:$0xff]  ;;  %v1443_v56 = vpop.f32.mrf.mxu1  ;;  %v228_v22 = vld [vmem:[#allocation5 + $0x570] sm:$0xff] }
 0x1cd   :  { %2113 = vmatprep.subr.mxu1 %v333_v57  ;;  %2043 = vmatpush1.msra.mxu0 %v76_v58  ;;  %v1374_v57 = vpop.f32.mrf.mxu0  ;;  %v252_v58 = vld [vmem:[#allocation5 + $0x630] sm:$0xff] }
 0x1ce   :  { %2114 = vmatpush1.msra.mxu1 %v332_v59  ;;  %2044 = vmatprep.subr.mxu0 %v69_v60  ;;  %v508_v59 = vld [vmem:[#allocation5 + $0xe30] sm:$0xff]  ;;  %v1304_v60 = vadd.f32 %v1303_v49, %v1233_v46 }
 0x1cf   :  { %2115 = vmatprep.subr.mxu1 %v325_v61  ;;  %2045 = vmatpush1.msra.mxu0 %v68_v63  ;;  %v1090_v61 = vsub.s32 2, %v2581_v41  ;;  %v245_v63 = vld [vmem:[#allocation5 + $0x5f8] sm:$0xff]  ;;  %v468_v39 = vld [vmem:[#allocation5 + $0xcf0] sm:$0xff] }
 0x1d0   :  { %2116 = vmatpush1.msra.mxu1 %v324_v0  ;;  %2046 = vmatprep.subr.mxu0 %v61_v1  ;;  %v501_v0 = vld [vmem:[#allocation5 + $0xdf8] sm:$0xff]  ;;  %v244_v1 = vld [vmem:[#allocation5 + $0x5f0] sm:$0xff] }
 0x1d1   :  { %2117 = vmatprep.subr.mxu1 %v317_v2  ;;  %2047 = vmatpush1.msra.mxu0 %v60_v4  ;;  %v500_v2 = vld [vmem:[#allocation5 + $0xdf0] sm:$0xff]  ;;  %v1302_v4 = vadd.f32 %v1301_v35, %v1231_v53  ;;  %v1091_v17 = vrot.slane %v2639_v20, %v1090_v61 }
 0x1d2   :  { %2118 = vmatpush1.msra.mxu1 %v316_v5  ;;  %2048 = vmatprep.subr.mxu0 %v309_v6  ;;  %v1375_v5 = vadd.f32 %v1374_v57, %v1304_v60  ;;  %v1094_v6 = vsub.s32 3, %v2581_v41  ;;  %v204_v46 = vld [vmem:[#allocation5 + $0x4b0] sm:$0xff]  ;;  %v189_v57 = vld [vmem:[#allocation5 + $0x438] sm:$0xff] }
 0x1d3   :  { %2119 = vmatprep.subr.mxu1 %v565_v7  ;;  %2049 = vmatpush2.msra.mxu0 %v308_v9  ;;  %v237_v7 = vld [vmem:[#allocation5 + $0x5b8] sm:$0xff]  ;;  %v196_v53 = vld [vmem:[#allocation5 + $0x470] sm:$0xff] }
 0x1d4   :  { %2120 = vmatpush2.msra.mxu1 %v564_v10  ;;  %2050 = vmatprep.subr.mxu0 %v301_v12  ;;  %v493_v9 = vld [vmem:[#allocation5 + $0xdb8] sm:$0xff]  ;;  %v1445_v10 = vpop.f32.mrf.mxu1  ;;  %v1514_v12 = vpop.f32.mrf.mxu0  ;;  %v1095_v25 = vrot.slane %v2639_v20, %v1094_v6  ;;  %v188_v60 = vld [vmem:[#allocation5 + $0x430] sm:$0xff] }
 0x1d5   :  { %2121 = vmatprep.subr.mxu1 %v557_v13  ;;  %2051 = vmatpush2.msra.mxu0 %v300_v14  ;;  %v236_v13 = vld [vmem:[#allocation5 + $0x5b0] sm:$0xff]  ;;  %v1515_v35 = vadd.f32 %v1514_v12, %v1091_v17  ;;  %v949_v6 = vld [vmem:[#allocation5 + $0x1bf8] sm:$0xff] }
 0x1d6   :  { %2122 = vmatpush2.msra.mxu1 %v556_v15  ;;  %2052 = vmatprep.subr.mxu0 %v293_v18  ;;  %v492_v14 = vld [vmem:[#allocation5 + $0xdb0] sm:$0xff]  ;;  %v1373_v15 = vadd.f32 %v1372_v43, %v1302_v4  ;;  %v229_v18 = vld [vmem:[#allocation5 + $0x578] sm:$0xff] }
 0x1d7   :  { %2123 = vmatprep.subr.mxu1 %v549_v19  ;;  %2053 = vmatpush2.msra.mxu0 %v292_v23  ;;  %v485_v19 = vld [vmem:[#allocation5 + $0xd78] sm:$0xff]  ;;  %v484_v23 = vld [vmem:[#allocation5 + $0xd70] sm:$0xff] }
 0x1d8   :  { %2124 = vmatpush2.msra.mxu1 %v548_v24  ;;  %2054 = vmatprep.subr.mxu0 %v285_v27  ;;  %v1446_v24 = vadd.f32 %v1445_v10, %v1375_v5  ;;  %v221_v27 = vld [vmem:[#allocation5 + $0x538] sm:$0xff]  ;;  %v692_v10 = vld [vmem:[#allocation5 + $0x13f0] sm:$0xff] }
 0x1d9   :  { %2125 = vmatprep.subr.mxu1 %v541_v28  ;;  %2055 = vmatpush2.msra.mxu0 %v284_v30  ;;  %v477_v28 = vld [vmem:[#allocation5 + $0xd38] sm:$0xff]  ;;  %v1585_v30 = vpop.f32.mrf.mxu1  ;;  %v948_v12 = vld [vmem:[#allocation5 + $0x1bf0] sm:$0xff] }
 0x1da   :  { %2126 = vmatpush2.msra.mxu1 %v540_v31  ;;  %2056 = vmatprep.subr.mxu0 %v277_v33  ;;  %v1516_v31 = vpop.f32.mrf.mxu0  ;;  %v476_v33 = vld [vmem:[#allocation5 + $0xd30] sm:$0xff]  ;;  %v205_v43 = vld [vmem:[#allocation5 + $0x4b8] sm:$0xff]  ;;  %v1586_v49 = vadd.f32 %v1585_v30, %v1515_v35 }
 0x1db   :  { %2127 = vmatprep.subr.mxu1 %v533_v34  ;;  %2057 = vmatpush2.msra.mxu0 %v276_v37  ;;  %v1444_v34 = vadd.f32 %v1443_v56, %v1373_v15  ;;  %v469_v37 = vld [vmem:[#allocation5 + $0xcf8] sm:$0xff]  ;;  %v684_v17 = vld [vmem:[#allocation5 + $0x13b0] sm:$0xff] }
 0x1dc   :  { %2128 = vmatpush2.msra.mxu1 %v532_v38  ;;  %2058 = vmatprep.subr.mxu0 %v269_v40  ;;  %v212_v38 = vld [vmem:[#allocation5 + $0x4f0] sm:$0xff]  ;;  %v2411_v40 = vmul.f32 -1.442695, %v1446_v24  ;;  %v693_v4 = vld [vmem:[#allocation5 + $0x13f8] sm:$0xff] }
 0x1dd   :  { %2129 = vmatprep.subr.mxu1 %v525_v42  ;;  %2059 = vmatpush2.msra.mxu0 %v268_v44  ;;  %v1517_v42 = vadd.f32 %v1516_v31, %v1095_v25  ;;  %v461_v44 = vld [vmem:[#allocation5 + $0xcb8] sm:$0xff]  ;;  %v668_v24 = vld [vmem:[#allocation5 + $0x1330] sm:$0xff] }
 0x1de   :  { %2130 = vmatpush2.msra.mxu1 %v524_v45  ;;  %2060 = vmatprep.subr.mxu0 %v261_v47  ;;  %v1587_v45 = vpop.f32.mrf.mxu1  ;;  %v460_v47 = vld [vmem:[#allocation5 + $0xcb0] sm:$0xff]  ;;  %2427 = vpow2.f32 %v2411_v40 }
 0x1df   :  { %2131 = vmatprep.subr.mxu1 %v517_v48  ;;  %2061 = vmatpush2.msra.mxu0 %v260_v50  ;;  %v2410_v48 = vmul.f32 -1.442695, %v1444_v34  ;;  %v197_v50 = vld [vmem:[#allocation5 + $0x478] sm:$0xff]  ;;  %v1588_v56 = vadd.f32 %v1587_v45, %v1517_v42  ;;  %v924_v25 = vld [vmem:[#allocation5 + $0x1b30] sm:$0xff] }
 0x1e0   :  { %2132 = vmatpush2.msra.mxu1 %v516_v51  ;;  %2062 = vmatprep.subr.mxu0 %v253_v54  ;;  %v453_v51 = vld [vmem:[#allocation5 + $0xc78] sm:$0xff]  ;;  %v452_v54 = vld [vmem:[#allocation5 + $0xc70] sm:$0xff] }
 0x1e1   :  { %2133 = vmatprep.subr.mxu1 %v509_v55  ;;  %2063 = vmatpush2.msra.mxu0 %v252_v58  ;;  %v445_v58 = vld [vmem:[#allocation5 + $0xc38] sm:$0xff]  ;;  %2429 = vpow2.f32 %v2410_v48  ;;  %v660_v30 = vld [vmem:[#allocation5 + $0x12f0] sm:$0xff] }
 0x1e2   :  { %2134 = vmatpush2.msra.mxu1 %v508_v59  ;;  %2064 = vmatprep.subr.mxu0 %v245_v63  ;;  %v916_v31 = vld [vmem:[#allocation5 + $0x1af0] sm:$0xff]  ;;  %v893_v45 = vld [vmem:[#allocation5 + $0x1a38] sm:$0xff] }
 0x1e3   :  { %2135 = vmatprep.subr.mxu1 %v501_v0  ;;  %2065 = vmatpush2.msra.mxu0 %v244_v1  ;;  %v444_v0 = vld [vmem:[#allocation5 + $0xc30] sm:$0xff] }
 0x1e4   :  { %2136 = vmatpush2.msra.mxu1 %v500_v2  ;;  %2066 = vmatprep.subr.mxu0 %v237_v7  ;;  %v652_v35 = vld [vmem:[#allocation5 + $0x12b0] sm:$0xff] }
 0x1e5   :  { %2137 = vmatprep.subr.mxu1 %v493_v9  ;;  %2067 = vmatpush2.msra.mxu0 %v236_v13  ;;  %v685_v13 = vld [vmem:[#allocation5 + $0x13b8] sm:$0xff]  ;;  %v644_v40 = vld [vmem:[#allocation5 + $0x1270] sm:$0xff] }
 0x1e6   :  { %2138 = vmatpush2.msra.mxu1 %v492_v14  ;;  %2068 = vmatprep.subr.mxu0 %v229_v18  ;;  %v941_v14 = vld [vmem:[#allocation5 + $0x1bb8] sm:$0xff]  ;;  %v900_v42 = vld [vmem:[#allocation5 + $0x1a70] sm:$0xff] }
 0x1e7   :  { %2139 = vmatprep.subr.mxu1 %v485_v19  ;;  %2069 = vmatpush2.msra.mxu0 %v228_v22  ;;  %v677_v18 = vld [vmem:[#allocation5 + $0x1378] sm:$0xff]  ;;  %v932_v22 = vld [vmem:[#allocation5 + $0x1b70] sm:$0xff] }
 0x1e8   :  { %2140 = vmatpush2.msra.mxu1 %v484_v23  ;;  %2070 = vmatprep.subr.mxu0 %v221_v27  ;;  %v933_v19 = vld [vmem:[#allocation5 + $0x1b78] sm:$0xff]  ;;  %v892_v48 = vld [vmem:[#allocation5 + $0x1a30] sm:$0xff] }
 0x1e9   :  { %2141 = vmatprep.subr.mxu1 %v477_v28  ;;  %2071 = vmatpush2.msra.mxu0 %v220_v32  ;;  %v925_v23 = vld [vmem:[#allocation5 + $0x1b38] sm:$0xff] }
 0x1ea   :  { %2142 = vmatpush2.msra.mxu1 %v476_v33  ;;  %2072 = vmatprep.subr.mxu0 %v213_v36  ;;  %v917_v27 = vld [vmem:[#allocation5 + $0x1af8] sm:$0xff]  ;;  %v908_v36 = vld [vmem:[#allocation5 + $0x1ab0] sm:$0xff] }
 0x1eb   :  { %2143 = vmatprep.subr.mxu1 %v469_v37  ;;  %2073 = vmatpush2.msra.mxu0 %v212_v38  ;;  %v2428_v28 = vpop.eup %2427  ;;  %v653_v32 = vld [vmem:[#allocation5 + $0x12b8] sm:$0xff] }
 0x1ec   :  { %2144 = vmatpush2.msra.mxu1 %v468_v39  ;;  %2074 = vmatprep.subr.mxu0 %v205_v43  ;;  %v909_v33 = vld [vmem:[#allocation5 + $0x1ab8] sm:$0xff]  ;;  %v2325_v37 = vadd.f32 1.0, %v2428_v28 }
 0x1ed   :  { %2145 = vmatprep.subr.mxu1 %v461_v44  ;;  %v1656_v55 = vpop.f32.mrf.mxu0  ;;  %2075 = vmatpush2.msra.mxu0 %v204_v46  ;;  %v645_v38 = vld [vmem:[#allocation5 + $0x1278] sm:$0xff] }
 0x1ee   :  { %2146 = vmatpush2.msra.mxu1 %v460_v47  ;;  %v1657_v59 = vadd.f32 %v1656_v55, %v1586_v49  ;;  %2076 = vmatprep.subr.mxu0 %v197_v50  ;;  %v2430_v34 = vpop.eup %2429  ;;  %v901_v39 = vld [vmem:[#allocation5 + $0x1a78] sm:$0xff]  ;;  %v636_v47 = vld [vmem:[#allocation5 + $0x1230] sm:$0xff] }
 0x1ef   :  { %2147 = vmatprep.subr.mxu1 %v453_v51  ;;  %v1727_v61 = vpop.f32.mrf.mxu1  ;;  %v1658_v63 = vpop.f32.mrf.mxu0  ;;  %2077 = vmatpush2.msra.mxu0 %v196_v53  ;;  %v2324_v43 = vadd.f32 1.0, %v2430_v34  ;;  %v637_v44 = vld [vmem:[#allocation5 + $0x1238] sm:$0xff]  ;;  %v884_v55 = vld [vmem:[#allocation5 + $0x19f0] sm:$0xff] }
 0x1f0   :  { %2148 = vmatpush2.msra.mxu1 %v452_v54  ;;  %v1728_v1 = vadd.f32 %v1727_v61, %v1657_v59  ;;  %v1659_v2 = vadd.f32 %v1658_v63, %v1588_v56  ;;  %2078 = vmatprep.subr.mxu0 %v189_v57  ;;  %v629_v50 = vld [vmem:[#allocation5 + $0x11f8] sm:$0xff]  ;;  %v628_v54 = vld [vmem:[#allocation5 + $0x11f0] sm:$0xff] }
 0x1f1   :  { %2149 = vmatprep.subr.mxu1 %v445_v58  ;;  %v1729_v5 = vpop.f32.mrf.mxu1  ;;  %2079 = vmatpush2.msra.mxu0 %v188_v60  ;;  %v885_v51 = vld [vmem:[#allocation5 + $0x19f8] sm:$0xff]  ;;  %v620_v59 = vld [vmem:[#allocation5 + $0x11b0] sm:$0xff] }
 0x1f2   :  { %2080 = vmatprep.mubr.f32.mxu0 %v2594_v8  ;;  %v2412_v7 = vmul.f32 -1.442695, %v1728_v1  ;;  %v1730_v9 = vadd.f32 %v1729_v5, %v1659_v2  ;;  %2150 = vmatpush2.msra.mxu1 %v444_v0  ;;  %v940_v8 = vld [vmem:[#allocation5 + $0x1bb0] sm:$0xff]  ;;  %v621_v57 = vld [vmem:[#allocation5 + $0x11b8] sm:$0xff] }
 0x1f3   :  { %2081 = vmatmul.mubr.f32.vlgmr.msra.gmra.mxu0 %v2587_v62  ;;  %2151 = vmatprep.mubr.f32.mxu1 %v2598_v11  ;;  %v676_v62 = vld [vmem:[#allocation5 + $0x1370] sm:$0xff]  ;;  %v669_v11 = vld [vmem:[#allocation5 + $0x1338] sm:$0xff] }
 0x1f4   :  { %2158 = vmatprep.subr.mxu0 %v693_v4  ;;  %2431 = vpow2.f32 %v2412_v7  ;;  %v2413_v15 = vmul.f32 -1.442695, %v1730_v9  ;;  %2229 = vmatprep.subr.mxu1 %v949_v6  ;;  %v877_v58 = vld [vmem:[#allocation5 + $0x19b8] sm:$0xff]  ;;  %v876_v60 = vld [vmem:[#allocation5 + $0x19b0] sm:$0xff] }
 0x1f5   :  { %2152 = vmatmul.mubr.f32.vlgmr.msra.gmra.mxu1 %v2590_v3  ;;  %2159 = vmatpush1.msra.mxu0 %v692_v10  ;;  %v661_v3 = vld [vmem:[#allocation5 + $0x12f8] sm:$0xff]  ;;  %v612_v0 = vld [vmem:[#allocation5 + $0x1170] sm:$0xff] }
 0x1f6   :  { %2230 = vmatpush1.msra.mxu1 %v948_v12  ;;  %2433 = vpow2.f32 %v2413_v15  ;;  %2160 = vmatprep.subr.mxu0 %v685_v13  ;;  %v613_v61 = vld [vmem:[#allocation5 + $0x1178] sm:$0xff]  ;;  %v868_v1 = vld [vmem:[#allocation5 + $0x1970] sm:$0xff] }
 0x1f7   :  { %2231 = vmatprep.subr.mxu1 %v941_v14  ;;  %2161 = vmatpush1.msra.mxu0 %v684_v17  ;;  %2435 = vrcp.f32 %v2325_v37  ;;  %v869_v63 = vld [vmem:[#allocation5 + $0x1978] sm:$0xff]  ;;  %v604_v5 = vld [vmem:[#allocation5 + $0x1130] sm:$0xff] }
 0x1f8   :  { %2232 = vmatpush1.msra.mxu1 %v940_v8  ;;  %2162 = vmatprep.subr.mxu0 %v677_v18  ;;  %2437 = vrcp.f32 %v2324_v43  ;;  %v605_v2 = vld [vmem:[#allocation5 + $0x1138] sm:$0xff]  ;;  %v860_v6 = vld [vmem:[#allocation5 + $0x1930] sm:$0xff] }
 0x1f9   :  { %2233 = vmatprep.subr.mxu1 %v933_v19  ;;  %2163 = vmatpush1.msra.mxu0 %v676_v62  ;;  %v861_v4 = vld [vmem:[#allocation5 + $0x1938] sm:$0xff]  ;;  %v596_v10 = vld [vmem:[#allocation5 + $0x10f0] sm:$0xff] }
 0x1fa   :  { %2234 = vmatpush1.msra.mxu1 %v932_v22  ;;  %2164 = vmatprep.subr.mxu0 %v669_v11  ;;  %v597_v7 = vld [vmem:[#allocation5 + $0x10f8] sm:$0xff]  ;;  %v852_v12 = vld [vmem:[#allocation5 + $0x18f0] sm:$0xff] }
 0x1fb   :  { %2235 = vmatprep.subr.mxu1 %v925_v23  ;;  %2165 = vmatpush1.msra.mxu0 %v668_v24  ;;  %v853_v9 = vld [vmem:[#allocation5 + $0x18f8] sm:$0xff]  ;;  %v588_v15 = vld [vmem:[#allocation5 + $0x10b0] sm:$0xff] }
 0x1fc   :  { %2236 = vmatpush1.msra.mxu1 %v924_v25  ;;  %2166 = vmatprep.subr.mxu0 %v661_v3  ;;  %v589_v13 = vld [vmem:[#allocation5 + $0x10b8] sm:$0xff]  ;;  %v844_v17 = vld [vmem:[#allocation5 + $0x18b0] sm:$0xff] }
 0x1fd   :  { %2237 = vmatprep.subr.mxu1 %v917_v27  ;;  %2167 = vmatpush1.msra.mxu0 %v660_v30  ;;  %v845_v14 = vld [vmem:[#allocation5 + $0x18b8] sm:$0xff]  ;;  %v580_v62 = vld [vmem:[#allocation5 + $0x1070] sm:$0xff] }
 0x1fe   :  { %2238 = vmatpush1.msra.mxu1 %v916_v31  ;;  %2168 = vmatprep.subr.mxu0 %v653_v32  ;;  %v581_v8 = vld [vmem:[#allocation5 + $0x1078] sm:$0xff]  ;;  %v836_v22 = vld [vmem:[#allocation5 + $0x1870] sm:$0xff] }
 0x1ff   :  { %2239 = vmatprep.subr.mxu1 %v909_v33  ;;  %2169 = vmatpush1.msra.mxu0 %v652_v35  ;;  %v837_v18 = vld [vmem:[#allocation5 + $0x1878] sm:$0xff]  ;;  %v572_v25 = vld [vmem:[#allocation5 + $0x1030] sm:$0xff] }
 0x200   :  { %2240 = vmatpush1.msra.mxu1 %v908_v36  ;;  %2170 = vmatprep.subr.mxu0 %v645_v38  ;;  %v573_v11 = vld [vmem:[#allocation5 + $0x1038] sm:$0xff]  ;;  %v828_v3 = vld [vmem:[#allocation5 + $0x1830] sm:$0xff] }
 0x201   :  { %v2432_v46 = vpop.eup %2431  ;;  %2241 = vmatprep.subr.mxu1 %v901_v39  ;;  %2171 = vmatpush1.msra.mxu0 %v644_v40  ;;  %v829_v23 = vld [vmem:[#allocation5 + $0x1838] sm:$0xff]  ;;  %v820_v33 = vld [vmem:[#allocation5 + $0x17f0] sm:$0xff] }
 0x202   :  { %v2326_v49 = vadd.f32 1.0, %v2432_v46  ;;  %2242 = vmatpush1.msra.mxu1 %v900_v42  ;;  %2172 = vmatprep.subr.mxu0 %v637_v44  ;;  %v821_v28 = vld [vmem:[#allocation5 + $0x17f8] sm:$0xff]  ;;  %v1076_v34 = vld [vmem:[#allocation5 + $0x1ff0] sm:$0xff] }
 0x203   :  { %v2434_v53 = vpop.eup %2433  ;;  %2243 = vmatprep.subr.mxu1 %v893_v45  ;;  %2173 = vmatpush1.msra.mxu0 %v636_v47  ;;  %v1077_v30 = vld [vmem:[#allocation5 + $0x1ff8] sm:$0xff]  ;;  %v812_v38 = vld [vmem:[#allocation5 + $0x17b0] sm:$0xff] }
 0x204   :  { %v2327_v56 = vadd.f32 1.0, %v2434_v53  ;;  %2244 = vmatpush1.msra.mxu1 %v892_v48  ;;  %2439 = vrcp.f32 %v2326_v49  ;;  %2174 = vmatprep.subr.mxu0 %v629_v50  ;;  %v2436_v19 = vpop.eup %2435  ;;  %v813_v35 = vld [vmem:[#allocation5 + $0x17b8] sm:$0xff]  ;;  %v1068_v39 = vld [vmem:[#allocation5 + $0x1fb0] sm:$0xff] }
 0x205   :  { %2245 = vmatprep.subr.mxu1 %v885_v51  ;;  %2175 = vmatpush1.msra.mxu0 %v628_v54  ;;  %v2438_v24 = vpop.eup %2437  ;;  %v1069_v36 = vld [vmem:[#allocation5 + $0x1fb8] sm:$0xff]  ;;  %v804_v45 = vld [vmem:[#allocation5 + $0x1770] sm:$0xff] }
 0x206   :  { %2441 = vrcp.f32 %v2327_v56  ;;  %2246 = vmatpush1.msra.mxu1 %v884_v55  ;;  %2176 = vmatprep.subr.mxu0 %v621_v57  ;;  %v2356_v31 = vcombine.low %v2438_v24, %v2436_v19  ;;  %v805_v40 = vld [vmem:[#allocation5 + $0x1778] sm:$0xff]  ;;  %v1060_v46 = vld [vmem:[#allocation5 + $0x1f70] sm:$0xff] }
 0x207   :  { %2247 = vmatprep.subr.mxu1 %v877_v58  ;;  %2177 = vmatpush1.msra.mxu0 %v620_v59  ;;  %v1061_v42 = vld [vmem:[#allocation5 + $0x1f78] sm:$0xff]  ;;  %v796_v50 = vld [vmem:[#allocation5 + $0x1730] sm:$0xff] }
 0x208   :  { %2248 = vmatpush1.msra.mxu1 %v876_v60  ;;  %2178 = vmatprep.subr.mxu0 %v613_v61  ;;  %v2364_v43 = vrot.slane %v2356_v31, %v2584_v52  ;;  %v797_v47 = vld [vmem:[#allocation5 + $0x1738] sm:$0xff]  ;;  %v1052_v51 = vld [vmem:[#allocation5 + $0x1f30] sm:$0xff] }
 0x209   :  { %2249 = vmatprep.subr.mxu1 %v869_v63  ;;  %2179 = vmatpush1.msra.mxu0 %v612_v0  ;;  %v1053_v48 = vld [vmem:[#allocation5 + $0x1f38] sm:$0xff]  ;;  %v788_v55 = vld [vmem:[#allocation5 + $0x16f0] sm:$0xff] }
 0x20a   :  { %2250 = vmatpush1.msra.mxu1 %v868_v1  ;;  %2180 = vmatprep.subr.mxu0 %v605_v2  ;;  %v789_v53 = vld [vmem:[#allocation5 + $0x16f8] sm:$0xff]  ;;  %v1044_v56 = vld [vmem:[#allocation5 + $0x1ef0] sm:$0xff] }
 0x20b   :  { %2251 = vmatprep.subr.mxu1 %v861_v4  ;;  %2181 = vmatpush1.msra.mxu0 %v604_v5  ;;  %v1045_v54 = vld [vmem:[#allocation5 + $0x1ef8] sm:$0xff]  ;;  %v780_v59 = vld [vmem:[#allocation5 + $0x16b0] sm:$0xff] }
 0x20c   :  { %2252 = vmatpush1.msra.mxu1 %v860_v6  ;;  %2182 = vmatprep.subr.mxu0 %v597_v7  ;;  %v781_v57 = vld [vmem:[#allocation5 + $0x16b8] sm:$0xff]  ;;  %v1036_v60 = vld [vmem:[#allocation5 + $0x1eb0] sm:$0xff] }
 0x20d   :  { %2253 = vmatprep.subr.mxu1 %v853_v9  ;;  %2183 = vmatpush1.msra.mxu0 %v596_v10  ;;  %v1037_v58 = vld [vmem:[#allocation5 + $0x1eb8] sm:$0xff]  ;;  %v772_v0 = vld [vmem:[#allocation5 + $0x1670] sm:$0xff] }
 0x20e   :  { %2254 = vmatpush1.msra.mxu1 %v852_v12  ;;  %2184 = vmatprep.subr.mxu0 %v589_v13  ;;  %v773_v61 = vld [vmem:[#allocation5 + $0x1678] sm:$0xff]  ;;  %v1028_v1 = vld [vmem:[#allocation5 + $0x1e70] sm:$0xff] }
 0x20f   :  { %2255 = vmatprep.subr.mxu1 %v845_v14  ;;  %2185 = vmatpush1.msra.mxu0 %v588_v15  ;;  %v1029_v63 = vld [vmem:[#allocation5 + $0x1e78] sm:$0xff]  ;;  %v764_v5 = vld [vmem:[#allocation5 + $0x1630] sm:$0xff] }
 0x210   :  { %2256 = vmatpush1.msra.mxu1 %v844_v17  ;;  %2186 = vmatprep.subr.mxu0 %v581_v8  ;;  %v765_v2 = vld [vmem:[#allocation5 + $0x1638] sm:$0xff]  ;;  %v1020_v6 = vld [vmem:[#allocation5 + $0x1e30] sm:$0xff] }
 0x211   :  { %2257 = vmatprep.subr.mxu1 %v837_v18  ;;  %v2440_v27 = vpop.eup %2439  ;;  %2187 = vmatpush1.msra.mxu0 %v580_v62  ;;  %v1021_v4 = vld [vmem:[#allocation5 + $0x1e38] sm:$0xff]  ;;  %v756_v10 = vld [vmem:[#allocation5 + $0x15f0] sm:$0xff] }
 0x212   :  { %2258 = vmatpush1.msra.mxu1 %v836_v22  ;;  %2188 = vmatprep.subr.mxu0 %v573_v11  ;;  %v757_v7 = vld [vmem:[#allocation5 + $0x15f8] sm:$0xff]  ;;  %v1012_v12 = vld [vmem:[#allocation5 + $0x1df0] sm:$0xff] }
 0x213   :  { %v2442_v32 = vpop.eup %2441  ;;  %2259 = vmatprep.subr.mxu1 %v829_v23  ;;  %2189 = vmatpush1.msra.mxu0 %v572_v25  ;;  %v1013_v9 = vld [vmem:[#allocation5 + $0x1df8] sm:$0xff]  ;;  %v748_v15 = vld [vmem:[#allocation5 + $0x15b0] sm:$0xff] }
 0x214   :  { %2260 = vmatpush1.msra.mxu1 %v828_v3  ;;  %v2357_v37 = vcombine.low %v2440_v27, %v2442_v32  ;;  %2190 = vmatprep.subr.mxu0 %v821_v28  ;;  %v749_v13 = vld [vmem:[#allocation5 + $0x15b8] sm:$0xff]  ;;  %v1004_v17 = vld [vmem:[#allocation5 + $0x1db0] sm:$0xff] }
 0x215   :  { %2261 = vmatprep.subr.mxu1 %v1077_v30  ;;  %2191 = vmatpush2.msra.mxu0 %v820_v33  ;;  %v1005_v14 = vld [vmem:[#allocation5 + $0x1db8] sm:$0xff]  ;;  %v740_v19 = vld [vmem:[#allocation5 + $0x1570] sm:$0xff] }
 0x216   :  { %2262 = vmatpush2.msra.mxu1 %v1076_v34  ;;  %v2371_v44 = vrot.slane %v2357_v37, %v2584_v52  ;;  %2192 = vmatprep.subr.mxu0 %v813_v35  ;;  %v741_v8 = vld [vmem:[#allocation5 + $0x1578] sm:$0xff]  ;;  %v996_v62 = vld [vmem:[#allocation5 + $0x1d70] sm:$0xff] }
 0x217   :  { %2263 = vmatprep.subr.mxu1 %v1069_v36  ;;  %2193 = vmatpush2.msra.mxu0 %v812_v38  ;;  %v997_v18 = vld [vmem:[#allocation5 + $0x1d78] sm:$0xff]  ;;  %v732_v23 = vld [vmem:[#allocation5 + $0x1530] sm:$0xff] }
 0x218   :  { %2264 = vmatpush2.msra.mxu1 %v1068_v39  ;;  %v2372_v49 = vcombine.low %v2364_v43, %v2371_v44  ;;  %2194 = vmatprep.subr.mxu0 %v805_v40  ;;  %v733_v22 = vld [vmem:[#allocation5 + $0x1538] sm:$0xff]  ;;  %v988_v24 = vld [vmem:[#allocation5 + $0x1d30] sm:$0xff]  ;;  %v1102_v43 = vsub.s32 5, %v2581_v41 }
 0x219   :  { %2265 = vmatprep.subr.mxu1 %v1061_v42  ;;  %2195 = vmatpush2.msra.mxu0 %v804_v45  ;;  %v989_v11 = vld [vmem:[#allocation5 + $0x1d38] sm:$0xff]  ;;  %v724_v27 = vld [vmem:[#allocation5 + $0x14f0] sm:$0xff]  ;;  %v1098_v45 = vsub.s32 4, %v2581_v41 }
 0x21a   :  { %2266 = vmatpush2.msra.mxu1 %v1060_v46  ;;  %2392 = vst [vmem:[#allocation8] sm:$0xff] %v2372_v49  ;;  %2196 = vmatprep.subr.mxu0 %v797_v47  ;;  %v725_v25 = vld [vmem:[#allocation5 + $0x14f8] sm:$0xff]  ;;  %v980_v28 = vld [vmem:[#allocation5 + $0x1cf0] sm:$0xff]  ;;  %v1103_v46 = vrot.slane %v2639_v20, %v1102_v43 }
 0x21b   :  { %2267 = vmatprep.subr.mxu1 %v1053_v48  ;;  %2197 = vmatpush2.msra.mxu0 %v796_v50  ;;  %v981_v3 = vld [vmem:[#allocation5 + $0x1cf8] sm:$0xff]  ;;  %v716_v32 = vld [vmem:[#allocation5 + $0x14b0] sm:$0xff]  ;;  %v1099_v49 = vrot.slane %v2639_v20, %v1098_v45 }
 0x21c   :  { %2268 = vmatpush2.msra.mxu1 %v1052_v51  ;;  %2198 = vmatprep.subr.mxu0 %v789_v53  ;;  %v717_v30 = vld [vmem:[#allocation5 + $0x14b8] sm:$0xff]  ;;  %v972_v33 = vld [vmem:[#allocation5 + $0x1cb0] sm:$0xff] }
 0x21d   :  { %2269 = vmatprep.subr.mxu1 %v1045_v54  ;;  %2199 = vmatpush2.msra.mxu0 %v788_v55  ;;  %v973_v31 = vld [vmem:[#allocation5 + $0x1cb8] sm:$0xff]  ;;  %v708_v36 = vld [vmem:[#allocation5 + $0x1470] sm:$0xff] }
 0x21e   :  { %2270 = vmatpush2.msra.mxu1 %v1044_v56  ;;  %2200 = vmatprep.subr.mxu0 %v781_v57  ;;  %v709_v34 = vld [vmem:[#allocation5 + $0x1478] sm:$0xff]  ;;  %v964_v37 = vld [vmem:[#allocation5 + $0x1c70] sm:$0xff]  ;;  %v1110_v57 = vsub.s32 7, %v2581_v41 }
 0x21f   :  { %2271 = vmatprep.subr.mxu1 %v1037_v58  ;;  %2201 = vmatpush2.msra.mxu0 %v780_v59  ;;  %v965_v35 = vld [vmem:[#allocation5 + $0x1c78] sm:$0xff]  ;;  %v700_v40 = vld [vmem:[#allocation5 + $0x1430] sm:$0xff] }
 0x220   :  { %2272 = vmatpush2.msra.mxu1 %v1036_v60  ;;  %2202 = vmatprep.subr.mxu0 %v773_v61  ;;  %v701_v38 = vld [vmem:[#allocation5 + $0x1438] sm:$0xff]  ;;  %v956_v42 = vld [vmem:[#allocation5 + $0x1c30] sm:$0xff] }
 0x221   :  { %2273 = vmatprep.subr.mxu1 %v1029_v63  ;;  %2203 = vmatpush2.msra.mxu0 %v772_v0  ;;  %v957_v39 = vld [vmem:[#allocation5 + $0x1c38] sm:$0xff]  ;;  %v1111_v0 = vrot.slane %v2639_v20, %v1110_v57 }
 0x222   :  { %2274 = vmatpush2.msra.mxu1 %v1028_v1  ;;  %2204 = vmatprep.subr.mxu0 %v765_v2 }
 0x223   :  { %2275 = vmatprep.subr.mxu1 %v1021_v4  ;;  %2205 = vmatpush2.msra.mxu0 %v764_v5 }
 0x224   :  { %2276 = vmatpush2.msra.mxu1 %v1020_v6  ;;  %2206 = vmatprep.subr.mxu0 %v757_v7 }
 0x225   :  { %2277 = vmatprep.subr.mxu1 %v1013_v9  ;;  %2207 = vmatpush2.msra.mxu0 %v756_v10 }
 0x226   :  { %2278 = vmatpush2.msra.mxu1 %v1012_v12  ;;  %2208 = vmatprep.subr.mxu0 %v749_v13 }
 0x227   :  { %2279 = vmatprep.subr.mxu1 %v1005_v14  ;;  %2209 = vmatpush2.msra.mxu0 %v748_v15 }
 0x228   :  { %2280 = vmatpush2.msra.mxu1 %v1004_v17  ;;  %2210 = vmatprep.subr.mxu0 %v741_v8 }
 0x229   :  { %2281 = vmatprep.subr.mxu1 %v997_v18  ;;  %2211 = vmatpush2.msra.mxu0 %v740_v19 }
 0x22a   :  { %2282 = vmatpush2.msra.mxu1 %v996_v62  ;;  %2212 = vmatprep.subr.mxu0 %v733_v22 }
 0x22b   :  { %2283 = vmatprep.subr.mxu1 %v989_v11  ;;  %2213 = vmatpush2.msra.mxu0 %v732_v23 }
 0x22c   :  { %2284 = vmatpush2.msra.mxu1 %v988_v24  ;;  %2214 = vmatprep.subr.mxu0 %v725_v25 }
 0x22d   :  { %2285 = vmatprep.subr.mxu1 %v981_v3  ;;  %2215 = vmatpush2.msra.mxu0 %v724_v27 }
 0x22e   :  { %2286 = vmatpush2.msra.mxu1 %v980_v28  ;;  %2216 = vmatprep.subr.mxu0 %v717_v30 }
 0x22f   :  { %2287 = vmatprep.subr.mxu1 %v973_v31  ;;  %2217 = vmatpush2.msra.mxu0 %v716_v32  ;;  %v1798_v44 = vpop.f32.mrf.mxu0 }
 0x230   :  { %2288 = vmatpush2.msra.mxu1 %v972_v33  ;;  %2218 = vmatprep.subr.mxu0 %v709_v34  ;;  %v1799_v53 = vadd.f32 %v1798_v44, %v1099_v49 }
 0x231   :  { %2289 = vmatprep.subr.mxu1 %v965_v35  ;;  %2219 = vmatpush2.msra.mxu0 %v708_v36  ;;  %v1869_v47 = vpop.f32.mrf.mxu1  ;;  %v1800_v48 = vpop.f32.mrf.mxu0 }
 0x232   :  { %2290 = vmatpush2.msra.mxu1 %v964_v37  ;;  %2220 = vmatprep.subr.mxu0 %v701_v38  ;;  %v1870_v55 = vadd.f32 %v1869_v47, %v1799_v53 }
 0x233   :  { %2291 = vmatprep.subr.mxu1 %v957_v39  ;;  %2221 = vmatpush2.msra.mxu0 %v700_v40  ;;  %v1871_v51 = vpop.f32.mrf.mxu1 }
 0x234   :  { %2222 = vmatprep.mubr.f32.mxu0 %v2612_v26  ;;  %2292 = vmatpush2.msra.mxu1 %v956_v42  ;;  %v1801_v26 = vadd.f32 %v1800_v48, %v1103_v46 }
 0x235   :  { %2293 = vmatprep.mubr.f32.mxu1 %v2616_v29  ;;  %2223 = vmatmul.mubr.f32.vlgmr.msra.gmra.mxu0 %v2605_v16 }
 0x236   :  { %2294 = vmatmul.mubr.f32.vlgmr.msra.gmra.mxu1 %v2608_v21  ;;  %v1872_v16 = vadd.f32 %v1871_v51, %v1801_v26  ;;  %v1106_v21 = vsub.s32 6, %v2581_v41 }
 0x238   :  { %v1107_v61 = vrot.slane %v2639_v20, %v1106_v21 }
 0x271   :  { %v1940_v50 = vpop.f32.mrf.mxu0 }
 0x272   :  { %v1941_v60 = vadd.f32 %v1940_v50, %v1870_v55 }
 0x273   :  { %v2011_v29 = vpop.f32.mrf.mxu1  ;;  %v1942_v54 = vpop.f32.mrf.mxu0 }
 0x274   :  { %v1943_v56 = vadd.f32 %v1942_v54, %v1872_v16  ;;  %v2012_v4 = vadd.f32 %v2011_v29, %v1941_v60 }
 0x275   :  { %v2013_v58 = vpop.f32.mrf.mxu1 }
 0x276   :  { %v2014_v63 = vadd.f32 %v2013_v58, %v1943_v56  ;;  %v2414_v10 = vmul.f32 -1.442695, %v2012_v4 }
 0x278   :  { %v2415_v6 = vmul.f32 -1.442695, %v2014_v63 }
 0x27a   :  { %2443 = vpow2.f32 %v2415_v6 }
 0x27b   :  { %2445 = vpow2.f32 %v2414_v10 }
 0x287   :  { %v2444_v11 = vpop.eup %2443 }
 0x288   :  { %v2446_v23 = vpop.eup %2445  ;;  %v2329_v24 = vadd.f32 1.0, %v2444_v11 }
 0x289   :  { %v2328_v25 = vadd.f32 1.0, %v2446_v23 }
 0x2b3   :  { %v2082_v59 = vpop.f32.mrf.mxu0 }
 0x2b4   :  { %v2083_v5 = vadd.f32 %v2082_v59, %v1107_v61 }
 0x2b5   :  { %v2153_v1 = vpop.f32.mrf.mxu1  ;;  %v2084_v2 = vpop.f32.mrf.mxu0 }
 0x2b6   :  { %v2085_v7 = vadd.f32 %v2084_v2, %v1111_v0  ;;  %v2154_v12 = vadd.f32 %v2153_v1, %v2083_v5 }
 0x2b7   :  { %v2155_v9 = vpop.f32.mrf.mxu1 }
 0x2b8   :  { %v2156_v41 = vadd.f32 %v2155_v9, %v2085_v7 }
 0x2f5   :  { %v2224_v13 = vpop.f32.mrf.mxu0 }
 0x2f6   :  { %v2295_v14 = vpop.f32.mrf.mxu1  ;;  %v2225_v15 = vadd.f32 %v2224_v13, %v2154_v12 }
 0x2f7   :  { %v2226_v17 = vpop.f32.mrf.mxu0 }
 0x2f8   :  { %v2296_v8 = vadd.f32 %v2295_v14, %v2225_v15  ;;  %v2227_v18 = vadd.f32 %v2226_v17, %v2156_v41  ;;  %v2297_v19 = vpop.f32.mrf.mxu1 }
 0x2fa   :  { %v2416_v20 = vmul.f32 -1.442695, %v2296_v8  ;;  %v2298_v62 = vadd.f32 %v2297_v19, %v2227_v18 }
 0x2fc   :  { %2447 = vpow2.f32 %v2416_v20  ;;  %v2417_v22 = vmul.f32 -1.442695, %v2298_v62 }
 0x2fe   :  { %2449 = vpow2.f32 %v2417_v22 }
 0x2ff   :  { %2451 = vrcp.f32 %v2329_v24 }
 0x300   :  { %2453 = vrcp.f32 %v2328_v25 }
 0x309   :  { %v2448_v3 = vpop.eup %2447 }
 0x30a   :  { %v2330_v27 = vadd.f32 1.0, %v2448_v3 }
 0x30b   :  { %v2450_v28 = vpop.eup %2449 }
 0x30c   :  { %v2331_v30 = vadd.f32 1.0, %v2450_v28  ;;  %2455 = vrcp.f32 %v2330_v27  ;;  %v2452_v31 = vpop.eup %2451 }
 0x30d   :  { %v2454_v32 = vpop.eup %2453 }
 0x30e   :  { %2457 = vrcp.f32 %v2331_v30  ;;  %v2373_v34 = vcombine.low %v2454_v32, %v2452_v31 }
 0x310   :  { %v2381_v37 = vrot.slane %v2373_v34, %v2584_v52 }
 0x319   :  { %v2456_v33 = vpop.eup %2455 }
 0x31b   :  { %v2458_v35 = vpop.eup %2457 }
 0x31c   :  { %v2374_v36 = vcombine.low %v2456_v33, %v2458_v35 }
 0x31e   :  { %v2388_v38 = vrot.slane %v2374_v36, %v2584_v52 }
 0x320   :  { %v2389_v39 = vcombine.low %v2381_v37, %v2388_v38 }
 0x322   :  { %2393 = vst [vmem:[#allocation8 + $0x8] sm:$0xff] %v2389_v39 }
 0x323   :  { %2530 = shalt.err (!%p2527_p5)
}
 0x324   :  { %2403 = dma.vmem_to_hbm [thread:$0]  %s2401_s2, 256, %s2674_s3, [#allocation4]  }
 0x325   :  { %2543 = dma.done.wait [#allocation4], 256  }
 0x326   :  { %2544 = vsyncadd [#allocation4], 4294967040 }
 0x327   :  { %2407 = vsyncpa [#allocation3], 1 }
 0x328   :  { %2408 = vsyncpa [#allocation6], 1 }
 0x329   :  { %2409 = vsyncpa [#allocation4], 1 }

// kernel: tpu_custom_call.1
= control target key start
LH: loop header
LB: loop body
LE: loop exit
PB: predicated region body
PF: predicated region fallthrough
CT: control target
= control target key end

     0   :  { %8 = vsyncpa [#allocation3], 0  ;;  %s2671_s0 = inlined_call_operand.hbm [shape: f32[2,1024], index: 0, kind: input, shape index: {}]   ;;  %s2672_s1 = inlined_call_operand.hbm [shape: f32[1024,1024], index: 1, kind: input, shape index: {}]   ;;  %s2673_s2 = inlined_call_operand.hbm [shape: f32[1,1024], index: 2, kind: input, shape index: {}]   ;;  %s2674_s3 = inlined_call_operand.hbm [shape: f32[2,1024], index: 3, kind: output, shape index: {}]  }
   0x1   :  { %9 = vsyncpa [#allocation6], 0 }
   0x2   :  { %10 = vsyncpa [#allocation4], 0  ;;  %s2545_s12 = smov [#allocation5]  }
   0x3   :  { %s26_s13 = sshll.u32 %s2545_s12, 4  ;;  %s27_s13 = int_to_ptr.vmem [resolvable:$true] %s26_s13 }
   0x4   :  { %s2467_s14 = scalar_lea.vmem %s27_s13, 131072  ;;  %p2472_p1 = scmp.lt.s32.totalorder %s27_s13, %s27_s13 }
   0x5   :  { %p2468_p0 = scmp.ne.s32.totalorder %s27_s13, %s2467_s14  ;;  %p2473_p2 = scmp.lt.s32.totalorder %s2467_s14, %s2467_s14 }
   0x7   :  { %p2474_p3 = por %p2473_p2, %p2472_p1 }
   0x9   :  { %p2475_p4 = pnand %p2474_p3, %p2468_p0 }
   0xb   :  { %2478 = shalt.err (!%p2475_p4)
}
   0xc   :  { %s2546_s15 = smov 1024   ;;  %s2547_s16 = smov 64  }
   0xd   :  { %32 = dma.hbm_to_vmem [thread:$0]  %s2672_s1, 131072, %s27_s13, [#allocation6], %s2546_s15, %s2546_s15, %s2547_s16  }
   0xe   :  { %s2548_s19 = smov [#allocation2]   ;;  %s2549_s21 = smov [#allocation7]  }
   0xf   :  { %s17_s20 = sshll.u32 %s2548_s19, 4  ;;  %s39_s22 = sshll.u32 %s2549_s21, 4  ;;  %s18_s20 = int_to_ptr.vmem [resolvable:$true] %s17_s20  ;;  %s40_s22 = int_to_ptr.vmem [resolvable:$true] %s39_s22 }
  0x10   :  { %s2487_s23 = scalar_lea.vmem %s18_s20, 256  ;;  %p2492_p6 = scmp.lt.s32.totalorder %s18_s20, %s18_s20 }
  0x11   :  { %p2488_p5 = scmp.ne.s32.totalorder %s18_s20, %s2487_s23  ;;  %p2493_p7 = scmp.lt.s32.totalorder %s2487_s23, %s2487_s23 }
  0x13   :  { %p2494_p8 = por %p2493_p7, %p2492_p6 }
  0x15   :  { %p2495_p9 = pnand %p2494_p8, %p2488_p5 }
  0x17   :  { %2498 = shalt.err (!%p2495_p9)
}
  0x18   :  { %20 = dma.hbm_to_vmem [thread:$0]  %s2671_s0, 256, %s18_s20, [#allocation3]  }
  0x19   :  { %s2507_s26 = scalar_lea.vmem %s40_s22, 128  ;;  %p2512_p11 = scmp.lt.s32.totalorder %s40_s22, %s40_s22 }
  0x1a   :  { %p2508_p10 = scmp.ne.s32.totalorder %s40_s22, %s2507_s26  ;;  %p2513_p12 = scmp.lt.s32.totalorder %s2507_s26, %s2507_s26 }
  0x1c   :  { %p2514_p13 = por %p2513_p12, %p2512_p11 }
  0x1e   :  { %p2515_p0 = pnand %p2514_p13, %p2508_p10 }
  0x20   :  { %2518 = shalt.err (!%p2515_p0)
}
  0x21   :  { %42 = dma.hbm_to_vmem [thread:$0]  %s2673_s2, 128, %s40_s22, [#allocation6]  }
  0x22   :  { %2539 = dma.done.wait [#allocation3], 256  }
  0x23   :  { %2540 = vsyncadd [#allocation3], 4294967040 }
  0x24   :  { %2541 = dma.done.wait [#allocation6], 131200  }
  0x25   :  { %2542 = vsyncadd [#allocation6], 4294836096  ;;  %v175_v0 = vld [vmem:[#allocation5 + $0x3c8] sm:$0xff]  ;;  %v174_v2 = vld [vmem:[#allocation5 + $0x3c0] sm:$0xff]  ;;  %s2551_s0 = smov [#allocation8]  }
  0x26   :  { %v431_v1 = vld [vmem:[#allocation5 + $0xbc8] sm:$0xff]  ;;  %1164 = vmatprep.subr.mxu0 %v175_v0  ;;  %v430_v3 = vld [vmem:[#allocation5 + $0xbc0] sm:$0xff]  ;;  %s2400_s2 = sshll.u32 %s2551_s0, 4  ;;  %s2401_s2 = int_to_ptr.vmem [resolvable:$true] %s2400_s2 }
  0x27   :  { %1235 = vmatprep.subr.mxu1 %v431_v1  ;;  %v167_v4 = vld [vmem:[#allocation5 + $0x388] sm:$0xff]  ;;  %1165 = vmatpush1.msra.mxu0 %v174_v2  ;;  %v166_v6 = vld [vmem:[#allocation5 + $0x380] sm:$0xff]  ;;  %s2519_s28 = scalar_lea.vmem %s2401_s2, 256  ;;  %p2524_p2 = scmp.lt.s32.totalorder %s2401_s2, %s2401_s2 }
  0x28   :  { %v423_v5 = vld [vmem:[#allocation5 + $0xb88] sm:$0xff]  ;;  %1236 = vmatpush1.msra.mxu1 %v430_v3  ;;  %v422_v7 = vld [vmem:[#allocation5 + $0xb80] sm:$0xff]  ;;  %1166 = vmatprep.subr.mxu0 %v167_v4  ;;  %p2520_p1 = scmp.ne.s32.totalorder %s2401_s2, %s2519_s28  ;;  %p2525_p3 = scmp.lt.s32.totalorder %s2519_s28, %s2519_s28 }
  0x29   :  { %v159_v8 = vld [vmem:[#allocation5 + $0x348] sm:$0xff]  ;;  %1237 = vmatprep.subr.mxu1 %v423_v5  ;;  %v158_v10 = vld [vmem:[#allocation5 + $0x340] sm:$0xff]  ;;  %1167 = vmatpush1.msra.mxu0 %v166_v6 }
  0x2a   :  { %v415_v9 = vld [vmem:[#allocation5 + $0xb48] sm:$0xff]  ;;  %v414_v11 = vld [vmem:[#allocation5 + $0xb40] sm:$0xff]  ;;  %1238 = vmatpush1.msra.mxu1 %v422_v7  ;;  %1168 = vmatprep.subr.mxu0 %v159_v8  ;;  %p2526_p4 = por %p2525_p3, %p2524_p2 }
  0x2b   :  { %v151_v12 = vld [vmem:[#allocation5 + $0x308] sm:$0xff]  ;;  %1239 = vmatprep.subr.mxu1 %v415_v9  ;;  %v150_v14 = vld [vmem:[#allocation5 + $0x300] sm:$0xff]  ;;  %1169 = vmatpush1.msra.mxu0 %v158_v10 }
  0x2c   :  { %v407_v13 = vld [vmem:[#allocation5 + $0xb08] sm:$0xff]  ;;  %v406_v15 = vld [vmem:[#allocation5 + $0xb00] sm:$0xff]  ;;  %1240 = vmatpush1.msra.mxu1 %v414_v11  ;;  %1170 = vmatprep.subr.mxu0 %v151_v12  ;;  %p2527_p5 = pnand %p2526_p4, %p2520_p1 }
  0x2d   :  { %v143_v16 = vld [vmem:[#allocation5 + $0x2c8] sm:$0xff]  ;;  %1241 = vmatprep.subr.mxu1 %v407_v13  ;;  %v142_v18 = vld [vmem:[#allocation5 + $0x2c0] sm:$0xff]  ;;  %1171 = vmatpush1.msra.mxu0 %v150_v14 }
  0x2e   :  { %v399_v17 = vld [vmem:[#allocation5 + $0xac8] sm:$0xff]  ;;  %v398_v19 = vld [vmem:[#allocation5 + $0xac0] sm:$0xff]  ;;  %1242 = vmatpush1.msra.mxu1 %v406_v15  ;;  %1172 = vmatprep.subr.mxu0 %v143_v16 }
  0x2f   :  { %v135_v20 = vld [vmem:[#allocation5 + $0x288] sm:$0xff]  ;;  %1243 = vmatprep.subr.mxu1 %v399_v17  ;;  %v134_v22 = vld [vmem:[#allocation5 + $0x280] sm:$0xff]  ;;  %1173 = vmatpush1.msra.mxu0 %v142_v18 }
  0x30   :  { %v391_v21 = vld [vmem:[#allocation5 + $0xa88] sm:$0xff]  ;;  %v390_v23 = vld [vmem:[#allocation5 + $0xa80] sm:$0xff]  ;;  %1244 = vmatpush1.msra.mxu1 %v398_v19  ;;  %1174 = vmatprep.subr.mxu0 %v135_v20 }
  0x31   :  { %v127_v24 = vld [vmem:[#allocation5 + $0x248] sm:$0xff]  ;;  %1245 = vmatprep.subr.mxu1 %v391_v21  ;;  %v126_v26 = vld [vmem:[#allocation5 + $0x240] sm:$0xff]  ;;  %1175 = vmatpush1.msra.mxu0 %v134_v22 }
  0x32   :  { %v383_v25 = vld [vmem:[#allocation5 + $0xa48] sm:$0xff]  ;;  %v382_v27 = vld [vmem:[#allocation5 + $0xa40] sm:$0xff]  ;;  %1246 = vmatpush1.msra.mxu1 %v390_v23  ;;  %1176 = vmatprep.subr.mxu0 %v127_v24 }
  0x33   :  { %v119_v28 = vld [vmem:[#allocation5 + $0x208] sm:$0xff]  ;;  %1247 = vmatprep.subr.mxu1 %v383_v25  ;;  %v118_v30 = vld [vmem:[#allocation5 + $0x200] sm:$0xff]  ;;  %1177 = vmatpush1.msra.mxu0 %v126_v26 }
  0x34   :  { %v375_v29 = vld [vmem:[#allocation5 + $0xa08] sm:$0xff]  ;;  %v374_v31 = vld [vmem:[#allocation5 + $0xa00] sm:$0xff]  ;;  %1248 = vmatpush1.msra.mxu1 %v382_v27  ;;  %1178 = vmatprep.subr.mxu0 %v119_v28 }
  0x35   :  { %v111_v32 = vld [vmem:[#allocation5 + $0x1c8] sm:$0xff]  ;;  %1249 = vmatprep.subr.mxu1 %v375_v29  ;;  %v110_v34 = vld [vmem:[#allocation5 + $0x1c0] sm:$0xff]  ;;  %1179 = vmatpush1.msra.mxu0 %v118_v30  ;;  %v1080_v30 = vlaneseq }
  0x36   :  { %v367_v33 = vld [vmem:[#allocation5 + $0x9c8] sm:$0xff]  ;;  %v366_v35 = vld [vmem:[#allocation5 + $0x9c0] sm:$0xff]  ;;  %1250 = vmatpush1.msra.mxu1 %v374_v31  ;;  %1180 = vmatprep.subr.mxu0 %v111_v32  ;;  %v2550_v31 = vmov 1983009808  }
  0x37   :  { %v103_v36 = vld [vmem:[#allocation5 + $0x188] sm:$0xff]  ;;  %1251 = vmatprep.subr.mxu1 %v367_v33  ;;  %v102_v38 = vld [vmem:[#allocation5 + $0x180] sm:$0xff]  ;;  %1181 = vmatpush1.msra.mxu0 %v110_v34  ;;  %v1124_v32 = vunpack.c.l.s4 %v2550_v31 }
  0x38   :  { %v359_v37 = vld [vmem:[#allocation5 + $0x988] sm:$0xff]  ;;  %v358_v39 = vld [vmem:[#allocation5 + $0x980] sm:$0xff]  ;;  %1252 = vmatpush1.msra.mxu1 %v366_v35  ;;  %1182 = vmatprep.subr.mxu0 %v103_v36 }
  0x39   :  { %v95_v40 = vld [vmem:[#allocation5 + $0x148] sm:$0xff]  ;;  %1253 = vmatprep.subr.mxu1 %v359_v37  ;;  %v94_v42 = vld [vmem:[#allocation5 + $0x140] sm:$0xff]  ;;  %1183 = vmatpush1.msra.mxu0 %v102_v38 }
  0x3a   :  { %v351_v41 = vld [vmem:[#allocation5 + $0x948] sm:$0xff]  ;;  %v350_v43 = vld [vmem:[#allocation5 + $0x940] sm:$0xff]  ;;  %1254 = vmatpush1.msra.mxu1 %v358_v39  ;;  %1184 = vmatprep.subr.mxu0 %v95_v40 }
  0x3b   :  { %v87_v44 = vld [vmem:[#allocation5 + $0x108] sm:$0xff]  ;;  %1255 = vmatprep.subr.mxu1 %v351_v41  ;;  %v86_v46 = vld [vmem:[#allocation5 + $0x100] sm:$0xff]  ;;  %1185 = vmatpush1.msra.mxu0 %v94_v42  ;;  %v2581_v41 = vshrl.u32 %v1080_v30, 7  ;;  %v1125_v42 = vunpack.c.0.s8 %v1124_v32 }
  0x3c   :  { %v343_v45 = vld [vmem:[#allocation5 + $0x908] sm:$0xff]  ;;  %v342_v47 = vld [vmem:[#allocation5 + $0x900] sm:$0xff]  ;;  %1256 = vmatpush1.msra.mxu1 %v350_v43  ;;  %1186 = vmatprep.subr.mxu0 %v87_v44 }
  0x3d   :  { %v79_v48 = vld [vmem:[#allocation5 + $0xc8] sm:$0xff]  ;;  %1257 = vmatprep.subr.mxu1 %v343_v45  ;;  %v78_v50 = vld [vmem:[#allocation5 + $0xc0] sm:$0xff]  ;;  %1187 = vmatpush1.msra.mxu0 %v86_v46 }
  0x3e   :  { %v335_v49 = vld [vmem:[#allocation5 + $0x8c8] sm:$0xff]  ;;  %v334_v51 = vld [vmem:[#allocation5 + $0x8c0] sm:$0xff]  ;;  %1258 = vmatpush1.msra.mxu1 %v342_v47  ;;  %1188 = vmatprep.subr.mxu0 %v79_v48 }
  0x3f   :  { %v71_v52 = vld [vmem:[#allocation5 + $0x88] sm:$0xff]  ;;  %1259 = vmatprep.subr.mxu1 %v335_v49  ;;  %v70_v54 = vld [vmem:[#allocation5 + $0x80] sm:$0xff]  ;;  %1189 = vmatpush1.msra.mxu0 %v78_v50  ;;  %v52_v49 = vld [vmem:[#allocation2] sm:$0xff] }
  0x40   :  { %v327_v53 = vld [vmem:[#allocation5 + $0x888] sm:$0xff]  ;;  %v326_v55 = vld [vmem:[#allocation5 + $0x880] sm:$0xff]  ;;  %1260 = vmatpush1.msra.mxu1 %v334_v51  ;;  %1190 = vmatprep.subr.mxu0 %v71_v52  ;;  %v2584_v52 = vsub.s32 %v1125_v42, %v2581_v41 }
  0x41   :  { %v63_v56 = vld [vmem:[#allocation5 + $0x48] sm:$0xff]  ;;  %1261 = vmatprep.subr.mxu1 %v327_v53  ;;  %v62_v58 = vld [vmem:[#allocation5 + $0x40] sm:$0xff]  ;;  %1191 = vmatpush1.msra.mxu0 %v70_v54 }
  0x42   :  { %v319_v57 = vld [vmem:[#allocation5 + $0x848] sm:$0xff]  ;;  %v318_v59 = vld [vmem:[#allocation5 + $0x840] sm:$0xff]  ;;  %1262 = vmatpush1.msra.mxu1 %v326_v55  ;;  %1192 = vmatprep.subr.mxu0 %v63_v56 }
  0x43   :  { %v55_v60 = vld [vmem:[#allocation5 + $0x8] sm:$0xff]  ;;  %1263 = vmatprep.subr.mxu1 %v319_v57  ;;  %v54_v62 = vld [vmem:[#allocation5] sm:$0xff]  ;;  %1193 = vmatpush1.msra.mxu0 %v62_v58  ;;  %v1122_v57 = vcombine.high %v52_v49, %v52_v49 }
  0x44   :  { %v311_v61 = vld [vmem:[#allocation5 + $0x808] sm:$0xff]  ;;  %v310_v63 = vld [vmem:[#allocation5 + $0x800] sm:$0xff]  ;;  %1264 = vmatpush1.msra.mxu1 %v318_v59  ;;  %1194 = vmatprep.subr.mxu0 %v55_v60 }
  0x45   :  { %v303_v0 = vld [vmem:[#allocation5 + $0x7c8] sm:$0xff]  ;;  %1265 = vmatprep.subr.mxu1 %v311_v61  ;;  %v302_v2 = vld [vmem:[#allocation5 + $0x7c0] sm:$0xff]  ;;  %1195 = vmatpush1.msra.mxu0 %v54_v62  ;;  %v2587_v62 = vrot.slane %v52_v49, %v2584_v52 }
  0x46   :  { %v559_v1 = vld [vmem:[#allocation5 + $0xfc8] sm:$0xff]  ;;  %v558_v3 = vld [vmem:[#allocation5 + $0xfc0] sm:$0xff]  ;;  %1266 = vmatpush1.msra.mxu1 %v310_v63  ;;  %1196 = vmatprep.subr.mxu0 %v303_v0 }
  0x47   :  { %v295_v4 = vld [vmem:[#allocation5 + $0x788] sm:$0xff]  ;;  %1267 = vmatprep.subr.mxu1 %v559_v1  ;;  %v294_v6 = vld [vmem:[#allocation5 + $0x780] sm:$0xff]  ;;  %1197 = vmatpush2.msra.mxu0 %v302_v2 }
  0x48   :  { %v551_v5 = vld [vmem:[#allocation5 + $0xf88] sm:$0xff]  ;;  %v550_v7 = vld [vmem:[#allocation5 + $0xf80] sm:$0xff]  ;;  %1268 = vmatpush2.msra.mxu1 %v558_v3  ;;  %1198 = vmatprep.subr.mxu0 %v295_v4  ;;  %v2590_v3 = vrot.slane %v1122_v57, %v2584_v52 }
  0x49   :  { %v287_v8 = vld [vmem:[#allocation5 + $0x748] sm:$0xff]  ;;  %1269 = vmatprep.subr.mxu1 %v551_v5  ;;  %v286_v10 = vld [vmem:[#allocation5 + $0x740] sm:$0xff]  ;;  %1199 = vmatpush2.msra.mxu0 %v294_v6 }
  0x4a   :  { %v543_v9 = vld [vmem:[#allocation5 + $0xf48] sm:$0xff]  ;;  %v542_v11 = vld [vmem:[#allocation5 + $0xf40] sm:$0xff]  ;;  %1270 = vmatpush2.msra.mxu1 %v550_v7  ;;  %1200 = vmatprep.subr.mxu0 %v287_v8  ;;  %v2594_v8 = vcombine.high %v2587_v62, %v2587_v62 }
  0x4b   :  { %v279_v12 = vld [vmem:[#allocation5 + $0x708] sm:$0xff]  ;;  %1271 = vmatprep.subr.mxu1 %v543_v9  ;;  %v278_v14 = vld [vmem:[#allocation5 + $0x700] sm:$0xff]  ;;  %1201 = vmatpush2.msra.mxu0 %v286_v10 }
  0x4c   :  { %v535_v13 = vld [vmem:[#allocation5 + $0xf08] sm:$0xff]  ;;  %v534_v15 = vld [vmem:[#allocation5 + $0xf00] sm:$0xff]  ;;  %1272 = vmatpush2.msra.mxu1 %v542_v11  ;;  %1202 = vmatprep.subr.mxu0 %v279_v12  ;;  %v2598_v11 = vcombine.high %v2590_v3, %v2590_v3 }
  0x4d   :  { %v271_v16 = vld [vmem:[#allocation5 + $0x6c8] sm:$0xff]  ;;  %1273 = vmatprep.subr.mxu1 %v535_v13  ;;  %v270_v18 = vld [vmem:[#allocation5 + $0x6c0] sm:$0xff]  ;;  %1203 = vmatpush2.msra.mxu0 %v278_v14 }
  0x4e   :  { %v527_v17 = vld [vmem:[#allocation5 + $0xec8] sm:$0xff]  ;;  %v526_v19 = vld [vmem:[#allocation5 + $0xec0] sm:$0xff]  ;;  %1274 = vmatpush2.msra.mxu1 %v534_v15  ;;  %1204 = vmatprep.subr.mxu0 %v271_v16 }
  0x4f   :  { %v263_v20 = vld [vmem:[#allocation5 + $0x688] sm:$0xff]  ;;  %1275 = vmatprep.subr.mxu1 %v527_v17  ;;  %v262_v22 = vld [vmem:[#allocation5 + $0x680] sm:$0xff]  ;;  %1205 = vmatpush2.msra.mxu0 %v270_v18 }
  0x50   :  { %v519_v21 = vld [vmem:[#allocation5 + $0xe88] sm:$0xff]  ;;  %v518_v23 = vld [vmem:[#allocation5 + $0xe80] sm:$0xff]  ;;  %1276 = vmatpush2.msra.mxu1 %v526_v19  ;;  %1206 = vmatprep.subr.mxu0 %v263_v20 }
  0x51   :  { %v255_v24 = vld [vmem:[#allocation5 + $0x648] sm:$0xff]  ;;  %1277 = vmatprep.subr.mxu1 %v519_v21  ;;  %v254_v26 = vld [vmem:[#allocation5 + $0x640] sm:$0xff]  ;;  %1207 = vmatpush2.msra.mxu0 %v262_v22 }
  0x52   :  { %v511_v25 = vld [vmem:[#allocation5 + $0xe48] sm:$0xff]  ;;  %v510_v27 = vld [vmem:[#allocation5 + $0xe40] sm:$0xff]  ;;  %1278 = vmatpush2.msra.mxu1 %v518_v23  ;;  %1208 = vmatprep.subr.mxu0 %v255_v24 }
  0x53   :  { %v247_v28 = vld [vmem:[#allocation5 + $0x608] sm:$0xff]  ;;  %1279 = vmatprep.subr.mxu1 %v511_v25  ;;  %v246_v33 = vld [vmem:[#allocation5 + $0x600] sm:$0xff]  ;;  %1209 = vmatpush2.msra.mxu0 %v254_v26 }
  0x54   :  { %v503_v29 = vld [vmem:[#allocation5 + $0xe08] sm:$0xff]  ;;  %v502_v34 = vld [vmem:[#allocation5 + $0xe00] sm:$0xff]  ;;  %1280 = vmatpush2.msra.mxu1 %v510_v27  ;;  %1210 = vmatprep.subr.mxu0 %v247_v28 }
  0x55   :  { %v239_v35 = vld [vmem:[#allocation5 + $0x5c8] sm:$0xff]  ;;  %1281 = vmatprep.subr.mxu1 %v503_v29  ;;  %v238_v37 = vld [vmem:[#allocation5 + $0x5c0] sm:$0xff]  ;;  %1211 = vmatpush2.msra.mxu0 %v246_v33 }
  0x56   :  { %v495_v36 = vld [vmem:[#allocation5 + $0xdc8] sm:$0xff]  ;;  %v494_v38 = vld [vmem:[#allocation5 + $0xdc0] sm:$0xff]  ;;  %1282 = vmatpush2.msra.mxu1 %v502_v34  ;;  %1212 = vmatprep.subr.mxu0 %v239_v35 }
  0x57   :  { %v231_v39 = vld [vmem:[#allocation5 + $0x588] sm:$0xff]  ;;  %1283 = vmatprep.subr.mxu1 %v495_v36  ;;  %v230_v43 = vld [vmem:[#allocation5 + $0x580] sm:$0xff]  ;;  %1213 = vmatpush2.msra.mxu0 %v238_v37 }
  0x58   :  { %v487_v40 = vld [vmem:[#allocation5 + $0xd88] sm:$0xff]  ;;  %v486_v44 = vld [vmem:[#allocation5 + $0xd80] sm:$0xff]  ;;  %1284 = vmatpush2.msra.mxu1 %v494_v38  ;;  %1214 = vmatprep.subr.mxu0 %v231_v39 }
  0x59   :  { %v223_v45 = vld [vmem:[#allocation5 + $0x548] sm:$0xff]  ;;  %1285 = vmatprep.subr.mxu1 %v487_v40  ;;  %v222_v47 = vld [vmem:[#allocation5 + $0x540] sm:$0xff]  ;;  %1215 = vmatpush2.msra.mxu0 %v230_v43 }
  0x5a   :  { %v479_v46 = vld [vmem:[#allocation5 + $0xd48] sm:$0xff]  ;;  %v478_v48 = vld [vmem:[#allocation5 + $0xd40] sm:$0xff]  ;;  %1286 = vmatpush2.msra.mxu1 %v486_v44  ;;  %1216 = vmatprep.subr.mxu0 %v223_v45 }
  0x5b   :  { %v215_v50 = vld [vmem:[#allocation5 + $0x508] sm:$0xff]  ;;  %1287 = vmatprep.subr.mxu1 %v479_v46  ;;  %v214_v53 = vld [vmem:[#allocation5 + $0x500] sm:$0xff]  ;;  %1217 = vmatpush2.msra.mxu0 %v222_v47 }
  0x5c   :  { %v471_v51 = vld [vmem:[#allocation5 + $0xd08] sm:$0xff]  ;;  %v470_v54 = vld [vmem:[#allocation5 + $0xd00] sm:$0xff]  ;;  %1288 = vmatpush2.msra.mxu1 %v478_v48  ;;  %1218 = vmatprep.subr.mxu0 %v215_v50 }
  0x5d   :  { %v207_v55 = vld [vmem:[#allocation5 + $0x4c8] sm:$0xff]  ;;  %1289 = vmatprep.subr.mxu1 %v471_v51  ;;  %v206_v58 = vld [vmem:[#allocation5 + $0x4c0] sm:$0xff]  ;;  %1219 = vmatpush2.msra.mxu0 %v214_v53 }
  0x5e   :  { %v463_v56 = vld [vmem:[#allocation5 + $0xcc8] sm:$0xff]  ;;  %v462_v59 = vld [vmem:[#allocation5 + $0xcc0] sm:$0xff]  ;;  %1290 = vmatpush2.msra.mxu1 %v470_v54  ;;  %1220 = vmatprep.subr.mxu0 %v207_v55 }
  0x5f   :  { %v199_v60 = vld [vmem:[#allocation5 + $0x488] sm:$0xff]  ;;  %1291 = vmatprep.subr.mxu1 %v463_v56  ;;  %v198_v63 = vld [vmem:[#allocation5 + $0x480] sm:$0xff]  ;;  %1221 = vmatpush2.msra.mxu0 %v206_v58 }
  0x60   :  { %v455_v61 = vld [vmem:[#allocation5 + $0xc88] sm:$0xff]  ;;  %v454_v0 = vld [vmem:[#allocation5 + $0xc80] sm:$0xff]  ;;  %1292 = vmatpush2.msra.mxu1 %v462_v59  ;;  %1222 = vmatprep.subr.mxu0 %v199_v60 }
  0x61   :  { %v191_v1 = vld [vmem:[#allocation5 + $0x448] sm:$0xff]  ;;  %1293 = vmatprep.subr.mxu1 %v455_v61  ;;  %v190_v4 = vld [vmem:[#allocation5 + $0x440] sm:$0xff]  ;;  %1223 = vmatpush2.msra.mxu0 %v198_v63 }
  0x62   :  { %v447_v2 = vld [vmem:[#allocation5 + $0xc48] sm:$0xff]  ;;  %v446_v5 = vld [vmem:[#allocation5 + $0xc40] sm:$0xff]  ;;  %1294 = vmatpush2.msra.mxu1 %v454_v0  ;;  %1224 = vmatprep.subr.mxu0 %v191_v1 }
  0x63   :  { %v183_v6 = vld [vmem:[#allocation5 + $0x408] sm:$0xff]  ;;  %1295 = vmatprep.subr.mxu1 %v447_v2  ;;  %v182_v9 = vld [vmem:[#allocation5 + $0x400] sm:$0xff]  ;;  %1225 = vmatpush2.msra.mxu0 %v190_v4 }
  0x64   :  { %v439_v7 = vld [vmem:[#allocation5 + $0xc08] sm:$0xff]  ;;  %1296 = vmatpush2.msra.mxu1 %v446_v5  ;;  %v438_v10 = vld [vmem:[#allocation5 + $0xc00] sm:$0xff]  ;;  %1226 = vmatprep.subr.mxu0 %v183_v6 }
  0x65   :  { %1297 = vmatprep.subr.mxu1 %v439_v7  ;;  %v687_v12 = vld [vmem:[#allocation5 + $0x13c8] sm:$0xff]  ;;  %1227 = vmatpush2.msra.mxu0 %v182_v9  ;;  %v686_v14 = vld [vmem:[#allocation5 + $0x13c0] sm:$0xff] }
  0x66   :  { %1228 = vmatprep.mubr.f32.mxu0 %v2594_v8  ;;  %v943_v13 = vld [vmem:[#allocation5 + $0x1bc8] sm:$0xff]  ;;  %1298 = vmatpush2.msra.mxu1 %v438_v10  ;;  %v942_v15 = vld [vmem:[#allocation5 + $0x1bc0] sm:$0xff] }
  0x67   :  { %1229 = vmatmul.mubr.f32.vlgmr.msra.gmra.mxu0 %v2587_v62  ;;  %1299 = vmatprep.mubr.f32.mxu1 %v2598_v11  ;;  %v679_v16 = vld [vmem:[#allocation5 + $0x1388] sm:$0xff]  ;;  %v678_v18 = vld [vmem:[#allocation5 + $0x1380] sm:$0xff] }
  0x68   :  { %1306 = vmatprep.subr.mxu0 %v687_v12  ;;  %v935_v17 = vld [vmem:[#allocation5 + $0x1b88] sm:$0xff]  ;;  %1377 = vmatprep.subr.mxu1 %v943_v13  ;;  %v934_v19 = vld [vmem:[#allocation5 + $0x1b80] sm:$0xff] }
  0x69   :  { %1300 = vmatmul.mubr.f32.vlgmr.msra.gmra.mxu1 %v2590_v3  ;;  %1307 = vmatpush1.msra.mxu0 %v686_v14  ;;  %v671_v20 = vld [vmem:[#allocation5 + $0x1348] sm:$0xff]  ;;  %v670_v22 = vld [vmem:[#allocation5 + $0x1340] sm:$0xff] }
  0x6a   :  { %1378 = vmatpush1.msra.mxu1 %v942_v15  ;;  %v927_v21 = vld [vmem:[#allocation5 + $0x1b48] sm:$0xff]  ;;  %1308 = vmatprep.subr.mxu0 %v679_v16  ;;  %v926_v23 = vld [vmem:[#allocation5 + $0x1b40] sm:$0xff] }
  0x6b   :  { %1379 = vmatprep.subr.mxu1 %v935_v17  ;;  %1309 = vmatpush1.msra.mxu0 %v678_v18  ;;  %v663_v24 = vld [vmem:[#allocation5 + $0x1308] sm:$0xff]  ;;  %v662_v26 = vld [vmem:[#allocation5 + $0x1300] sm:$0xff] }
  0x6c   :  { %1380 = vmatpush1.msra.mxu1 %v934_v19  ;;  %v919_v25 = vld [vmem:[#allocation5 + $0x1b08] sm:$0xff]  ;;  %1310 = vmatprep.subr.mxu0 %v671_v20  ;;  %v918_v27 = vld [vmem:[#allocation5 + $0x1b00] sm:$0xff] }
  0x6d   :  { %1381 = vmatprep.subr.mxu1 %v927_v21  ;;  %1311 = vmatpush1.msra.mxu0 %v670_v22  ;;  %v655_v28 = vld [vmem:[#allocation5 + $0x12c8] sm:$0xff]  ;;  %v654_v30 = vld [vmem:[#allocation5 + $0x12c0] sm:$0xff] }
  0x6e   :  { %1382 = vmatpush1.msra.mxu1 %v926_v23  ;;  %v911_v29 = vld [vmem:[#allocation5 + $0x1ac8] sm:$0xff]  ;;  %1312 = vmatprep.subr.mxu0 %v663_v24  ;;  %v910_v31 = vld [vmem:[#allocation5 + $0x1ac0] sm:$0xff] }
  0x6f   :  { %1383 = vmatprep.subr.mxu1 %v919_v25  ;;  %1313 = vmatpush1.msra.mxu0 %v662_v26  ;;  %v647_v32 = vld [vmem:[#allocation5 + $0x1288] sm:$0xff]  ;;  %v646_v34 = vld [vmem:[#allocation5 + $0x1280] sm:$0xff] }
  0x70   :  { %1384 = vmatpush1.msra.mxu1 %v918_v27  ;;  %v903_v33 = vld [vmem:[#allocation5 + $0x1a88] sm:$0xff]  ;;  %1314 = vmatprep.subr.mxu0 %v655_v28  ;;  %v902_v35 = vld [vmem:[#allocation5 + $0x1a80] sm:$0xff] }
  0x71   :  { %1385 = vmatprep.subr.mxu1 %v911_v29  ;;  %1315 = vmatpush1.msra.mxu0 %v654_v30  ;;  %v639_v36 = vld [vmem:[#allocation5 + $0x1248] sm:$0xff]  ;;  %v638_v38 = vld [vmem:[#allocation5 + $0x1240] sm:$0xff] }
  0x72   :  { %1386 = vmatpush1.msra.mxu1 %v910_v31  ;;  %v895_v37 = vld [vmem:[#allocation5 + $0x1a48] sm:$0xff]  ;;  %1316 = vmatprep.subr.mxu0 %v647_v32  ;;  %v894_v39 = vld [vmem:[#allocation5 + $0x1a40] sm:$0xff] }
  0x73   :  { %1387 = vmatprep.subr.mxu1 %v903_v33  ;;  %1317 = vmatpush1.msra.mxu0 %v646_v34  ;;  %v631_v40 = vld [vmem:[#allocation5 + $0x1208] sm:$0xff]  ;;  %v630_v43 = vld [vmem:[#allocation5 + $0x1200] sm:$0xff] }
  0x74   :  { %1388 = vmatpush1.msra.mxu1 %v902_v35  ;;  %v887_v42 = vld [vmem:[#allocation5 + $0x1a08] sm:$0xff]  ;;  %1318 = vmatprep.subr.mxu0 %v639_v36  ;;  %v886_v44 = vld [vmem:[#allocation5 + $0x1a00] sm:$0xff] }
  0x75   :  { %1389 = vmatprep.subr.mxu1 %v895_v37  ;;  %1319 = vmatpush1.msra.mxu0 %v638_v38  ;;  %v623_v45 = vld [vmem:[#allocation5 + $0x11c8] sm:$0xff]  ;;  %v622_v47 = vld [vmem:[#allocation5 + $0x11c0] sm:$0xff] }
  0x76   :  { %1390 = vmatpush1.msra.mxu1 %v894_v39  ;;  %v879_v46 = vld [vmem:[#allocation5 + $0x19c8] sm:$0xff]  ;;  %1320 = vmatprep.subr.mxu0 %v631_v40  ;;  %v878_v48 = vld [vmem:[#allocation5 + $0x19c0] sm:$0xff] }
  0x77   :  { %1391 = vmatprep.subr.mxu1 %v887_v42  ;;  %1321 = vmatpush1.msra.mxu0 %v630_v43  ;;  %v615_v49 = vld [vmem:[#allocation5 + $0x1188] sm:$0xff]  ;;  %v614_v51 = vld [vmem:[#allocation5 + $0x1180] sm:$0xff] }
  0x78   :  { %1392 = vmatpush1.msra.mxu1 %v886_v44  ;;  %v871_v50 = vld [vmem:[#allocation5 + $0x1988] sm:$0xff]  ;;  %1322 = vmatprep.subr.mxu0 %v623_v45  ;;  %v870_v53 = vld [vmem:[#allocation5 + $0x1980] sm:$0xff] }
  0x79   :  { %1393 = vmatprep.subr.mxu1 %v879_v46  ;;  %1323 = vmatpush1.msra.mxu0 %v622_v47  ;;  %v607_v54 = vld [vmem:[#allocation5 + $0x1148] sm:$0xff]  ;;  %v606_v56 = vld [vmem:[#allocation5 + $0x1140] sm:$0xff] }
  0x7a   :  { %1394 = vmatpush1.msra.mxu1 %v878_v48  ;;  %v863_v55 = vld [vmem:[#allocation5 + $0x1948] sm:$0xff]  ;;  %1324 = vmatprep.subr.mxu0 %v615_v49  ;;  %v862_v57 = vld [vmem:[#allocation5 + $0x1940] sm:$0xff] }
  0x7b   :  { %1395 = vmatprep.subr.mxu1 %v871_v50  ;;  %1325 = vmatpush1.msra.mxu0 %v614_v51  ;;  %v599_v58 = vld [vmem:[#allocation5 + $0x1108] sm:$0xff]  ;;  %v598_v60 = vld [vmem:[#allocation5 + $0x1100] sm:$0xff] }
  0x7c   :  { %1396 = vmatpush1.msra.mxu1 %v870_v53  ;;  %v855_v59 = vld [vmem:[#allocation5 + $0x1908] sm:$0xff]  ;;  %1326 = vmatprep.subr.mxu0 %v607_v54  ;;  %v854_v61 = vld [vmem:[#allocation5 + $0x1900] sm:$0xff] }
  0x7d   :  { %1397 = vmatprep.subr.mxu1 %v863_v55  ;;  %1327 = vmatpush1.msra.mxu0 %v606_v56  ;;  %v591_v63 = vld [vmem:[#allocation5 + $0x10c8] sm:$0xff]  ;;  %v590_v1 = vld [vmem:[#allocation5 + $0x10c0] sm:$0xff] }
  0x7e   :  { %1398 = vmatpush1.msra.mxu1 %v862_v57  ;;  %v847_v0 = vld [vmem:[#allocation5 + $0x18c8] sm:$0xff]  ;;  %1328 = vmatprep.subr.mxu0 %v599_v58  ;;  %v846_v2 = vld [vmem:[#allocation5 + $0x18c0] sm:$0xff] }
  0x7f   :  { %1399 = vmatprep.subr.mxu1 %v855_v59  ;;  %1329 = vmatpush1.msra.mxu0 %v598_v60  ;;  %v583_v4 = vld [vmem:[#allocation5 + $0x1088] sm:$0xff]  ;;  %v582_v6 = vld [vmem:[#allocation5 + $0x1080] sm:$0xff] }
  0x80   :  { %1400 = vmatpush1.msra.mxu1 %v854_v61  ;;  %v839_v5 = vld [vmem:[#allocation5 + $0x1888] sm:$0xff]  ;;  %1330 = vmatprep.subr.mxu0 %v591_v63  ;;  %v838_v7 = vld [vmem:[#allocation5 + $0x1880] sm:$0xff] }
  0x81   :  { %1401 = vmatprep.subr.mxu1 %v847_v0  ;;  %1331 = vmatpush1.msra.mxu0 %v590_v1  ;;  %v575_v9 = vld [vmem:[#allocation5 + $0x1048] sm:$0xff]  ;;  %v574_v12 = vld [vmem:[#allocation5 + $0x1040] sm:$0xff]  ;;  %v53_v1 = vld [vmem:[#allocation2 + $0x8] sm:$0xff] }
  0x82   :  { %1402 = vmatpush1.msra.mxu1 %v846_v2  ;;  %v831_v10 = vld [vmem:[#allocation5 + $0x1848] sm:$0xff]  ;;  %1332 = vmatprep.subr.mxu0 %v583_v4  ;;  %v830_v13 = vld [vmem:[#allocation5 + $0x1840] sm:$0xff] }
  0x83   :  { %1403 = vmatprep.subr.mxu1 %v839_v5  ;;  %1333 = vmatpush1.msra.mxu0 %v582_v6  ;;  %v567_v14 = vld [vmem:[#allocation5 + $0x1008] sm:$0xff]  ;;  %v566_v16 = vld [vmem:[#allocation5 + $0x1000] sm:$0xff] }
  0x84   :  { %1404 = vmatpush1.msra.mxu1 %v838_v7  ;;  %v823_v15 = vld [vmem:[#allocation5 + $0x1808] sm:$0xff]  ;;  %1334 = vmatprep.subr.mxu0 %v575_v9  ;;  %v822_v17 = vld [vmem:[#allocation5 + $0x1800] sm:$0xff] }
  0x85   :  { %1405 = vmatprep.subr.mxu1 %v831_v10  ;;  %1335 = vmatpush1.msra.mxu0 %v574_v12  ;;  %v815_v18 = vld [vmem:[#allocation5 + $0x17c8] sm:$0xff]  ;;  %v814_v20 = vld [vmem:[#allocation5 + $0x17c0] sm:$0xff]  ;;  %v1139_v10 = vcombine.high %v53_v1, %v53_v1 }
  0x86   :  { %1406 = vmatpush1.msra.mxu1 %v830_v13  ;;  %v1071_v19 = vld [vmem:[#allocation5 + $0x1fc8] sm:$0xff]  ;;  %1336 = vmatprep.subr.mxu0 %v567_v14  ;;  %v1070_v21 = vld [vmem:[#allocation5 + $0x1fc0] sm:$0xff] }
  0x87   :  { %1407 = vmatprep.subr.mxu1 %v823_v15  ;;  %1337 = vmatpush1.msra.mxu0 %v566_v16  ;;  %v807_v22 = vld [vmem:[#allocation5 + $0x1788] sm:$0xff]  ;;  %v806_v24 = vld [vmem:[#allocation5 + $0x1780] sm:$0xff]  ;;  %v2605_v16 = vrot.slane %v53_v1, %v2584_v52  ;;  %v113_v1 = vld [vmem:[#allocation5 + $0x1d8] sm:$0xff] }
  0x88   :  { %1408 = vmatpush1.msra.mxu1 %v822_v17  ;;  %v1063_v23 = vld [vmem:[#allocation5 + $0x1f88] sm:$0xff]  ;;  %1338 = vmatprep.subr.mxu0 %v815_v18  ;;  %v1062_v25 = vld [vmem:[#allocation5 + $0x1f80] sm:$0xff] }
  0x89   :  { %1409 = vmatprep.subr.mxu1 %v1071_v19  ;;  %1339 = vmatpush2.msra.mxu0 %v814_v20  ;;  %v799_v26 = vld [vmem:[#allocation5 + $0x1748] sm:$0xff]  ;;  %v798_v28 = vld [vmem:[#allocation5 + $0x1740] sm:$0xff] }
  0x8a   :  { %1410 = vmatpush2.msra.mxu1 %v1070_v21  ;;  %v1055_v27 = vld [vmem:[#allocation5 + $0x1f48] sm:$0xff]  ;;  %1340 = vmatprep.subr.mxu0 %v807_v22  ;;  %v1054_v29 = vld [vmem:[#allocation5 + $0x1f40] sm:$0xff]  ;;  %v2608_v21 = vrot.slane %v1139_v10, %v2584_v52  ;;  %v360_v10 = vld [vmem:[#allocation5 + $0x990] sm:$0xff] }
  0x8b   :  { %1411 = vmatprep.subr.mxu1 %v1063_v23  ;;  %1341 = vmatpush2.msra.mxu0 %v806_v24  ;;  %v791_v30 = vld [vmem:[#allocation5 + $0x1708] sm:$0xff]  ;;  %v790_v32 = vld [vmem:[#allocation5 + $0x1700] sm:$0xff] }
  0x8c   :  { %1412 = vmatpush2.msra.mxu1 %v1062_v25  ;;  %v1047_v31 = vld [vmem:[#allocation5 + $0x1f08] sm:$0xff]  ;;  %1342 = vmatprep.subr.mxu0 %v799_v26  ;;  %v1046_v33 = vld [vmem:[#allocation5 + $0x1f00] sm:$0xff]  ;;  %v2612_v26 = vcombine.high %v2605_v16, %v2605_v16 }
  0x8d   :  { %1413 = vmatprep.subr.mxu1 %v1055_v27  ;;  %1343 = vmatpush2.msra.mxu0 %v798_v28  ;;  %v783_v34 = vld [vmem:[#allocation5 + $0x16c8] sm:$0xff]  ;;  %v782_v36 = vld [vmem:[#allocation5 + $0x16c0] sm:$0xff] }
  0x8e   :  { %1414 = vmatpush2.msra.mxu1 %v1054_v29  ;;  %v1039_v35 = vld [vmem:[#allocation5 + $0x1ec8] sm:$0xff]  ;;  %1344 = vmatprep.subr.mxu0 %v791_v30  ;;  %v1038_v37 = vld [vmem:[#allocation5 + $0x1ec0] sm:$0xff]  ;;  %v2616_v29 = vcombine.high %v2608_v21, %v2608_v21  ;;  %v177_v30 = vld [vmem:[#allocation5 + $0x3d8] sm:$0xff] }
  0x8f   :  { %1415 = vmatprep.subr.mxu1 %v1047_v31  ;;  %1345 = vmatpush2.msra.mxu0 %v790_v32  ;;  %v775_v38 = vld [vmem:[#allocation5 + $0x1688] sm:$0xff]  ;;  %v774_v40 = vld [vmem:[#allocation5 + $0x1680] sm:$0xff]  ;;  %v433_v31 = vld [vmem:[#allocation5 + $0xbd8] sm:$0xff] }
  0x90   :  { %1416 = vmatpush2.msra.mxu1 %v1046_v33  ;;  %v1031_v39 = vld [vmem:[#allocation5 + $0x1e88] sm:$0xff]  ;;  %1346 = vmatprep.subr.mxu0 %v783_v34  ;;  %v1030_v42 = vld [vmem:[#allocation5 + $0x1e80] sm:$0xff]  ;;  %v176_v32 = vld [vmem:[#allocation5 + $0x3d0] sm:$0xff] }
  0x91   :  { %1417 = vmatprep.subr.mxu1 %v1039_v35  ;;  %1347 = vmatpush2.msra.mxu0 %v782_v36  ;;  %v767_v43 = vld [vmem:[#allocation5 + $0x1648] sm:$0xff]  ;;  %v766_v45 = vld [vmem:[#allocation5 + $0x1640] sm:$0xff]  ;;  %v432_v33 = vld [vmem:[#allocation5 + $0xbd0] sm:$0xff] }
  0x92   :  { %1418 = vmatpush2.msra.mxu1 %v1038_v37  ;;  %v1023_v44 = vld [vmem:[#allocation5 + $0x1e48] sm:$0xff]  ;;  %1348 = vmatprep.subr.mxu0 %v775_v38  ;;  %v1022_v46 = vld [vmem:[#allocation5 + $0x1e40] sm:$0xff]  ;;  %v169_v34 = vld [vmem:[#allocation5 + $0x398] sm:$0xff] }
  0x93   :  { %1419 = vmatprep.subr.mxu1 %v1031_v39  ;;  %1349 = vmatpush2.msra.mxu0 %v774_v40  ;;  %v759_v47 = vld [vmem:[#allocation5 + $0x1608] sm:$0xff]  ;;  %v758_v49 = vld [vmem:[#allocation5 + $0x1600] sm:$0xff]  ;;  %v425_v35 = vld [vmem:[#allocation5 + $0xb98] sm:$0xff] }
  0x94   :  { %1420 = vmatpush2.msra.mxu1 %v1030_v42  ;;  %v1015_v48 = vld [vmem:[#allocation5 + $0x1e08] sm:$0xff]  ;;  %1350 = vmatprep.subr.mxu0 %v767_v43  ;;  %v1014_v50 = vld [vmem:[#allocation5 + $0x1e00] sm:$0xff]  ;;  %v168_v36 = vld [vmem:[#allocation5 + $0x390] sm:$0xff] }
  0x95   :  { %1421 = vmatprep.subr.mxu1 %v1023_v44  ;;  %1351 = vmatpush2.msra.mxu0 %v766_v45  ;;  %v751_v51 = vld [vmem:[#allocation5 + $0x15c8] sm:$0xff]  ;;  %v750_v54 = vld [vmem:[#allocation5 + $0x15c0] sm:$0xff]  ;;  %v424_v37 = vld [vmem:[#allocation5 + $0xb90] sm:$0xff] }
  0x96   :  { %1422 = vmatpush2.msra.mxu1 %v1022_v46  ;;  %v1007_v53 = vld [vmem:[#allocation5 + $0x1dc8] sm:$0xff]  ;;  %1352 = vmatprep.subr.mxu0 %v759_v47  ;;  %v1006_v55 = vld [vmem:[#allocation5 + $0x1dc0] sm:$0xff]  ;;  %v161_v38 = vld [vmem:[#allocation5 + $0x358] sm:$0xff] }
  0x97   :  { %1423 = vmatprep.subr.mxu1 %v1015_v48  ;;  %1353 = vmatpush2.msra.mxu0 %v758_v49  ;;  %v743_v56 = vld [vmem:[#allocation5 + $0x1588] sm:$0xff]  ;;  %v742_v58 = vld [vmem:[#allocation5 + $0x1580] sm:$0xff]  ;;  %v417_v39 = vld [vmem:[#allocation5 + $0xb58] sm:$0xff] }
  0x98   :  { %1424 = vmatpush2.msra.mxu1 %v1014_v50  ;;  %v999_v57 = vld [vmem:[#allocation5 + $0x1d88] sm:$0xff]  ;;  %1354 = vmatprep.subr.mxu0 %v751_v51  ;;  %v998_v59 = vld [vmem:[#allocation5 + $0x1d80] sm:$0xff]  ;;  %v160_v40 = vld [vmem:[#allocation5 + $0x350] sm:$0xff] }
  0x99   :  { %1425 = vmatprep.subr.mxu1 %v1007_v53  ;;  %1355 = vmatpush2.msra.mxu0 %v750_v54  ;;  %v735_v60 = vld [vmem:[#allocation5 + $0x1548] sm:$0xff]  ;;  %v734_v63 = vld [vmem:[#allocation5 + $0x1540] sm:$0xff]  ;;  %v416_v42 = vld [vmem:[#allocation5 + $0xb50] sm:$0xff] }
  0x9a   :  { %1426 = vmatpush2.msra.mxu1 %v1006_v55  ;;  %v991_v61 = vld [vmem:[#allocation5 + $0x1d48] sm:$0xff]  ;;  %1356 = vmatprep.subr.mxu0 %v743_v56  ;;  %v990_v0 = vld [vmem:[#allocation5 + $0x1d40] sm:$0xff]  ;;  %v153_v43 = vld [vmem:[#allocation5 + $0x318] sm:$0xff] }
  0x9b   :  { %1427 = vmatprep.subr.mxu1 %v999_v57  ;;  %1357 = vmatpush2.msra.mxu0 %v742_v58  ;;  %v727_v2 = vld [vmem:[#allocation5 + $0x1508] sm:$0xff]  ;;  %v726_v5 = vld [vmem:[#allocation5 + $0x1500] sm:$0xff]  ;;  %v409_v44 = vld [vmem:[#allocation5 + $0xb18] sm:$0xff] }
  0x9c   :  { %1428 = vmatpush2.msra.mxu1 %v998_v59  ;;  %v983_v4 = vld [vmem:[#allocation5 + $0x1d08] sm:$0xff]  ;;  %1358 = vmatprep.subr.mxu0 %v735_v60  ;;  %v982_v6 = vld [vmem:[#allocation5 + $0x1d00] sm:$0xff]  ;;  %v152_v45 = vld [vmem:[#allocation5 + $0x310] sm:$0xff] }
  0x9d   :  { %1429 = vmatprep.subr.mxu1 %v991_v61  ;;  %1359 = vmatpush2.msra.mxu0 %v734_v63  ;;  %v719_v7 = vld [vmem:[#allocation5 + $0x14c8] sm:$0xff]  ;;  %v718_v12 = vld [vmem:[#allocation5 + $0x14c0] sm:$0xff]  ;;  %v408_v46 = vld [vmem:[#allocation5 + $0xb10] sm:$0xff] }
  0x9e   :  { %1430 = vmatpush2.msra.mxu1 %v990_v0  ;;  %v975_v9 = vld [vmem:[#allocation5 + $0x1cc8] sm:$0xff]  ;;  %1360 = vmatprep.subr.mxu0 %v727_v2  ;;  %v974_v13 = vld [vmem:[#allocation5 + $0x1cc0] sm:$0xff]  ;;  %v145_v47 = vld [vmem:[#allocation5 + $0x2d8] sm:$0xff] }
  0x9f   :  { %1431 = vmatprep.subr.mxu1 %v983_v4  ;;  %1361 = vmatpush2.msra.mxu0 %v726_v5  ;;  %v711_v14 = vld [vmem:[#allocation5 + $0x1488] sm:$0xff]  ;;  %v710_v17 = vld [vmem:[#allocation5 + $0x1480] sm:$0xff]  ;;  %v401_v48 = vld [vmem:[#allocation5 + $0xad8] sm:$0xff] }
  0xa0   :  { %1432 = vmatpush2.msra.mxu1 %v982_v6  ;;  %v967_v15 = vld [vmem:[#allocation5 + $0x1c88] sm:$0xff]  ;;  %1362 = vmatprep.subr.mxu0 %v719_v7  ;;  %v966_v18 = vld [vmem:[#allocation5 + $0x1c80] sm:$0xff]  ;;  %v144_v49 = vld [vmem:[#allocation5 + $0x2d0] sm:$0xff] }
  0xa1   :  { %1433 = vmatprep.subr.mxu1 %v975_v9  ;;  %1363 = vmatpush2.msra.mxu0 %v718_v12  ;;  %v703_v19 = vld [vmem:[#allocation5 + $0x1448] sm:$0xff]  ;;  %v702_v22 = vld [vmem:[#allocation5 + $0x1440] sm:$0xff]  ;;  %v400_v50 = vld [vmem:[#allocation5 + $0xad0] sm:$0xff] }
  0xa2   :  { %1434 = vmatpush2.msra.mxu1 %v974_v13  ;;  %v959_v20 = vld [vmem:[#allocation5 + $0x1c48] sm:$0xff]  ;;  %1364 = vmatprep.subr.mxu0 %v711_v14  ;;  %v958_v23 = vld [vmem:[#allocation5 + $0x1c40] sm:$0xff]  ;;  %v137_v51 = vld [vmem:[#allocation5 + $0x298] sm:$0xff] }
  0xa3   :  { %1435 = vmatprep.subr.mxu1 %v967_v15  ;;  %1365 = vmatpush2.msra.mxu0 %v710_v17  ;;  %v695_v24 = vld [vmem:[#allocation5 + $0x1408] sm:$0xff]  ;;  %v694_v27 = vld [vmem:[#allocation5 + $0x1400] sm:$0xff]  ;;  %v393_v53 = vld [vmem:[#allocation5 + $0xa98] sm:$0xff] }
  0xa4   :  { %1436 = vmatpush2.msra.mxu1 %v966_v18  ;;  %v951_v25 = vld [vmem:[#allocation5 + $0x1c08] sm:$0xff]  ;;  %1366 = vmatprep.subr.mxu0 %v703_v19  ;;  %v950_v28 = vld [vmem:[#allocation5 + $0x1c00] sm:$0xff]  ;;  %v136_v54 = vld [vmem:[#allocation5 + $0x290] sm:$0xff] }
  0xa5   :  { %1437 = vmatprep.subr.mxu1 %v959_v20  ;;  %1367 = vmatpush2.msra.mxu0 %v702_v22  ;;  %v392_v55 = vld [vmem:[#allocation5 + $0xa90] sm:$0xff]  ;;  %v129_v56 = vld [vmem:[#allocation5 + $0x258] sm:$0xff] }
  0xa6   :  { %1438 = vmatpush2.msra.mxu1 %v958_v23  ;;  %1368 = vmatprep.subr.mxu0 %v695_v24  ;;  %v385_v57 = vld [vmem:[#allocation5 + $0xa58] sm:$0xff]  ;;  %v128_v58 = vld [vmem:[#allocation5 + $0x250] sm:$0xff] }
  0xa7   :  { %1439 = vmatprep.subr.mxu1 %v951_v25  ;;  %1369 = vmatpush2.msra.mxu0 %v694_v27  ;;  %v384_v59 = vld [vmem:[#allocation5 + $0xa50] sm:$0xff]  ;;  %v121_v60 = vld [vmem:[#allocation5 + $0x218] sm:$0xff] }
  0xa8   :  { %1370 = vmatprep.mubr.f32.mxu0 %v2612_v26  ;;  %1440 = vmatpush2.msra.mxu1 %v950_v28  ;;  %v377_v61 = vld [vmem:[#allocation5 + $0xa18] sm:$0xff]  ;;  %v120_v63 = vld [vmem:[#allocation5 + $0x210] sm:$0xff] }
  0xa9   :  { %1371 = vmatmul.mubr.f32.vlgmr.msra.gmra.mxu0 %v2605_v16  ;;  %1441 = vmatprep.mubr.f32.mxu1 %v2616_v29  ;;  %v376_v0 = vld [vmem:[#allocation5 + $0xa10] sm:$0xff]  ;;  %v369_v2 = vld [vmem:[#allocation5 + $0x9d8] sm:$0xff] }
  0xaa   :  { %1448 = vmatprep.subr.mxu0 %v177_v30  ;;  %1519 = vmatprep.subr.mxu1 %v433_v31  ;;  %v112_v4 = vld [vmem:[#allocation5 + $0x1d0] sm:$0xff]  ;;  %v105_v6 = vld [vmem:[#allocation5 + $0x198] sm:$0xff] }
  0xab   :  { %1442 = vmatmul.mubr.f32.vlgmr.msra.gmra.mxu1 %v2608_v21  ;;  %1449 = vmatpush1.msra.mxu0 %v176_v32  ;;  %v368_v5 = vld [vmem:[#allocation5 + $0x9d0] sm:$0xff]  ;;  %v361_v7 = vld [vmem:[#allocation5 + $0x998] sm:$0xff] }
  0xac   :  { %1520 = vmatpush1.msra.mxu1 %v432_v33  ;;  %1450 = vmatprep.subr.mxu0 %v169_v34  ;;  %v104_v9 = vld [vmem:[#allocation5 + $0x190] sm:$0xff]  ;;  %v97_v12 = vld [vmem:[#allocation5 + $0x158] sm:$0xff] }
  0xad   :  { %1521 = vmatprep.subr.mxu1 %v425_v35  ;;  %1451 = vmatpush1.msra.mxu0 %v168_v36  ;;  %v353_v13 = vld [vmem:[#allocation5 + $0x958] sm:$0xff]  ;;  %v96_v14 = vld [vmem:[#allocation5 + $0x150] sm:$0xff] }
  0xae   :  { %1522 = vmatpush1.msra.mxu1 %v424_v37  ;;  %1452 = vmatprep.subr.mxu0 %v161_v38  ;;  %v352_v15 = vld [vmem:[#allocation5 + $0x950] sm:$0xff]  ;;  %v89_v17 = vld [vmem:[#allocation5 + $0x118] sm:$0xff] }
  0xaf   :  { %1523 = vmatprep.subr.mxu1 %v417_v39  ;;  %1453 = vmatpush1.msra.mxu0 %v160_v40  ;;  %v345_v18 = vld [vmem:[#allocation5 + $0x918] sm:$0xff]  ;;  %v88_v19 = vld [vmem:[#allocation5 + $0x110] sm:$0xff] }
  0xb0   :  { %1524 = vmatpush1.msra.mxu1 %v416_v42  ;;  %1454 = vmatprep.subr.mxu0 %v153_v43  ;;  %v344_v20 = vld [vmem:[#allocation5 + $0x910] sm:$0xff]  ;;  %v81_v22 = vld [vmem:[#allocation5 + $0xd8] sm:$0xff] }
  0xb1   :  { %1525 = vmatprep.subr.mxu1 %v409_v44  ;;  %1455 = vmatpush1.msra.mxu0 %v152_v45  ;;  %v337_v23 = vld [vmem:[#allocation5 + $0x8d8] sm:$0xff]  ;;  %v80_v24 = vld [vmem:[#allocation5 + $0xd0] sm:$0xff] }
  0xb2   :  { %1526 = vmatpush1.msra.mxu1 %v408_v46  ;;  %1456 = vmatprep.subr.mxu0 %v145_v47  ;;  %v336_v25 = vld [vmem:[#allocation5 + $0x8d0] sm:$0xff]  ;;  %v73_v27 = vld [vmem:[#allocation5 + $0x98] sm:$0xff] }
  0xb3   :  { %1527 = vmatprep.subr.mxu1 %v401_v48  ;;  %1457 = vmatpush1.msra.mxu0 %v144_v49  ;;  %v329_v28 = vld [vmem:[#allocation5 + $0x898] sm:$0xff]  ;;  %v72_v30 = vld [vmem:[#allocation5 + $0x90] sm:$0xff] }
  0xb4   :  { %1528 = vmatpush1.msra.mxu1 %v400_v50  ;;  %1458 = vmatprep.subr.mxu0 %v137_v51  ;;  %v328_v31 = vld [vmem:[#allocation5 + $0x890] sm:$0xff]  ;;  %v65_v32 = vld [vmem:[#allocation5 + $0x58] sm:$0xff] }
  0xb5   :  { %1529 = vmatprep.subr.mxu1 %v393_v53  ;;  %1459 = vmatpush1.msra.mxu0 %v136_v54  ;;  %v321_v33 = vld [vmem:[#allocation5 + $0x858] sm:$0xff]  ;;  %v64_v34 = vld [vmem:[#allocation5 + $0x50] sm:$0xff] }
  0xb6   :  { %1530 = vmatpush1.msra.mxu1 %v392_v55  ;;  %1460 = vmatprep.subr.mxu0 %v129_v56  ;;  %v320_v35 = vld [vmem:[#allocation5 + $0x850] sm:$0xff]  ;;  %v57_v36 = vld [vmem:[#allocation5 + $0x18] sm:$0xff] }
  0xb7   :  { %1531 = vmatprep.subr.mxu1 %v385_v57  ;;  %1461 = vmatpush1.msra.mxu0 %v128_v58  ;;  %v313_v37 = vld [vmem:[#allocation5 + $0x818] sm:$0xff]  ;;  %v56_v38 = vld [vmem:[#allocation5 + $0x10] sm:$0xff] }
  0xb8   :  { %1532 = vmatpush1.msra.mxu1 %v384_v59  ;;  %1462 = vmatprep.subr.mxu0 %v121_v60  ;;  %v312_v39 = vld [vmem:[#allocation5 + $0x810] sm:$0xff]  ;;  %v305_v40 = vld [vmem:[#allocation5 + $0x7d8] sm:$0xff] }
  0xb9   :  { %1533 = vmatprep.subr.mxu1 %v377_v61  ;;  %1463 = vmatpush1.msra.mxu0 %v120_v63  ;;  %v561_v42 = vld [vmem:[#allocation5 + $0xfd8] sm:$0xff]  ;;  %v304_v43 = vld [vmem:[#allocation5 + $0x7d0] sm:$0xff] }
  0xba   :  { %1534 = vmatpush1.msra.mxu1 %v376_v0  ;;  %1464 = vmatprep.subr.mxu0 %v113_v1  ;;  %v560_v44 = vld [vmem:[#allocation5 + $0xfd0] sm:$0xff]  ;;  %v297_v45 = vld [vmem:[#allocation5 + $0x798] sm:$0xff] }
  0xbb   :  { %1535 = vmatprep.subr.mxu1 %v369_v2  ;;  %1465 = vmatpush1.msra.mxu0 %v112_v4  ;;  %v553_v46 = vld [vmem:[#allocation5 + $0xf98] sm:$0xff]  ;;  %v296_v47 = vld [vmem:[#allocation5 + $0x790] sm:$0xff] }
  0xbc   :  { %1536 = vmatpush1.msra.mxu1 %v368_v5  ;;  %1466 = vmatprep.subr.mxu0 %v105_v6  ;;  %v552_v48 = vld [vmem:[#allocation5 + $0xf90] sm:$0xff]  ;;  %v289_v49 = vld [vmem:[#allocation5 + $0x758] sm:$0xff] }
  0xbd   :  { %1537 = vmatprep.subr.mxu1 %v361_v7  ;;  %1467 = vmatpush1.msra.mxu0 %v104_v9  ;;  %v545_v50 = vld [vmem:[#allocation5 + $0xf58] sm:$0xff]  ;;  %v288_v51 = vld [vmem:[#allocation5 + $0x750] sm:$0xff] }
  0xbe   :  { %1538 = vmatpush1.msra.mxu1 %v360_v10  ;;  %1468 = vmatprep.subr.mxu0 %v97_v12  ;;  %v544_v53 = vld [vmem:[#allocation5 + $0xf50] sm:$0xff]  ;;  %v281_v54 = vld [vmem:[#allocation5 + $0x718] sm:$0xff] }
  0xbf   :  { %1539 = vmatprep.subr.mxu1 %v353_v13  ;;  %1469 = vmatpush1.msra.mxu0 %v96_v14  ;;  %v537_v55 = vld [vmem:[#allocation5 + $0xf18] sm:$0xff]  ;;  %v280_v56 = vld [vmem:[#allocation5 + $0x710] sm:$0xff] }
  0xc0   :  { %1540 = vmatpush1.msra.mxu1 %v352_v15  ;;  %1470 = vmatprep.subr.mxu0 %v89_v17  ;;  %v536_v57 = vld [vmem:[#allocation5 + $0xf10] sm:$0xff]  ;;  %v273_v58 = vld [vmem:[#allocation5 + $0x6d8] sm:$0xff] }
  0xc1   :  { %1541 = vmatprep.subr.mxu1 %v345_v18  ;;  %1471 = vmatpush1.msra.mxu0 %v88_v19  ;;  %v529_v59 = vld [vmem:[#allocation5 + $0xed8] sm:$0xff]  ;;  %v272_v60 = vld [vmem:[#allocation5 + $0x6d0] sm:$0xff] }
  0xc2   :  { %1542 = vmatpush1.msra.mxu1 %v344_v20  ;;  %1472 = vmatprep.subr.mxu0 %v81_v22  ;;  %v528_v61 = vld [vmem:[#allocation5 + $0xed0] sm:$0xff]  ;;  %v265_v63 = vld [vmem:[#allocation5 + $0x698] sm:$0xff] }
  0xc3   :  { %1543 = vmatprep.subr.mxu1 %v337_v23  ;;  %1473 = vmatpush1.msra.mxu0 %v80_v24  ;;  %v521_v0 = vld [vmem:[#allocation5 + $0xe98] sm:$0xff]  ;;  %v264_v1 = vld [vmem:[#allocation5 + $0x690] sm:$0xff] }
  0xc4   :  { %1544 = vmatpush1.msra.mxu1 %v336_v25  ;;  %1474 = vmatprep.subr.mxu0 %v73_v27  ;;  %v520_v2 = vld [vmem:[#allocation5 + $0xe90] sm:$0xff]  ;;  %v257_v4 = vld [vmem:[#allocation5 + $0x658] sm:$0xff] }
  0xc5   :  { %1545 = vmatprep.subr.mxu1 %v329_v28  ;;  %1475 = vmatpush1.msra.mxu0 %v72_v30  ;;  %v513_v5 = vld [vmem:[#allocation5 + $0xe58] sm:$0xff]  ;;  %v256_v6 = vld [vmem:[#allocation5 + $0x650] sm:$0xff] }
  0xc6   :  { %1546 = vmatpush1.msra.mxu1 %v328_v31  ;;  %1476 = vmatprep.subr.mxu0 %v65_v32  ;;  %v512_v7 = vld [vmem:[#allocation5 + $0xe50] sm:$0xff]  ;;  %v249_v9 = vld [vmem:[#allocation5 + $0x618] sm:$0xff] }
  0xc7   :  { %1547 = vmatprep.subr.mxu1 %v321_v33  ;;  %1477 = vmatpush1.msra.mxu0 %v64_v34  ;;  %v505_v10 = vld [vmem:[#allocation5 + $0xe18] sm:$0xff]  ;;  %v248_v12 = vld [vmem:[#allocation5 + $0x610] sm:$0xff] }
  0xc8   :  { %1548 = vmatpush1.msra.mxu1 %v320_v35  ;;  %1478 = vmatprep.subr.mxu0 %v57_v36  ;;  %v504_v13 = vld [vmem:[#allocation5 + $0xe10] sm:$0xff]  ;;  %v241_v14 = vld [vmem:[#allocation5 + $0x5d8] sm:$0xff] }
  0xc9   :  { %1549 = vmatprep.subr.mxu1 %v313_v37  ;;  %1479 = vmatpush1.msra.mxu0 %v56_v38  ;;  %v497_v15 = vld [vmem:[#allocation5 + $0xdd8] sm:$0xff]  ;;  %v240_v17 = vld [vmem:[#allocation5 + $0x5d0] sm:$0xff] }
  0xca   :  { %1550 = vmatpush1.msra.mxu1 %v312_v39  ;;  %1480 = vmatprep.subr.mxu0 %v305_v40  ;;  %v496_v18 = vld [vmem:[#allocation5 + $0xdd0] sm:$0xff]  ;;  %v233_v19 = vld [vmem:[#allocation5 + $0x598] sm:$0xff] }
  0xcb   :  { %1551 = vmatprep.subr.mxu1 %v561_v42  ;;  %1481 = vmatpush2.msra.mxu0 %v304_v43  ;;  %v489_v20 = vld [vmem:[#allocation5 + $0xd98] sm:$0xff]  ;;  %v232_v22 = vld [vmem:[#allocation5 + $0x590] sm:$0xff] }
  0xcc   :  { %1552 = vmatpush2.msra.mxu1 %v560_v44  ;;  %1482 = vmatprep.subr.mxu0 %v297_v45  ;;  %v488_v23 = vld [vmem:[#allocation5 + $0xd90] sm:$0xff]  ;;  %v225_v24 = vld [vmem:[#allocation5 + $0x558] sm:$0xff] }
  0xcd   :  { %1553 = vmatprep.subr.mxu1 %v553_v46  ;;  %1483 = vmatpush2.msra.mxu0 %v296_v47  ;;  %v481_v25 = vld [vmem:[#allocation5 + $0xd58] sm:$0xff]  ;;  %v224_v27 = vld [vmem:[#allocation5 + $0x550] sm:$0xff] }
  0xce   :  { %1554 = vmatpush2.msra.mxu1 %v552_v48  ;;  %1484 = vmatprep.subr.mxu0 %v289_v49  ;;  %v480_v28 = vld [vmem:[#allocation5 + $0xd50] sm:$0xff]  ;;  %v217_v30 = vld [vmem:[#allocation5 + $0x518] sm:$0xff] }
  0xcf   :  { %1555 = vmatprep.subr.mxu1 %v545_v50  ;;  %1485 = vmatpush2.msra.mxu0 %v288_v51  ;;  %v473_v31 = vld [vmem:[#allocation5 + $0xd18] sm:$0xff]  ;;  %v216_v32 = vld [vmem:[#allocation5 + $0x510] sm:$0xff] }
  0xd0   :  { %1556 = vmatpush2.msra.mxu1 %v544_v53  ;;  %1486 = vmatprep.subr.mxu0 %v281_v54  ;;  %v472_v33 = vld [vmem:[#allocation5 + $0xd10] sm:$0xff]  ;;  %v209_v34 = vld [vmem:[#allocation5 + $0x4d8] sm:$0xff] }
  0xd1   :  { %1557 = vmatprep.subr.mxu1 %v537_v55  ;;  %1487 = vmatpush2.msra.mxu0 %v280_v56  ;;  %v465_v35 = vld [vmem:[#allocation5 + $0xcd8] sm:$0xff]  ;;  %v208_v36 = vld [vmem:[#allocation5 + $0x4d0] sm:$0xff] }
  0xd2   :  { %1558 = vmatpush2.msra.mxu1 %v536_v57  ;;  %1488 = vmatprep.subr.mxu0 %v273_v58  ;;  %v464_v37 = vld [vmem:[#allocation5 + $0xcd0] sm:$0xff]  ;;  %v201_v38 = vld [vmem:[#allocation5 + $0x498] sm:$0xff] }
  0xd3   :  { %1559 = vmatprep.subr.mxu1 %v529_v59  ;;  %1489 = vmatpush2.msra.mxu0 %v272_v60  ;;  %v457_v39 = vld [vmem:[#allocation5 + $0xc98] sm:$0xff]  ;;  %v200_v40 = vld [vmem:[#allocation5 + $0x490] sm:$0xff] }
  0xd4   :  { %1560 = vmatpush2.msra.mxu1 %v528_v61  ;;  %1490 = vmatprep.subr.mxu0 %v265_v63  ;;  %v456_v42 = vld [vmem:[#allocation5 + $0xc90] sm:$0xff]  ;;  %v193_v43 = vld [vmem:[#allocation5 + $0x458] sm:$0xff] }
  0xd5   :  { %1561 = vmatprep.subr.mxu1 %v521_v0  ;;  %1491 = vmatpush2.msra.mxu0 %v264_v1  ;;  %v449_v44 = vld [vmem:[#allocation5 + $0xc58] sm:$0xff]  ;;  %v192_v45 = vld [vmem:[#allocation5 + $0x450] sm:$0xff] }
  0xd6   :  { %1562 = vmatpush2.msra.mxu1 %v520_v2  ;;  %1492 = vmatprep.subr.mxu0 %v257_v4  ;;  %v448_v46 = vld [vmem:[#allocation5 + $0xc50] sm:$0xff]  ;;  %v185_v47 = vld [vmem:[#allocation5 + $0x418] sm:$0xff] }
  0xd7   :  { %1563 = vmatprep.subr.mxu1 %v513_v5  ;;  %1493 = vmatpush2.msra.mxu0 %v256_v6  ;;  %v441_v48 = vld [vmem:[#allocation5 + $0xc18] sm:$0xff]  ;;  %v184_v49 = vld [vmem:[#allocation5 + $0x410] sm:$0xff] }
  0xd8   :  { %1564 = vmatpush2.msra.mxu1 %v512_v7  ;;  %1494 = vmatprep.subr.mxu0 %v249_v9  ;;  %v440_v50 = vld [vmem:[#allocation5 + $0xc10] sm:$0xff]  ;;  %v689_v51 = vld [vmem:[#allocation5 + $0x13d8] sm:$0xff] }
  0xd9   :  { %1565 = vmatprep.subr.mxu1 %v505_v10  ;;  %1495 = vmatpush2.msra.mxu0 %v248_v12  ;;  %v945_v53 = vld [vmem:[#allocation5 + $0x1bd8] sm:$0xff]  ;;  %v688_v54 = vld [vmem:[#allocation5 + $0x13d0] sm:$0xff] }
  0xda   :  { %1566 = vmatpush2.msra.mxu1 %v504_v13  ;;  %1496 = vmatprep.subr.mxu0 %v241_v14  ;;  %v944_v55 = vld [vmem:[#allocation5 + $0x1bd0] sm:$0xff]  ;;  %v681_v56 = vld [vmem:[#allocation5 + $0x1398] sm:$0xff] }
  0xdb   :  { %1567 = vmatprep.subr.mxu1 %v497_v15  ;;  %1497 = vmatpush2.msra.mxu0 %v240_v17  ;;  %v937_v57 = vld [vmem:[#allocation5 + $0x1b98] sm:$0xff]  ;;  %v680_v58 = vld [vmem:[#allocation5 + $0x1390] sm:$0xff] }
  0xdc   :  { %1568 = vmatpush2.msra.mxu1 %v496_v18  ;;  %1498 = vmatprep.subr.mxu0 %v233_v19  ;;  %v936_v59 = vld [vmem:[#allocation5 + $0x1b90] sm:$0xff]  ;;  %v673_v60 = vld [vmem:[#allocation5 + $0x1358] sm:$0xff] }
  0xdd   :  { %1569 = vmatprep.subr.mxu1 %v489_v20  ;;  %1499 = vmatpush2.msra.mxu0 %v232_v22  ;;  %v929_v61 = vld [vmem:[#allocation5 + $0x1b58] sm:$0xff]  ;;  %v672_v63 = vld [vmem:[#allocation5 + $0x1350] sm:$0xff] }
  0xde   :  { %1570 = vmatpush2.msra.mxu1 %v488_v23  ;;  %1500 = vmatprep.subr.mxu0 %v225_v24  ;;  %v928_v0 = vld [vmem:[#allocation5 + $0x1b50] sm:$0xff]  ;;  %v665_v1 = vld [vmem:[#allocation5 + $0x1318] sm:$0xff] }
  0xdf   :  { %1571 = vmatprep.subr.mxu1 %v481_v25  ;;  %1501 = vmatpush2.msra.mxu0 %v224_v27  ;;  %v921_v2 = vld [vmem:[#allocation5 + $0x1b18] sm:$0xff]  ;;  %v664_v4 = vld [vmem:[#allocation5 + $0x1310] sm:$0xff] }
  0xe0   :  { %1572 = vmatpush2.msra.mxu1 %v480_v28  ;;  %1502 = vmatprep.subr.mxu0 %v217_v30  ;;  %v920_v5 = vld [vmem:[#allocation5 + $0x1b10] sm:$0xff]  ;;  %v657_v6 = vld [vmem:[#allocation5 + $0x12d8] sm:$0xff] }
  0xe1   :  { %1573 = vmatprep.subr.mxu1 %v473_v31  ;;  %1503 = vmatpush2.msra.mxu0 %v216_v32  ;;  %v913_v7 = vld [vmem:[#allocation5 + $0x1ad8] sm:$0xff]  ;;  %v656_v9 = vld [vmem:[#allocation5 + $0x12d0] sm:$0xff] }
  0xe2   :  { %1574 = vmatpush2.msra.mxu1 %v472_v33  ;;  %1504 = vmatprep.subr.mxu0 %v209_v34  ;;  %v912_v10 = vld [vmem:[#allocation5 + $0x1ad0] sm:$0xff]  ;;  %v649_v12 = vld [vmem:[#allocation5 + $0x1298] sm:$0xff] }
  0xe3   :  { %1575 = vmatprep.subr.mxu1 %v465_v35  ;;  %1505 = vmatpush2.msra.mxu0 %v208_v36  ;;  %v905_v13 = vld [vmem:[#allocation5 + $0x1a98] sm:$0xff]  ;;  %v648_v14 = vld [vmem:[#allocation5 + $0x1290] sm:$0xff] }
  0xe4   :  { %1576 = vmatpush2.msra.mxu1 %v464_v37  ;;  %1506 = vmatprep.subr.mxu0 %v201_v38  ;;  %v904_v15 = vld [vmem:[#allocation5 + $0x1a90] sm:$0xff]  ;;  %v641_v17 = vld [vmem:[#allocation5 + $0x1258] sm:$0xff] }
  0xe5   :  { %1577 = vmatprep.subr.mxu1 %v457_v39  ;;  %1507 = vmatpush2.msra.mxu0 %v200_v40  ;;  %v897_v18 = vld [vmem:[#allocation5 + $0x1a58] sm:$0xff]  ;;  %v640_v19 = vld [vmem:[#allocation5 + $0x1250] sm:$0xff] }
  0xe6   :  { %1578 = vmatpush2.msra.mxu1 %v456_v42  ;;  %1508 = vmatprep.subr.mxu0 %v193_v43  ;;  %v896_v20 = vld [vmem:[#allocation5 + $0x1a50] sm:$0xff]  ;;  %v633_v22 = vld [vmem:[#allocation5 + $0x1218] sm:$0xff] }
  0xe7   :  { %1579 = vmatprep.subr.mxu1 %v449_v44  ;;  %1509 = vmatpush2.msra.mxu0 %v192_v45  ;;  %v889_v23 = vld [vmem:[#allocation5 + $0x1a18] sm:$0xff]  ;;  %v632_v24 = vld [vmem:[#allocation5 + $0x1210] sm:$0xff] }
  0xe8   :  { %1580 = vmatpush2.msra.mxu1 %v448_v46  ;;  %1510 = vmatprep.subr.mxu0 %v185_v47  ;;  %v888_v25 = vld [vmem:[#allocation5 + $0x1a10] sm:$0xff]  ;;  %v625_v27 = vld [vmem:[#allocation5 + $0x11d8] sm:$0xff] }
  0xe9   :  { %1581 = vmatprep.subr.mxu1 %v441_v48  ;;  %1511 = vmatpush2.msra.mxu0 %v184_v49  ;;  %v881_v28 = vld [vmem:[#allocation5 + $0x19d8] sm:$0xff]  ;;  %v624_v30 = vld [vmem:[#allocation5 + $0x11d0] sm:$0xff] }
  0xea   :  { %1512 = vmatprep.mubr.f32.mxu0 %v2594_v8  ;;  %1582 = vmatpush2.msra.mxu1 %v440_v50  ;;  %v880_v31 = vld [vmem:[#allocation5 + $0x19d0] sm:$0xff]  ;;  %v617_v32 = vld [vmem:[#allocation5 + $0x1198] sm:$0xff] }
  0xeb   :  { %1513 = vmatmul.mubr.f32.vlgmr.msra.gmra.mxu0 %v2587_v62  ;;  %1583 = vmatprep.mubr.f32.mxu1 %v2598_v11  ;;  %v873_v33 = vld [vmem:[#allocation5 + $0x1998] sm:$0xff]  ;;  %v616_v34 = vld [vmem:[#allocation5 + $0x1190] sm:$0xff] }
  0xec   :  { %1590 = vmatprep.subr.mxu0 %v689_v51  ;;  %1661 = vmatprep.subr.mxu1 %v945_v53  ;;  %v872_v35 = vld [vmem:[#allocation5 + $0x1990] sm:$0xff]  ;;  %v609_v36 = vld [vmem:[#allocation5 + $0x1158] sm:$0xff] }
  0xed   :  { %1584 = vmatmul.mubr.f32.vlgmr.msra.gmra.mxu1 %v2590_v3  ;;  %1591 = vmatpush1.msra.mxu0 %v688_v54  ;;  %v865_v37 = vld [vmem:[#allocation5 + $0x1958] sm:$0xff]  ;;  %v608_v38 = vld [vmem:[#allocation5 + $0x1150] sm:$0xff] }
  0xee   :  { %1662 = vmatpush1.msra.mxu1 %v944_v55  ;;  %1592 = vmatprep.subr.mxu0 %v681_v56  ;;  %v864_v39 = vld [vmem:[#allocation5 + $0x1950] sm:$0xff]  ;;  %v601_v40 = vld [vmem:[#allocation5 + $0x1118] sm:$0xff] }
  0xef   :  { %1663 = vmatprep.subr.mxu1 %v937_v57  ;;  %1593 = vmatpush1.msra.mxu0 %v680_v58  ;;  %v857_v42 = vld [vmem:[#allocation5 + $0x1918] sm:$0xff]  ;;  %v600_v43 = vld [vmem:[#allocation5 + $0x1110] sm:$0xff] }
  0xf0   :  { %1664 = vmatpush1.msra.mxu1 %v936_v59  ;;  %1594 = vmatprep.subr.mxu0 %v673_v60  ;;  %v856_v44 = vld [vmem:[#allocation5 + $0x1910] sm:$0xff]  ;;  %v593_v45 = vld [vmem:[#allocation5 + $0x10d8] sm:$0xff] }
  0xf1   :  { %1665 = vmatprep.subr.mxu1 %v929_v61  ;;  %1595 = vmatpush1.msra.mxu0 %v672_v63  ;;  %v849_v46 = vld [vmem:[#allocation5 + $0x18d8] sm:$0xff]  ;;  %v592_v47 = vld [vmem:[#allocation5 + $0x10d0] sm:$0xff] }
  0xf2   :  { %1666 = vmatpush1.msra.mxu1 %v928_v0  ;;  %1596 = vmatprep.subr.mxu0 %v665_v1  ;;  %v848_v48 = vld [vmem:[#allocation5 + $0x18d0] sm:$0xff]  ;;  %v585_v49 = vld [vmem:[#allocation5 + $0x1098] sm:$0xff] }
  0xf3   :  { %1667 = vmatprep.subr.mxu1 %v921_v2  ;;  %1597 = vmatpush1.msra.mxu0 %v664_v4  ;;  %v841_v50 = vld [vmem:[#allocation5 + $0x1898] sm:$0xff]  ;;  %v584_v51 = vld [vmem:[#allocation5 + $0x1090] sm:$0xff] }
  0xf4   :  { %1668 = vmatpush1.msra.mxu1 %v920_v5  ;;  %1598 = vmatprep.subr.mxu0 %v657_v6  ;;  %v840_v53 = vld [vmem:[#allocation5 + $0x1890] sm:$0xff]  ;;  %v577_v54 = vld [vmem:[#allocation5 + $0x1058] sm:$0xff] }
  0xf5   :  { %1669 = vmatprep.subr.mxu1 %v913_v7  ;;  %1599 = vmatpush1.msra.mxu0 %v656_v9  ;;  %v833_v55 = vld [vmem:[#allocation5 + $0x1858] sm:$0xff]  ;;  %v576_v56 = vld [vmem:[#allocation5 + $0x1050] sm:$0xff] }
  0xf6   :  { %1670 = vmatpush1.msra.mxu1 %v912_v10  ;;  %1600 = vmatprep.subr.mxu0 %v649_v12  ;;  %v832_v57 = vld [vmem:[#allocation5 + $0x1850] sm:$0xff]  ;;  %v569_v58 = vld [vmem:[#allocation5 + $0x1018] sm:$0xff] }
  0xf7   :  { %1671 = vmatprep.subr.mxu1 %v905_v13  ;;  %1601 = vmatpush1.msra.mxu0 %v648_v14  ;;  %v825_v59 = vld [vmem:[#allocation5 + $0x1818] sm:$0xff]  ;;  %v568_v60 = vld [vmem:[#allocation5 + $0x1010] sm:$0xff] }
  0xf8   :  { %1672 = vmatpush1.msra.mxu1 %v904_v15  ;;  %1602 = vmatprep.subr.mxu0 %v641_v17  ;;  %v824_v61 = vld [vmem:[#allocation5 + $0x1810] sm:$0xff]  ;;  %v817_v63 = vld [vmem:[#allocation5 + $0x17d8] sm:$0xff] }
  0xf9   :  { %1673 = vmatprep.subr.mxu1 %v897_v18  ;;  %1603 = vmatpush1.msra.mxu0 %v640_v19  ;;  %v1073_v0 = vld [vmem:[#allocation5 + $0x1fd8] sm:$0xff]  ;;  %v816_v1 = vld [vmem:[#allocation5 + $0x17d0] sm:$0xff] }
  0xfa   :  { %1674 = vmatpush1.msra.mxu1 %v896_v20  ;;  %1604 = vmatprep.subr.mxu0 %v633_v22  ;;  %v1072_v2 = vld [vmem:[#allocation5 + $0x1fd0] sm:$0xff]  ;;  %v809_v4 = vld [vmem:[#allocation5 + $0x1798] sm:$0xff] }
  0xfb   :  { %1675 = vmatprep.subr.mxu1 %v889_v23  ;;  %1605 = vmatpush1.msra.mxu0 %v632_v24  ;;  %v1065_v5 = vld [vmem:[#allocation5 + $0x1f98] sm:$0xff]  ;;  %v808_v6 = vld [vmem:[#allocation5 + $0x1790] sm:$0xff] }
  0xfc   :  { %1676 = vmatpush1.msra.mxu1 %v888_v25  ;;  %1606 = vmatprep.subr.mxu0 %v625_v27  ;;  %v1064_v7 = vld [vmem:[#allocation5 + $0x1f90] sm:$0xff]  ;;  %v801_v9 = vld [vmem:[#allocation5 + $0x1758] sm:$0xff] }
  0xfd   :  { %1677 = vmatprep.subr.mxu1 %v881_v28  ;;  %1607 = vmatpush1.msra.mxu0 %v624_v30  ;;  %v1057_v10 = vld [vmem:[#allocation5 + $0x1f58] sm:$0xff]  ;;  %v800_v12 = vld [vmem:[#allocation5 + $0x1750] sm:$0xff] }
  0xfe   :  { %1678 = vmatpush1.msra.mxu1 %v880_v31  ;;  %1608 = vmatprep.subr.mxu0 %v617_v32  ;;  %v1056_v13 = vld [vmem:[#allocation5 + $0x1f50] sm:$0xff]  ;;  %v793_v14 = vld [vmem:[#allocation5 + $0x1718] sm:$0xff] }
  0xff   :  { %1679 = vmatprep.subr.mxu1 %v873_v33  ;;  %1609 = vmatpush1.msra.mxu0 %v616_v34  ;;  %v1049_v15 = vld [vmem:[#allocation5 + $0x1f18] sm:$0xff]  ;;  %v792_v17 = vld [vmem:[#allocation5 + $0x1710] sm:$0xff] }
 0x100   :  { %1680 = vmatpush1.msra.mxu1 %v872_v35  ;;  %1610 = vmatprep.subr.mxu0 %v609_v36  ;;  %v1048_v18 = vld [vmem:[#allocation5 + $0x1f10] sm:$0xff]  ;;  %v785_v19 = vld [vmem:[#allocation5 + $0x16d8] sm:$0xff] }
 0x101   :  { %1681 = vmatprep.subr.mxu1 %v865_v37  ;;  %1611 = vmatpush1.msra.mxu0 %v608_v38  ;;  %v1041_v20 = vld [vmem:[#allocation5 + $0x1ed8] sm:$0xff]  ;;  %v784_v22 = vld [vmem:[#allocation5 + $0x16d0] sm:$0xff] }
 0x102   :  { %1682 = vmatpush1.msra.mxu1 %v864_v39  ;;  %1612 = vmatprep.subr.mxu0 %v601_v40  ;;  %v1040_v23 = vld [vmem:[#allocation5 + $0x1ed0] sm:$0xff]  ;;  %v777_v24 = vld [vmem:[#allocation5 + $0x1698] sm:$0xff] }
 0x103   :  { %1683 = vmatprep.subr.mxu1 %v857_v42  ;;  %1613 = vmatpush1.msra.mxu0 %v600_v43  ;;  %v1033_v25 = vld [vmem:[#allocation5 + $0x1e98] sm:$0xff]  ;;  %v776_v27 = vld [vmem:[#allocation5 + $0x1690] sm:$0xff] }
 0x104   :  { %1684 = vmatpush1.msra.mxu1 %v856_v44  ;;  %1614 = vmatprep.subr.mxu0 %v593_v45  ;;  %v1032_v28 = vld [vmem:[#allocation5 + $0x1e90] sm:$0xff]  ;;  %v769_v30 = vld [vmem:[#allocation5 + $0x1658] sm:$0xff] }
 0x105   :  { %1685 = vmatprep.subr.mxu1 %v849_v46  ;;  %1615 = vmatpush1.msra.mxu0 %v592_v47  ;;  %v1025_v31 = vld [vmem:[#allocation5 + $0x1e58] sm:$0xff]  ;;  %v768_v32 = vld [vmem:[#allocation5 + $0x1650] sm:$0xff] }
 0x106   :  { %1686 = vmatpush1.msra.mxu1 %v848_v48  ;;  %1616 = vmatprep.subr.mxu0 %v585_v49  ;;  %v1024_v33 = vld [vmem:[#allocation5 + $0x1e50] sm:$0xff]  ;;  %v761_v34 = vld [vmem:[#allocation5 + $0x1618] sm:$0xff] }
 0x107   :  { %1687 = vmatprep.subr.mxu1 %v841_v50  ;;  %1617 = vmatpush1.msra.mxu0 %v584_v51  ;;  %v1017_v35 = vld [vmem:[#allocation5 + $0x1e18] sm:$0xff]  ;;  %v760_v36 = vld [vmem:[#allocation5 + $0x1610] sm:$0xff] }
 0x108   :  { %1688 = vmatpush1.msra.mxu1 %v840_v53  ;;  %1618 = vmatprep.subr.mxu0 %v577_v54  ;;  %v1016_v37 = vld [vmem:[#allocation5 + $0x1e10] sm:$0xff]  ;;  %v753_v38 = vld [vmem:[#allocation5 + $0x15d8] sm:$0xff] }
 0x109   :  { %1689 = vmatprep.subr.mxu1 %v833_v55  ;;  %1619 = vmatpush1.msra.mxu0 %v576_v56  ;;  %v1009_v39 = vld [vmem:[#allocation5 + $0x1dd8] sm:$0xff]  ;;  %v752_v40 = vld [vmem:[#allocation5 + $0x15d0] sm:$0xff] }
 0x10a   :  { %1690 = vmatpush1.msra.mxu1 %v832_v57  ;;  %1620 = vmatprep.subr.mxu0 %v569_v58  ;;  %v1008_v42 = vld [vmem:[#allocation5 + $0x1dd0] sm:$0xff]  ;;  %v745_v43 = vld [vmem:[#allocation5 + $0x1598] sm:$0xff] }
 0x10b   :  { %1691 = vmatprep.subr.mxu1 %v825_v59  ;;  %1621 = vmatpush1.msra.mxu0 %v568_v60  ;;  %v1001_v44 = vld [vmem:[#allocation5 + $0x1d98] sm:$0xff]  ;;  %v744_v45 = vld [vmem:[#allocation5 + $0x1590] sm:$0xff] }
 0x10c   :  { %1692 = vmatpush1.msra.mxu1 %v824_v61  ;;  %1622 = vmatprep.subr.mxu0 %v817_v63  ;;  %v1000_v46 = vld [vmem:[#allocation5 + $0x1d90] sm:$0xff]  ;;  %v737_v47 = vld [vmem:[#allocation5 + $0x1558] sm:$0xff] }
 0x10d   :  { %1693 = vmatprep.subr.mxu1 %v1073_v0  ;;  %1623 = vmatpush2.msra.mxu0 %v816_v1  ;;  %v993_v48 = vld [vmem:[#allocation5 + $0x1d58] sm:$0xff]  ;;  %v736_v49 = vld [vmem:[#allocation5 + $0x1550] sm:$0xff] }
 0x10e   :  { %1694 = vmatpush2.msra.mxu1 %v1072_v2  ;;  %1624 = vmatprep.subr.mxu0 %v809_v4  ;;  %v992_v50 = vld [vmem:[#allocation5 + $0x1d50] sm:$0xff]  ;;  %v729_v51 = vld [vmem:[#allocation5 + $0x1518] sm:$0xff] }
 0x10f   :  { %1695 = vmatprep.subr.mxu1 %v1065_v5  ;;  %1625 = vmatpush2.msra.mxu0 %v808_v6  ;;  %v985_v53 = vld [vmem:[#allocation5 + $0x1d18] sm:$0xff]  ;;  %v728_v54 = vld [vmem:[#allocation5 + $0x1510] sm:$0xff] }
 0x110   :  { %1696 = vmatpush2.msra.mxu1 %v1064_v7  ;;  %1626 = vmatprep.subr.mxu0 %v801_v9  ;;  %v984_v55 = vld [vmem:[#allocation5 + $0x1d10] sm:$0xff]  ;;  %v721_v56 = vld [vmem:[#allocation5 + $0x14d8] sm:$0xff] }
 0x111   :  { %1697 = vmatprep.subr.mxu1 %v1057_v10  ;;  %1627 = vmatpush2.msra.mxu0 %v800_v12  ;;  %v977_v57 = vld [vmem:[#allocation5 + $0x1cd8] sm:$0xff]  ;;  %v720_v58 = vld [vmem:[#allocation5 + $0x14d0] sm:$0xff]  ;;  %v179_v12 = vld [vmem:[#allocation5 + $0x3e8] sm:$0xff] }
 0x112   :  { %1698 = vmatpush2.msra.mxu1 %v1056_v13  ;;  %1628 = vmatprep.subr.mxu0 %v793_v14  ;;  %v976_v59 = vld [vmem:[#allocation5 + $0x1cd0] sm:$0xff]  ;;  %v713_v60 = vld [vmem:[#allocation5 + $0x1498] sm:$0xff]  ;;  %v435_v13 = vld [vmem:[#allocation5 + $0xbe8] sm:$0xff] }
 0x113   :  { %1699 = vmatprep.subr.mxu1 %v1049_v15  ;;  %1629 = vmatpush2.msra.mxu0 %v792_v17  ;;  %v969_v61 = vld [vmem:[#allocation5 + $0x1c98] sm:$0xff]  ;;  %v712_v63 = vld [vmem:[#allocation5 + $0x1490] sm:$0xff]  ;;  %v178_v14 = vld [vmem:[#allocation5 + $0x3e0] sm:$0xff] }
 0x114   :  { %1700 = vmatpush2.msra.mxu1 %v1048_v18  ;;  %1630 = vmatprep.subr.mxu0 %v785_v19  ;;  %v968_v0 = vld [vmem:[#allocation5 + $0x1c90] sm:$0xff]  ;;  %v705_v1 = vld [vmem:[#allocation5 + $0x1458] sm:$0xff]  ;;  %v434_v15 = vld [vmem:[#allocation5 + $0xbe0] sm:$0xff] }
 0x115   :  { %1701 = vmatprep.subr.mxu1 %v1041_v20  ;;  %1631 = vmatpush2.msra.mxu0 %v784_v22  ;;  %v961_v2 = vld [vmem:[#allocation5 + $0x1c58] sm:$0xff]  ;;  %v704_v4 = vld [vmem:[#allocation5 + $0x1450] sm:$0xff]  ;;  %v171_v17 = vld [vmem:[#allocation5 + $0x3a8] sm:$0xff] }
 0x116   :  { %1702 = vmatpush2.msra.mxu1 %v1040_v23  ;;  %1632 = vmatprep.subr.mxu0 %v777_v24  ;;  %v960_v5 = vld [vmem:[#allocation5 + $0x1c50] sm:$0xff]  ;;  %v697_v6 = vld [vmem:[#allocation5 + $0x1418] sm:$0xff]  ;;  %v427_v18 = vld [vmem:[#allocation5 + $0xba8] sm:$0xff] }
 0x117   :  { %1703 = vmatprep.subr.mxu1 %v1033_v25  ;;  %1633 = vmatpush2.msra.mxu0 %v776_v27  ;;  %v953_v7 = vld [vmem:[#allocation5 + $0x1c18] sm:$0xff]  ;;  %v696_v9 = vld [vmem:[#allocation5 + $0x1410] sm:$0xff]  ;;  %v170_v19 = vld [vmem:[#allocation5 + $0x3a0] sm:$0xff] }
 0x118   :  { %1704 = vmatpush2.msra.mxu1 %v1032_v28  ;;  %1634 = vmatprep.subr.mxu0 %v769_v30  ;;  %v952_v10 = vld [vmem:[#allocation5 + $0x1c10] sm:$0xff]  ;;  %v426_v20 = vld [vmem:[#allocation5 + $0xba0] sm:$0xff]  ;;  %v163_v22 = vld [vmem:[#allocation5 + $0x368] sm:$0xff] }
 0x119   :  { %1705 = vmatprep.subr.mxu1 %v1025_v31  ;;  %1635 = vmatpush2.msra.mxu0 %v768_v32  ;;  %v419_v23 = vld [vmem:[#allocation5 + $0xb68] sm:$0xff]  ;;  %v162_v24 = vld [vmem:[#allocation5 + $0x360] sm:$0xff] }
 0x11a   :  { %1706 = vmatpush2.msra.mxu1 %v1024_v33  ;;  %1636 = vmatprep.subr.mxu0 %v761_v34  ;;  %v418_v25 = vld [vmem:[#allocation5 + $0xb60] sm:$0xff]  ;;  %v155_v27 = vld [vmem:[#allocation5 + $0x328] sm:$0xff] }
 0x11b   :  { %1707 = vmatprep.subr.mxu1 %v1017_v35  ;;  %1637 = vmatpush2.msra.mxu0 %v760_v36  ;;  %v411_v28 = vld [vmem:[#allocation5 + $0xb28] sm:$0xff]  ;;  %v154_v30 = vld [vmem:[#allocation5 + $0x320] sm:$0xff] }
 0x11c   :  { %1708 = vmatpush2.msra.mxu1 %v1016_v37  ;;  %1638 = vmatprep.subr.mxu0 %v753_v38  ;;  %v410_v31 = vld [vmem:[#allocation5 + $0xb20] sm:$0xff]  ;;  %v147_v32 = vld [vmem:[#allocation5 + $0x2e8] sm:$0xff] }
 0x11d   :  { %1709 = vmatprep.subr.mxu1 %v1009_v39  ;;  %1639 = vmatpush2.msra.mxu0 %v752_v40  ;;  %v403_v33 = vld [vmem:[#allocation5 + $0xae8] sm:$0xff]  ;;  %v146_v34 = vld [vmem:[#allocation5 + $0x2e0] sm:$0xff] }
 0x11e   :  { %1710 = vmatpush2.msra.mxu1 %v1008_v42  ;;  %1640 = vmatprep.subr.mxu0 %v745_v43  ;;  %v402_v35 = vld [vmem:[#allocation5 + $0xae0] sm:$0xff]  ;;  %v139_v36 = vld [vmem:[#allocation5 + $0x2a8] sm:$0xff] }
 0x11f   :  { %1711 = vmatprep.subr.mxu1 %v1001_v44  ;;  %1641 = vmatpush2.msra.mxu0 %v744_v45  ;;  %v395_v37 = vld [vmem:[#allocation5 + $0xaa8] sm:$0xff]  ;;  %v138_v38 = vld [vmem:[#allocation5 + $0x2a0] sm:$0xff] }
 0x120   :  { %1712 = vmatpush2.msra.mxu1 %v1000_v46  ;;  %1642 = vmatprep.subr.mxu0 %v737_v47  ;;  %v394_v39 = vld [vmem:[#allocation5 + $0xaa0] sm:$0xff]  ;;  %v131_v40 = vld [vmem:[#allocation5 + $0x268] sm:$0xff] }
 0x121   :  { %1713 = vmatprep.subr.mxu1 %v993_v48  ;;  %1643 = vmatpush2.msra.mxu0 %v736_v49  ;;  %v387_v42 = vld [vmem:[#allocation5 + $0xa68] sm:$0xff]  ;;  %v130_v43 = vld [vmem:[#allocation5 + $0x260] sm:$0xff] }
 0x122   :  { %1714 = vmatpush2.msra.mxu1 %v992_v50  ;;  %1644 = vmatprep.subr.mxu0 %v729_v51  ;;  %v386_v44 = vld [vmem:[#allocation5 + $0xa60] sm:$0xff]  ;;  %v123_v45 = vld [vmem:[#allocation5 + $0x228] sm:$0xff] }
 0x123   :  { %1715 = vmatprep.subr.mxu1 %v985_v53  ;;  %1645 = vmatpush2.msra.mxu0 %v728_v54  ;;  %v379_v46 = vld [vmem:[#allocation5 + $0xa28] sm:$0xff]  ;;  %v122_v47 = vld [vmem:[#allocation5 + $0x220] sm:$0xff] }
 0x124   :  { %1716 = vmatpush2.msra.mxu1 %v984_v55  ;;  %1646 = vmatprep.subr.mxu0 %v721_v56  ;;  %v378_v48 = vld [vmem:[#allocation5 + $0xa20] sm:$0xff]  ;;  %v115_v49 = vld [vmem:[#allocation5 + $0x1e8] sm:$0xff] }
 0x125   :  { %1717 = vmatprep.subr.mxu1 %v977_v57  ;;  %1647 = vmatpush2.msra.mxu0 %v720_v58  ;;  %v371_v50 = vld [vmem:[#allocation5 + $0x9e8] sm:$0xff]  ;;  %v114_v51 = vld [vmem:[#allocation5 + $0x1e0] sm:$0xff] }
 0x126   :  { %1718 = vmatpush2.msra.mxu1 %v976_v59  ;;  %1648 = vmatprep.subr.mxu0 %v713_v60  ;;  %v370_v53 = vld [vmem:[#allocation5 + $0x9e0] sm:$0xff]  ;;  %v107_v54 = vld [vmem:[#allocation5 + $0x1a8] sm:$0xff] }
 0x127   :  { %1719 = vmatprep.subr.mxu1 %v969_v61  ;;  %1649 = vmatpush2.msra.mxu0 %v712_v63  ;;  %v363_v55 = vld [vmem:[#allocation5 + $0x9a8] sm:$0xff]  ;;  %v106_v56 = vld [vmem:[#allocation5 + $0x1a0] sm:$0xff] }
 0x128   :  { %1720 = vmatpush2.msra.mxu1 %v968_v0  ;;  %1650 = vmatprep.subr.mxu0 %v705_v1  ;;  %v362_v57 = vld [vmem:[#allocation5 + $0x9a0] sm:$0xff]  ;;  %v99_v58 = vld [vmem:[#allocation5 + $0x168] sm:$0xff] }
 0x129   :  { %1721 = vmatprep.subr.mxu1 %v961_v2  ;;  %1651 = vmatpush2.msra.mxu0 %v704_v4  ;;  %v355_v59 = vld [vmem:[#allocation5 + $0x968] sm:$0xff]  ;;  %v98_v60 = vld [vmem:[#allocation5 + $0x160] sm:$0xff] }
 0x12a   :  { %1722 = vmatpush2.msra.mxu1 %v960_v5  ;;  %1652 = vmatprep.subr.mxu0 %v697_v6  ;;  %v354_v61 = vld [vmem:[#allocation5 + $0x960] sm:$0xff]  ;;  %v91_v63 = vld [vmem:[#allocation5 + $0x128] sm:$0xff] }
 0x12b   :  { %1723 = vmatprep.subr.mxu1 %v953_v7  ;;  %1653 = vmatpush2.msra.mxu0 %v696_v9  ;;  %v347_v0 = vld [vmem:[#allocation5 + $0x928] sm:$0xff]  ;;  %v90_v1 = vld [vmem:[#allocation5 + $0x120] sm:$0xff] }
 0x12c   :  { %1654 = vmatprep.mubr.f32.mxu0 %v2612_v26  ;;  %1724 = vmatpush2.msra.mxu1 %v952_v10  ;;  %v346_v2 = vld [vmem:[#allocation5 + $0x920] sm:$0xff]  ;;  %v83_v4 = vld [vmem:[#allocation5 + $0xe8] sm:$0xff] }
 0x12d   :  { %1655 = vmatmul.mubr.f32.vlgmr.msra.gmra.mxu0 %v2605_v16  ;;  %1725 = vmatprep.mubr.f32.mxu1 %v2616_v29  ;;  %v339_v5 = vld [vmem:[#allocation5 + $0x8e8] sm:$0xff]  ;;  %v82_v6 = vld [vmem:[#allocation5 + $0xe0] sm:$0xff] }
 0x12e   :  { %1732 = vmatprep.subr.mxu0 %v179_v12  ;;  %1803 = vmatprep.subr.mxu1 %v435_v13  ;;  %v338_v7 = vld [vmem:[#allocation5 + $0x8e0] sm:$0xff]  ;;  %v75_v9 = vld [vmem:[#allocation5 + $0xa8] sm:$0xff] }
 0x12f   :  { %1726 = vmatmul.mubr.f32.vlgmr.msra.gmra.mxu1 %v2608_v21  ;;  %1733 = vmatpush1.msra.mxu0 %v178_v14  ;;  %v331_v10 = vld [vmem:[#allocation5 + $0x8a8] sm:$0xff]  ;;  %v74_v12 = vld [vmem:[#allocation5 + $0xa0] sm:$0xff] }
 0x130   :  { %1804 = vmatpush1.msra.mxu1 %v434_v15  ;;  %1734 = vmatprep.subr.mxu0 %v171_v17  ;;  %v330_v13 = vld [vmem:[#allocation5 + $0x8a0] sm:$0xff]  ;;  %v67_v14 = vld [vmem:[#allocation5 + $0x68] sm:$0xff] }
 0x131   :  { %1805 = vmatprep.subr.mxu1 %v427_v18  ;;  %1735 = vmatpush1.msra.mxu0 %v170_v19  ;;  %v323_v15 = vld [vmem:[#allocation5 + $0x868] sm:$0xff]  ;;  %v66_v17 = vld [vmem:[#allocation5 + $0x60] sm:$0xff] }
 0x132   :  { %1806 = vmatpush1.msra.mxu1 %v426_v20  ;;  %1736 = vmatprep.subr.mxu0 %v163_v22  ;;  %v322_v18 = vld [vmem:[#allocation5 + $0x860] sm:$0xff]  ;;  %v59_v19 = vld [vmem:[#allocation5 + $0x28] sm:$0xff] }
 0x133   :  { %1807 = vmatprep.subr.mxu1 %v419_v23  ;;  %1737 = vmatpush1.msra.mxu0 %v162_v24  ;;  %v315_v20 = vld [vmem:[#allocation5 + $0x828] sm:$0xff]  ;;  %v58_v22 = vld [vmem:[#allocation5 + $0x20] sm:$0xff] }
 0x134   :  { %1808 = vmatpush1.msra.mxu1 %v418_v25  ;;  %1738 = vmatprep.subr.mxu0 %v155_v27  ;;  %v314_v23 = vld [vmem:[#allocation5 + $0x820] sm:$0xff]  ;;  %v307_v24 = vld [vmem:[#allocation5 + $0x7e8] sm:$0xff] }
 0x135   :  { %1809 = vmatprep.subr.mxu1 %v411_v28  ;;  %1739 = vmatpush1.msra.mxu0 %v154_v30  ;;  %v563_v25 = vld [vmem:[#allocation5 + $0xfe8] sm:$0xff]  ;;  %v306_v27 = vld [vmem:[#allocation5 + $0x7e0] sm:$0xff] }
 0x136   :  { %1810 = vmatpush1.msra.mxu1 %v410_v31  ;;  %1740 = vmatprep.subr.mxu0 %v147_v32  ;;  %v562_v28 = vld [vmem:[#allocation5 + $0xfe0] sm:$0xff]  ;;  %v299_v30 = vld [vmem:[#allocation5 + $0x7a8] sm:$0xff] }
 0x137   :  { %1811 = vmatprep.subr.mxu1 %v403_v33  ;;  %1741 = vmatpush1.msra.mxu0 %v146_v34  ;;  %v555_v31 = vld [vmem:[#allocation5 + $0xfa8] sm:$0xff]  ;;  %v298_v32 = vld [vmem:[#allocation5 + $0x7a0] sm:$0xff] }
 0x138   :  { %1812 = vmatpush1.msra.mxu1 %v402_v35  ;;  %1742 = vmatprep.subr.mxu0 %v139_v36  ;;  %v554_v33 = vld [vmem:[#allocation5 + $0xfa0] sm:$0xff]  ;;  %v291_v34 = vld [vmem:[#allocation5 + $0x768] sm:$0xff] }
 0x139   :  { %1813 = vmatprep.subr.mxu1 %v395_v37  ;;  %1743 = vmatpush1.msra.mxu0 %v138_v38  ;;  %v547_v35 = vld [vmem:[#allocation5 + $0xf68] sm:$0xff]  ;;  %v290_v36 = vld [vmem:[#allocation5 + $0x760] sm:$0xff] }
 0x13a   :  { %1814 = vmatpush1.msra.mxu1 %v394_v39  ;;  %1744 = vmatprep.subr.mxu0 %v131_v40  ;;  %v546_v37 = vld [vmem:[#allocation5 + $0xf60] sm:$0xff]  ;;  %v283_v38 = vld [vmem:[#allocation5 + $0x728] sm:$0xff] }
 0x13b   :  { %1815 = vmatprep.subr.mxu1 %v387_v42  ;;  %1745 = vmatpush1.msra.mxu0 %v130_v43  ;;  %v539_v39 = vld [vmem:[#allocation5 + $0xf28] sm:$0xff]  ;;  %v282_v40 = vld [vmem:[#allocation5 + $0x720] sm:$0xff] }
 0x13c   :  { %1816 = vmatpush1.msra.mxu1 %v386_v44  ;;  %1746 = vmatprep.subr.mxu0 %v123_v45  ;;  %v538_v42 = vld [vmem:[#allocation5 + $0xf20] sm:$0xff]  ;;  %v275_v43 = vld [vmem:[#allocation5 + $0x6e8] sm:$0xff] }
 0x13d   :  { %1817 = vmatprep.subr.mxu1 %v379_v46  ;;  %1747 = vmatpush1.msra.mxu0 %v122_v47  ;;  %v531_v44 = vld [vmem:[#allocation5 + $0xee8] sm:$0xff]  ;;  %v274_v45 = vld [vmem:[#allocation5 + $0x6e0] sm:$0xff] }
 0x13e   :  { %1818 = vmatpush1.msra.mxu1 %v378_v48  ;;  %1748 = vmatprep.subr.mxu0 %v115_v49  ;;  %v530_v46 = vld [vmem:[#allocation5 + $0xee0] sm:$0xff]  ;;  %v267_v47 = vld [vmem:[#allocation5 + $0x6a8] sm:$0xff] }
 0x13f   :  { %1819 = vmatprep.subr.mxu1 %v371_v50  ;;  %1749 = vmatpush1.msra.mxu0 %v114_v51  ;;  %v523_v48 = vld [vmem:[#allocation5 + $0xea8] sm:$0xff]  ;;  %v266_v49 = vld [vmem:[#allocation5 + $0x6a0] sm:$0xff] }
 0x140   :  { %1820 = vmatpush1.msra.mxu1 %v370_v53  ;;  %1750 = vmatprep.subr.mxu0 %v107_v54  ;;  %v522_v50 = vld [vmem:[#allocation5 + $0xea0] sm:$0xff]  ;;  %v259_v51 = vld [vmem:[#allocation5 + $0x668] sm:$0xff] }
 0x141   :  { %1821 = vmatprep.subr.mxu1 %v363_v55  ;;  %1751 = vmatpush1.msra.mxu0 %v106_v56  ;;  %v515_v53 = vld [vmem:[#allocation5 + $0xe68] sm:$0xff]  ;;  %v258_v54 = vld [vmem:[#allocation5 + $0x660] sm:$0xff] }
 0x142   :  { %1822 = vmatpush1.msra.mxu1 %v362_v57  ;;  %1752 = vmatprep.subr.mxu0 %v99_v58  ;;  %v514_v55 = vld [vmem:[#allocation5 + $0xe60] sm:$0xff]  ;;  %v251_v56 = vld [vmem:[#allocation5 + $0x628] sm:$0xff] }
 0x143   :  { %1823 = vmatprep.subr.mxu1 %v355_v59  ;;  %1753 = vmatpush1.msra.mxu0 %v98_v60  ;;  %v507_v57 = vld [vmem:[#allocation5 + $0xe28] sm:$0xff]  ;;  %v250_v58 = vld [vmem:[#allocation5 + $0x620] sm:$0xff] }
 0x144   :  { %1824 = vmatpush1.msra.mxu1 %v354_v61  ;;  %1754 = vmatprep.subr.mxu0 %v91_v63  ;;  %v506_v59 = vld [vmem:[#allocation5 + $0xe20] sm:$0xff]  ;;  %v243_v60 = vld [vmem:[#allocation5 + $0x5e8] sm:$0xff] }
 0x145   :  { %1825 = vmatprep.subr.mxu1 %v347_v0  ;;  %1755 = vmatpush1.msra.mxu0 %v90_v1  ;;  %v499_v61 = vld [vmem:[#allocation5 + $0xde8] sm:$0xff]  ;;  %v242_v63 = vld [vmem:[#allocation5 + $0x5e0] sm:$0xff] }
 0x146   :  { %1826 = vmatpush1.msra.mxu1 %v346_v2  ;;  %1756 = vmatprep.subr.mxu0 %v83_v4  ;;  %v498_v0 = vld [vmem:[#allocation5 + $0xde0] sm:$0xff]  ;;  %v235_v1 = vld [vmem:[#allocation5 + $0x5a8] sm:$0xff] }
 0x147   :  { %1827 = vmatprep.subr.mxu1 %v339_v5  ;;  %1757 = vmatpush1.msra.mxu0 %v82_v6  ;;  %v491_v2 = vld [vmem:[#allocation5 + $0xda8] sm:$0xff]  ;;  %v234_v4 = vld [vmem:[#allocation5 + $0x5a0] sm:$0xff] }
 0x148   :  { %1828 = vmatpush1.msra.mxu1 %v338_v7  ;;  %1758 = vmatprep.subr.mxu0 %v75_v9  ;;  %v490_v5 = vld [vmem:[#allocation5 + $0xda0] sm:$0xff]  ;;  %v227_v6 = vld [vmem:[#allocation5 + $0x568] sm:$0xff] }
 0x149   :  { %1829 = vmatprep.subr.mxu1 %v331_v10  ;;  %1759 = vmatpush1.msra.mxu0 %v74_v12  ;;  %v483_v7 = vld [vmem:[#allocation5 + $0xd68] sm:$0xff]  ;;  %v226_v9 = vld [vmem:[#allocation5 + $0x560] sm:$0xff] }
 0x14a   :  { %1830 = vmatpush1.msra.mxu1 %v330_v13  ;;  %1760 = vmatprep.subr.mxu0 %v67_v14  ;;  %v482_v10 = vld [vmem:[#allocation5 + $0xd60] sm:$0xff]  ;;  %v219_v12 = vld [vmem:[#allocation5 + $0x528] sm:$0xff] }
 0x14b   :  { %1831 = vmatprep.subr.mxu1 %v323_v15  ;;  %1761 = vmatpush1.msra.mxu0 %v66_v17  ;;  %v475_v13 = vld [vmem:[#allocation5 + $0xd28] sm:$0xff]  ;;  %v218_v14 = vld [vmem:[#allocation5 + $0x520] sm:$0xff] }
 0x14c   :  { %1832 = vmatpush1.msra.mxu1 %v322_v18  ;;  %1762 = vmatprep.subr.mxu0 %v59_v19  ;;  %v474_v15 = vld [vmem:[#allocation5 + $0xd20] sm:$0xff]  ;;  %v211_v17 = vld [vmem:[#allocation5 + $0x4e8] sm:$0xff] }
 0x14d   :  { %1833 = vmatprep.subr.mxu1 %v315_v20  ;;  %1763 = vmatpush1.msra.mxu0 %v58_v22  ;;  %v467_v18 = vld [vmem:[#allocation5 + $0xce8] sm:$0xff]  ;;  %v210_v19 = vld [vmem:[#allocation5 + $0x4e0] sm:$0xff] }
 0x14e   :  { %1834 = vmatpush1.msra.mxu1 %v314_v23  ;;  %1764 = vmatprep.subr.mxu0 %v307_v24  ;;  %v466_v20 = vld [vmem:[#allocation5 + $0xce0] sm:$0xff]  ;;  %v203_v22 = vld [vmem:[#allocation5 + $0x4a8] sm:$0xff] }
 0x14f   :  { %1835 = vmatprep.subr.mxu1 %v563_v25  ;;  %1765 = vmatpush2.msra.mxu0 %v306_v27  ;;  %v459_v23 = vld [vmem:[#allocation5 + $0xca8] sm:$0xff]  ;;  %v202_v24 = vld [vmem:[#allocation5 + $0x4a0] sm:$0xff] }
 0x150   :  { %1836 = vmatpush2.msra.mxu1 %v562_v28  ;;  %1766 = vmatprep.subr.mxu0 %v299_v30  ;;  %v458_v25 = vld [vmem:[#allocation5 + $0xca0] sm:$0xff]  ;;  %v195_v27 = vld [vmem:[#allocation5 + $0x468] sm:$0xff] }
 0x151   :  { %1837 = vmatprep.subr.mxu1 %v555_v31  ;;  %1767 = vmatpush2.msra.mxu0 %v298_v32  ;;  %v451_v28 = vld [vmem:[#allocation5 + $0xc68] sm:$0xff]  ;;  %v194_v30 = vld [vmem:[#allocation5 + $0x460] sm:$0xff] }
 0x152   :  { %1838 = vmatpush2.msra.mxu1 %v554_v33  ;;  %1768 = vmatprep.subr.mxu0 %v291_v34  ;;  %v450_v31 = vld [vmem:[#allocation5 + $0xc60] sm:$0xff]  ;;  %v187_v32 = vld [vmem:[#allocation5 + $0x428] sm:$0xff] }
 0x153   :  { %1839 = vmatprep.subr.mxu1 %v547_v35  ;;  %1769 = vmatpush2.msra.mxu0 %v290_v36  ;;  %v443_v33 = vld [vmem:[#allocation5 + $0xc28] sm:$0xff]  ;;  %v186_v34 = vld [vmem:[#allocation5 + $0x420] sm:$0xff] }
 0x154   :  { %1840 = vmatpush2.msra.mxu1 %v546_v37  ;;  %1770 = vmatprep.subr.mxu0 %v283_v38  ;;  %v442_v35 = vld [vmem:[#allocation5 + $0xc20] sm:$0xff]  ;;  %v691_v36 = vld [vmem:[#allocation5 + $0x13e8] sm:$0xff] }
 0x155   :  { %1841 = vmatprep.subr.mxu1 %v539_v39  ;;  %1771 = vmatpush2.msra.mxu0 %v282_v40  ;;  %v947_v37 = vld [vmem:[#allocation5 + $0x1be8] sm:$0xff]  ;;  %v690_v38 = vld [vmem:[#allocation5 + $0x13e0] sm:$0xff] }
 0x156   :  { %1842 = vmatpush2.msra.mxu1 %v538_v42  ;;  %1772 = vmatprep.subr.mxu0 %v275_v43  ;;  %v946_v39 = vld [vmem:[#allocation5 + $0x1be0] sm:$0xff]  ;;  %v683_v40 = vld [vmem:[#allocation5 + $0x13a8] sm:$0xff] }
 0x157   :  { %1843 = vmatprep.subr.mxu1 %v531_v44  ;;  %1773 = vmatpush2.msra.mxu0 %v274_v45  ;;  %v939_v42 = vld [vmem:[#allocation5 + $0x1ba8] sm:$0xff]  ;;  %v682_v43 = vld [vmem:[#allocation5 + $0x13a0] sm:$0xff] }
 0x158   :  { %1844 = vmatpush2.msra.mxu1 %v530_v46  ;;  %1774 = vmatprep.subr.mxu0 %v267_v47  ;;  %v938_v44 = vld [vmem:[#allocation5 + $0x1ba0] sm:$0xff]  ;;  %v675_v45 = vld [vmem:[#allocation5 + $0x1368] sm:$0xff] }
 0x159   :  { %1845 = vmatprep.subr.mxu1 %v523_v48  ;;  %1775 = vmatpush2.msra.mxu0 %v266_v49  ;;  %v931_v46 = vld [vmem:[#allocation5 + $0x1b68] sm:$0xff]  ;;  %v674_v47 = vld [vmem:[#allocation5 + $0x1360] sm:$0xff] }
 0x15a   :  { %1846 = vmatpush2.msra.mxu1 %v522_v50  ;;  %1776 = vmatprep.subr.mxu0 %v259_v51  ;;  %v930_v48 = vld [vmem:[#allocation5 + $0x1b60] sm:$0xff]  ;;  %v667_v49 = vld [vmem:[#allocation5 + $0x1328] sm:$0xff] }
 0x15b   :  { %1847 = vmatprep.subr.mxu1 %v515_v53  ;;  %1777 = vmatpush2.msra.mxu0 %v258_v54  ;;  %v923_v50 = vld [vmem:[#allocation5 + $0x1b28] sm:$0xff]  ;;  %v666_v51 = vld [vmem:[#allocation5 + $0x1320] sm:$0xff] }
 0x15c   :  { %1848 = vmatpush2.msra.mxu1 %v514_v55  ;;  %1778 = vmatprep.subr.mxu0 %v251_v56  ;;  %v922_v53 = vld [vmem:[#allocation5 + $0x1b20] sm:$0xff]  ;;  %v659_v54 = vld [vmem:[#allocation5 + $0x12e8] sm:$0xff] }
 0x15d   :  { %1849 = vmatprep.subr.mxu1 %v507_v57  ;;  %1779 = vmatpush2.msra.mxu0 %v250_v58  ;;  %v915_v55 = vld [vmem:[#allocation5 + $0x1ae8] sm:$0xff]  ;;  %v658_v56 = vld [vmem:[#allocation5 + $0x12e0] sm:$0xff] }
 0x15e   :  { %1850 = vmatpush2.msra.mxu1 %v506_v59  ;;  %1780 = vmatprep.subr.mxu0 %v243_v60  ;;  %v914_v57 = vld [vmem:[#allocation5 + $0x1ae0] sm:$0xff]  ;;  %v651_v58 = vld [vmem:[#allocation5 + $0x12a8] sm:$0xff] }
 0x15f   :  { %1851 = vmatprep.subr.mxu1 %v499_v61  ;;  %1781 = vmatpush2.msra.mxu0 %v242_v63  ;;  %v907_v59 = vld [vmem:[#allocation5 + $0x1aa8] sm:$0xff]  ;;  %v650_v60 = vld [vmem:[#allocation5 + $0x12a0] sm:$0xff] }
 0x160   :  { %1852 = vmatpush2.msra.mxu1 %v498_v0  ;;  %1782 = vmatprep.subr.mxu0 %v235_v1  ;;  %v906_v61 = vld [vmem:[#allocation5 + $0x1aa0] sm:$0xff]  ;;  %v643_v63 = vld [vmem:[#allocation5 + $0x1268] sm:$0xff] }
 0x161   :  { %1853 = vmatprep.subr.mxu1 %v491_v2  ;;  %1783 = vmatpush2.msra.mxu0 %v234_v4  ;;  %v899_v0 = vld [vmem:[#allocation5 + $0x1a68] sm:$0xff]  ;;  %v642_v1 = vld [vmem:[#allocation5 + $0x1260] sm:$0xff] }
 0x162   :  { %1854 = vmatpush2.msra.mxu1 %v490_v5  ;;  %1784 = vmatprep.subr.mxu0 %v227_v6  ;;  %v898_v2 = vld [vmem:[#allocation5 + $0x1a60] sm:$0xff]  ;;  %v635_v4 = vld [vmem:[#allocation5 + $0x1228] sm:$0xff] }
 0x163   :  { %1855 = vmatprep.subr.mxu1 %v483_v7  ;;  %1785 = vmatpush2.msra.mxu0 %v226_v9  ;;  %v891_v5 = vld [vmem:[#allocation5 + $0x1a28] sm:$0xff]  ;;  %v634_v6 = vld [vmem:[#allocation5 + $0x1220] sm:$0xff] }
 0x164   :  { %1856 = vmatpush2.msra.mxu1 %v482_v10  ;;  %1786 = vmatprep.subr.mxu0 %v219_v12  ;;  %v890_v7 = vld [vmem:[#allocation5 + $0x1a20] sm:$0xff]  ;;  %v627_v9 = vld [vmem:[#allocation5 + $0x11e8] sm:$0xff] }
 0x165   :  { %1857 = vmatprep.subr.mxu1 %v475_v13  ;;  %1787 = vmatpush2.msra.mxu0 %v218_v14  ;;  %v883_v10 = vld [vmem:[#allocation5 + $0x19e8] sm:$0xff]  ;;  %v626_v12 = vld [vmem:[#allocation5 + $0x11e0] sm:$0xff] }
 0x166   :  { %1858 = vmatpush2.msra.mxu1 %v474_v15  ;;  %1788 = vmatprep.subr.mxu0 %v211_v17  ;;  %v882_v13 = vld [vmem:[#allocation5 + $0x19e0] sm:$0xff]  ;;  %v619_v14 = vld [vmem:[#allocation5 + $0x11a8] sm:$0xff] }
 0x167   :  { %1859 = vmatprep.subr.mxu1 %v467_v18  ;;  %1789 = vmatpush2.msra.mxu0 %v210_v19  ;;  %v875_v15 = vld [vmem:[#allocation5 + $0x19a8] sm:$0xff]  ;;  %v618_v17 = vld [vmem:[#allocation5 + $0x11a0] sm:$0xff] }
 0x168   :  { %1860 = vmatpush2.msra.mxu1 %v466_v20  ;;  %1790 = vmatprep.subr.mxu0 %v203_v22  ;;  %v874_v18 = vld [vmem:[#allocation5 + $0x19a0] sm:$0xff]  ;;  %v611_v19 = vld [vmem:[#allocation5 + $0x1168] sm:$0xff] }
 0x169   :  { %1861 = vmatprep.subr.mxu1 %v459_v23  ;;  %1791 = vmatpush2.msra.mxu0 %v202_v24  ;;  %v867_v20 = vld [vmem:[#allocation5 + $0x1968] sm:$0xff]  ;;  %v610_v22 = vld [vmem:[#allocation5 + $0x1160] sm:$0xff] }
 0x16a   :  { %1862 = vmatpush2.msra.mxu1 %v458_v25  ;;  %1792 = vmatprep.subr.mxu0 %v195_v27  ;;  %v866_v23 = vld [vmem:[#allocation5 + $0x1960] sm:$0xff]  ;;  %v603_v24 = vld [vmem:[#allocation5 + $0x1128] sm:$0xff] }
 0x16b   :  { %1863 = vmatprep.subr.mxu1 %v451_v28  ;;  %1793 = vmatpush2.msra.mxu0 %v194_v30  ;;  %v859_v25 = vld [vmem:[#allocation5 + $0x1928] sm:$0xff]  ;;  %v602_v27 = vld [vmem:[#allocation5 + $0x1120] sm:$0xff] }
 0x16c   :  { %1864 = vmatpush2.msra.mxu1 %v450_v31  ;;  %1794 = vmatprep.subr.mxu0 %v187_v32  ;;  %v858_v28 = vld [vmem:[#allocation5 + $0x1920] sm:$0xff]  ;;  %v595_v30 = vld [vmem:[#allocation5 + $0x10e8] sm:$0xff] }
 0x16d   :  { %1865 = vmatprep.subr.mxu1 %v443_v33  ;;  %1795 = vmatpush2.msra.mxu0 %v186_v34  ;;  %v851_v31 = vld [vmem:[#allocation5 + $0x18e8] sm:$0xff]  ;;  %v594_v32 = vld [vmem:[#allocation5 + $0x10e0] sm:$0xff] }
 0x16e   :  { %1796 = vmatprep.mubr.f32.mxu0 %v2594_v8  ;;  %1866 = vmatpush2.msra.mxu1 %v442_v35  ;;  %v850_v33 = vld [vmem:[#allocation5 + $0x18e0] sm:$0xff]  ;;  %v587_v34 = vld [vmem:[#allocation5 + $0x10a8] sm:$0xff] }
 0x16f   :  { %1797 = vmatmul.mubr.f32.vlgmr.msra.gmra.mxu0 %v2587_v62  ;;  %1867 = vmatprep.mubr.f32.mxu1 %v2598_v11  ;;  %v843_v35 = vld [vmem:[#allocation5 + $0x18a8] sm:$0xff] }
 0x170   :  { %1874 = vmatprep.subr.mxu0 %v691_v36  ;;  %1945 = vmatprep.subr.mxu1 %v947_v37  ;;  %v586_v36 = vld [vmem:[#allocation5 + $0x10a0] sm:$0xff] }
 0x171   :  { %1868 = vmatmul.mubr.f32.vlgmr.msra.gmra.mxu1 %v2590_v3  ;;  %1875 = vmatpush1.msra.mxu0 %v690_v38  ;;  %v842_v37 = vld [vmem:[#allocation5 + $0x18a0] sm:$0xff]  ;;  %v579_v38 = vld [vmem:[#allocation5 + $0x1068] sm:$0xff] }
 0x172   :  { %1946 = vmatpush1.msra.mxu1 %v946_v39  ;;  %1876 = vmatprep.subr.mxu0 %v683_v40  ;;  %v835_v39 = vld [vmem:[#allocation5 + $0x1868] sm:$0xff]  ;;  %v578_v40 = vld [vmem:[#allocation5 + $0x1060] sm:$0xff] }
 0x173   :  { %1947 = vmatprep.subr.mxu1 %v939_v42  ;;  %1877 = vmatpush1.msra.mxu0 %v682_v43  ;;  %v834_v42 = vld [vmem:[#allocation5 + $0x1860] sm:$0xff]  ;;  %v571_v43 = vld [vmem:[#allocation5 + $0x1028] sm:$0xff] }
 0x174   :  { %1948 = vmatpush1.msra.mxu1 %v938_v44  ;;  %1878 = vmatprep.subr.mxu0 %v675_v45  ;;  %v827_v44 = vld [vmem:[#allocation5 + $0x1828] sm:$0xff]  ;;  %v570_v45 = vld [vmem:[#allocation5 + $0x1020] sm:$0xff] }
 0x175   :  { %1949 = vmatprep.subr.mxu1 %v931_v46  ;;  %1879 = vmatpush1.msra.mxu0 %v674_v47  ;;  %v826_v46 = vld [vmem:[#allocation5 + $0x1820] sm:$0xff]  ;;  %v819_v47 = vld [vmem:[#allocation5 + $0x17e8] sm:$0xff] }
 0x176   :  { %1950 = vmatpush1.msra.mxu1 %v930_v48  ;;  %1880 = vmatprep.subr.mxu0 %v667_v49  ;;  %v1075_v48 = vld [vmem:[#allocation5 + $0x1fe8] sm:$0xff]  ;;  %v818_v49 = vld [vmem:[#allocation5 + $0x17e0] sm:$0xff] }
 0x177   :  { %1951 = vmatprep.subr.mxu1 %v923_v50  ;;  %1881 = vmatpush1.msra.mxu0 %v666_v51  ;;  %v1074_v50 = vld [vmem:[#allocation5 + $0x1fe0] sm:$0xff]  ;;  %v811_v51 = vld [vmem:[#allocation5 + $0x17a8] sm:$0xff] }
 0x178   :  { %1952 = vmatpush1.msra.mxu1 %v922_v53  ;;  %1882 = vmatprep.subr.mxu0 %v659_v54  ;;  %v1067_v53 = vld [vmem:[#allocation5 + $0x1fa8] sm:$0xff]  ;;  %v810_v54 = vld [vmem:[#allocation5 + $0x17a0] sm:$0xff] }
 0x179   :  { %1953 = vmatprep.subr.mxu1 %v915_v55  ;;  %1883 = vmatpush1.msra.mxu0 %v658_v56  ;;  %v1066_v55 = vld [vmem:[#allocation5 + $0x1fa0] sm:$0xff]  ;;  %v803_v56 = vld [vmem:[#allocation5 + $0x1768] sm:$0xff] }
 0x17a   :  { %1954 = vmatpush1.msra.mxu1 %v914_v57  ;;  %1884 = vmatprep.subr.mxu0 %v651_v58  ;;  %v1059_v57 = vld [vmem:[#allocation5 + $0x1f68] sm:$0xff]  ;;  %v802_v58 = vld [vmem:[#allocation5 + $0x1760] sm:$0xff] }
 0x17b   :  { %1955 = vmatprep.subr.mxu1 %v907_v59  ;;  %1885 = vmatpush1.msra.mxu0 %v650_v60  ;;  %v1058_v59 = vld [vmem:[#allocation5 + $0x1f60] sm:$0xff]  ;;  %v795_v60 = vld [vmem:[#allocation5 + $0x1728] sm:$0xff] }
 0x17c   :  { %1956 = vmatpush1.msra.mxu1 %v906_v61  ;;  %1886 = vmatprep.subr.mxu0 %v643_v63  ;;  %v1051_v61 = vld [vmem:[#allocation5 + $0x1f28] sm:$0xff]  ;;  %v794_v63 = vld [vmem:[#allocation5 + $0x1720] sm:$0xff] }
 0x17d   :  { %1957 = vmatprep.subr.mxu1 %v899_v0  ;;  %1887 = vmatpush1.msra.mxu0 %v642_v1  ;;  %v1050_v0 = vld [vmem:[#allocation5 + $0x1f20] sm:$0xff]  ;;  %v787_v1 = vld [vmem:[#allocation5 + $0x16e8] sm:$0xff] }
 0x17e   :  { %1958 = vmatpush1.msra.mxu1 %v898_v2  ;;  %1888 = vmatprep.subr.mxu0 %v635_v4  ;;  %v1043_v2 = vld [vmem:[#allocation5 + $0x1ee8] sm:$0xff]  ;;  %v786_v4 = vld [vmem:[#allocation5 + $0x16e0] sm:$0xff] }
 0x17f   :  { %1959 = vmatprep.subr.mxu1 %v891_v5  ;;  %1889 = vmatpush1.msra.mxu0 %v634_v6  ;;  %v1042_v5 = vld [vmem:[#allocation5 + $0x1ee0] sm:$0xff]  ;;  %v779_v6 = vld [vmem:[#allocation5 + $0x16a8] sm:$0xff] }
 0x180   :  { %1960 = vmatpush1.msra.mxu1 %v890_v7  ;;  %1890 = vmatprep.subr.mxu0 %v627_v9  ;;  %v1035_v7 = vld [vmem:[#allocation5 + $0x1ea8] sm:$0xff]  ;;  %v778_v9 = vld [vmem:[#allocation5 + $0x16a0] sm:$0xff] }
 0x181   :  { %1961 = vmatprep.subr.mxu1 %v883_v10  ;;  %1891 = vmatpush1.msra.mxu0 %v626_v12  ;;  %v1034_v10 = vld [vmem:[#allocation5 + $0x1ea0] sm:$0xff]  ;;  %v771_v12 = vld [vmem:[#allocation5 + $0x1668] sm:$0xff] }
 0x182   :  { %1962 = vmatpush1.msra.mxu1 %v882_v13  ;;  %1892 = vmatprep.subr.mxu0 %v619_v14  ;;  %v1027_v13 = vld [vmem:[#allocation5 + $0x1e68] sm:$0xff]  ;;  %v770_v14 = vld [vmem:[#allocation5 + $0x1660] sm:$0xff] }
 0x183   :  { %1963 = vmatprep.subr.mxu1 %v875_v15  ;;  %1893 = vmatpush1.msra.mxu0 %v618_v17  ;;  %v1026_v15 = vld [vmem:[#allocation5 + $0x1e60] sm:$0xff]  ;;  %v763_v17 = vld [vmem:[#allocation5 + $0x1628] sm:$0xff] }
 0x184   :  { %1964 = vmatpush1.msra.mxu1 %v874_v18  ;;  %1894 = vmatprep.subr.mxu0 %v611_v19  ;;  %v1019_v18 = vld [vmem:[#allocation5 + $0x1e28] sm:$0xff]  ;;  %v762_v19 = vld [vmem:[#allocation5 + $0x1620] sm:$0xff] }
 0x185   :  { %1965 = vmatprep.subr.mxu1 %v867_v20  ;;  %1895 = vmatpush1.msra.mxu0 %v610_v22  ;;  %v1018_v20 = vld [vmem:[#allocation5 + $0x1e20] sm:$0xff]  ;;  %v755_v22 = vld [vmem:[#allocation5 + $0x15e8] sm:$0xff] }
 0x186   :  { %1966 = vmatpush1.msra.mxu1 %v866_v23  ;;  %1896 = vmatprep.subr.mxu0 %v603_v24  ;;  %v1011_v23 = vld [vmem:[#allocation5 + $0x1de8] sm:$0xff]  ;;  %v754_v24 = vld [vmem:[#allocation5 + $0x15e0] sm:$0xff] }
 0x187   :  { %1967 = vmatprep.subr.mxu1 %v859_v25  ;;  %1897 = vmatpush1.msra.mxu0 %v602_v27  ;;  %v1010_v25 = vld [vmem:[#allocation5 + $0x1de0] sm:$0xff]  ;;  %v747_v27 = vld [vmem:[#allocation5 + $0x15a8] sm:$0xff] }
 0x188   :  { %1968 = vmatpush1.msra.mxu1 %v858_v28  ;;  %1898 = vmatprep.subr.mxu0 %v595_v30  ;;  %v1003_v28 = vld [vmem:[#allocation5 + $0x1da8] sm:$0xff]  ;;  %v746_v30 = vld [vmem:[#allocation5 + $0x15a0] sm:$0xff] }
 0x189   :  { %1969 = vmatprep.subr.mxu1 %v851_v31  ;;  %1899 = vmatpush1.msra.mxu0 %v594_v32  ;;  %v1002_v31 = vld [vmem:[#allocation5 + $0x1da0] sm:$0xff]  ;;  %v739_v32 = vld [vmem:[#allocation5 + $0x1568] sm:$0xff] }
 0x18a   :  { %1970 = vmatpush1.msra.mxu1 %v850_v33  ;;  %1900 = vmatprep.subr.mxu0 %v587_v34  ;;  %v995_v33 = vld [vmem:[#allocation5 + $0x1d68] sm:$0xff]  ;;  %v738_v34 = vld [vmem:[#allocation5 + $0x1560] sm:$0xff] }
 0x18b   :  { %1971 = vmatprep.subr.mxu1 %v843_v35  ;;  %1901 = vmatpush1.msra.mxu0 %v586_v36  ;;  %v994_v35 = vld [vmem:[#allocation5 + $0x1d60] sm:$0xff]  ;;  %v731_v36 = vld [vmem:[#allocation5 + $0x1528] sm:$0xff] }
 0x18c   :  { %1972 = vmatpush1.msra.mxu1 %v842_v37  ;;  %1902 = vmatprep.subr.mxu0 %v579_v38  ;;  %v987_v37 = vld [vmem:[#allocation5 + $0x1d28] sm:$0xff]  ;;  %v730_v38 = vld [vmem:[#allocation5 + $0x1520] sm:$0xff] }
 0x18d   :  { %1973 = vmatprep.subr.mxu1 %v835_v39  ;;  %1903 = vmatpush1.msra.mxu0 %v578_v40  ;;  %v986_v39 = vld [vmem:[#allocation5 + $0x1d20] sm:$0xff]  ;;  %v723_v40 = vld [vmem:[#allocation5 + $0x14e8] sm:$0xff] }
 0x18e   :  { %1974 = vmatpush1.msra.mxu1 %v834_v42  ;;  %1904 = vmatprep.subr.mxu0 %v571_v43  ;;  %v979_v42 = vld [vmem:[#allocation5 + $0x1ce8] sm:$0xff]  ;;  %v722_v43 = vld [vmem:[#allocation5 + $0x14e0] sm:$0xff] }
 0x18f   :  { %1975 = vmatprep.subr.mxu1 %v827_v44  ;;  %1905 = vmatpush1.msra.mxu0 %v570_v45  ;;  %v978_v44 = vld [vmem:[#allocation5 + $0x1ce0] sm:$0xff]  ;;  %v715_v45 = vld [vmem:[#allocation5 + $0x14a8] sm:$0xff] }
 0x190   :  { %1976 = vmatpush1.msra.mxu1 %v826_v46  ;;  %1906 = vmatprep.subr.mxu0 %v819_v47  ;;  %v971_v46 = vld [vmem:[#allocation5 + $0x1ca8] sm:$0xff]  ;;  %v714_v47 = vld [vmem:[#allocation5 + $0x14a0] sm:$0xff] }
 0x191   :  { %1977 = vmatprep.subr.mxu1 %v1075_v48  ;;  %1907 = vmatpush2.msra.mxu0 %v818_v49  ;;  %v970_v48 = vld [vmem:[#allocation5 + $0x1ca0] sm:$0xff]  ;;  %v707_v49 = vld [vmem:[#allocation5 + $0x1468] sm:$0xff] }
 0x192   :  { %1978 = vmatpush2.msra.mxu1 %v1074_v50  ;;  %1908 = vmatprep.subr.mxu0 %v811_v51  ;;  %v963_v50 = vld [vmem:[#allocation5 + $0x1c68] sm:$0xff]  ;;  %v706_v51 = vld [vmem:[#allocation5 + $0x1460] sm:$0xff] }
 0x193   :  { %1979 = vmatprep.subr.mxu1 %v1067_v53  ;;  %1909 = vmatpush2.msra.mxu0 %v810_v54  ;;  %v962_v53 = vld [vmem:[#allocation5 + $0x1c60] sm:$0xff]  ;;  %v699_v54 = vld [vmem:[#allocation5 + $0x1428] sm:$0xff] }
 0x194   :  { %1980 = vmatpush2.msra.mxu1 %v1066_v55  ;;  %1910 = vmatprep.subr.mxu0 %v803_v56  ;;  %v955_v55 = vld [vmem:[#allocation5 + $0x1c28] sm:$0xff]  ;;  %v698_v56 = vld [vmem:[#allocation5 + $0x1420] sm:$0xff] }
 0x195   :  { %1981 = vmatprep.subr.mxu1 %v1059_v57  ;;  %1911 = vmatpush2.msra.mxu0 %v802_v58  ;;  %v954_v57 = vld [vmem:[#allocation5 + $0x1c20] sm:$0xff]  ;;  %v181_v58 = vld [vmem:[#allocation5 + $0x3f8] sm:$0xff] }
 0x196   :  { %1982 = vmatpush2.msra.mxu1 %v1058_v59  ;;  %1912 = vmatprep.subr.mxu0 %v795_v60  ;;  %v437_v59 = vld [vmem:[#allocation5 + $0xbf8] sm:$0xff]  ;;  %v180_v60 = vld [vmem:[#allocation5 + $0x3f0] sm:$0xff] }
 0x197   :  { %1983 = vmatprep.subr.mxu1 %v1051_v61  ;;  %1913 = vmatpush2.msra.mxu0 %v794_v63  ;;  %v436_v61 = vld [vmem:[#allocation5 + $0xbf0] sm:$0xff]  ;;  %v173_v63 = vld [vmem:[#allocation5 + $0x3b8] sm:$0xff] }
 0x198   :  { %1984 = vmatpush2.msra.mxu1 %v1050_v0  ;;  %1914 = vmatprep.subr.mxu0 %v787_v1  ;;  %v429_v0 = vld [vmem:[#allocation5 + $0xbb8] sm:$0xff]  ;;  %v172_v1 = vld [vmem:[#allocation5 + $0x3b0] sm:$0xff] }
 0x199   :  { %1985 = vmatprep.subr.mxu1 %v1043_v2  ;;  %1915 = vmatpush2.msra.mxu0 %v786_v4  ;;  %v428_v2 = vld [vmem:[#allocation5 + $0xbb0] sm:$0xff]  ;;  %v165_v4 = vld [vmem:[#allocation5 + $0x378] sm:$0xff] }
 0x19a   :  { %1986 = vmatpush2.msra.mxu1 %v1042_v5  ;;  %1916 = vmatprep.subr.mxu0 %v779_v6  ;;  %v421_v5 = vld [vmem:[#allocation5 + $0xb78] sm:$0xff]  ;;  %v164_v6 = vld [vmem:[#allocation5 + $0x370] sm:$0xff] }
 0x19b   :  { %1987 = vmatprep.subr.mxu1 %v1035_v7  ;;  %1917 = vmatpush2.msra.mxu0 %v778_v9  ;;  %v420_v7 = vld [vmem:[#allocation5 + $0xb70] sm:$0xff]  ;;  %v157_v9 = vld [vmem:[#allocation5 + $0x338] sm:$0xff] }
 0x19c   :  { %1988 = vmatpush2.msra.mxu1 %v1034_v10  ;;  %1918 = vmatprep.subr.mxu0 %v771_v12  ;;  %v413_v10 = vld [vmem:[#allocation5 + $0xb38] sm:$0xff]  ;;  %v156_v12 = vld [vmem:[#allocation5 + $0x330] sm:$0xff] }
 0x19d   :  { %1989 = vmatprep.subr.mxu1 %v1027_v13  ;;  %1919 = vmatpush2.msra.mxu0 %v770_v14  ;;  %v412_v13 = vld [vmem:[#allocation5 + $0xb30] sm:$0xff]  ;;  %v149_v14 = vld [vmem:[#allocation5 + $0x2f8] sm:$0xff] }
 0x19e   :  { %1990 = vmatpush2.msra.mxu1 %v1026_v15  ;;  %1920 = vmatprep.subr.mxu0 %v763_v17  ;;  %v405_v15 = vld [vmem:[#allocation5 + $0xaf8] sm:$0xff]  ;;  %v148_v17 = vld [vmem:[#allocation5 + $0x2f0] sm:$0xff] }
 0x19f   :  { %1991 = vmatprep.subr.mxu1 %v1019_v18  ;;  %1921 = vmatpush2.msra.mxu0 %v762_v19  ;;  %v404_v18 = vld [vmem:[#allocation5 + $0xaf0] sm:$0xff]  ;;  %v141_v19 = vld [vmem:[#allocation5 + $0x2b8] sm:$0xff] }
 0x1a0   :  { %1992 = vmatpush2.msra.mxu1 %v1018_v20  ;;  %1922 = vmatprep.subr.mxu0 %v755_v22  ;;  %v397_v20 = vld [vmem:[#allocation5 + $0xab8] sm:$0xff]  ;;  %v140_v22 = vld [vmem:[#allocation5 + $0x2b0] sm:$0xff] }
 0x1a1   :  { %1993 = vmatprep.subr.mxu1 %v1011_v23  ;;  %1923 = vmatpush2.msra.mxu0 %v754_v24  ;;  %v396_v23 = vld [vmem:[#allocation5 + $0xab0] sm:$0xff]  ;;  %v133_v24 = vld [vmem:[#allocation5 + $0x278] sm:$0xff] }
 0x1a2   :  { %1994 = vmatpush2.msra.mxu1 %v1010_v25  ;;  %1924 = vmatprep.subr.mxu0 %v747_v27  ;;  %v389_v25 = vld [vmem:[#allocation5 + $0xa78] sm:$0xff]  ;;  %v132_v27 = vld [vmem:[#allocation5 + $0x270] sm:$0xff] }
 0x1a3   :  { %1995 = vmatprep.subr.mxu1 %v1003_v28  ;;  %1925 = vmatpush2.msra.mxu0 %v746_v30  ;;  %v388_v28 = vld [vmem:[#allocation5 + $0xa70] sm:$0xff]  ;;  %v125_v30 = vld [vmem:[#allocation5 + $0x238] sm:$0xff] }
 0x1a4   :  { %1996 = vmatpush2.msra.mxu1 %v1002_v31  ;;  %1926 = vmatprep.subr.mxu0 %v739_v32  ;;  %v381_v31 = vld [vmem:[#allocation5 + $0xa38] sm:$0xff]  ;;  %v124_v32 = vld [vmem:[#allocation5 + $0x230] sm:$0xff] }
 0x1a5   :  { %1997 = vmatprep.subr.mxu1 %v995_v33  ;;  %1927 = vmatpush2.msra.mxu0 %v738_v34  ;;  %v380_v33 = vld [vmem:[#allocation5 + $0xa30] sm:$0xff]  ;;  %v117_v34 = vld [vmem:[#allocation5 + $0x1f8] sm:$0xff] }
 0x1a6   :  { %1998 = vmatpush2.msra.mxu1 %v994_v35  ;;  %1928 = vmatprep.subr.mxu0 %v731_v36  ;;  %v373_v35 = vld [vmem:[#allocation5 + $0x9f8] sm:$0xff]  ;;  %v116_v36 = vld [vmem:[#allocation5 + $0x1f0] sm:$0xff] }
 0x1a7   :  { %1999 = vmatprep.subr.mxu1 %v987_v37  ;;  %1929 = vmatpush2.msra.mxu0 %v730_v38  ;;  %v372_v37 = vld [vmem:[#allocation5 + $0x9f0] sm:$0xff]  ;;  %v109_v38 = vld [vmem:[#allocation5 + $0x1b8] sm:$0xff] }
 0x1a8   :  { %2000 = vmatpush2.msra.mxu1 %v986_v39  ;;  %1930 = vmatprep.subr.mxu0 %v723_v40  ;;  %v365_v39 = vld [vmem:[#allocation5 + $0x9b8] sm:$0xff]  ;;  %v108_v40 = vld [vmem:[#allocation5 + $0x1b0] sm:$0xff] }
 0x1a9   :  { %2001 = vmatprep.subr.mxu1 %v979_v42  ;;  %1931 = vmatpush2.msra.mxu0 %v722_v43  ;;  %v364_v42 = vld [vmem:[#allocation5 + $0x9b0] sm:$0xff]  ;;  %v101_v43 = vld [vmem:[#allocation5 + $0x178] sm:$0xff] }
 0x1aa   :  { %2002 = vmatpush2.msra.mxu1 %v978_v44  ;;  %1932 = vmatprep.subr.mxu0 %v715_v45  ;;  %v357_v44 = vld [vmem:[#allocation5 + $0x978] sm:$0xff]  ;;  %v100_v45 = vld [vmem:[#allocation5 + $0x170] sm:$0xff] }
 0x1ab   :  { %2003 = vmatprep.subr.mxu1 %v971_v46  ;;  %1933 = vmatpush2.msra.mxu0 %v714_v47  ;;  %v356_v46 = vld [vmem:[#allocation5 + $0x970] sm:$0xff]  ;;  %v93_v47 = vld [vmem:[#allocation5 + $0x138] sm:$0xff] }
 0x1ac   :  { %2004 = vmatpush2.msra.mxu1 %v970_v48  ;;  %1934 = vmatprep.subr.mxu0 %v707_v49  ;;  %v349_v48 = vld [vmem:[#allocation5 + $0x938] sm:$0xff]  ;;  %v92_v49 = vld [vmem:[#allocation5 + $0x130] sm:$0xff] }
 0x1ad   :  { %2005 = vmatprep.subr.mxu1 %v963_v50  ;;  %1935 = vmatpush2.msra.mxu0 %v706_v51  ;;  %v348_v50 = vld [vmem:[#allocation5 + $0x930] sm:$0xff]  ;;  %v85_v51 = vld [vmem:[#allocation5 + $0xf8] sm:$0xff] }
 0x1ae   :  { %2006 = vmatpush2.msra.mxu1 %v962_v53  ;;  %1936 = vmatprep.subr.mxu0 %v699_v54  ;;  %v341_v53 = vld [vmem:[#allocation5 + $0x8f8] sm:$0xff]  ;;  %v84_v54 = vld [vmem:[#allocation5 + $0xf0] sm:$0xff] }
 0x1af   :  { %2007 = vmatprep.subr.mxu1 %v955_v55  ;;  %1937 = vmatpush2.msra.mxu0 %v698_v56  ;;  %v340_v55 = vld [vmem:[#allocation5 + $0x8f0] sm:$0xff]  ;;  %v77_v56 = vld [vmem:[#allocation5 + $0xb8] sm:$0xff] }
 0x1b0   :  { %1938 = vmatprep.mubr.f32.mxu0 %v2612_v26  ;;  %2008 = vmatpush2.msra.mxu1 %v954_v57  ;;  %v333_v57 = vld [vmem:[#allocation5 + $0x8b8] sm:$0xff] }
 0x1b1   :  { %1939 = vmatmul.mubr.f32.vlgmr.msra.gmra.mxu0 %v2605_v16  ;;  %2009 = vmatprep.mubr.f32.mxu1 %v2616_v29 }
 0x1b2   :  { %2016 = vmatprep.subr.mxu0 %v181_v58  ;;  %2087 = vmatprep.subr.mxu1 %v437_v59  ;;  %v76_v58 = vld [vmem:[#allocation5 + $0xb0] sm:$0xff] }
 0x1b3   :  { %2010 = vmatmul.mubr.f32.vlgmr.msra.gmra.mxu1 %v2608_v21  ;;  %2017 = vmatpush1.msra.mxu0 %v180_v60  ;;  %v332_v59 = vld [vmem:[#allocation5 + $0x8b0] sm:$0xff]  ;;  %v69_v60 = vld [vmem:[#allocation5 + $0x78] sm:$0xff] }
 0x1b4   :  { %2088 = vmatpush1.msra.mxu1 %v436_v61  ;;  %2018 = vmatprep.subr.mxu0 %v173_v63  ;;  %v325_v61 = vld [vmem:[#allocation5 + $0x878] sm:$0xff]  ;;  %v68_v63 = vld [vmem:[#allocation5 + $0x70] sm:$0xff] }
 0x1b5   :  { %2089 = vmatprep.subr.mxu1 %v429_v0  ;;  %2019 = vmatpush1.msra.mxu0 %v172_v1  ;;  %v324_v0 = vld [vmem:[#allocation5 + $0x870] sm:$0xff]  ;;  %v61_v1 = vld [vmem:[#allocation5 + $0x38] sm:$0xff] }
 0x1b6   :  { %2090 = vmatpush1.msra.mxu1 %v428_v2  ;;  %2020 = vmatprep.subr.mxu0 %v165_v4  ;;  %v317_v2 = vld [vmem:[#allocation5 + $0x838] sm:$0xff]  ;;  %v60_v4 = vld [vmem:[#allocation5 + $0x30] sm:$0xff] }
 0x1b7   :  { %2091 = vmatprep.subr.mxu1 %v421_v5  ;;  %2021 = vmatpush1.msra.mxu0 %v164_v6  ;;  %v316_v5 = vld [vmem:[#allocation5 + $0x830] sm:$0xff]  ;;  %v309_v6 = vld [vmem:[#allocation5 + $0x7f8] sm:$0xff] }
 0x1b8   :  { %2092 = vmatpush1.msra.mxu1 %v420_v7  ;;  %2022 = vmatprep.subr.mxu0 %v157_v9  ;;  %v565_v7 = vld [vmem:[#allocation5 + $0xff8] sm:$0xff]  ;;  %v308_v9 = vld [vmem:[#allocation5 + $0x7f0] sm:$0xff] }
 0x1b9   :  { %2093 = vmatprep.subr.mxu1 %v413_v10  ;;  %2023 = vmatpush1.msra.mxu0 %v156_v12  ;;  %v564_v10 = vld [vmem:[#allocation5 + $0xff0] sm:$0xff]  ;;  %v301_v12 = vld [vmem:[#allocation5 + $0x7b8] sm:$0xff] }
 0x1ba   :  { %2094 = vmatpush1.msra.mxu1 %v412_v13  ;;  %2024 = vmatprep.subr.mxu0 %v149_v14  ;;  %v557_v13 = vld [vmem:[#allocation5 + $0xfb8] sm:$0xff]  ;;  %v300_v14 = vld [vmem:[#allocation5 + $0x7b0] sm:$0xff] }
 0x1bb   :  { %2095 = vmatprep.subr.mxu1 %v405_v15  ;;  %2025 = vmatpush1.msra.mxu0 %v148_v17  ;;  %v556_v15 = vld [vmem:[#allocation5 + $0xfb0] sm:$0xff]  ;;  %v1086_v17 = vsub.s32 1, %v2581_v41 }
 0x1bc   :  { %2096 = vmatpush1.msra.mxu1 %v404_v18  ;;  %2026 = vmatprep.subr.mxu0 %v141_v19  ;;  %v293_v18 = vld [vmem:[#allocation5 + $0x778] sm:$0xff] }
 0x1bd   :  { %2097 = vmatprep.subr.mxu1 %v397_v20  ;;  %2027 = vmatpush1.msra.mxu0 %v140_v22  ;;  %v549_v19 = vld [vmem:[#allocation5 + $0xf78] sm:$0xff]  ;;  %v2639_v20 = vld [vmem:[#allocation7] sm:$0xff]  ;;  %v1230_v22 = vpop.f32.mrf.mxu0 }
 0x1be   :  { %2098 = vmatpush1.msra.mxu1 %v396_v23  ;;  %2028 = vmatprep.subr.mxu0 %v133_v24  ;;  %v292_v23 = vld [vmem:[#allocation5 + $0x770] sm:$0xff] }
 0x1bf   :  { %2099 = vmatprep.subr.mxu1 %v389_v25  ;;  %2029 = vmatpush1.msra.mxu0 %v132_v27  ;;  %v548_v24 = vld [vmem:[#allocation5 + $0xf70] sm:$0xff]  ;;  %v1082_v25 = vsub.s32 0, %v2581_v41  ;;  %v285_v27 = vld [vmem:[#allocation5 + $0x738] sm:$0xff] }
 0x1c0   :  { %2100 = vmatpush1.msra.mxu1 %v388_v28  ;;  %2030 = vmatprep.subr.mxu0 %v125_v30  ;;  %v541_v28 = vld [vmem:[#allocation5 + $0xf38] sm:$0xff]  ;;  %v284_v30 = vld [vmem:[#allocation5 + $0x730] sm:$0xff] }
 0x1c1   :  { %2101 = vmatprep.subr.mxu1 %v381_v31  ;;  %2031 = vmatpush1.msra.mxu0 %v124_v32  ;;  %v540_v31 = vld [vmem:[#allocation5 + $0xf30] sm:$0xff]  ;;  %v1087_v32 = vrot.slane %v2639_v20, %v1086_v17 }
 0x1c2   :  { %2102 = vmatpush1.msra.mxu1 %v380_v33  ;;  %2032 = vmatprep.subr.mxu0 %v117_v34  ;;  %v277_v33 = vld [vmem:[#allocation5 + $0x6f8] sm:$0xff] }
 0x1c3   :  { %2103 = vmatprep.subr.mxu1 %v373_v35  ;;  %2033 = vmatpush1.msra.mxu0 %v116_v36  ;;  %v533_v34 = vld [vmem:[#allocation5 + $0xef8] sm:$0xff]  ;;  %v1301_v35 = vpop.f32.mrf.mxu1  ;;  %v1232_v36 = vpop.f32.mrf.mxu0 }
 0x1c4   :  { %2104 = vmatpush1.msra.mxu1 %v372_v37  ;;  %2034 = vmatprep.subr.mxu0 %v109_v38  ;;  %v276_v37 = vld [vmem:[#allocation5 + $0x6f0] sm:$0xff] }
 0x1c5   :  { %2105 = vmatprep.subr.mxu1 %v365_v39  ;;  %2035 = vmatpush1.msra.mxu0 %v108_v40  ;;  %v532_v38 = vld [vmem:[#allocation5 + $0xef0] sm:$0xff]  ;;  %v1083_v39 = vrot.slane %v2639_v20, %v1082_v25  ;;  %v269_v40 = vld [vmem:[#allocation5 + $0x6b8] sm:$0xff] }
 0x1c6   :  { %2106 = vmatpush1.msra.mxu1 %v364_v42  ;;  %2036 = vmatprep.subr.mxu0 %v101_v43  ;;  %v525_v42 = vld [vmem:[#allocation5 + $0xeb8] sm:$0xff]  ;;  %v1372_v43 = vpop.f32.mrf.mxu0 }
 0x1c7   :  { %2107 = vmatprep.subr.mxu1 %v357_v44  ;;  %2037 = vmatpush1.msra.mxu0 %v100_v45  ;;  %v268_v44 = vld [vmem:[#allocation5 + $0x6b0] sm:$0xff] }
 0x1c8   :  { %2108 = vmatpush1.msra.mxu1 %v356_v46  ;;  %2038 = vmatprep.subr.mxu0 %v93_v47  ;;  %v524_v45 = vld [vmem:[#allocation5 + $0xeb0] sm:$0xff]  ;;  %v1233_v46 = vadd.f32 %v1232_v36, %v1087_v32  ;;  %v261_v47 = vld [vmem:[#allocation5 + $0x678] sm:$0xff] }
 0x1c9   :  { %2109 = vmatprep.subr.mxu1 %v349_v48  ;;  %2039 = vmatpush1.msra.mxu0 %v92_v49  ;;  %v517_v48 = vld [vmem:[#allocation5 + $0xe78] sm:$0xff]  ;;  %v1303_v49 = vpop.f32.mrf.mxu1  ;;  %v220_v32 = vld [vmem:[#allocation5 + $0x530] sm:$0xff] }
 0x1ca   :  { %2110 = vmatpush1.msra.mxu1 %v348_v50  ;;  %2040 = vmatprep.subr.mxu0 %v85_v51  ;;  %v260_v50 = vld [vmem:[#allocation5 + $0x670] sm:$0xff]  ;;  %v213_v36 = vld [vmem:[#allocation5 + $0x4f8] sm:$0xff] }
 0x1cb   :  { %2111 = vmatprep.subr.mxu1 %v341_v53  ;;  %2041 = vmatpush1.msra.mxu0 %v84_v54  ;;  %v516_v51 = vld [vmem:[#allocation5 + $0xe70] sm:$0xff]  ;;  %v1231_v53 = vadd.f32 %v1230_v22, %v1083_v39  ;;  %v253_v54 = vld [vmem:[#allocation5 + $0x638] sm:$0xff] }
 0x1cc   :  { %2112 = vmatpush1.msra.mxu1 %v340_v55  ;;  %2042 = vmatprep.subr.mxu0 %v77_v56  ;;  %v509_v55 = vld [vmem:[#allocation5 + $0xe38] sm:$0xff]  ;;  %v1443_v56 = vpop.f32.mrf.mxu1  ;;  %v228_v22 = vld [vmem:[#allocation5 + $0x570] sm:$0xff] }
 0x1cd   :  { %2113 = vmatprep.subr.mxu1 %v333_v57  ;;  %2043 = vmatpush1.msra.mxu0 %v76_v58  ;;  %v1374_v57 = vpop.f32.mrf.mxu0  ;;  %v252_v58 = vld [vmem:[#allocation5 + $0x630] sm:$0xff] }
 0x1ce   :  { %2114 = vmatpush1.msra.mxu1 %v332_v59  ;;  %2044 = vmatprep.subr.mxu0 %v69_v60  ;;  %v508_v59 = vld [vmem:[#allocation5 + $0xe30] sm:$0xff]  ;;  %v1304_v60 = vadd.f32 %v1303_v49, %v1233_v46 }
 0x1cf   :  { %2115 = vmatprep.subr.mxu1 %v325_v61  ;;  %2045 = vmatpush1.msra.mxu0 %v68_v63  ;;  %v1090_v61 = vsub.s32 2, %v2581_v41  ;;  %v245_v63 = vld [vmem:[#allocation5 + $0x5f8] sm:$0xff]  ;;  %v468_v39 = vld [vmem:[#allocation5 + $0xcf0] sm:$0xff] }
 0x1d0   :  { %2116 = vmatpush1.msra.mxu1 %v324_v0  ;;  %2046 = vmatprep.subr.mxu0 %v61_v1  ;;  %v501_v0 = vld [vmem:[#allocation5 + $0xdf8] sm:$0xff]  ;;  %v244_v1 = vld [vmem:[#allocation5 + $0x5f0] sm:$0xff] }
 0x1d1   :  { %2117 = vmatprep.subr.mxu1 %v317_v2  ;;  %2047 = vmatpush1.msra.mxu0 %v60_v4  ;;  %v500_v2 = vld [vmem:[#allocation5 + $0xdf0] sm:$0xff]  ;;  %v1302_v4 = vadd.f32 %v1301_v35, %v1231_v53  ;;  %v1091_v17 = vrot.slane %v2639_v20, %v1090_v61 }
 0x1d2   :  { %2118 = vmatpush1.msra.mxu1 %v316_v5  ;;  %2048 = vmatprep.subr.mxu0 %v309_v6  ;;  %v1375_v5 = vadd.f32 %v1374_v57, %v1304_v60  ;;  %v1094_v6 = vsub.s32 3, %v2581_v41  ;;  %v204_v46 = vld [vmem:[#allocation5 + $0x4b0] sm:$0xff]  ;;  %v189_v57 = vld [vmem:[#allocation5 + $0x438] sm:$0xff] }
 0x1d3   :  { %2119 = vmatprep.subr.mxu1 %v565_v7  ;;  %2049 = vmatpush2.msra.mxu0 %v308_v9  ;;  %v237_v7 = vld [vmem:[#allocation5 + $0x5b8] sm:$0xff]  ;;  %v196_v53 = vld [vmem:[#allocation5 + $0x470] sm:$0xff] }
 0x1d4   :  { %2120 = vmatpush2.msra.mxu1 %v564_v10  ;;  %2050 = vmatprep.subr.mxu0 %v301_v12  ;;  %v493_v9 = vld [vmem:[#allocation5 + $0xdb8] sm:$0xff]  ;;  %v1445_v10 = vpop.f32.mrf.mxu1  ;;  %v1514_v12 = vpop.f32.mrf.mxu0  ;;  %v1095_v25 = vrot.slane %v2639_v20, %v1094_v6  ;;  %v188_v60 = vld [vmem:[#allocation5 + $0x430] sm:$0xff] }
 0x1d5   :  { %2121 = vmatprep.subr.mxu1 %v557_v13  ;;  %2051 = vmatpush2.msra.mxu0 %v300_v14  ;;  %v236_v13 = vld [vmem:[#allocation5 + $0x5b0] sm:$0xff]  ;;  %v1515_v35 = vadd.f32 %v1514_v12, %v1091_v17  ;;  %v949_v6 = vld [vmem:[#allocation5 + $0x1bf8] sm:$0xff] }
 0x1d6   :  { %2122 = vmatpush2.msra.mxu1 %v556_v15  ;;  %2052 = vmatprep.subr.mxu0 %v293_v18  ;;  %v492_v14 = vld [vmem:[#allocation5 + $0xdb0] sm:$0xff]  ;;  %v1373_v15 = vadd.f32 %v1372_v43, %v1302_v4  ;;  %v229_v18 = vld [vmem:[#allocation5 + $0x578] sm:$0xff] }
 0x1d7   :  { %2123 = vmatprep.subr.mxu1 %v549_v19  ;;  %2053 = vmatpush2.msra.mxu0 %v292_v23  ;;  %v485_v19 = vld [vmem:[#allocation5 + $0xd78] sm:$0xff]  ;;  %v484_v23 = vld [vmem:[#allocation5 + $0xd70] sm:$0xff] }
 0x1d8   :  { %2124 = vmatpush2.msra.mxu1 %v548_v24  ;;  %2054 = vmatprep.subr.mxu0 %v285_v27  ;;  %v1446_v24 = vadd.f32 %v1445_v10, %v1375_v5  ;;  %v221_v27 = vld [vmem:[#allocation5 + $0x538] sm:$0xff]  ;;  %v692_v10 = vld [vmem:[#allocation5 + $0x13f0] sm:$0xff] }
 0x1d9   :  { %2125 = vmatprep.subr.mxu1 %v541_v28  ;;  %2055 = vmatpush2.msra.mxu0 %v284_v30  ;;  %v477_v28 = vld [vmem:[#allocation5 + $0xd38] sm:$0xff]  ;;  %v1585_v30 = vpop.f32.mrf.mxu1  ;;  %v948_v12 = vld [vmem:[#allocation5 + $0x1bf0] sm:$0xff] }
 0x1da   :  { %2126 = vmatpush2.msra.mxu1 %v540_v31  ;;  %2056 = vmatprep.subr.mxu0 %v277_v33  ;;  %v1516_v31 = vpop.f32.mrf.mxu0  ;;  %v476_v33 = vld [vmem:[#allocation5 + $0xd30] sm:$0xff]  ;;  %v205_v43 = vld [vmem:[#allocation5 + $0x4b8] sm:$0xff]  ;;  %v1586_v49 = vadd.f32 %v1585_v30, %v1515_v35 }
 0x1db   :  { %2127 = vmatprep.subr.mxu1 %v533_v34  ;;  %2057 = vmatpush2.msra.mxu0 %v276_v37  ;;  %v1444_v34 = vadd.f32 %v1443_v56, %v1373_v15  ;;  %v469_v37 = vld [vmem:[#allocation5 + $0xcf8] sm:$0xff]  ;;  %v684_v17 = vld [vmem:[#allocation5 + $0x13b0] sm:$0xff] }
 0x1dc   :  { %2128 = vmatpush2.msra.mxu1 %v532_v38  ;;  %2058 = vmatprep.subr.mxu0 %v269_v40  ;;  %v212_v38 = vld [vmem:[#allocation5 + $0x4f0] sm:$0xff]  ;;  %v2411_v40 = vmul.f32 -1.442695, %v1446_v24  ;;  %v693_v4 = vld [vmem:[#allocation5 + $0x13f8] sm:$0xff] }
 0x1dd   :  { %2129 = vmatprep.subr.mxu1 %v525_v42  ;;  %2059 = vmatpush2.msra.mxu0 %v268_v44  ;;  %v1517_v42 = vadd.f32 %v1516_v31, %v1095_v25  ;;  %v461_v44 = vld [vmem:[#allocation5 + $0xcb8] sm:$0xff]  ;;  %v668_v24 = vld [vmem:[#allocation5 + $0x1330] sm:$0xff] }
 0x1de   :  { %2130 = vmatpush2.msra.mxu1 %v524_v45  ;;  %2060 = vmatprep.subr.mxu0 %v261_v47  ;;  %v1587_v45 = vpop.f32.mrf.mxu1  ;;  %v460_v47 = vld [vmem:[#allocation5 + $0xcb0] sm:$0xff]  ;;  %2427 = vpow2.f32 %v2411_v40 }
 0x1df   :  { %2131 = vmatprep.subr.mxu1 %v517_v48  ;;  %2061 = vmatpush2.msra.mxu0 %v260_v50  ;;  %v2410_v48 = vmul.f32 -1.442695, %v1444_v34  ;;  %v197_v50 = vld [vmem:[#allocation5 + $0x478] sm:$0xff]  ;;  %v1588_v56 = vadd.f32 %v1587_v45, %v1517_v42  ;;  %v924_v25 = vld [vmem:[#allocation5 + $0x1b30] sm:$0xff] }
 0x1e0   :  { %2132 = vmatpush2.msra.mxu1 %v516_v51  ;;  %2062 = vmatprep.subr.mxu0 %v253_v54  ;;  %v453_v51 = vld [vmem:[#allocation5 + $0xc78] sm:$0xff]  ;;  %v452_v54 = vld [vmem:[#allocation5 + $0xc70] sm:$0xff] }
 0x1e1   :  { %2133 = vmatprep.subr.mxu1 %v509_v55  ;;  %2063 = vmatpush2.msra.mxu0 %v252_v58  ;;  %v445_v58 = vld [vmem:[#allocation5 + $0xc38] sm:$0xff]  ;;  %2429 = vpow2.f32 %v2410_v48  ;;  %v660_v30 = vld [vmem:[#allocation5 + $0x12f0] sm:$0xff] }
 0x1e2   :  { %2134 = vmatpush2.msra.mxu1 %v508_v59  ;;  %2064 = vmatprep.subr.mxu0 %v245_v63  ;;  %v916_v31 = vld [vmem:[#allocation5 + $0x1af0] sm:$0xff]  ;;  %v893_v45 = vld [vmem:[#allocation5 + $0x1a38] sm:$0xff] }
 0x1e3   :  { %2135 = vmatprep.subr.mxu1 %v501_v0  ;;  %2065 = vmatpush2.msra.mxu0 %v244_v1  ;;  %v444_v0 = vld [vmem:[#allocation5 + $0xc30] sm:$0xff] }
 0x1e4   :  { %2136 = vmatpush2.msra.mxu1 %v500_v2  ;;  %2066 = vmatprep.subr.mxu0 %v237_v7  ;;  %v652_v35 = vld [vmem:[#allocation5 + $0x12b0] sm:$0xff] }
 0x1e5   :  { %2137 = vmatprep.subr.mxu1 %v493_v9  ;;  %2067 = vmatpush2.msra.mxu0 %v236_v13  ;;  %v685_v13 = vld [vmem:[#allocation5 + $0x13b8] sm:$0xff]  ;;  %v644_v40 = vld [vmem:[#allocation5 + $0x1270] sm:$0xff] }
 0x1e6   :  { %2138 = vmatpush2.msra.mxu1 %v492_v14  ;;  %2068 = vmatprep.subr.mxu0 %v229_v18  ;;  %v941_v14 = vld [vmem:[#allocation5 + $0x1bb8] sm:$0xff]  ;;  %v900_v42 = vld [vmem:[#allocation5 + $0x1a70] sm:$0xff] }
 0x1e7   :  { %2139 = vmatprep.subr.mxu1 %v485_v19  ;;  %2069 = vmatpush2.msra.mxu0 %v228_v22  ;;  %v677_v18 = vld [vmem:[#allocation5 + $0x1378] sm:$0xff]  ;;  %v932_v22 = vld [vmem:[#allocation5 + $0x1b70] sm:$0xff] }
 0x1e8   :  { %2140 = vmatpush2.msra.mxu1 %v484_v23  ;;  %2070 = vmatprep.subr.mxu0 %v221_v27  ;;  %v933_v19 = vld [vmem:[#allocation5 + $0x1b78] sm:$0xff]  ;;  %v892_v48 = vld [vmem:[#allocation5 + $0x1a30] sm:$0xff] }
 0x1e9   :  { %2141 = vmatprep.subr.mxu1 %v477_v28  ;;  %2071 = vmatpush2.msra.mxu0 %v220_v32  ;;  %v925_v23 = vld [vmem:[#allocation5 + $0x1b38] sm:$0xff] }
 0x1ea   :  { %2142 = vmatpush2.msra.mxu1 %v476_v33  ;;  %2072 = vmatprep.subr.mxu0 %v213_v36  ;;  %v917_v27 = vld [vmem:[#allocation5 + $0x1af8] sm:$0xff]  ;;  %v908_v36 = vld [vmem:[#allocation5 + $0x1ab0] sm:$0xff] }
 0x1eb   :  { %2143 = vmatprep.subr.mxu1 %v469_v37  ;;  %2073 = vmatpush2.msra.mxu0 %v212_v38  ;;  %v2428_v28 = vpop.eup %2427  ;;  %v653_v32 = vld [vmem:[#allocation5 + $0x12b8] sm:$0xff] }
 0x1ec   :  { %2144 = vmatpush2.msra.mxu1 %v468_v39  ;;  %2074 = vmatprep.subr.mxu0 %v205_v43  ;;  %v909_v33 = vld [vmem:[#allocation5 + $0x1ab8] sm:$0xff]  ;;  %v2325_v37 = vadd.f32 1.0, %v2428_v28 }
 0x1ed   :  { %2145 = vmatprep.subr.mxu1 %v461_v44  ;;  %v1656_v55 = vpop.f32.mrf.mxu0  ;;  %2075 = vmatpush2.msra.mxu0 %v204_v46  ;;  %v645_v38 = vld [vmem:[#allocation5 + $0x1278] sm:$0xff] }
 0x1ee   :  { %2146 = vmatpush2.msra.mxu1 %v460_v47  ;;  %v1657_v59 = vadd.f32 %v1656_v55, %v1586_v49  ;;  %2076 = vmatprep.subr.mxu0 %v197_v50  ;;  %v2430_v34 = vpop.eup %2429  ;;  %v901_v39 = vld [vmem:[#allocation5 + $0x1a78] sm:$0xff]  ;;  %v636_v47 = vld [vmem:[#allocation5 + $0x1230] sm:$0xff] }
 0x1ef   :  { %2147 = vmatprep.subr.mxu1 %v453_v51  ;;  %v1727_v61 = vpop.f32.mrf.mxu1  ;;  %v1658_v63 = vpop.f32.mrf.mxu0  ;;  %2077 = vmatpush2.msra.mxu0 %v196_v53  ;;  %v2324_v43 = vadd.f32 1.0, %v2430_v34  ;;  %v637_v44 = vld [vmem:[#allocation5 + $0x1238] sm:$0xff]  ;;  %v884_v55 = vld [vmem:[#allocation5 + $0x19f0] sm:$0xff] }
 0x1f0   :  { %2148 = vmatpush2.msra.mxu1 %v452_v54  ;;  %v1728_v1 = vadd.f32 %v1727_v61, %v1657_v59  ;;  %v1659_v2 = vadd.f32 %v1658_v63, %v1588_v56  ;;  %2078 = vmatprep.subr.mxu0 %v189_v57  ;;  %v629_v50 = vld [vmem:[#allocation5 + $0x11f8] sm:$0xff]  ;;  %v628_v54 = vld [vmem:[#allocation5 + $0x11f0] sm:$0xff] }
 0x1f1   :  { %2149 = vmatprep.subr.mxu1 %v445_v58  ;;  %v1729_v5 = vpop.f32.mrf.mxu1  ;;  %2079 = vmatpush2.msra.mxu0 %v188_v60  ;;  %v885_v51 = vld [vmem:[#allocation5 + $0x19f8] sm:$0xff]  ;;  %v620_v59 = vld [vmem:[#allocation5 + $0x11b0] sm:$0xff] }
 0x1f2   :  { %2080 = vmatprep.mubr.f32.mxu0 %v2594_v8  ;;  %v2412_v7 = vmul.f32 -1.442695, %v1728_v1  ;;  %v1730_v9 = vadd.f32 %v1729_v5, %v1659_v2  ;;  %2150 = vmatpush2.msra.mxu1 %v444_v0  ;;  %v940_v8 = vld [vmem:[#allocation5 + $0x1bb0] sm:$0xff]  ;;  %v621_v57 = vld [vmem:[#allocation5 + $0x11b8] sm:$0xff] }
 0x1f3   :  { %2081 = vmatmul.mubr.f32.vlgmr.msra.gmra.mxu0 %v2587_v62  ;;  %2151 = vmatprep.mubr.f32.mxu1 %v2598_v11  ;;  %v676_v62 = vld [vmem:[#allocation5 + $0x1370] sm:$0xff]  ;;  %v669_v11 = vld [vmem:[#allocation5 + $0x1338] sm:$0xff] }
 0x1f4   :  { %2158 = vmatprep.subr.mxu0 %v693_v4  ;;  %2431 = vpow2.f32 %v2412_v7  ;;  %v2413_v15 = vmul.f32 -1.442695, %v1730_v9  ;;  %2229 = vmatprep.subr.mxu1 %v949_v6  ;;  %v877_v58 = vld [vmem:[#allocation5 + $0x19b8] sm:$0xff]  ;;  %v876_v60 = vld [vmem:[#allocation5 + $0x19b0] sm:$0xff] }
 0x1f5   :  { %2152 = vmatmul.mubr.f32.vlgmr.msra.gmra.mxu1 %v2590_v3  ;;  %2159 = vmatpush1.msra.mxu0 %v692_v10  ;;  %v661_v3 = vld [vmem:[#allocation5 + $0x12f8] sm:$0xff]  ;;  %v612_v0 = vld [vmem:[#allocation5 + $0x1170] sm:$0xff] }
 0x1f6   :  { %2230 = vmatpush1.msra.mxu1 %v948_v12  ;;  %2433 = vpow2.f32 %v2413_v15  ;;  %2160 = vmatprep.subr.mxu0 %v685_v13  ;;  %v613_v61 = vld [vmem:[#allocation5 + $0x1178] sm:$0xff]  ;;  %v868_v1 = vld [vmem:[#allocation5 + $0x1970] sm:$0xff] }
 0x1f7   :  { %2231 = vmatprep.subr.mxu1 %v941_v14  ;;  %2161 = vmatpush1.msra.mxu0 %v684_v17  ;;  %2435 = vrcp.f32 %v2325_v37  ;;  %v869_v63 = vld [vmem:[#allocation5 + $0x1978] sm:$0xff]  ;;  %v604_v5 = vld [vmem:[#allocation5 + $0x1130] sm:$0xff] }
 0x1f8   :  { %2232 = vmatpush1.msra.mxu1 %v940_v8  ;;  %2162 = vmatprep.subr.mxu0 %v677_v18  ;;  %2437 = vrcp.f32 %v2324_v43  ;;  %v605_v2 = vld [vmem:[#allocation5 + $0x1138] sm:$0xff]  ;;  %v860_v6 = vld [vmem:[#allocation5 + $0x1930] sm:$0xff] }
 0x1f9   :  { %2233 = vmatprep.subr.mxu1 %v933_v19  ;;  %2163 = vmatpush1.msra.mxu0 %v676_v62  ;;  %v861_v4 = vld [vmem:[#allocation5 + $0x1938] sm:$0xff]  ;;  %v596_v10 = vld [vmem:[#allocation5 + $0x10f0] sm:$0xff] }
 0x1fa   :  { %2234 = vmatpush1.msra.mxu1 %v932_v22  ;;  %2164 = vmatprep.subr.mxu0 %v669_v11  ;;  %v597_v7 = vld [vmem:[#allocation5 + $0x10f8] sm:$0xff]  ;;  %v852_v12 = vld [vmem:[#allocation5 + $0x18f0] sm:$0xff] }
 0x1fb   :  { %2235 = vmatprep.subr.mxu1 %v925_v23  ;;  %2165 = vmatpush1.msra.mxu0 %v668_v24  ;;  %v853_v9 = vld [vmem:[#allocation5 + $0x18f8] sm:$0xff]  ;;  %v588_v15 = vld [vmem:[#allocation5 + $0x10b0] sm:$0xff] }
 0x1fc   :  { %2236 = vmatpush1.msra.mxu1 %v924_v25  ;;  %2166 = vmatprep.subr.mxu0 %v661_v3  ;;  %v589_v13 = vld [vmem:[#allocation5 + $0x10b8] sm:$0xff]  ;;  %v844_v17 = vld [vmem:[#allocation5 + $0x18b0] sm:$0xff] }
 0x1fd   :  { %2237 = vmatprep.subr.mxu1 %v917_v27  ;;  %2167 = vmatpush1.msra.mxu0 %v660_v30  ;;  %v845_v14 = vld [vmem:[#allocation5 + $0x18b8] sm:$0xff]  ;;  %v580_v62 = vld [vmem:[#allocation5 + $0x1070] sm:$0xff] }
 0x1fe   :  { %2238 = vmatpush1.msra.mxu1 %v916_v31  ;;  %2168 = vmatprep.subr.mxu0 %v653_v32  ;;  %v581_v8 = vld [vmem:[#allocation5 + $0x1078] sm:$0xff]  ;;  %v836_v22 = vld [vmem:[#allocation5 + $0x1870] sm:$0xff] }
 0x1ff   :  { %2239 = vmatprep.subr.mxu1 %v909_v33  ;;  %2169 = vmatpush1.msra.mxu0 %v652_v35  ;;  %v837_v18 = vld [vmem:[#allocation5 + $0x1878] sm:$0xff]  ;;  %v572_v25 = vld [vmem:[#allocation5 + $0x1030] sm:$0xff] }
 0x200   :  { %2240 = vmatpush1.msra.mxu1 %v908_v36  ;;  %2170 = vmatprep.subr.mxu0 %v645_v38  ;;  %v573_v11 = vld [vmem:[#allocation5 + $0x1038] sm:$0xff]  ;;  %v828_v3 = vld [vmem:[#allocation5 + $0x1830] sm:$0xff] }
 0x201   :  { %v2432_v46 = vpop.eup %2431  ;;  %2241 = vmatprep.subr.mxu1 %v901_v39  ;;  %2171 = vmatpush1.msra.mxu0 %v644_v40  ;;  %v829_v23 = vld [vmem:[#allocation5 + $0x1838] sm:$0xff]  ;;  %v820_v33 = vld [vmem:[#allocation5 + $0x17f0] sm:$0xff] }
 0x202   :  { %v2326_v49 = vadd.f32 1.0, %v2432_v46  ;;  %2242 = vmatpush1.msra.mxu1 %v900_v42  ;;  %2172 = vmatprep.subr.mxu0 %v637_v44  ;;  %v821_v28 = vld [vmem:[#allocation5 + $0x17f8] sm:$0xff]  ;;  %v1076_v34 = vld [vmem:[#allocation5 + $0x1ff0] sm:$0xff] }
 0x203   :  { %v2434_v53 = vpop.eup %2433  ;;  %2243 = vmatprep.subr.mxu1 %v893_v45  ;;  %2173 = vmatpush1.msra.mxu0 %v636_v47  ;;  %v1077_v30 = vld [vmem:[#allocation5 + $0x1ff8] sm:$0xff]  ;;  %v812_v38 = vld [vmem:[#allocation5 + $0x17b0] sm:$0xff] }
 0x204   :  { %v2327_v56 = vadd.f32 1.0, %v2434_v53  ;;  %2244 = vmatpush1.msra.mxu1 %v892_v48  ;;  %2439 = vrcp.f32 %v2326_v49  ;;  %2174 = vmatprep.subr.mxu0 %v629_v50  ;;  %v2436_v19 = vpop.eup %2435  ;;  %v813_v35 = vld [vmem:[#allocation5 + $0x17b8] sm:$0xff]  ;;  %v1068_v39 = vld [vmem:[#allocation5 + $0x1fb0] sm:$0xff] }
 0x205   :  { %2245 = vmatprep.subr.mxu1 %v885_v51  ;;  %2175 = vmatpush1.msra.mxu0 %v628_v54  ;;  %v2438_v24 = vpop.eup %2437  ;;  %v1069_v36 = vld [vmem:[#allocation5 + $0x1fb8] sm:$0xff]  ;;  %v804_v45 = vld [vmem:[#allocation5 + $0x1770] sm:$0xff] }
 0x206   :  { %2441 = vrcp.f32 %v2327_v56  ;;  %2246 = vmatpush1.msra.mxu1 %v884_v55  ;;  %2176 = vmatprep.subr.mxu0 %v621_v57  ;;  %v2356_v31 = vcombine.low %v2438_v24, %v2436_v19  ;;  %v805_v40 = vld [vmem:[#allocation5 + $0x1778] sm:$0xff]  ;;  %v1060_v46 = vld [vmem:[#allocation5 + $0x1f70] sm:$0xff] }
 0x207   :  { %2247 = vmatprep.subr.mxu1 %v877_v58  ;;  %2177 = vmatpush1.msra.mxu0 %v620_v59  ;;  %v1061_v42 = vld [vmem:[#allocation5 + $0x1f78] sm:$0xff]  ;;  %v796_v50 = vld [vmem:[#allocation5 + $0x1730] sm:$0xff] }
 0x208   :  { %2248 = vmatpush1.msra.mxu1 %v876_v60  ;;  %2178 = vmatprep.subr.mxu0 %v613_v61  ;;  %v2364_v43 = vrot.slane %v2356_v31, %v2584_v52  ;;  %v797_v47 = vld [vmem:[#allocation5 + $0x1738] sm:$0xff]  ;;  %v1052_v51 = vld [vmem:[#allocation5 + $0x1f30] sm:$0xff] }
 0x209   :  { %2249 = vmatprep.subr.mxu1 %v869_v63  ;;  %2179 = vmatpush1.msra.mxu0 %v612_v0  ;;  %v1053_v48 = vld [vmem:[#allocation5 + $0x1f38] sm:$0xff]  ;;  %v788_v55 = vld [vmem:[#allocation5 + $0x16f0] sm:$0xff] }
 0x20a   :  { %2250 = vmatpush1.msra.mxu1 %v868_v1  ;;  %2180 = vmatprep.subr.mxu0 %v605_v2  ;;  %v789_v53 = vld [vmem:[#allocation5 + $0x16f8] sm:$0xff]  ;;  %v1044_v56 = vld [vmem:[#allocation5 + $0x1ef0] sm:$0xff] }
 0x20b   :  { %2251 = vmatprep.subr.mxu1 %v861_v4  ;;  %2181 = vmatpush1.msra.mxu0 %v604_v5  ;;  %v1045_v54 = vld [vmem:[#allocation5 + $0x1ef8] sm:$0xff]  ;;  %v780_v59 = vld [vmem:[#allocation5 + $0x16b0] sm:$0xff] }
 0x20c   :  { %2252 = vmatpush1.msra.mxu1 %v860_v6  ;;  %2182 = vmatprep.subr.mxu0 %v597_v7  ;;  %v781_v57 = vld [vmem:[#allocation5 + $0x16b8] sm:$0xff]  ;;  %v1036_v60 = vld [vmem:[#allocation5 + $0x1eb0] sm:$0xff] }
 0x20d   :  { %2253 = vmatprep.subr.mxu1 %v853_v9  ;;  %2183 = vmatpush1.msra.mxu0 %v596_v10  ;;  %v1037_v58 = vld [vmem:[#allocation5 + $0x1eb8] sm:$0xff]  ;;  %v772_v0 = vld [vmem:[#allocation5 + $0x1670] sm:$0xff] }
 0x20e   :  { %2254 = vmatpush1.msra.mxu1 %v852_v12  ;;  %2184 = vmatprep.subr.mxu0 %v589_v13  ;;  %v773_v61 = vld [vmem:[#allocation5 + $0x1678] sm:$0xff]  ;;  %v1028_v1 = vld [vmem:[#allocation5 + $0x1e70] sm:$0xff] }
 0x20f   :  { %2255 = vmatprep.subr.mxu1 %v845_v14  ;;  %2185 = vmatpush1.msra.mxu0 %v588_v15  ;;  %v1029_v63 = vld [vmem:[#allocation5 + $0x1e78] sm:$0xff]  ;;  %v764_v5 = vld [vmem:[#allocation5 + $0x1630] sm:$0xff] }
 0x210   :  { %2256 = vmatpush1.msra.mxu1 %v844_v17  ;;  %2186 = vmatprep.subr.mxu0 %v581_v8  ;;  %v765_v2 = vld [vmem:[#allocation5 + $0x1638] sm:$0xff]  ;;  %v1020_v6 = vld [vmem:[#allocation5 + $0x1e30] sm:$0xff] }
 0x211   :  { %2257 = vmatprep.subr.mxu1 %v837_v18  ;;  %v2440_v27 = vpop.eup %2439  ;;  %2187 = vmatpush1.msra.mxu0 %v580_v62  ;;  %v1021_v4 = vld [vmem:[#allocation5 + $0x1e38] sm:$0xff]  ;;  %v756_v10 = vld [vmem:[#allocation5 + $0x15f0] sm:$0xff] }
 0x212   :  { %2258 = vmatpush1.msra.mxu1 %v836_v22  ;;  %2188 = vmatprep.subr.mxu0 %v573_v11  ;;  %v757_v7 = vld [vmem:[#allocation5 + $0x15f8] sm:$0xff]  ;;  %v1012_v12 = vld [vmem:[#allocation5 + $0x1df0] sm:$0xff] }
 0x213   :  { %v2442_v32 = vpop.eup %2441  ;;  %2259 = vmatprep.subr.mxu1 %v829_v23  ;;  %2189 = vmatpush1.msra.mxu0 %v572_v25  ;;  %v1013_v9 = vld [vmem:[#allocation5 + $0x1df8] sm:$0xff]  ;;  %v748_v15 = vld [vmem:[#allocation5 + $0x15b0] sm:$0xff] }
 0x214   :  { %2260 = vmatpush1.msra.mxu1 %v828_v3  ;;  %v2357_v37 = vcombine.low %v2440_v27, %v2442_v32  ;;  %2190 = vmatprep.subr.mxu0 %v821_v28  ;;  %v749_v13 = vld [vmem:[#allocation5 + $0x15b8] sm:$0xff]  ;;  %v1004_v17 = vld [vmem:[#allocation5 + $0x1db0] sm:$0xff] }
 0x215   :  { %2261 = vmatprep.subr.mxu1 %v1077_v30  ;;  %2191 = vmatpush2.msra.mxu0 %v820_v33  ;;  %v1005_v14 = vld [vmem:[#allocation5 + $0x1db8] sm:$0xff]  ;;  %v740_v19 = vld [vmem:[#allocation5 + $0x1570] sm:$0xff] }
 0x216   :  { %2262 = vmatpush2.msra.mxu1 %v1076_v34  ;;  %v2371_v44 = vrot.slane %v2357_v37, %v2584_v52  ;;  %2192 = vmatprep.subr.mxu0 %v813_v35  ;;  %v741_v8 = vld [vmem:[#allocation5 + $0x1578] sm:$0xff]  ;;  %v996_v62 = vld [vmem:[#allocation5 + $0x1d70] sm:$0xff] }
 0x217   :  { %2263 = vmatprep.subr.mxu1 %v1069_v36  ;;  %2193 = vmatpush2.msra.mxu0 %v812_v38  ;;  %v997_v18 = vld [vmem:[#allocation5 + $0x1d78] sm:$0xff]  ;;  %v732_v23 = vld [vmem:[#allocation5 + $0x1530] sm:$0xff] }
 0x218   :  { %2264 = vmatpush2.msra.mxu1 %v1068_v39  ;;  %v2372_v49 = vcombine.low %v2364_v43, %v2371_v44  ;;  %2194 = vmatprep.subr.mxu0 %v805_v40  ;;  %v733_v22 = vld [vmem:[#allocation5 + $0x1538] sm:$0xff]  ;;  %v988_v24 = vld [vmem:[#allocation5 + $0x1d30] sm:$0xff]  ;;  %v1102_v43 = vsub.s32 5, %v2581_v41 }
 0x219   :  { %2265 = vmatprep.subr.mxu1 %v1061_v42  ;;  %2195 = vmatpush2.msra.mxu0 %v804_v45  ;;  %v989_v11 = vld [vmem:[#allocation5 + $0x1d38] sm:$0xff]  ;;  %v724_v27 = vld [vmem:[#allocation5 + $0x14f0] sm:$0xff]  ;;  %v1098_v45 = vsub.s32 4, %v2581_v41 }
 0x21a   :  { %2266 = vmatpush2.msra.mxu1 %v1060_v46  ;;  %2392 = vst [vmem:[#allocation8] sm:$0xff] %v2372_v49  ;;  %2196 = vmatprep.subr.mxu0 %v797_v47  ;;  %v725_v25 = vld [vmem:[#allocation5 + $0x14f8] sm:$0xff]  ;;  %v980_v28 = vld [vmem:[#allocation5 + $0x1cf0] sm:$0xff]  ;;  %v1103_v46 = vrot.slane %v2639_v20, %v1102_v43 }
 0x21b   :  { %2267 = vmatprep.subr.mxu1 %v1053_v48  ;;  %2197 = vmatpush2.msra.mxu0 %v796_v50  ;;  %v981_v3 = vld [vmem:[#allocation5 + $0x1cf8] sm:$0xff]  ;;  %v716_v32 = vld [vmem:[#allocation5 + $0x14b0] sm:$0xff]  ;;  %v1099_v49 = vrot.slane %v2639_v20, %v1098_v45 }
 0x21c   :  { %2268 = vmatpush2.msra.mxu1 %v1052_v51  ;;  %2198 = vmatprep.subr.mxu0 %v789_v53  ;;  %v717_v30 = vld [vmem:[#allocation5 + $0x14b8] sm:$0xff]  ;;  %v972_v33 = vld [vmem:[#allocation5 + $0x1cb0] sm:$0xff] }
 0x21d   :  { %2269 = vmatprep.subr.mxu1 %v1045_v54  ;;  %2199 = vmatpush2.msra.mxu0 %v788_v55  ;;  %v973_v31 = vld [vmem:[#allocation5 + $0x1cb8] sm:$0xff]  ;;  %v708_v36 = vld [vmem:[#allocation5 + $0x1470] sm:$0xff] }
 0x21e   :  { %2270 = vmatpush2.msra.mxu1 %v1044_v56  ;;  %2200 = vmatprep.subr.mxu0 %v781_v57  ;;  %v709_v34 = vld [vmem:[#allocation5 + $0x1478] sm:$0xff]  ;;  %v964_v37 = vld [vmem:[#allocation5 + $0x1c70] sm:$0xff]  ;;  %v1110_v57 = vsub.s32 7, %v2581_v41 }
 0x21f   :  { %2271 = vmatprep.subr.mxu1 %v1037_v58  ;;  %2201 = vmatpush2.msra.mxu0 %v780_v59  ;;  %v965_v35 = vld [vmem:[#allocation5 + $0x1c78] sm:$0xff]  ;;  %v700_v40 = vld [vmem:[#allocation5 + $0x1430] sm:$0xff] }
 0x220   :  { %2272 = vmatpush2.msra.mxu1 %v1036_v60  ;;  %2202 = vmatprep.subr.mxu0 %v773_v61  ;;  %v701_v38 = vld [vmem:[#allocation5 + $0x1438] sm:$0xff]  ;;  %v956_v42 = vld [vmem:[#allocation5 + $0x1c30] sm:$0xff] }
 0x221   :  { %2273 = vmatprep.subr.mxu1 %v1029_v63  ;;  %2203 = vmatpush2.msra.mxu0 %v772_v0  ;;  %v957_v39 = vld [vmem:[#allocation5 + $0x1c38] sm:$0xff]  ;;  %v1111_v0 = vrot.slane %v2639_v20, %v1110_v57 }
 0x222   :  { %2274 = vmatpush2.msra.mxu1 %v1028_v1  ;;  %2204 = vmatprep.subr.mxu0 %v765_v2 }
 0x223   :  { %2275 = vmatprep.subr.mxu1 %v1021_v4  ;;  %2205 = vmatpush2.msra.mxu0 %v764_v5 }
 0x224   :  { %2276 = vmatpush2.msra.mxu1 %v1020_v6  ;;  %2206 = vmatprep.subr.mxu0 %v757_v7 }
 0x225   :  { %2277 = vmatprep.subr.mxu1 %v1013_v9  ;;  %2207 = vmatpush2.msra.mxu0 %v756_v10 }
 0x226   :  { %2278 = vmatpush2.msra.mxu1 %v1012_v12  ;;  %2208 = vmatprep.subr.mxu0 %v749_v13 }
 0x227   :  { %2279 = vmatprep.subr.mxu1 %v1005_v14  ;;  %2209 = vmatpush2.msra.mxu0 %v748_v15 }
 0x228   :  { %2280 = vmatpush2.msra.mxu1 %v1004_v17  ;;  %2210 = vmatprep.subr.mxu0 %v741_v8 }
 0x229   :  { %2281 = vmatprep.subr.mxu1 %v997_v18  ;;  %2211 = vmatpush2.msra.mxu0 %v740_v19 }
 0x22a   :  { %2282 = vmatpush2.msra.mxu1 %v996_v62  ;;  %2212 = vmatprep.subr.mxu0 %v733_v22 }
 0x22b   :  { %2283 = vmatprep.subr.mxu1 %v989_v11  ;;  %2213 = vmatpush2.msra.mxu0 %v732_v23 }
 0x22c   :  { %2284 = vmatpush2.msra.mxu1 %v988_v24  ;;  %2214 = vmatprep.subr.mxu0 %v725_v25 }
 0x22d   :  { %2285 = vmatprep.subr.mxu1 %v981_v3  ;;  %2215 = vmatpush2.msra.mxu0 %v724_v27 }
 0x22e   :  { %2286 = vmatpush2.msra.mxu1 %v980_v28  ;;  %2216 = vmatprep.subr.mxu0 %v717_v30 }
 0x22f   :  { %2287 = vmatprep.subr.mxu1 %v973_v31  ;;  %2217 = vmatpush2.msra.mxu0 %v716_v32  ;;  %v1798_v44 = vpop.f32.mrf.mxu0 }
 0x230   :  { %2288 = vmatpush2.msra.mxu1 %v972_v33  ;;  %2218 = vmatprep.subr.mxu0 %v709_v34  ;;  %v1799_v53 = vadd.f32 %v1798_v44, %v1099_v49 }
 0x231   :  { %2289 = vmatprep.subr.mxu1 %v965_v35  ;;  %2219 = vmatpush2.msra.mxu0 %v708_v36  ;;  %v1869_v47 = vpop.f32.mrf.mxu1  ;;  %v1800_v48 = vpop.f32.mrf.mxu0 }
 0x232   :  { %2290 = vmatpush2.msra.mxu1 %v964_v37  ;;  %2220 = vmatprep.subr.mxu0 %v701_v38  ;;  %v1870_v55 = vadd.f32 %v1869_v47, %v1799_v53 }
 0x233   :  { %2291 = vmatprep.subr.mxu1 %v957_v39  ;;  %2221 = vmatpush2.msra.mxu0 %v700_v40  ;;  %v1871_v51 = vpop.f32.mrf.mxu1 }
 0x234   :  { %2222 = vmatprep.mubr.f32.mxu0 %v2612_v26  ;;  %2292 = vmatpush2.msra.mxu1 %v956_v42  ;;  %v1801_v26 = vadd.f32 %v1800_v48, %v1103_v46 }
 0x235   :  { %2293 = vmatprep.mubr.f32.mxu1 %v2616_v29  ;;  %2223 = vmatmul.mubr.f32.vlgmr.msra.gmra.mxu0 %v2605_v16 }
 0x236   :  { %2294 = vmatmul.mubr.f32.vlgmr.msra.gmra.mxu1 %v2608_v21  ;;  %v1872_v16 = vadd.f32 %v1871_v51, %v1801_v26  ;;  %v1106_v21 = vsub.s32 6, %v2581_v41 }
 0x238   :  { %v1107_v61 = vrot.slane %v2639_v20, %v1106_v21 }
 0x271   :  { %v1940_v50 = vpop.f32.mrf.mxu0 }
 0x272   :  { %v1941_v60 = vadd.f32 %v1940_v50, %v1870_v55 }
 0x273   :  { %v2011_v29 = vpop.f32.mrf.mxu1  ;;  %v1942_v54 = vpop.f32.mrf.mxu0 }
 0x274   :  { %v1943_v56 = vadd.f32 %v1942_v54, %v1872_v16  ;;  %v2012_v4 = vadd.f32 %v2011_v29, %v1941_v60 }
 0x275   :  { %v2013_v58 = vpop.f32.mrf.mxu1 }
 0x276   :  { %v2014_v63 = vadd.f32 %v2013_v58, %v1943_v56  ;;  %v2414_v10 = vmul.f32 -1.442695, %v2012_v4 }
 0x278   :  { %v2415_v6 = vmul.f32 -1.442695, %v2014_v63 }
 0x27a   :  { %2443 = vpow2.f32 %v2415_v6 }
 0x27b   :  { %2445 = vpow2.f32 %v2414_v10 }
 0x287   :  { %v2444_v11 = vpop.eup %2443 }
 0x288   :  { %v2446_v23 = vpop.eup %2445  ;;  %v2329_v24 = vadd.f32 1.0, %v2444_v11 }
 0x289   :  { %v2328_v25 = vadd.f32 1.0, %v2446_v23 }
 0x2b3   :  { %v2082_v59 = vpop.f32.mrf.mxu0 }
 0x2b4   :  { %v2083_v5 = vadd.f32 %v2082_v59, %v1107_v61 }
 0x2b5   :  { %v2153_v1 = vpop.f32.mrf.mxu1  ;;  %v2084_v2 = vpop.f32.mrf.mxu0 }
 0x2b6   :  { %v2085_v7 = vadd.f32 %v2084_v2, %v1111_v0  ;;  %v2154_v12 = vadd.f32 %v2153_v1, %v2083_v5 }
 0x2b7   :  { %v2155_v9 = vpop.f32.mrf.mxu1 }
 0x2b8   :  { %v2156_v41 = vadd.f32 %v2155_v9, %v2085_v7 }
 0x2f5   :  { %v2224_v13 = vpop.f32.mrf.mxu0 }
 0x2f6   :  { %v2295_v14 = vpop.f32.mrf.mxu1  ;;  %v2225_v15 = vadd.f32 %v2224_v13, %v2154_v12 }
 0x2f7   :  { %v2226_v17 = vpop.f32.mrf.mxu0 }
 0x2f8   :  { %v2296_v8 = vadd.f32 %v2295_v14, %v2225_v15  ;;  %v2227_v18 = vadd.f32 %v2226_v17, %v2156_v41  ;;  %v2297_v19 = vpop.f32.mrf.mxu1 }
 0x2fa   :  { %v2416_v20 = vmul.f32 -1.442695, %v2296_v8  ;;  %v2298_v62 = vadd.f32 %v2297_v19, %v2227_v18 }
 0x2fc   :  { %2447 = vpow2.f32 %v2416_v20  ;;  %v2417_v22 = vmul.f32 -1.442695, %v2298_v62 }
 0x2fe   :  { %2449 = vpow2.f32 %v2417_v22 }
 0x2ff   :  { %2451 = vrcp.f32 %v2329_v24 }
 0x300   :  { %2453 = vrcp.f32 %v2328_v25 }
 0x309   :  { %v2448_v3 = vpop.eup %2447 }
 0x30a   :  { %v2330_v27 = vadd.f32 1.0, %v2448_v3 }
 0x30b   :  { %v2450_v28 = vpop.eup %2449 }
 0x30c   :  { %v2331_v30 = vadd.f32 1.0, %v2450_v28  ;;  %2455 = vrcp.f32 %v2330_v27  ;;  %v2452_v31 = vpop.eup %2451 }
 0x30d   :  { %v2454_v32 = vpop.eup %2453 }
 0x30e   :  { %2457 = vrcp.f32 %v2331_v30  ;;  %v2373_v34 = vcombine.low %v2454_v32, %v2452_v31 }
 0x310   :  { %v2381_v37 = vrot.slane %v2373_v34, %v2584_v52 }
 0x319   :  { %v2456_v33 = vpop.eup %2455 }
 0x31b   :  { %v2458_v35 = vpop.eup %2457 }
 0x31c   :  { %v2374_v36 = vcombine.low %v2456_v33, %v2458_v35 }
 0x31e   :  { %v2388_v38 = vrot.slane %v2374_v36, %v2584_v52 }
 0x320   :  { %v2389_v39 = vcombine.low %v2381_v37, %v2388_v38 }
 0x322   :  { %2393 = vst [vmem:[#allocation8 + $0x8] sm:$0xff] %v2389_v39 }
 0x323   :  { %2530 = shalt.err (!%p2527_p5)
}
 0x324   :  { %2403 = dma.vmem_to_hbm [thread:$0]  %s2401_s2, 256, %s2674_s3, [#allocation4]  }
 0x325   :  { %2543 = dma.done.wait [#allocation4], 256  }
 0x326   :  { %2544 = vsyncadd [#allocation4], 4294967040 }
 0x327   :  { %2407 = vsyncpa [#allocation3], 1 }
 0x328   :  { %2408 = vsyncpa [#allocation6], 1 }
 0x329   :  { %2409 = vsyncpa [#allocation4], 1 }

</bundles_post_ra>
